<compile_context>
chip_gen: v6e
topology: v6e:2x2x1
jax: 0.10.0
libtpu: 0.0.40
codegen_flags: <defaults>
</compile_context>

<pallas_src>
import jax
import jax.numpy as jnp
import numpy as np
from jax import lax
from jax.experimental import pallas as pl
from jax.experimental.pallas import tpu as pltpu


def _round_up(x, m):
    return (x + m - 1) // m * m


# --------------------------- VMEM budgeting helpers ---------------------------

def _vmem_cap_bytes():
    """Physical per-TensorCore VMEM; conservatively default to v7x (64 MiB)."""
    try:
        return int(pltpu.get_tpu_info().vmem_capacity_bytes)
    except Exception:
        return 64 << 20


def _vmem_need_bytes(Tc, Bp, DF, DH, G, has_hidden):
    f = 4  # f32
    streamed = 2 * Tc * Bp * (DF + DH)                   # emb-in + hid-out blocks, double-buffered
    resident = 2 * (DF * G + DH * G + G + 2 * Bp * DH)   # weights/bias + hT/cT (x2, conservative)
    if has_hidden:
        resident += 2 * 2 * Bp * DH
    scratch = 2 * Bp * DH + Tc * Bp * G                  # h/c state + per-chunk input projection
    return (streamed + resident + scratch) * f


def _pick_time_chunk(T, Bp, DF, DH, G, has_hidden):
    budget = max((_vmem_cap_bytes() - (8 << 20)) * 3 // 4, 4 << 20)
    n_chunks = pl.cdiv(T, 32)
    Tc = pl.cdiv(T, n_chunks)          # <= 32 steps/chunk, minimal tail padding
    while Tc > 1 and _vmem_need_bytes(Tc, Bp, DF, DH, G, has_hidden) > budget:
        Tc = pl.cdiv(Tc, 2)
    return max(Tc, 1)


# ----------------------- fused bidirectional LSTM kernel -----------------------

def _make_lstm_kernel(Tc, T, has_hidden):
    """Kernel processing Tc timesteps (both directions, block-diagonal weights)
    per grid step.  h/c state lives in VMEM scratch across grid steps."""

    def kernel(*refs):
        if has_hidden:
            (emb_ref, wih_ref, whh_ref, bias_ref, h0_ref, c0_ref,
             out_ref, hT_ref, cT_ref, h_sc, c_sc, xw_sc) = refs
        else:
            (emb_ref, wih_ref, whh_ref, bias_ref,
             out_ref, hT_ref, cT_ref, h_sc, c_sc, xw_sc) = refs

        ci = pl.program_id(0)
        Tc_, Bp_, DF_ = emb_ref.shape
        G = xw_sc.shape[-1]
        DH = G // 4                         # lane width of one gate group [dir0|dir1]

        @pl.when(ci == 0)
        def _init():
            if has_hidden:
                h_sc[...] = h0_ref[...]
                c_sc[...] = c0_ref[...]
            else:
                h_sc[...] = jnp.zeros_like(h_sc)
                c_sc[...] = jnp.zeros_like(c_sc)

        # Chunk-parallel input projection for BOTH directions in one MXU GEMM
        # (block-diagonal W_ih, bias folded in); lives in VMEM scratch.
        x2d = emb_ref[...].reshape(Tc_ * Bp_, DF_)
        xw = jnp.dot(x2d, wih_ref[...], preferred_element_type=jnp.float32)
        xw_sc[...] = (xw + bias_ref[...]).reshape(Tc_, Bp_, G)

        t0 = ci * Tc

        def step(tc, carry):
            h_prev = h_sc[...]
            c_prev = c_sc[...]
            # One (Bp, 2Hp) @ (2Hp, 8Hp) block-diagonal matmul covers both
            # directions' recurrent projections.
            gates = xw_sc[tc] + jnp.dot(h_prev, whh_ref[...],
                                        preferred_element_type=jnp.float32)
            # Gate layout: [i | f | g | o], each DH (= [dir0 | dir1]) lanes wide.
            i = jax.nn.sigmoid(gates[:, 0 * DH:1 * DH])
            f = jax.nn.sigmoid(gates[:, 1 * DH:2 * DH])
            g = jnp.tanh(gates[:, 2 * DH:3 * DH])
            o = jax.nn.sigmoid(gates[:, 3 * DH:4 * DH])
            c_new = f * c_prev + i * g
            h_new = o * jnp.tanh(c_new)
            if T % Tc != 0:                  # mask padded tail timesteps
                valid = (t0 + tc) < T
                h_new = jnp.where(valid, h_new, h_prev)
                c_new = jnp.where(valid, c_new, c_prev)
            h_sc[...] = h_new
            c_sc[...] = c_new
            out_ref[tc] = h_new
            return carry

        lax.fori_loop(0, Tc, step, 0, unroll=True)

        @pl.when(ci == pl.num_programs(0) - 1)
        def _final():
            hT_ref[...] = h_sc[...]
            cT_ref[...] = c_sc[...]

    return kernel


def _lstm_recurrence(emb_cat, wih, whh, bias, h0, c0, *, Tc, T):
    """Fused (forward + backward) LSTM over a direction-interleaved input.

    emb_cat : (Tp, Bp, D*E)  f32   [emb_fwd(t) | emb_bwd(t)=emb[T-1-t]]
    wih     : (D*E, 4*D*Hp)  f32   block-diagonal W_ih^T (gate-major columns)
    whh     : (D*Hp, 4*D*Hp) f32   block-diagonal W_hh^T
    bias    : (1, 4*D*Hp)    f32   b_ih + b_hh (gate-major, zero padded)
    h0, c0  : (Bp, D*Hp) or None
    Returns out (Tp, Bp, D*Hp) (dir0 forward-time, dir1 reversed-time),
            hT, cT (Bp, D*Hp).
    """
    Tp, Bp, DF = emb_cat.shape
    DH, G = whh.shape
    num_chunks = Tp // Tc
    has_hidden = h0 is not None

    in_specs = [
        pl.BlockSpec((Tc, Bp, DF), lambda c: (c, 0, 0)),   # streamed emb chunk
        pl.BlockSpec((DF, G), lambda c: (0, 0)),           # W_ih (resident)
        pl.BlockSpec((DH, G), lambda c: (0, 0)),           # W_hh (resident)
        pl.BlockSpec((1, G), lambda c: (0, 0)),            # bias (resident)
    ]
    args = [emb_cat, wih, whh, bias]
    if has_hidden:
        in_specs += [pl.BlockSpec((Bp, DH), lambda c: (0, 0)),
                     pl.BlockSpec((Bp, DH), lambda c: (0, 0))]
        args += [h0, c0]

    out_specs = (
        pl.BlockSpec((Tc, Bp, DH), lambda c: (c, 0, 0)),   # hidden per step (both dirs)
        pl.BlockSpec((Bp, DH), lambda c: (0, 0)),          # final h
        pl.BlockSpec((Bp, DH), lambda c: (0, 0)),          # final c
    )
    out_shape = (
        jax.ShapeDtypeStruct((Tp, Bp, DH), jnp.float32),
        jax.ShapeDtypeStruct((Bp, DH), jnp.float32),
        jax.ShapeDtypeStruct((Bp, DH), jnp.float32),
    )

    need = _vmem_need_bytes(Tc, Bp, DF, DH, G, has_hidden)
    cap = _vmem_cap_bytes()
    vmem_limit = int(min(max(need + (2 << 20), 8 << 20),
                         max(cap - (8 << 20), 8 << 20)))

    out, hT, cT = pl.pallas_call(
        _make_lstm_kernel(Tc, T, has_hidden),
        grid=(num_chunks,),
        in_specs=in_specs,
        out_specs=out_specs,
        out_shape=out_shape,
        scratch_shapes=[pltpu.VMEM((Bp, DH), jnp.float32),     # h state
                        pltpu.VMEM((Bp, DH), jnp.float32),     # c state
                        pltpu.VMEM((Tc, Bp, G), jnp.float32)], # chunk input projection
        compiler_params=pltpu.CompilerParams(
            dimension_semantics=("arbitrary",),   # recurrence is sequential in time
            vmem_limit_bytes=vmem_limit),
    )(*args)
    return out, hT, cT


# ------------------------------ RNNEncoder wrapper ------------------------------

class RNNEncoderPallas:
    """JAX/Pallas equivalent of table.Models.RNNEncoder (eval mode).

    rnn_type='LSTM', num_layers=1, dropout=0, dropout_i=0, dropword=0,
    weight_dropout=0, ent_embedding=None.
    """

    def __init__(self, vocab_size, emb_dim, hidden_size, bidirectional, key):
        D = 2 if bidirectional else 1
        assert hidden_size % D == 0
        self.bidirectional = bidirectional
        self.num_directions = D
        self.hidden_size = hidden_size
        self.emb_dim = emb_dim
        self.h_dir = H = hidden_size // D
        self.h_pad = Hp = max(128, _round_up(H, 128))      # lane-aligned gate blocks

        ks = jax.random.split(key, 1 + 4 * D)
        # Embedding table ~ N(0, 1) like nn.Embedding default.
        self.embedding = jax.random.normal(ks[0], (vocab_size, emb_dim),
                                           dtype=jnp.float32)

        k = 1.0 / np.sqrt(H)
        self.params = []     # raw PyTorch-layout params (for the reference)
        for d in range(D):
            kk = ks[1 + 4 * d: 1 + 4 * (d + 1)]
            w_ih = jax.random.uniform(kk[0], (4 * H, emb_dim),
                                      minval=-k, maxval=k, dtype=jnp.float32)
            w_hh = jax.random.uniform(kk[1], (4 * H, H),
                                      minval=-k, maxval=k, dtype=jnp.float32)
            b_ih = jax.random.uniform(kk[2], (4 * H,),
                                      minval=-k, maxval=k, dtype=jnp.float32)
            b_hh = jax.random.uniform(kk[3], (4 * H,),
                                      minval=-k, maxval=k, dtype=jnp.float32)
            self.params.append((w_ih, w_hh, b_ih, b_hh))

        # Pack weights block-diagonally, lane-aligned.
        # Column layout (4*D*Hp lanes): [i_f|i_b | f_f|f_b | g_f|g_b | o_f|o_b],
        # each sub-block Hp wide (zero-padded beyond H).  The hidden/cell state
        # is laid out as [h_f | h_b] over D*Hp lanes.
        E, DH, G = emb_dim, D * Hp, 4 * D * Hp
        wih_bd = np.zeros((D * E, G), np.float32)
        whh_bd = np.zeros((DH, G), np.float32)
        bias_bd = np.zeros((1, G), np.float32)
        for d in range(D):
            w_ih, w_hh, b_ih, b_hh = [np.asarray(p) for p in self.params[d]]
            b = b_ih + b_hh
            for g in range(4):                      # PyTorch gate order i, f, g, o
                col = g * DH + d * Hp
                wih_bd[d * E:(d + 1) * E, col:col + H] = w_ih[g * H:(g + 1) * H, :].T
                whh_bd[d * Hp:d * Hp + H, col:col + H] = w_hh[g * H:(g + 1) * H, :].T
                bias_bd[0, col:col + H] = b[g * H:(g + 1) * H]
        self.wih_bd = jnp.asarray(wih_bd)
        self.whh_bd = jnp.asarray(whh_bd)
        self.bias_bd = jnp.asarray(bias_bd)

    def _pack_state(self, s, B, Bp):
        """(D, B, H) PyTorch state -> (Bp, D*Hp) lane-concatenated, zero-padded."""
        D, H, Hp = self.num_directions, self.h_dir, self.h_pad
        s = jnp.asarray(s, jnp.float32)
        assert s.shape == (D, B, H), f"expected state shape {(D, B, H)}, got {s.shape}"
        s = jnp.transpose(s, (1, 0, 2))                           # (B, D, H)
        s = jnp.pad(s, ((0, Bp - B), (0, 0), (0, Hp - H)))        # (Bp, D, Hp)
        return s.reshape(Bp, D * Hp)

    def __call__(self, tokens, lengths=None, hidden=None):
        # tokens: (T, B) int32, seq-first (PyTorch nn.LSTM batch_first=False).
        # TODO(synk): pack_padded_sequence semantics are only reproduced for
        # full-length sequences (lengths[i] == T for every batch element).
        T, B = tokens.shape
        D, H, Hp = self.num_directions, self.h_dir, self.h_pad
        DH = D * Hp
        Bp = max(8, _round_up(B, 8))

        emb = self.embedding[tokens]                  # (T, B, E) - gather glue
        # word_dropout (dropout_i) / dropword are identity in eval mode.

        # Pre-interleave directions on the feature axis (backward stream already
        # time-reversed) so the kernel streams ONE input per chunk and its input
        # projection is a single block-diagonal GEMM.
        streams = [emb]
        if D == 2:
            streams.append(emb[::-1])
        emb_cat = jnp.concatenate(streams, axis=-1)   # (T, B, D*E)
        DF = emb_cat.shape[-1]

        Tc = _pick_time_chunk(T, Bp, DF, DH, 4 * DH, hidden is not None)
        Tp = pl.cdiv(T, Tc) * Tc
        emb_cat = jnp.pad(emb_cat, ((0, Tp - T), (0, Bp - B), (0, 0)))

        h0 = c0 = None
        if hidden is not None:
            h_all, c_all = hidden
            h0 = self._pack_state(h_all, B, Bp)
            c0 = self._pack_state(c_all, B, Bp)

        out, hT, cT = _lstm_recurrence(emb_cat, self.wih_bd, self.whh_bd,
                                       self.bias_bd, h0, c0, Tc=Tc, T=T)

        out_f = out[:T, :B, 0:H]
        if D == 2:
            out_b = out[:T, :B, Hp:Hp + H][::-1]      # back to forward time order
            outputs = jnp.concatenate([out_f, out_b], axis=-1)   # (T, B, 2*Hdir)
        else:
            outputs = out_f
        h_n = jnp.stack([hT[:B, d * Hp:d * Hp + H] for d in range(D)], axis=0)
        c_n = jnp.stack([cT[:B, d * Hp:d * Hp + H] for d in range(D)], axis=0)
        return (h_n, c_n), outputs


# ------------------------------ pure-JAX reference ------------------------------

def _lstm_ref(x, w_ih, w_hh, b_ih, b_hh, h0, c0):
    T = x.shape[0]
    H = h0.shape[-1]
    h, c = h0, c0
    outs = []
    b = b_ih + b_hh
    for t in range(T):
        gates = x[t] @ w_ih.T + h @ w_hh.T + b
        i = jax.nn.sigmoid(gates[:, 0:H])
        f = jax.nn.sigmoid(gates[:, H:2 * H])
        g = jnp.tanh(gates[:, 2 * H:3 * H])
        o = jax.nn.sigmoid(gates[:, 3 * H:4 * H])
        c = f * c + i * g
        h = o * jnp.tanh(c)
        outs.append(h)
    return jnp.stack(outs), h, c


def _encoder_ref(enc, tokens):
    emb = enc.embedding[tokens]
    B = tokens.shape[1]
    h0 = jnp.zeros((B, enc.h_dir), jnp.float32)
    c0 = jnp.zeros((B, enc.h_dir), jnp.float32)
    out_f, h_f, c_f = _lstm_ref(emb, *enc.params[0], h0, c0)
    out_b_rev, h_b, c_b = _lstm_ref(emb[::-1], *enc.params[1], h0, c0)
    out_b = out_b_rev[::-1]
    outputs = jnp.concatenate([out_f, out_b], axis=-1)
    return (jnp.stack([h_f, h_b]), jnp.stack([c_f, c_b])), outputs


# ----------------------------------- main ---------------------------------------

if __name__ == "__main__":
    key = jax.random.PRNGKey(0)
    k_tok, k_param = jax.random.split(key)

    T, B = 8, 2              # seq-first (T, B) like PyTorch RNN default layout
    vocab, emb_dim = 20, 16
    hidden_size = 32         # bidirectional -> 16 per direction

    tokens = jax.random.randint(k_tok, (T, B), 0, vocab, dtype=jnp.int32)
    lengths = [T] * B        # full-length sequences (pack/unpack is a no-op)

    enc = RNNEncoderPallas(vocab, emb_dim, hidden_size,
                           bidirectional=True, key=k_param)

    (h_n, c_n), outputs = enc(tokens, lengths)
    jax.block_until_ready((h_n, c_n, outputs))

    # sanity check against the pure-JAX reference
    (h_ref, c_ref), out_ref = _encoder_ref(enc, tokens)
    assert outputs.shape == (T, B, hidden_size)
    assert h_n.shape == (2, B, hidden_size // 2)
    np.testing.assert_allclose(np.asarray(outputs), np.asarray(out_ref),
                               rtol=1e-5, atol=1e-5)
    np.testing.assert_allclose(np.asarray(h_n), np.asarray(h_ref),
                               rtol=1e-5, atol=1e-5)
    np.testing.assert_allclose(np.asarray(c_n), np.asarray(c_ref),
                               rtol=1e-5, atol=1e-5)

    print("KERNEL_OK")
</pallas_src>

<mosaic_0001>
module attributes {stable_mosaic.version = 11 : i64} {
  func.func @kernel(%arg0: i32, %arg1: memref<8x8x32xf32, #tpu.memory_space<vmem>>, %arg2: memref<32x1024xf32, #tpu.memory_space<vmem>>, %arg3: memref<256x1024xf32, #tpu.memory_space<vmem>>, %arg4: memref<1x1024xf32, #tpu.memory_space<vmem>>, %arg5: memref<8x8x256xf32, #tpu.memory_space<vmem>>, %arg6: memref<8x256xf32, #tpu.memory_space<vmem>>, %arg7: memref<8x256xf32, #tpu.memory_space<vmem>>, %arg8: memref<8x256xf32, #tpu.memory_space<vmem>>, %arg9: memref<8x256xf32, #tpu.memory_space<vmem>>, %arg10: memref<8x8x1024xf32, #tpu.memory_space<vmem>>) attributes {dimension_semantics = [#tpu.dimension_semantics<arbitrary>], iteration_bounds = array<i64: 1>, scalar_prefetch = 0 : i64, scratch_operands = 3 : i64, tpu.core_type = #tpu.core_type<tc>, window_params = [{transform_indices = @transform_0, window_bounds = array<i64: 8, 8, 32>}, {pipeline_mode = #tpu.pipeline_mode<synchronous>, transform_indices = @transform_1, window_bounds = array<i64: 32, 1024>}, {pipeline_mode = #tpu.pipeline_mode<synchronous>, transform_indices = @transform_2, window_bounds = array<i64: 256, 1024>}, {pipeline_mode = #tpu.pipeline_mode<synchronous>, transform_indices = @transform_3, window_bounds = array<i64: 1, 1024>}, {transform_indices = @transform_4, window_bounds = array<i64: 8, 8, 256>}, {pipeline_mode = #tpu.pipeline_mode<synchronous>, transform_indices = @transform_5, window_bounds = array<i64: 8, 256>}, {pipeline_mode = #tpu.pipeline_mode<synchronous>, transform_indices = @transform_6, window_bounds = array<i64: 8, 256>}]} {
    %c0_i32 = arith.constant 0 : i32
    %0 = arith.cmpi eq, %arg0, %c0_i32 : i32
    %1 = arith.extui %0 : i1 to i32
    %c0_i32_0 = arith.constant 0 : i32
    %2 = arith.cmpi ne, %1, %c0_i32_0 : i32
    scf.if %2 {
      %cst_157 = arith.constant 0.000000e+00 : f32
      %327 = vector.broadcast %cst_157 : f32 to vector<8x256xf32>
      %c0_158 = arith.constant 0 : index
      %c0_159 = arith.constant 0 : index
      %328 = vector.load %arg8[%c0_158, %c0_159] : memref<8x256xf32, #tpu.memory_space<vmem>>, vector<8x256xf32>
      tpu.vector_store %arg8[%c0_158, %c0_159], %327 {strides = array<i32>} : memref<8x256xf32, #tpu.memory_space<vmem>>, vector<8x256xf32>,
      %cst_160 = arith.constant 0.000000e+00 : f32
      %329 = vector.broadcast %cst_160 : f32 to vector<8x256xf32>
      %c0_161 = arith.constant 0 : index
      %c0_162 = arith.constant 0 : index
      %330 = vector.load %arg9[%c0_161, %c0_162] : memref<8x256xf32, #tpu.memory_space<vmem>>, vector<8x256xf32>
      tpu.vector_store %arg9[%c0_161, %c0_162], %329 {strides = array<i32>} : memref<8x256xf32, #tpu.memory_space<vmem>>, vector<8x256xf32>,
    } else {
    }
    %c0 = arith.constant 0 : index
    %c0_1 = arith.constant 0 : index
    %c0_2 = arith.constant 0 : index
    %3 = vector.load %arg1[%c0, %c0_1, %c0_2] : memref<8x8x32xf32, #tpu.memory_space<vmem>>, vector<8x8x32xf32>
    %4 = vector.shape_cast %3 : vector<8x8x32xf32> to vector<64x32xf32>
    %c0_3 = arith.constant 0 : index
    %c0_4 = arith.constant 0 : index
    %5 = vector.load %arg2[%c0_3, %c0_4] : memref<32x1024xf32, #tpu.memory_space<vmem>>, vector<32x1024xf32>
    %cst = arith.constant dense<0.000000e+00> : vector<64x1024xf32>
    %6 = tpu.matmul %4, %5, %cst {dimension_numbers = #tpu.dot_dimension_numbers<[1], [0], [0], [1], [0, 0, 1, 1], [], []>} : vector<64x32xf32>, vector<32x1024xf32>, vector<64x1024xf32> -> vector<64x1024xf32>
    %c0_5 = arith.constant 0 : index
    %c0_6 = arith.constant 0 : index
    %7 = vector.load %arg4[%c0_5, %c0_6] : memref<1x1024xf32, #tpu.memory_space<vmem>>, vector<1x1024xf32>
    %8 = vector.broadcast %7 : vector<1x1024xf32> to vector<64x1024xf32>
    %9 = arith.addf %6, %8 : vector<64x1024xf32>
    %10 = vector.shape_cast %9 : vector<64x1024xf32> to vector<8x8x1024xf32>
    %c0_7 = arith.constant 0 : index
    %c0_8 = arith.constant 0 : index
    %c0_9 = arith.constant 0 : index
    %11 = vector.load %arg10[%c0_7, %c0_8, %c0_9] : memref<8x8x1024xf32, #tpu.memory_space<vmem>>, vector<8x8x1024xf32>
    tpu.vector_store %arg10[%c0_7, %c0_8, %c0_9], %10 {strides = array<i32>} : memref<8x8x1024xf32, #tpu.memory_space<vmem>>, vector<8x8x1024xf32>,
    %c0_i32_10 = arith.constant 0 : i32
    %c0_11 = arith.constant 0 : index
    %c0_12 = arith.constant 0 : index
    %12 = vector.load %arg8[%c0_11, %c0_12] : memref<8x256xf32, #tpu.memory_space<vmem>>, vector<8x256xf32>
    %c0_13 = arith.constant 0 : index
    %c0_14 = arith.constant 0 : index
    %13 = vector.load %arg9[%c0_13, %c0_14] : memref<8x256xf32, #tpu.memory_space<vmem>>, vector<8x256xf32>
    %14 = arith.index_cast %c0_i32_10 : i32 to index
    %c0_15 = arith.constant 0 : index
    %c0_16 = arith.constant 0 : index
    %15 = vector.load %arg10[%14, %c0_15, %c0_16] : memref<8x8x1024xf32, #tpu.memory_space<vmem>>, vector<1x8x1024xf32>
    %16 = vector.shape_cast %15 : vector<1x8x1024xf32> to vector<8x1024xf32>
    %c0_17 = arith.constant 0 : index
    %c0_18 = arith.constant 0 : index
    %17 = vector.load %arg3[%c0_17, %c0_18] : memref<256x1024xf32, #tpu.memory_space<vmem>>, vector<256x1024xf32>
    %cst_19 = arith.constant dense<0.000000e+00> : vector<8x1024xf32>
    %18 = tpu.matmul %12, %17, %cst_19 {dimension_numbers = #tpu.dot_dimension_numbers<[1], [0], [0], [1], [0, 0, 1, 1], [], []>} : vector<8x256xf32>, vector<256x1024xf32>, vector<8x1024xf32> -> vector<8x1024xf32>
    %19 = arith.addf %16, %18 : vector<8x1024xf32>
    %20 = vector.extract_strided_slice %19 {offsets = [0, 0], sizes = [8, 256], strides = [1, 1]} : vector<8x1024xf32> to vector<8x256xf32>
    %21 = arith.negf %20 : vector<8x256xf32>
    %22 = math.exp %21 : vector<8x256xf32>
    %cst_20 = arith.constant 1.000000e+00 : f32
    %23 = vector.broadcast %cst_20 : f32 to vector<8x256xf32>
    %24 = arith.addf %23, %22 : vector<8x256xf32>
    %25 = arith.divf %23, %24 : vector<8x256xf32>
    %26 = vector.extract_strided_slice %19 {offsets = [0, 256], sizes = [8, 256], strides = [1, 1]} : vector<8x1024xf32> to vector<8x256xf32>
    %27 = arith.negf %26 : vector<8x256xf32>
    %28 = math.exp %27 : vector<8x256xf32>
    %cst_21 = arith.constant 1.000000e+00 : f32
    %29 = vector.broadcast %cst_21 : f32 to vector<8x256xf32>
    %30 = arith.addf %29, %28 : vector<8x256xf32>
    %31 = arith.divf %29, %30 : vector<8x256xf32>
    %32 = vector.extract_strided_slice %19 {offsets = [0, 512], sizes = [8, 256], strides = [1, 1]} : vector<8x1024xf32> to vector<8x256xf32>
    %33 = math.tanh %32 : vector<8x256xf32>
    %34 = vector.extract_strided_slice %19 {offsets = [0, 768], sizes = [8, 256], strides = [1, 1]} : vector<8x1024xf32> to vector<8x256xf32>
    %35 = arith.negf %34 : vector<8x256xf32>
    %36 = math.exp %35 : vector<8x256xf32>
    %cst_22 = arith.constant 1.000000e+00 : f32
    %37 = vector.broadcast %cst_22 : f32 to vector<8x256xf32>
    %38 = arith.addf %37, %36 : vector<8x256xf32>
    %39 = arith.divf %37, %38 : vector<8x256xf32>
    %40 = arith.mulf %31, %13 : vector<8x256xf32>
    %41 = arith.mulf %25, %33 : vector<8x256xf32>
    %42 = arith.addf %40, %41 : vector<8x256xf32>
    %43 = math.tanh %42 : vector<8x256xf32>
    %44 = arith.mulf %39, %43 : vector<8x256xf32>
    %c0_23 = arith.constant 0 : index
    %c0_24 = arith.constant 0 : index
    %45 = vector.load %arg8[%c0_23, %c0_24] : memref<8x256xf32, #tpu.memory_space<vmem>>, vector<8x256xf32>
    tpu.vector_store %arg8[%c0_23, %c0_24], %44 {strides = array<i32>} : memref<8x256xf32, #tpu.memory_space<vmem>>, vector<8x256xf32>,
    %c0_25 = arith.constant 0 : index
    %c0_26 = arith.constant 0 : index
    %46 = vector.load %arg9[%c0_25, %c0_26] : memref<8x256xf32, #tpu.memory_space<vmem>>, vector<8x256xf32>
    tpu.vector_store %arg9[%c0_25, %c0_26], %42 {strides = array<i32>} : memref<8x256xf32, #tpu.memory_space<vmem>>, vector<8x256xf32>,
    %47 = arith.index_cast %c0_i32_10 : i32 to index
    %c0_27 = arith.constant 0 : index
    %c0_28 = arith.constant 0 : index
    %48 = vector.load %arg5[%47, %c0_27, %c0_28] : memref<8x8x256xf32, #tpu.memory_space<vmem>>, vector<1x8x256xf32>
    %49 = vector.shape_cast %48 : vector<1x8x256xf32> to vector<8x256xf32>
    %50 = vector.shape_cast %44 : vector<8x256xf32> to vector<1x8x256xf32>
    tpu.vector_store %arg5[%47, %c0_27, %c0_28], %50 {strides = array<i32>} : memref<8x8x256xf32, #tpu.memory_space<vmem>>, vector<1x8x256xf32>,
    %c1_i32 = arith.constant 1 : i32
    %c0_29 = arith.constant 0 : index
    %c0_30 = arith.constant 0 : index
    %51 = vector.load %arg8[%c0_29, %c0_30] : memref<8x256xf32, #tpu.memory_space<vmem>>, vector<8x256xf32>
    %c0_31 = arith.constant 0 : index
    %c0_32 = arith.constant 0 : index
    %52 = vector.load %arg9[%c0_31, %c0_32] : memref<8x256xf32, #tpu.memory_space<vmem>>, vector<8x256xf32>
    %53 = arith.index_cast %c1_i32 : i32 to index
    %c0_33 = arith.constant 0 : index
    %c0_34 = arith.constant 0 : index
    %54 = vector.load %arg10[%53, %c0_33, %c0_34] : memref<8x8x1024xf32, #tpu.memory_space<vmem>>, vector<1x8x1024xf32>
    %55 = vector.shape_cast %54 : vector<1x8x1024xf32> to vector<8x1024xf32>
    %c0_35 = arith.constant 0 : index
    %c0_36 = arith.constant 0 : index
    %56 = vector.load %arg3[%c0_35, %c0_36] : memref<256x1024xf32, #tpu.memory_space<vmem>>, vector<256x1024xf32>
    %cst_37 = arith.constant dense<0.000000e+00> : vector<8x1024xf32>
    %57 = tpu.matmul %51, %56, %cst_37 {dimension_numbers = #tpu.dot_dimension_numbers<[1], [0], [0], [1], [0, 0, 1, 1], [], []>} : vector<8x256xf32>, vector<256x1024xf32>, vector<8x1024xf32> -> vector<8x1024xf32>
    %58 = arith.addf %55, %57 : vector<8x1024xf32>
    %59 = vector.extract_strided_slice %58 {offsets = [0, 0], sizes = [8, 256], strides = [1, 1]} : vector<8x1024xf32> to vector<8x256xf32>
    %60 = arith.negf %59 : vector<8x256xf32>
    %61 = math.exp %60 : vector<8x256xf32>
    %cst_38 = arith.constant 1.000000e+00 : f32
    %62 = vector.broadcast %cst_38 : f32 to vector<8x256xf32>
    %63 = arith.addf %62, %61 : vector<8x256xf32>
    %64 = arith.divf %62, %63 : vector<8x256xf32>
    %65 = vector.extract_strided_slice %58 {offsets = [0, 256], sizes = [8, 256], strides = [1, 1]} : vector<8x1024xf32> to vector<8x256xf32>
    %66 = arith.negf %65 : vector<8x256xf32>
    %67 = math.exp %66 : vector<8x256xf32>
    %cst_39 = arith.constant 1.000000e+00 : f32
    %68 = vector.broadcast %cst_39 : f32 to vector<8x256xf32>
    %69 = arith.addf %68, %67 : vector<8x256xf32>
    %70 = arith.divf %68, %69 : vector<8x256xf32>
    %71 = vector.extract_strided_slice %58 {offsets = [0, 512], sizes = [8, 256], strides = [1, 1]} : vector<8x1024xf32> to vector<8x256xf32>
    %72 = math.tanh %71 : vector<8x256xf32>
    %73 = vector.extract_strided_slice %58 {offsets = [0, 768], sizes = [8, 256], strides = [1, 1]} : vector<8x1024xf32> to vector<8x256xf32>
    %74 = arith.negf %73 : vector<8x256xf32>
    %75 = math.exp %74 : vector<8x256xf32>
    %cst_40 = arith.constant 1.000000e+00 : f32
    %76 = vector.broadcast %cst_40 : f32 to vector<8x256xf32>
    %77 = arith.addf %76, %75 : vector<8x256xf32>
    %78 = arith.divf %76, %77 : vector<8x256xf32>
    %79 = arith.mulf %70, %52 : vector<8x256xf32>
    %80 = arith.mulf %64, %72 : vector<8x256xf32>
    %81 = arith.addf %79, %80 : vector<8x256xf32>
    %82 = math.tanh %81 : vector<8x256xf32>
    %83 = arith.mulf %78, %82 : vector<8x256xf32>
    %c0_41 = arith.constant 0 : index
    %c0_42 = arith.constant 0 : index
    %84 = vector.load %arg8[%c0_41, %c0_42] : memref<8x256xf32, #tpu.memory_space<vmem>>, vector<8x256xf32>
    tpu.vector_store %arg8[%c0_41, %c0_42], %83 {strides = array<i32>} : memref<8x256xf32, #tpu.memory_space<vmem>>, vector<8x256xf32>,
    %c0_43 = arith.constant 0 : index
    %c0_44 = arith.constant 0 : index
    %85 = vector.load %arg9[%c0_43, %c0_44] : memref<8x256xf32, #tpu.memory_space<vmem>>, vector<8x256xf32>
    tpu.vector_store %arg9[%c0_43, %c0_44], %81 {strides = array<i32>} : memref<8x256xf32, #tpu.memory_space<vmem>>, vector<8x256xf32>,
    %86 = arith.index_cast %c1_i32 : i32 to index
    %c0_45 = arith.constant 0 : index
    %c0_46 = arith.constant 0 : index
    %87 = vector.load %arg5[%86, %c0_45, %c0_46] : memref<8x8x256xf32, #tpu.memory_space<vmem>>, vector<1x8x256xf32>
    %88 = vector.shape_cast %87 : vector<1x8x256xf32> to vector<8x256xf32>
    %89 = vector.shape_cast %83 : vector<8x256xf32> to vector<1x8x256xf32>
    tpu.vector_store %arg5[%86, %c0_45, %c0_46], %89 {strides = array<i32>} : memref<8x8x256xf32, #tpu.memory_space<vmem>>, vector<1x8x256xf32>,
    %c2_i32 = arith.constant 2 : i32
    %c0_47 = arith.constant 0 : index
    %c0_48 = arith.constant 0 : index
    %90 = vector.load %arg8[%c0_47, %c0_48] : memref<8x256xf32, #tpu.memory_space<vmem>>, vector<8x256xf32>
    %c0_49 = arith.constant 0 : index
    %c0_50 = arith.constant 0 : index
    %91 = vector.load %arg9[%c0_49, %c0_50] : memref<8x256xf32, #tpu.memory_space<vmem>>, vector<8x256xf32>
    %92 = arith.index_cast %c2_i32 : i32 to index
    %c0_51 = arith.constant 0 : index
    %c0_52 = arith.constant 0 : index
    %93 = vector.load %arg10[%92, %c0_51, %c0_52] : memref<8x8x1024xf32, #tpu.memory_space<vmem>>, vector<1x8x1024xf32>
    %94 = vector.shape_cast %93 : vector<1x8x1024xf32> to vector<8x1024xf32>
    %c0_53 = arith.constant 0 : index
    %c0_54 = arith.constant 0 : index
    %95 = vector.load %arg3[%c0_53, %c0_54] : memref<256x1024xf32, #tpu.memory_space<vmem>>, vector<256x1024xf32>
    %cst_55 = arith.constant dense<0.000000e+00> : vector<8x1024xf32>
    %96 = tpu.matmul %90, %95, %cst_55 {dimension_numbers = #tpu.dot_dimension_numbers<[1], [0], [0], [1], [0, 0, 1, 1], [], []>} : vector<8x256xf32>, vector<256x1024xf32>, vector<8x1024xf32> -> vector<8x1024xf32>
    %97 = arith.addf %94, %96 : vector<8x1024xf32>
    %98 = vector.extract_strided_slice %97 {offsets = [0, 0], sizes = [8, 256], strides = [1, 1]} : vector<8x1024xf32> to vector<8x256xf32>
    %99 = arith.negf %98 : vector<8x256xf32>
    %100 = math.exp %99 : vector<8x256xf32>
    %cst_56 = arith.constant 1.000000e+00 : f32
    %101 = vector.broadcast %cst_56 : f32 to vector<8x256xf32>
    %102 = arith.addf %101, %100 : vector<8x256xf32>
    %103 = arith.divf %101, %102 : vector<8x256xf32>
    %104 = vector.extract_strided_slice %97 {offsets = [0, 256], sizes = [8, 256], strides = [1, 1]} : vector<8x1024xf32> to vector<8x256xf32>
    %105 = arith.negf %104 : vector<8x256xf32>
    %106 = math.exp %105 : vector<8x256xf32>
    %cst_57 = arith.constant 1.000000e+00 : f32
    %107 = vector.broadcast %cst_57 : f32 to vector<8x256xf32>
    %108 = arith.addf %107, %106 : vector<8x256xf32>
    %109 = arith.divf %107, %108 : vector<8x256xf32>
    %110 = vector.extract_strided_slice %97 {offsets = [0, 512], sizes = [8, 256], strides = [1, 1]} : vector<8x1024xf32> to vector<8x256xf32>
    %111 = math.tanh %110 : vector<8x256xf32>
    %112 = vector.extract_strided_slice %97 {offsets = [0, 768], sizes = [8, 256], strides = [1, 1]} : vector<8x1024xf32> to vector<8x256xf32>
    %113 = arith.negf %112 : vector<8x256xf32>
    %114 = math.exp %113 : vector<8x256xf32>
    %cst_58 = arith.constant 1.000000e+00 : f32
    %115 = vector.broadcast %cst_58 : f32 to vector<8x256xf32>
    %116 = arith.addf %115, %114 : vector<8x256xf32>
    %117 = arith.divf %115, %116 : vector<8x256xf32>
    %118 = arith.mulf %109, %91 : vector<8x256xf32>
    %119 = arith.mulf %103, %111 : vector<8x256xf32>
    %120 = arith.addf %118, %119 : vector<8x256xf32>
    %121 = math.tanh %120 : vector<8x256xf32>
    %122 = arith.mulf %117, %121 : vector<8x256xf32>
    %c0_59 = arith.constant 0 : index
    %c0_60 = arith.constant 0 : index
    %123 = vector.load %arg8[%c0_59, %c0_60] : memref<8x256xf32, #tpu.memory_space<vmem>>, vector<8x256xf32>
    tpu.vector_store %arg8[%c0_59, %c0_60], %122 {strides = array<i32>} : memref<8x256xf32, #tpu.memory_space<vmem>>, vector<8x256xf32>,
    %c0_61 = arith.constant 0 : index
    %c0_62 = arith.constant 0 : index
    %124 = vector.load %arg9[%c0_61, %c0_62] : memref<8x256xf32, #tpu.memory_space<vmem>>, vector<8x256xf32>
    tpu.vector_store %arg9[%c0_61, %c0_62], %120 {strides = array<i32>} : memref<8x256xf32, #tpu.memory_space<vmem>>, vector<8x256xf32>,
    %125 = arith.index_cast %c2_i32 : i32 to index
    %c0_63 = arith.constant 0 : index
    %c0_64 = arith.constant 0 : index
    %126 = vector.load %arg5[%125, %c0_63, %c0_64] : memref<8x8x256xf32, #tpu.memory_space<vmem>>, vector<1x8x256xf32>
    %127 = vector.shape_cast %126 : vector<1x8x256xf32> to vector<8x256xf32>
    %128 = vector.shape_cast %122 : vector<8x256xf32> to vector<1x8x256xf32>
    tpu.vector_store %arg5[%125, %c0_63, %c0_64], %128 {strides = array<i32>} : memref<8x8x256xf32, #tpu.memory_space<vmem>>, vector<1x8x256xf32>,
    %c3_i32 = arith.constant 3 : i32
    %c0_65 = arith.constant 0 : index
    %c0_66 = arith.constant 0 : index
    %129 = vector.load %arg8[%c0_65, %c0_66] : memref<8x256xf32, #tpu.memory_space<vmem>>, vector<8x256xf32>
    %c0_67 = arith.constant 0 : index
    %c0_68 = arith.constant 0 : index
    %130 = vector.load %arg9[%c0_67, %c0_68] : memref<8x256xf32, #tpu.memory_space<vmem>>, vector<8x256xf32>
    %131 = arith.index_cast %c3_i32 : i32 to index
    %c0_69 = arith.constant 0 : index
    %c0_70 = arith.constant 0 : index
    %132 = vector.load %arg10[%131, %c0_69, %c0_70] : memref<8x8x1024xf32, #tpu.memory_space<vmem>>, vector<1x8x1024xf32>
    %133 = vector.shape_cast %132 : vector<1x8x1024xf32> to vector<8x1024xf32>
    %c0_71 = arith.constant 0 : index
    %c0_72 = arith.constant 0 : index
    %134 = vector.load %arg3[%c0_71, %c0_72] : memref<256x1024xf32, #tpu.memory_space<vmem>>, vector<256x1024xf32>
    %cst_73 = arith.constant dense<0.000000e+00> : vector<8x1024xf32>
    %135 = tpu.matmul %129, %134, %cst_73 {dimension_numbers = #tpu.dot_dimension_numbers<[1], [0], [0], [1], [0, 0, 1, 1], [], []>} : vector<8x256xf32>, vector<256x1024xf32>, vector<8x1024xf32> -> vector<8x1024xf32>
    %136 = arith.addf %133, %135 : vector<8x1024xf32>
    %137 = vector.extract_strided_slice %136 {offsets = [0, 0], sizes = [8, 256], strides = [1, 1]} : vector<8x1024xf32> to vector<8x256xf32>
    %138 = arith.negf %137 : vector<8x256xf32>
    %139 = math.exp %138 : vector<8x256xf32>
    %cst_74 = arith.constant 1.000000e+00 : f32
    %140 = vector.broadcast %cst_74 : f32 to vector<8x256xf32>
    %141 = arith.addf %140, %139 : vector<8x256xf32>
    %142 = arith.divf %140, %141 : vector<8x256xf32>
    %143 = vector.extract_strided_slice %136 {offsets = [0, 256], sizes = [8, 256], strides = [1, 1]} : vector<8x1024xf32> to vector<8x256xf32>
    %144 = arith.negf %143 : vector<8x256xf32>
    %145 = math.exp %144 : vector<8x256xf32>
    %cst_75 = arith.constant 1.000000e+00 : f32
    %146 = vector.broadcast %cst_75 : f32 to vector<8x256xf32>
    %147 = arith.addf %146, %145 : vector<8x256xf32>
    %148 = arith.divf %146, %147 : vector<8x256xf32>
    %149 = vector.extract_strided_slice %136 {offsets = [0, 512], sizes = [8, 256], strides = [1, 1]} : vector<8x1024xf32> to vector<8x256xf32>
    %150 = math.tanh %149 : vector<8x256xf32>
    %151 = vector.extract_strided_slice %136 {offsets = [0, 768], sizes = [8, 256], strides = [1, 1]} : vector<8x1024xf32> to vector<8x256xf32>
    %152 = arith.negf %151 : vector<8x256xf32>
    %153 = math.exp %152 : vector<8x256xf32>
    %cst_76 = arith.constant 1.000000e+00 : f32
    %154 = vector.broadcast %cst_76 : f32 to vector<8x256xf32>
    %155 = arith.addf %154, %153 : vector<8x256xf32>
    %156 = arith.divf %154, %155 : vector<8x256xf32>
    %157 = arith.mulf %148, %130 : vector<8x256xf32>
    %158 = arith.mulf %142, %150 : vector<8x256xf32>
    %159 = arith.addf %157, %158 : vector<8x256xf32>
    %160 = math.tanh %159 : vector<8x256xf32>
    %161 = arith.mulf %156, %160 : vector<8x256xf32>
    %c0_77 = arith.constant 0 : index
    %c0_78 = arith.constant 0 : index
    %162 = vector.load %arg8[%c0_77, %c0_78] : memref<8x256xf32, #tpu.memory_space<vmem>>, vector<8x256xf32>
    tpu.vector_store %arg8[%c0_77, %c0_78], %161 {strides = array<i32>} : memref<8x256xf32, #tpu.memory_space<vmem>>, vector<8x256xf32>,
    %c0_79 = arith.constant 0 : index
    %c0_80 = arith.constant 0 : index
    %163 = vector.load %arg9[%c0_79, %c0_80] : memref<8x256xf32, #tpu.memory_space<vmem>>, vector<8x256xf32>
    tpu.vector_store %arg9[%c0_79, %c0_80], %159 {strides = array<i32>} : memref<8x256xf32, #tpu.memory_space<vmem>>, vector<8x256xf32>,
    %164 = arith.index_cast %c3_i32 : i32 to index
    %c0_81 = arith.constant 0 : index
    %c0_82 = arith.constant 0 : index
    %165 = vector.load %arg5[%164, %c0_81, %c0_82] : memref<8x8x256xf32, #tpu.memory_space<vmem>>, vector<1x8x256xf32>
    %166 = vector.shape_cast %165 : vector<1x8x256xf32> to vector<8x256xf32>
    %167 = vector.shape_cast %161 : vector<8x256xf32> to vector<1x8x256xf32>
    tpu.vector_store %arg5[%164, %c0_81, %c0_82], %167 {strides = array<i32>} : memref<8x8x256xf32, #tpu.memory_space<vmem>>, vector<1x8x256xf32>,
    %c4_i32 = arith.constant 4 : i32
    %c0_83 = arith.constant 0 : index
    %c0_84 = arith.constant 0 : index
    %168 = vector.load %arg8[%c0_83, %c0_84] : memref<8x256xf32, #tpu.memory_space<vmem>>, vector<8x256xf32>
    %c0_85 = arith.constant 0 : index
    %c0_86 = arith.constant 0 : index
    %169 = vector.load %arg9[%c0_85, %c0_86] : memref<8x256xf32, #tpu.memory_space<vmem>>, vector<8x256xf32>
    %170 = arith.index_cast %c4_i32 : i32 to index
    %c0_87 = arith.constant 0 : index
    %c0_88 = arith.constant 0 : index
    %171 = vector.load %arg10[%170, %c0_87, %c0_88] : memref<8x8x1024xf32, #tpu.memory_space<vmem>>, vector<1x8x1024xf32>
    %172 = vector.shape_cast %171 : vector<1x8x1024xf32> to vector<8x1024xf32>
    %c0_89 = arith.constant 0 : index
    %c0_90 = arith.constant 0 : index
    %173 = vector.load %arg3[%c0_89, %c0_90] : memref<256x1024xf32, #tpu.memory_space<vmem>>, vector<256x1024xf32>
    %cst_91 = arith.constant dense<0.000000e+00> : vector<8x1024xf32>
    %174 = tpu.matmul %168, %173, %cst_91 {dimension_numbers = #tpu.dot_dimension_numbers<[1], [0], [0], [1], [0, 0, 1, 1], [], []>} : vector<8x256xf32>, vector<256x1024xf32>, vector<8x1024xf32> -> vector<8x1024xf32>
    %175 = arith.addf %172, %174 : vector<8x1024xf32>
    %176 = vector.extract_strided_slice %175 {offsets = [0, 0], sizes = [8, 256], strides = [1, 1]} : vector<8x1024xf32> to vector<8x256xf32>
    %177 = arith.negf %176 : vector<8x256xf32>
    %178 = math.exp %177 : vector<8x256xf32>
    %cst_92 = arith.constant 1.000000e+00 : f32
    %179 = vector.broadcast %cst_92 : f32 to vector<8x256xf32>
    %180 = arith.addf %179, %178 : vector<8x256xf32>
    %181 = arith.divf %179, %180 : vector<8x256xf32>
    %182 = vector.extract_strided_slice %175 {offsets = [0, 256], sizes = [8, 256], strides = [1, 1]} : vector<8x1024xf32> to vector<8x256xf32>
    %183 = arith.negf %182 : vector<8x256xf32>
    %184 = math.exp %183 : vector<8x256xf32>
    %cst_93 = arith.constant 1.000000e+00 : f32
    %185 = vector.broadcast %cst_93 : f32 to vector<8x256xf32>
    %186 = arith.addf %185, %184 : vector<8x256xf32>
    %187 = arith.divf %185, %186 : vector<8x256xf32>
    %188 = vector.extract_strided_slice %175 {offsets = [0, 512], sizes = [8, 256], strides = [1, 1]} : vector<8x1024xf32> to vector<8x256xf32>
    %189 = math.tanh %188 : vector<8x256xf32>
    %190 = vector.extract_strided_slice %175 {offsets = [0, 768], sizes = [8, 256], strides = [1, 1]} : vector<8x1024xf32> to vector<8x256xf32>
    %191 = arith.negf %190 : vector<8x256xf32>
    %192 = math.exp %191 : vector<8x256xf32>
    %cst_94 = arith.constant 1.000000e+00 : f32
    %193 = vector.broadcast %cst_94 : f32 to vector<8x256xf32>
    %194 = arith.addf %193, %192 : vector<8x256xf32>
    %195 = arith.divf %193, %194 : vector<8x256xf32>
    %196 = arith.mulf %187, %169 : vector<8x256xf32>
    %197 = arith.mulf %181, %189 : vector<8x256xf32>
    %198 = arith.addf %196, %197 : vector<8x256xf32>
    %199 = math.tanh %198 : vector<8x256xf32>
    %200 = arith.mulf %195, %199 : vector<8x256xf32>
    %c0_95 = arith.constant 0 : index
    %c0_96 = arith.constant 0 : index
    %201 = vector.load %arg8[%c0_95, %c0_96] : memref<8x256xf32, #tpu.memory_space<vmem>>, vector<8x256xf32>
    tpu.vector_store %arg8[%c0_95, %c0_96], %200 {strides = array<i32>} : memref<8x256xf32, #tpu.memory_space<vmem>>, vector<8x256xf32>,
    %c0_97 = arith.constant 0 : index
    %c0_98 = arith.constant 0 : index
    %202 = vector.load %arg9[%c0_97, %c0_98] : memref<8x256xf32, #tpu.memory_space<vmem>>, vector<8x256xf32>
    tpu.vector_store %arg9[%c0_97, %c0_98], %198 {strides = array<i32>} : memref<8x256xf32, #tpu.memory_space<vmem>>, vector<8x256xf32>,
    %203 = arith.index_cast %c4_i32 : i32 to index
    %c0_99 = arith.constant 0 : index
    %c0_100 = arith.constant 0 : index
    %204 = vector.load %arg5[%203, %c0_99, %c0_100] : memref<8x8x256xf32, #tpu.memory_space<vmem>>, vector<1x8x256xf32>
    %205 = vector.shape_cast %204 : vector<1x8x256xf32> to vector<8x256xf32>
    %206 = vector.shape_cast %200 : vector<8x256xf32> to vector<1x8x256xf32>
    tpu.vector_store %arg5[%203, %c0_99, %c0_100], %206 {strides = array<i32>} : memref<8x8x256xf32, #tpu.memory_space<vmem>>, vector<1x8x256xf32>,
    %c5_i32 = arith.constant 5 : i32
    %c0_101 = arith.constant 0 : index
    %c0_102 = arith.constant 0 : index
    %207 = vector.load %arg8[%c0_101, %c0_102] : memref<8x256xf32, #tpu.memory_space<vmem>>, vector<8x256xf32>
    %c0_103 = arith.constant 0 : index
    %c0_104 = arith.constant 0 : index
    %208 = vector.load %arg9[%c0_103, %c0_104] : memref<8x256xf32, #tpu.memory_space<vmem>>, vector<8x256xf32>
    %209 = arith.index_cast %c5_i32 : i32 to index
    %c0_105 = arith.constant 0 : index
    %c0_106 = arith.constant 0 : index
    %210 = vector.load %arg10[%209, %c0_105, %c0_106] : memref<8x8x1024xf32, #tpu.memory_space<vmem>>, vector<1x8x1024xf32>
    %211 = vector.shape_cast %210 : vector<1x8x1024xf32> to vector<8x1024xf32>
    %c0_107 = arith.constant 0 : index
    %c0_108 = arith.constant 0 : index
    %212 = vector.load %arg3[%c0_107, %c0_108] : memref<256x1024xf32, #tpu.memory_space<vmem>>, vector<256x1024xf32>
    %cst_109 = arith.constant dense<0.000000e+00> : vector<8x1024xf32>
    %213 = tpu.matmul %207, %212, %cst_109 {dimension_numbers = #tpu.dot_dimension_numbers<[1], [0], [0], [1], [0, 0, 1, 1], [], []>} : vector<8x256xf32>, vector<256x1024xf32>, vector<8x1024xf32> -> vector<8x1024xf32>
    %214 = arith.addf %211, %213 : vector<8x1024xf32>
    %215 = vector.extract_strided_slice %214 {offsets = [0, 0], sizes = [8, 256], strides = [1, 1]} : vector<8x1024xf32> to vector<8x256xf32>
    %216 = arith.negf %215 : vector<8x256xf32>
    %217 = math.exp %216 : vector<8x256xf32>
    %cst_110 = arith.constant 1.000000e+00 : f32
    %218 = vector.broadcast %cst_110 : f32 to vector<8x256xf32>
    %219 = arith.addf %218, %217 : vector<8x256xf32>
    %220 = arith.divf %218, %219 : vector<8x256xf32>
    %221 = vector.extract_strided_slice %214 {offsets = [0, 256], sizes = [8, 256], strides = [1, 1]} : vector<8x1024xf32> to vector<8x256xf32>
    %222 = arith.negf %221 : vector<8x256xf32>
    %223 = math.exp %222 : vector<8x256xf32>
    %cst_111 = arith.constant 1.000000e+00 : f32
    %224 = vector.broadcast %cst_111 : f32 to vector<8x256xf32>
    %225 = arith.addf %224, %223 : vector<8x256xf32>
    %226 = arith.divf %224, %225 : vector<8x256xf32>
    %227 = vector.extract_strided_slice %214 {offsets = [0, 512], sizes = [8, 256], strides = [1, 1]} : vector<8x1024xf32> to vector<8x256xf32>
    %228 = math.tanh %227 : vector<8x256xf32>
    %229 = vector.extract_strided_slice %214 {offsets = [0, 768], sizes = [8, 256], strides = [1, 1]} : vector<8x1024xf32> to vector<8x256xf32>
    %230 = arith.negf %229 : vector<8x256xf32>
    %231 = math.exp %230 : vector<8x256xf32>
    %cst_112 = arith.constant 1.000000e+00 : f32
    %232 = vector.broadcast %cst_112 : f32 to vector<8x256xf32>
    %233 = arith.addf %232, %231 : vector<8x256xf32>
    %234 = arith.divf %232, %233 : vector<8x256xf32>
    %235 = arith.mulf %226, %208 : vector<8x256xf32>
    %236 = arith.mulf %220, %228 : vector<8x256xf32>
    %237 = arith.addf %235, %236 : vector<8x256xf32>
    %238 = math.tanh %237 : vector<8x256xf32>
    %239 = arith.mulf %234, %238 : vector<8x256xf32>
    %c0_113 = arith.constant 0 : index
    %c0_114 = arith.constant 0 : index
    %240 = vector.load %arg8[%c0_113, %c0_114] : memref<8x256xf32, #tpu.memory_space<vmem>>, vector<8x256xf32>
    tpu.vector_store %arg8[%c0_113, %c0_114], %239 {strides = array<i32>} : memref<8x256xf32, #tpu.memory_space<vmem>>, vector<8x256xf32>,
    %c0_115 = arith.constant 0 : index
    %c0_116 = arith.constant 0 : index
    %241 = vector.load %arg9[%c0_115, %c0_116] : memref<8x256xf32, #tpu.memory_space<vmem>>, vector<8x256xf32>
    tpu.vector_store %arg9[%c0_115, %c0_116], %237 {strides = array<i32>} : memref<8x256xf32, #tpu.memory_space<vmem>>, vector<8x256xf32>,
    %242 = arith.index_cast %c5_i32 : i32 to index
    %c0_117 = arith.constant 0 : index
    %c0_118 = arith.constant 0 : index
    %243 = vector.load %arg5[%242, %c0_117, %c0_118] : memref<8x8x256xf32, #tpu.memory_space<vmem>>, vector<1x8x256xf32>
    %244 = vector.shape_cast %243 : vector<1x8x256xf32> to vector<8x256xf32>
    %245 = vector.shape_cast %239 : vector<8x256xf32> to vector<1x8x256xf32>
    tpu.vector_store %arg5[%242, %c0_117, %c0_118], %245 {strides = array<i32>} : memref<8x8x256xf32, #tpu.memory_space<vmem>>, vector<1x8x256xf32>,
    %c6_i32 = arith.constant 6 : i32
    %c0_119 = arith.constant 0 : index
    %c0_120 = arith.constant 0 : index
    %246 = vector.load %arg8[%c0_119, %c0_120] : memref<8x256xf32, #tpu.memory_space<vmem>>, vector<8x256xf32>
    %c0_121 = arith.constant 0 : index
    %c0_122 = arith.constant 0 : index
    %247 = vector.load %arg9[%c0_121, %c0_122] : memref<8x256xf32, #tpu.memory_space<vmem>>, vector<8x256xf32>
    %248 = arith.index_cast %c6_i32 : i32 to index
    %c0_123 = arith.constant 0 : index
    %c0_124 = arith.constant 0 : index
    %249 = vector.load %arg10[%248, %c0_123, %c0_124] : memref<8x8x1024xf32, #tpu.memory_space<vmem>>, vector<1x8x1024xf32>
    %250 = vector.shape_cast %249 : vector<1x8x1024xf32> to vector<8x1024xf32>
    %c0_125 = arith.constant 0 : index
    %c0_126 = arith.constant 0 : index
    %251 = vector.load %arg3[%c0_125, %c0_126] : memref<256x1024xf32, #tpu.memory_space<vmem>>, vector<256x1024xf32>
    %cst_127 = arith.constant dense<0.000000e+00> : vector<8x1024xf32>
    %252 = tpu.matmul %246, %251, %cst_127 {dimension_numbers = #tpu.dot_dimension_numbers<[1], [0], [0], [1], [0, 0, 1, 1], [], []>} : vector<8x256xf32>, vector<256x1024xf32>, vector<8x1024xf32> -> vector<8x1024xf32>
    %253 = arith.addf %250, %252 : vector<8x1024xf32>
    %254 = vector.extract_strided_slice %253 {offsets = [0, 0], sizes = [8, 256], strides = [1, 1]} : vector<8x1024xf32> to vector<8x256xf32>
    %255 = arith.negf %254 : vector<8x256xf32>
    %256 = math.exp %255 : vector<8x256xf32>
    %cst_128 = arith.constant 1.000000e+00 : f32
    %257 = vector.broadcast %cst_128 : f32 to vector<8x256xf32>
    %258 = arith.addf %257, %256 : vector<8x256xf32>
    %259 = arith.divf %257, %258 : vector<8x256xf32>
    %260 = vector.extract_strided_slice %253 {offsets = [0, 256], sizes = [8, 256], strides = [1, 1]} : vector<8x1024xf32> to vector<8x256xf32>
    %261 = arith.negf %260 : vector<8x256xf32>
    %262 = math.exp %261 : vector<8x256xf32>
    %cst_129 = arith.constant 1.000000e+00 : f32
    %263 = vector.broadcast %cst_129 : f32 to vector<8x256xf32>
    %264 = arith.addf %263, %262 : vector<8x256xf32>
    %265 = arith.divf %263, %264 : vector<8x256xf32>
    %266 = vector.extract_strided_slice %253 {offsets = [0, 512], sizes = [8, 256], strides = [1, 1]} : vector<8x1024xf32> to vector<8x256xf32>
    %267 = math.tanh %266 : vector<8x256xf32>
    %268 = vector.extract_strided_slice %253 {offsets = [0, 768], sizes = [8, 256], strides = [1, 1]} : vector<8x1024xf32> to vector<8x256xf32>
    %269 = arith.negf %268 : vector<8x256xf32>
    %270 = math.exp %269 : vector<8x256xf32>
    %cst_130 = arith.constant 1.000000e+00 : f32
    %271 = vector.broadcast %cst_130 : f32 to vector<8x256xf32>
    %272 = arith.addf %271, %270 : vector<8x256xf32>
    %273 = arith.divf %271, %272 : vector<8x256xf32>
    %274 = arith.mulf %265, %247 : vector<8x256xf32>
    %275 = arith.mulf %259, %267 : vector<8x256xf32>
    %276 = arith.addf %274, %275 : vector<8x256xf32>
    %277 = math.tanh %276 : vector<8x256xf32>
    %278 = arith.mulf %273, %277 : vector<8x256xf32>
    %c0_131 = arith.constant 0 : index
    %c0_132 = arith.constant 0 : index
    %279 = vector.load %arg8[%c0_131, %c0_132] : memref<8x256xf32, #tpu.memory_space<vmem>>, vector<8x256xf32>
    tpu.vector_store %arg8[%c0_131, %c0_132], %278 {strides = array<i32>} : memref<8x256xf32, #tpu.memory_space<vmem>>, vector<8x256xf32>,
    %c0_133 = arith.constant 0 : index
    %c0_134 = arith.constant 0 : index
    %280 = vector.load %arg9[%c0_133, %c0_134] : memref<8x256xf32, #tpu.memory_space<vmem>>, vector<8x256xf32>
    tpu.vector_store %arg9[%c0_133, %c0_134], %276 {strides = array<i32>} : memref<8x256xf32, #tpu.memory_space<vmem>>, vector<8x256xf32>,
    %281 = arith.index_cast %c6_i32 : i32 to index
    %c0_135 = arith.constant 0 : index
    %c0_136 = arith.constant 0 : index
    %282 = vector.load %arg5[%281, %c0_135, %c0_136] : memref<8x8x256xf32, #tpu.memory_space<vmem>>, vector<1x8x256xf32>
    %283 = vector.shape_cast %282 : vector<1x8x256xf32> to vector<8x256xf32>
    %284 = vector.shape_cast %278 : vector<8x256xf32> to vector<1x8x256xf32>
    tpu.vector_store %arg5[%281, %c0_135, %c0_136], %284 {strides = array<i32>} : memref<8x8x256xf32, #tpu.memory_space<vmem>>, vector<1x8x256xf32>,
    %c7_i32 = arith.constant 7 : i32
    %c0_137 = arith.constant 0 : index
    %c0_138 = arith.constant 0 : index
    %285 = vector.load %arg8[%c0_137, %c0_138] : memref<8x256xf32, #tpu.memory_space<vmem>>, vector<8x256xf32>
    %c0_139 = arith.constant 0 : index
    %c0_140 = arith.constant 0 : index
    %286 = vector.load %arg9[%c0_139, %c0_140] : memref<8x256xf32, #tpu.memory_space<vmem>>, vector<8x256xf32>
    %287 = arith.index_cast %c7_i32 : i32 to index
    %c0_141 = arith.constant 0 : index
    %c0_142 = arith.constant 0 : index
    %288 = vector.load %arg10[%287, %c0_141, %c0_142] : memref<8x8x1024xf32, #tpu.memory_space<vmem>>, vector<1x8x1024xf32>
    %289 = vector.shape_cast %288 : vector<1x8x1024xf32> to vector<8x1024xf32>
    %c0_143 = arith.constant 0 : index
    %c0_144 = arith.constant 0 : index
    %290 = vector.load %arg3[%c0_143, %c0_144] : memref<256x1024xf32, #tpu.memory_space<vmem>>, vector<256x1024xf32>
    %cst_145 = arith.constant dense<0.000000e+00> : vector<8x1024xf32>
    %291 = tpu.matmul %285, %290, %cst_145 {dimension_numbers = #tpu.dot_dimension_numbers<[1], [0], [0], [1], [0, 0, 1, 1], [], []>} : vector<8x256xf32>, vector<256x1024xf32>, vector<8x1024xf32> -> vector<8x1024xf32>
    %292 = arith.addf %289, %291 : vector<8x1024xf32>
    %293 = vector.extract_strided_slice %292 {offsets = [0, 0], sizes = [8, 256], strides = [1, 1]} : vector<8x1024xf32> to vector<8x256xf32>
    %294 = arith.negf %293 : vector<8x256xf32>
    %295 = math.exp %294 : vector<8x256xf32>
    %cst_146 = arith.constant 1.000000e+00 : f32
    %296 = vector.broadcast %cst_146 : f32 to vector<8x256xf32>
    %297 = arith.addf %296, %295 : vector<8x256xf32>
    %298 = arith.divf %296, %297 : vector<8x256xf32>
    %299 = vector.extract_strided_slice %292 {offsets = [0, 256], sizes = [8, 256], strides = [1, 1]} : vector<8x1024xf32> to vector<8x256xf32>
    %300 = arith.negf %299 : vector<8x256xf32>
    %301 = math.exp %300 : vector<8x256xf32>
    %cst_147 = arith.constant 1.000000e+00 : f32
    %302 = vector.broadcast %cst_147 : f32 to vector<8x256xf32>
    %303 = arith.addf %302, %301 : vector<8x256xf32>
    %304 = arith.divf %302, %303 : vector<8x256xf32>
    %305 = vector.extract_strided_slice %292 {offsets = [0, 512], sizes = [8, 256], strides = [1, 1]} : vector<8x1024xf32> to vector<8x256xf32>
    %306 = math.tanh %305 : vector<8x256xf32>
    %307 = vector.extract_strided_slice %292 {offsets = [0, 768], sizes = [8, 256], strides = [1, 1]} : vector<8x1024xf32> to vector<8x256xf32>
    %308 = arith.negf %307 : vector<8x256xf32>
    %309 = math.exp %308 : vector<8x256xf32>
    %cst_148 = arith.constant 1.000000e+00 : f32
    %310 = vector.broadcast %cst_148 : f32 to vector<8x256xf32>
    %311 = arith.addf %310, %309 : vector<8x256xf32>
    %312 = arith.divf %310, %311 : vector<8x256xf32>
    %313 = arith.mulf %304, %286 : vector<8x256xf32>
    %314 = arith.mulf %298, %306 : vector<8x256xf32>
    %315 = arith.addf %313, %314 : vector<8x256xf32>
    %316 = math.tanh %315 : vector<8x256xf32>
    %317 = arith.mulf %312, %316 : vector<8x256xf32>
    %c0_149 = arith.constant 0 : index
    %c0_150 = arith.constant 0 : index
    %318 = vector.load %arg8[%c0_149, %c0_150] : memref<8x256xf32, #tpu.memory_space<vmem>>, vector<8x256xf32>
    tpu.vector_store %arg8[%c0_149, %c0_150], %317 {strides = array<i32>} : memref<8x256xf32, #tpu.memory_space<vmem>>, vector<8x256xf32>,
    %c0_151 = arith.constant 0 : index
    %c0_152 = arith.constant 0 : index
    %319 = vector.load %arg9[%c0_151, %c0_152] : memref<8x256xf32, #tpu.memory_space<vmem>>, vector<8x256xf32>
    tpu.vector_store %arg9[%c0_151, %c0_152], %315 {strides = array<i32>} : memref<8x256xf32, #tpu.memory_space<vmem>>, vector<8x256xf32>,
    %320 = arith.index_cast %c7_i32 : i32 to index
    %c0_153 = arith.constant 0 : index
    %c0_154 = arith.constant 0 : index
    %321 = vector.load %arg5[%320, %c0_153, %c0_154] : memref<8x8x256xf32, #tpu.memory_space<vmem>>, vector<1x8x256xf32>
    %322 = vector.shape_cast %321 : vector<1x8x256xf32> to vector<8x256xf32>
    %323 = vector.shape_cast %317 : vector<8x256xf32> to vector<1x8x256xf32>
    tpu.vector_store %arg5[%320, %c0_153, %c0_154], %323 {strides = array<i32>} : memref<8x8x256xf32, #tpu.memory_space<vmem>>, vector<1x8x256xf32>,
    %c8_i32 = arith.constant 8 : i32
    %c0_i32_155 = arith.constant 0 : i32
    %324 = arith.cmpi eq, %arg0, %c0_i32_155 : i32
    %325 = arith.extui %324 : i1 to i32
    %c0_i32_156 = arith.constant 0 : i32
    %326 = arith.cmpi ne, %325, %c0_i32_156 : i32
    scf.if %326 {
      %c0_157 = arith.constant 0 : index
      %c0_158 = arith.constant 0 : index
      %327 = vector.load %arg8[%c0_157, %c0_158] : memref<8x256xf32, #tpu.memory_space<vmem>>, vector<8x256xf32>
      %c0_159 = arith.constant 0 : index
      %c0_160 = arith.constant 0 : index
      %328 = vector.load %arg6[%c0_159, %c0_160] : memref<8x256xf32, #tpu.memory_space<vmem>>, vector<8x256xf32>
      tpu.vector_store %arg6[%c0_159, %c0_160], %327 {strides = array<i32>} : memref<8x256xf32, #tpu.memory_space<vmem>>, vector<8x256xf32>,
      %c0_161 = arith.constant 0 : index
      %c0_162 = arith.constant 0 : index
      %329 = vector.load %arg9[%c0_161, %c0_162] : memref<8x256xf32, #tpu.memory_space<vmem>>, vector<8x256xf32>
      %c0_163 = arith.constant 0 : index
      %c0_164 = arith.constant 0 : index
      %330 = vector.load %arg7[%c0_163, %c0_164] : memref<8x256xf32, #tpu.memory_space<vmem>>, vector<8x256xf32>
      tpu.vector_store %arg7[%c0_163, %c0_164], %329 {strides = array<i32>} : memref<8x256xf32, #tpu.memory_space<vmem>>, vector<8x256xf32>,
    } else {
    }
    return
  }
  func.func @transform_0(%arg0: i32) -> (i32, i32, i32) {
    %c0_i32 = arith.constant 0 : i32
    %c0_i32_0 = arith.constant 0 : i32
    %c0_i32_1 = arith.constant 0 : i32
    return %arg0, %c0_i32, %c0_i32_0 : i32, i32, i32
  }
  func.func @transform_1(%arg0: i32) -> (i32, i32) {
    %c0_i32 = arith.constant 0 : i32
    %c0_i32_0 = arith.constant 0 : i32
    %c0_i32_1 = arith.constant 0 : i32
    return %c0_i32, %c0_i32_0 : i32, i32
  }
  func.func @transform_2(%arg0: i32) -> (i32, i32) {
    %c0_i32 = arith.constant 0 : i32
    %c0_i32_0 = arith.constant 0 : i32
    %c0_i32_1 = arith.constant 0 : i32
    return %c0_i32, %c0_i32_0 : i32, i32
  }
  func.func @transform_3(%arg0: i32) -> (i32, i32) {
    %c0_i32 = arith.constant 0 : i32
    %c0_i32_0 = arith.constant 0 : i32
    %c0_i32_1 = arith.constant 0 : i32
    return %c0_i32, %c0_i32_0 : i32, i32
  }
  func.func @transform_4(%arg0: i32) -> (i32, i32, i32) {
    %c0_i32 = arith.constant 0 : i32
    %c0_i32_0 = arith.constant 0 : i32
    %c0_i32_1 = arith.constant 0 : i32
    return %arg0, %c0_i32, %c0_i32_0 : i32, i32, i32
  }
  func.func @transform_5(%arg0: i32) -> (i32, i32) {
    %c0_i32 = arith.constant 0 : i32
    %c0_i32_0 = arith.constant 0 : i32
    %c0_i32_1 = arith.constant 0 : i32
    return %c0_i32, %c0_i32_0 : i32, i32
  }
  func.func @transform_6(%arg0: i32) -> (i32, i32) {
    %c0_i32 = arith.constant 0 : i32
    %c0_i32_0 = arith.constant 0 : i32
    %c0_i32_1 = arith.constant 0 : i32
    return %c0_i32, %c0_i32_0 : i32, i32
  }
}

</mosaic_0001>

<bundles_post_ra>
// kernel: tpu_custom_call.1
= control target key start
LH: loop header
LB: loop body
LE: loop exit
PB: predicated region body
PF: predicated region fallthrough
CT: control target
= control target key end

     0   :  { %12 = vsyncpa [#allocation6], 0  ;;  %s6782_s0 = inlined_call_operand.hbm [shape: f32[8,8,32], index: 0, kind: input, shape index: {}]   ;;  %s6783_s1 = inlined_call_operand.hbm [shape: f32[32,1024], index: 1, kind: input, shape index: {}]   ;;  %s6784_s2 = inlined_call_operand.hbm [shape: f32[256,1024], index: 2, kind: input, shape index: {}]   ;;  %s6785_s3 = inlined_call_operand.hbm [shape: f32[1,1024], index: 3, kind: input, shape index: {}]   ;;  %s6786_s4 = inlined_call_operand.hbm [shape: f32[8,8,256], index: 4, kind: output, shape index: {0}]   ;;  %s6787_s5 = inlined_call_operand.hbm [shape: f32[8,256], index: 5, kind: output, shape index: {1}]   ;;  %s6788_s6 = inlined_call_operand.hbm [shape: f32[8,256], index: 6, kind: output, shape index: {2}]  }
   0x1   :  { %13 = vsyncpa [#allocation9], 0 }
   0x2   :  { %14 = vsyncpa [#allocation12], 0 }
   0x3   :  { %15 = vsyncpa [#allocation7], 0 }
   0x4   :  { %16 = vsyncpa [#allocation15], 0  ;;  %s6189_s21 = smov [#allocation8]  }
   0x5   :  { %s34_s22 = sshll.u32 %s6189_s21, 4  ;;  %s35_s22 = int_to_ptr.vmem [resolvable:$true] %s34_s22 }
   0x6   :  { %s6047_s23 = scalar_lea.vmem %s35_s22, 4096  ;;  %p6052_p1 = scmp.lt.s32.totalorder %s35_s22, %s35_s22 }
   0x7   :  { %p6048_p0 = scmp.ne.s32.totalorder %s35_s22, %s6047_s23  ;;  %p6053_p2 = scmp.lt.s32.totalorder %s6047_s23, %s6047_s23 }
   0x9   :  { %p6054_p3 = por %p6053_p2, %p6052_p1 }
   0xb   :  { %p6055_p4 = pnand %p6054_p3, %p6048_p0 }
   0xd   :  { %6058 = shalt.err (!%p6055_p4)
}
   0xe   :  { %s6190_s24 = smov 1024   ;;  %s6191_s25 = smov 64  }
   0xf   :  { %40 = dma.hbm_to_vmem [thread:$0]  %s6783_s1, 4096, %s35_s22, [#allocation9], %s6190_s24, %s6190_s24, %s6191_s25  }
  0x10   :  { %s6192_s28 = smov [#allocation5]  }
  0x11   :  { %s22_s29 = sshll.u32 %s6192_s28, 4  ;;  %s23_s29 = int_to_ptr.vmem [resolvable:$true] %s22_s29 }
  0x12   :  { %s6067_s30 = scalar_lea.vmem %s23_s29, 1024  ;;  %p6072_p6 = scmp.lt.s32.totalorder %s23_s29, %s23_s29 }
  0x13   :  { %p6068_p5 = scmp.ne.s32.totalorder %s23_s29, %s6067_s30  ;;  %p6073_p7 = scmp.lt.s32.totalorder %s6067_s30, %s6067_s30 }
  0x15   :  { %p6074_p8 = por %p6073_p7, %p6072_p6 }
  0x17   :  { %p6075_p9 = pnand %p6074_p8, %p6068_p5 }
  0x19   :  { %6078 = shalt.err (!%p6075_p9)
}
  0x1a   :  { %s6193_s7 = smov 128   ;;  %s6194_s8 = smov 8  }
  0x1b   :  { %28 = dma.hbm_to_vmem [thread:$0]  %s6782_s0, 1024, %s23_s29, [#allocation6], %s6193_s7, %s6193_s7, %s6194_s8  }
  0x1c   :  { %s6195_s11 = smov [#allocation10]   ;;  %s6196_s13 = smov [#allocation11]  }
  0x1d   :  { %s46_s12 = sshll.u32 %s6195_s11, 4  ;;  %s59_s1 = sshll.u32 %s6196_s13, 4  ;;  %s47_s12 = int_to_ptr.vmem [resolvable:$true] %s46_s12  ;;  %s60_s1 = int_to_ptr.vmem [resolvable:$true] %s59_s1 }
  0x1e   :  { %s6087_s14 = scalar_lea.vmem %s47_s12, 32768  ;;  %p6092_p11 = scmp.lt.s32.totalorder %s47_s12, %s47_s12 }
  0x1f   :  { %p6088_p10 = scmp.ne.s32.totalorder %s47_s12, %s6087_s14  ;;  %p6093_p12 = scmp.lt.s32.totalorder %s6087_s14, %s6087_s14 }
  0x21   :  { %p6094_p13 = por %p6093_p12, %p6092_p11 }
  0x23   :  { %p6095_p0 = pnand %p6094_p13, %p6088_p10 }
  0x25   :  { %6098 = shalt.err (!%p6095_p0)
}
  0x26   :  { %52 = dma.hbm_to_vmem [thread:$0]  %s6784_s2, 32768, %s47_s12, [#allocation9], %s6190_s24, %s6190_s24, %s6191_s25  }
  0x27   :  { %s6107_s0 = scalar_lea.vmem %s60_s1, 128  ;;  %p6112_p2 = scmp.lt.s32.totalorder %s60_s1, %s60_s1 }
  0x28   :  { %p6108_p1 = scmp.ne.s32.totalorder %s60_s1, %s6107_s0  ;;  %p6113_p3 = scmp.lt.s32.totalorder %s6107_s0, %s6107_s0 }
  0x2a   :  { %p6114_p4 = por %p6113_p3, %p6112_p2 }
  0x2c   :  { %p6115_p5 = pnand %p6114_p4, %p6108_p1 }
  0x2e   :  { %6118 = shalt.err (!%p6115_p5)
}
  0x2f   :  { %62 = dma.hbm_to_vmem [thread:$0]  %s6785_s3, 128, %s60_s1, [#allocation12]  }
  0x30   :  { %6179 = dma.done.wait [#allocation6], 1024  }
  0x31   :  { %6180 = vsyncadd [#allocation6], 4294966272 }
  0x32   :  { %6181 = dma.done.wait [#allocation9], 36864  }
  0x33   :  { %6182 = vsyncadd [#allocation9], 4294930432 }
  0x34   :  { %6183 = dma.done.wait [#allocation12], 128  }
  0x35   :  { %6184 = vsyncadd [#allocation12], 4294967168  ;;  %v6197_v0 = vmov 0.0   ;;  %v116_v1 = vld [vmem:[#allocation8 + $0xc8] sm:$0xff]  ;;  %v118_v2 = vld [vmem:[#allocation8 + $0xd8] sm:$0xff]  ;;  %vm165_vm0 = vcmask 261120  }
  0x36   :  { %254 = vmatprep.mubr.f32.mxu0 %v6197_v0  ;;  %367 = vmatprep.mubr.f32.mxu1 %v6197_v0  ;;  %v115_v3 = vld [vmem:[#allocation8 + $0xc0] sm:$0xff]  ;;  %v117_v4 = vld [vmem:[#allocation8 + $0xd0] sm:$0xff]  ;;  %v108_v5 = vld [vmem:[#allocation8 + $0x88] sm:$0xff]  ;;  %s6198_s2 = smov [#allocation14]   ;;  %s6199_s19 = smov [#allocation13]  }
  0x37   :  { %214 = vmatprep.subr.mxu0 %v116_v1  ;;  %327 = vmatprep.subr.mxu1 %v118_v2  ;;  %v110_v6 = vld [vmem:[#allocation8 + $0x98] sm:$0xff]  ;;  %v107_v7 = vld [vmem:[#allocation8 + $0x80] sm:$0xff]  ;;  %v109_v8 = vld [vmem:[#allocation8 + $0x90] sm:$0xff]  ;;  %s5661_s3 = sshll.u32 %s6198_s2, 4  ;;  %s5648_s20 = sshll.u32 %s6199_s19, 4  ;;  %s5662_s3 = int_to_ptr.vmem [resolvable:$true] %s5661_s3  ;;  %s5649_s20 = int_to_ptr.vmem [resolvable:$true] %s5648_s20 }
  0x38   :  { %215 = vmatpush1.msra.mxu0 %v115_v3  ;;  %328 = vmatpush1.msra.mxu1 %v117_v4  ;;  %v100_v9 = vld [vmem:[#allocation8 + $0x48] sm:$0xff]  ;;  %v102_v10 = vld [vmem:[#allocation8 + $0x58] sm:$0xff]  ;;  %v99_v11 = vld [vmem:[#allocation8 + $0x40] sm:$0xff]  ;;  %s6200_s21 = smov [#allocation16]   ;;  %s6119_s23 = scalar_lea.vmem %s5662_s3, 256 }
  0x39   :  { %216 = vmatprep.subr.mxu0 %v108_v5  ;;  %329 = vmatprep.subr.mxu1 %v110_v6  ;;  %v101_v12 = vld [vmem:[#allocation8 + $0x50] sm:$0xff]  ;;  %v92_v13 = vld [vmem:[#allocation8 + $0x8] sm:$0xff]  ;;  %v94_v14 = vld [vmem:[#allocation8 + $0x18] sm:$0xff]  ;;  %s5671_s22 = sshll.u32 %s6200_s21, 4  ;;  %p6120_p6 = scmp.ne.s32.totalorder %s5662_s3, %s6119_s23  ;;  %s5672_s22 = int_to_ptr.vmem [resolvable:$true] %s5671_s22 }
  0x3a   :  { %217 = vmatpush1.msra.mxu0 %v107_v7  ;;  %330 = vmatpush1.msra.mxu1 %v109_v8  ;;  %v91_v15 = vld [vmem:[#allocation8] sm:$0xff]  ;;  %v93_v16 = vld [vmem:[#allocation8 + $0x10] sm:$0xff]  ;;  %v120_v18 = vld [vmem:[#allocation8 + $0xe8] sm:$0xff]  ;;  %p6124_p7 = scmp.lt.s32.totalorder %s5662_s3, %s5662_s3  ;;  %p6125_p8 = scmp.lt.s32.totalorder %s6119_s23, %s6119_s23 }
  0x3b   :  { %218 = vmatprep.subr.mxu0 %v100_v9  ;;  %331 = vmatprep.subr.mxu1 %v102_v10  ;;  %v6258_v17 = vld [vmem:[#allocation5] sm:$0xff]  ;;  %v122_v19 = vld [vmem:[#allocation8 + $0xf8] sm:$0xff]  ;;  %v121_v21 = vld [vmem:[#allocation8 + $0xf0] sm:$0xff] }
  0x3c   :  { %219 = vmatpush1.msra.mxu0 %v99_v11  ;;  %332 = vmatpush1.msra.mxu1 %v101_v12  ;;  %v119_v20 = vld [vmem:[#allocation8 + $0xe0] sm:$0xff]  ;;  %v6264_v22 = vld [vmem:[#allocation5 + $0x8] sm:$0xff]  ;;  %v114_v24 = vld [vmem:[#allocation8 + $0xb8] sm:$0xff]  ;;  %p6126_p9 = por %p6125_p8, %p6124_p7 }
  0x3d   :  { %220 = vmatprep.subr.mxu0 %v92_v13  ;;  %333 = vmatprep.subr.mxu1 %v94_v14  ;;  %v112_v23 = vld [vmem:[#allocation8 + $0xa8] sm:$0xff]  ;;  %v111_v25 = vld [vmem:[#allocation8 + $0xa0] sm:$0xff]  ;;  %v113_v26 = vld [vmem:[#allocation8 + $0xb0] sm:$0xff] }
  0x3e   :  { %221 = vmatpush1.msra.mxu0 %v91_v15  ;;  %334 = vmatpush1.msra.mxu1 %v93_v16  ;;  %v6274_v27 = vld [vmem:[#allocation5 + $0x10] sm:$0xff]  ;;  %v104_v28 = vld [vmem:[#allocation8 + $0x68] sm:$0xff]  ;;  %v106_v29 = vld [vmem:[#allocation8 + $0x78] sm:$0xff]  ;;  %p6127_p10 = pnand %p6126_p9, %p6120_p6 }
  0x3f   :  { %5689 = vmatmul.mubr.msk.f32.vlgmr.msra.gmra.mxu0 %vm165_vm0, %v6258_v17  ;;  %5697 = vmatmul.mubr.msk.f32.vlgmr.msra.gmra.mxu1 %vm165_vm0, %v6258_v17  ;;  %v103_v30 = vld [vmem:[#allocation8 + $0x60] sm:$0xff]  ;;  %v105_v31 = vld [vmem:[#allocation8 + $0x70] sm:$0xff]  ;;  %v6282_v32 = vld [vmem:[#allocation5 + $0x18] sm:$0xff] }
  0x40   :  { %440 = vmatprep.subr.mxu0 %v120_v18  ;;  %553 = vmatprep.subr.mxu1 %v122_v19  ;;  %v96_v33 = vld [vmem:[#allocation8 + $0x28] sm:$0xff]  ;;  %v98_v34 = vld [vmem:[#allocation8 + $0x38] sm:$0xff]  ;;  %v95_v35 = vld [vmem:[#allocation8 + $0x20] sm:$0xff] }
  0x41   :  { %441 = vmatpush1.msra.mxu0 %v119_v20  ;;  %554 = vmatpush1.msra.mxu1 %v121_v21  ;;  %v97_v36 = vld [vmem:[#allocation8 + $0x30] sm:$0xff]  ;;  %v6290_v37 = vld [vmem:[#allocation5 + $0x20] sm:$0xff]  ;;  %v839_v38 = vld [vmem:[#allocation10 + $0x3c8] sm:$0xff] }
  0x42   :  { %260 = vmatprep.mubr.f32.mxu0 %v6197_v0  ;;  %373 = vmatprep.mubr.f32.mxu1 %v6197_v0  ;;  %v841_v39 = vld [vmem:[#allocation10 + $0x3d8] sm:$0xff]  ;;  %v6298_v40 = vld [vmem:[#allocation5 + $0x28] sm:$0xff]  ;;  %v6306_v41 = vld [vmem:[#allocation5 + $0x30] sm:$0xff] }
  0x43   :  { %5690 = vmatmul.mubr.msk.f32.gmra.mxu0 %vm165_vm0, %v6264_v22  ;;  %5698 = vmatmul.mubr.msk.f32.gmra.mxu1 %vm165_vm0, %v6264_v22  ;;  %v6314_v42 = vld [vmem:[#allocation5 + $0x38] sm:$0xff]  ;;  %v838_v43 = vld [vmem:[#allocation10 + $0x3c0] sm:$0xff]  ;;  %v840_v44 = vld [vmem:[#allocation10 + $0x3d0] sm:$0xff] }
  0x44   :  { %266 = vmatprep.mubr.f32.mxu0 %v6197_v0  ;;  %379 = vmatprep.mubr.f32.mxu1 %v6197_v0  ;;  %v831_v45 = vld [vmem:[#allocation10 + $0x388] sm:$0xff]  ;;  %v833_v46 = vld [vmem:[#allocation10 + $0x398] sm:$0xff]  ;;  %v830_v47 = vld [vmem:[#allocation10 + $0x380] sm:$0xff] }
  0x45   :  { %442 = vmatprep.subr.mxu0 %v112_v23  ;;  %555 = vmatprep.subr.mxu1 %v114_v24  ;;  %v832_v48 = vld [vmem:[#allocation10 + $0x390] sm:$0xff]  ;;  %v823_v49 = vld [vmem:[#allocation10 + $0x348] sm:$0xff]  ;;  %v825_v50 = vld [vmem:[#allocation10 + $0x358] sm:$0xff] }
  0x46   :  { %443 = vmatpush1.msra.mxu0 %v111_v25  ;;  %556 = vmatpush1.msra.mxu1 %v113_v26  ;;  %v822_v51 = vld [vmem:[#allocation10 + $0x340] sm:$0xff]  ;;  %v824_v52 = vld [vmem:[#allocation10 + $0x350] sm:$0xff]  ;;  %v815_v53 = vld [vmem:[#allocation10 + $0x308] sm:$0xff] }
  0x47   :  { %5691 = vmatmul.mubr.msk.f32.gmra.mxu0 %vm165_vm0, %v6274_v27  ;;  %5699 = vmatmul.mubr.msk.f32.gmra.mxu1 %vm165_vm0, %v6274_v27  ;;  %v817_v54 = vld [vmem:[#allocation10 + $0x318] sm:$0xff]  ;;  %v814_v55 = vld [vmem:[#allocation10 + $0x300] sm:$0xff]  ;;  %v816_v56 = vld [vmem:[#allocation10 + $0x310] sm:$0xff] }
  0x48   :  { %272 = vmatprep.mubr.f32.mxu0 %v6197_v0  ;;  %385 = vmatprep.mubr.f32.mxu1 %v6197_v0  ;;  %v807_v57 = vld [vmem:[#allocation10 + $0x2c8] sm:$0xff]  ;;  %v809_v58 = vld [vmem:[#allocation10 + $0x2d8] sm:$0xff]  ;;  %v806_v59 = vld [vmem:[#allocation10 + $0x2c0] sm:$0xff] }
  0x49   :  { %444 = vmatprep.subr.mxu0 %v104_v28  ;;  %557 = vmatprep.subr.mxu1 %v106_v29  ;;  %v808_v60 = vld [vmem:[#allocation10 + $0x2d0] sm:$0xff]  ;;  %v799_v61 = vld [vmem:[#allocation10 + $0x288] sm:$0xff]  ;;  %v801_v62 = vld [vmem:[#allocation10 + $0x298] sm:$0xff] }
  0x4a   :  { %445 = vmatpush1.msra.mxu0 %v103_v30  ;;  %558 = vmatpush1.msra.mxu1 %v105_v31  ;;  %v798_v63 = vld [vmem:[#allocation10 + $0x280] sm:$0xff]  ;;  %v800_v1 = vld [vmem:[#allocation10 + $0x290] sm:$0xff]  ;;  %v791_v2 = vld [vmem:[#allocation10 + $0x248] sm:$0xff] }
  0x4b   :  { %5692 = vmatmul.mubr.msk.f32.gmra.mxu0 %vm165_vm0, %v6282_v32  ;;  %5700 = vmatmul.mubr.msk.f32.gmra.mxu1 %vm165_vm0, %v6282_v32  ;;  %v793_v3 = vld [vmem:[#allocation10 + $0x258] sm:$0xff]  ;;  %v790_v4 = vld [vmem:[#allocation10 + $0x240] sm:$0xff]  ;;  %v792_v5 = vld [vmem:[#allocation10 + $0x250] sm:$0xff] }
  0x4c   :  { %278 = vmatprep.mubr.f32.mxu0 %v6197_v0  ;;  %391 = vmatprep.mubr.f32.mxu1 %v6197_v0  ;;  %v783_v6 = vld [vmem:[#allocation10 + $0x208] sm:$0xff]  ;;  %v785_v7 = vld [vmem:[#allocation10 + $0x218] sm:$0xff]  ;;  %v782_v8 = vld [vmem:[#allocation10 + $0x200] sm:$0xff] }
  0x4d   :  { %446 = vmatprep.subr.mxu0 %v96_v33  ;;  %559 = vmatprep.subr.mxu1 %v98_v34  ;;  %v784_v9 = vld [vmem:[#allocation10 + $0x210] sm:$0xff]  ;;  %v775_v10 = vld [vmem:[#allocation10 + $0x1c8] sm:$0xff]  ;;  %v777_v11 = vld [vmem:[#allocation10 + $0x1d8] sm:$0xff] }
  0x4e   :  { %447 = vmatpush1.msra.mxu0 %v95_v35  ;;  %560 = vmatpush1.msra.mxu1 %v97_v36  ;;  %v774_v12 = vld [vmem:[#allocation10 + $0x1c0] sm:$0xff]  ;;  %v776_v13 = vld [vmem:[#allocation10 + $0x1d0] sm:$0xff]  ;;  %v767_v14 = vld [vmem:[#allocation10 + $0x188] sm:$0xff] }
  0x4f   :  { %5693 = vmatmul.mubr.msk.f32.gmra.mxu0 %vm165_vm0, %v6290_v37  ;;  %5701 = vmatmul.mubr.msk.f32.gmra.mxu1 %vm165_vm0, %v6290_v37  ;;  %v769_v15 = vld [vmem:[#allocation10 + $0x198] sm:$0xff]  ;;  %v766_v16 = vld [vmem:[#allocation10 + $0x180] sm:$0xff]  ;;  %v759_v18 = vld [vmem:[#allocation10 + $0x148] sm:$0xff] }
  0x50   :  { %284 = vmatprep.mubr.f32.mxu0 %v6197_v0  ;;  %397 = vmatprep.mubr.f32.mxu1 %v6197_v0  ;;  %v761_v19 = vld [vmem:[#allocation10 + $0x158] sm:$0xff]  ;;  %v758_v20 = vld [vmem:[#allocation10 + $0x140] sm:$0xff]  ;;  %v760_v21 = vld [vmem:[#allocation10 + $0x150] sm:$0xff] }
  0x51   :  { %974 = vmatprep.subr.mxu0 %v839_v38  ;;  %1045 = vmatprep.subr.mxu1 %v841_v39  ;;  %v751_v23 = vld [vmem:[#allocation10 + $0x108] sm:$0xff]  ;;  %v753_v24 = vld [vmem:[#allocation10 + $0x118] sm:$0xff]  ;;  %v750_v25 = vld [vmem:[#allocation10 + $0x100] sm:$0xff] }
  0x52   :  { %v752_v26 = vld [vmem:[#allocation10 + $0x110] sm:$0xff]  ;;  %v743_v28 = vld [vmem:[#allocation10 + $0xc8] sm:$0xff]  ;;  %v745_v29 = vld [vmem:[#allocation10 + $0xd8] sm:$0xff] }
  0x53   :  { %5694 = vmatmul.mubr.msk.f32.gmra.mxu0 %vm165_vm0, %v6298_v40  ;;  %5702 = vmatmul.mubr.msk.f32.gmra.mxu1 %vm165_vm0, %v6298_v40  ;;  %v742_v30 = vld [vmem:[#allocation10 + $0xc0] sm:$0xff]  ;;  %v744_v31 = vld [vmem:[#allocation10 + $0xd0] sm:$0xff]  ;;  %v735_v33 = vld [vmem:[#allocation10 + $0x88] sm:$0xff] }
  0x54   :  { %290 = vmatprep.mubr.f32.mxu0 %v6197_v0  ;;  %403 = vmatprep.mubr.f32.mxu1 %v6197_v0  ;;  %v737_v34 = vld [vmem:[#allocation10 + $0x98] sm:$0xff]  ;;  %v734_v35 = vld [vmem:[#allocation10 + $0x80] sm:$0xff]  ;;  %v736_v36 = vld [vmem:[#allocation10 + $0x90] sm:$0xff] }
  0x55   :  { %v727_v38 = vld [vmem:[#allocation10 + $0x48] sm:$0xff]  ;;  %v729_v39 = vld [vmem:[#allocation10 + $0x58] sm:$0xff] }
  0x57   :  { %5695 = vmatmul.mubr.msk.f32.gmra.mxu0 %vm165_vm0, %v6306_v41  ;;  %5703 = vmatmul.mubr.msk.f32.gmra.mxu1 %vm165_vm0, %v6306_v41 }
  0x58   :  { %296 = vmatprep.mubr.f32.mxu0 %v6197_v0  ;;  %409 = vmatprep.mubr.f32.mxu1 %v6197_v0 }
  0x5b   :  { %5696 = vmatmul.mubr.msk.f32.gmra.mxu0 %vm165_vm0, %v6314_v42  ;;  %5704 = vmatmul.mubr.msk.f32.gmra.mxu1 %vm165_vm0, %v6314_v42 }
  0x5c   :  { %480 = vmatprep.mubr.f32.mxu0 %v6197_v0  ;;  %593 = vmatprep.mubr.f32.mxu1 %v6197_v0 }
  0x5f   :  { %5705 = vmatmul.mubr.msk.f32.vlgmr.msra.gmra.mxu0 %vm165_vm0, %v6258_v17  ;;  %5713 = vmatmul.mubr.msk.f32.vlgmr.msra.gmra.mxu1 %vm165_vm0, %v6258_v17  ;;  %v768_v17 = vld [vmem:[#allocation10 + $0x190] sm:$0xff] }
  0x60   :  { %975 = vmatpush1.msra.mxu0 %v838_v43  ;;  %1046 = vmatpush1.msra.mxu1 %v840_v44  ;;  %v726_v43 = vld [vmem:[#allocation10 + $0x40] sm:$0xff]  ;;  %v728_v44 = vld [vmem:[#allocation10 + $0x50] sm:$0xff] }
  0x61   :  { %976 = vmatprep.subr.mxu0 %v831_v45  ;;  %1047 = vmatprep.subr.mxu1 %v833_v46  ;;  %v719_v45 = vld [vmem:[#allocation10 + $0x8] sm:$0xff]  ;;  %v721_v46 = vld [vmem:[#allocation10 + $0x18] sm:$0xff] }
  0x62   :  { %977 = vmatpush1.msra.mxu0 %v830_v47  ;;  %1048 = vmatpush1.msra.mxu1 %v832_v48  ;;  %v718_v47 = vld [vmem:[#allocation10] sm:$0xff]  ;;  %v720_v48 = vld [vmem:[#allocation10 + $0x10] sm:$0xff] }
  0x63   :  { %978 = vmatprep.subr.mxu0 %v823_v49  ;;  %1049 = vmatprep.subr.mxu1 %v825_v50  ;;  %v967_v49 = vld [vmem:[#allocation10 + $0x7c8] sm:$0xff]  ;;  %v969_v50 = vld [vmem:[#allocation10 + $0x7d8] sm:$0xff] }
  0x64   :  { %979 = vmatpush1.msra.mxu0 %v822_v51  ;;  %1050 = vmatpush1.msra.mxu1 %v824_v52  ;;  %v966_v51 = vld [vmem:[#allocation10 + $0x7c0] sm:$0xff]  ;;  %v968_v52 = vld [vmem:[#allocation10 + $0x7d0] sm:$0xff] }
  0x65   :  { %980 = vmatprep.subr.mxu0 %v815_v53  ;;  %1051 = vmatprep.subr.mxu1 %v817_v54  ;;  %v959_v53 = vld [vmem:[#allocation10 + $0x788] sm:$0xff]  ;;  %v961_v54 = vld [vmem:[#allocation10 + $0x798] sm:$0xff] }
  0x66   :  { %981 = vmatpush1.msra.mxu0 %v814_v55  ;;  %1052 = vmatpush1.msra.mxu1 %v816_v56  ;;  %v958_v55 = vld [vmem:[#allocation10 + $0x780] sm:$0xff]  ;;  %v960_v56 = vld [vmem:[#allocation10 + $0x790] sm:$0xff] }
  0x67   :  { %982 = vmatprep.subr.mxu0 %v807_v57  ;;  %1053 = vmatprep.subr.mxu1 %v809_v58  ;;  %v951_v57 = vld [vmem:[#allocation10 + $0x748] sm:$0xff]  ;;  %v953_v58 = vld [vmem:[#allocation10 + $0x758] sm:$0xff] }
  0x68   :  { %983 = vmatpush1.msra.mxu0 %v806_v59  ;;  %1054 = vmatpush1.msra.mxu1 %v808_v60  ;;  %v950_v59 = vld [vmem:[#allocation10 + $0x740] sm:$0xff]  ;;  %v952_v60 = vld [vmem:[#allocation10 + $0x750] sm:$0xff] }
  0x69   :  { %984 = vmatprep.subr.mxu0 %v799_v61  ;;  %1055 = vmatprep.subr.mxu1 %v801_v62  ;;  %v943_v61 = vld [vmem:[#allocation10 + $0x708] sm:$0xff]  ;;  %v945_v62 = vld [vmem:[#allocation10 + $0x718] sm:$0xff] }
  0x6a   :  { %985 = vmatpush1.msra.mxu0 %v798_v63  ;;  %1056 = vmatpush1.msra.mxu1 %v800_v1  ;;  %v942_v63 = vld [vmem:[#allocation10 + $0x700] sm:$0xff]  ;;  %v944_v1 = vld [vmem:[#allocation10 + $0x710] sm:$0xff] }
  0x6b   :  { %986 = vmatprep.subr.mxu0 %v791_v2  ;;  %1057 = vmatprep.subr.mxu1 %v793_v3  ;;  %v935_v2 = vld [vmem:[#allocation10 + $0x6c8] sm:$0xff]  ;;  %v937_v3 = vld [vmem:[#allocation10 + $0x6d8] sm:$0xff] }
  0x6c   :  { %987 = vmatpush1.msra.mxu0 %v790_v4  ;;  %1058 = vmatpush1.msra.mxu1 %v792_v5  ;;  %v934_v4 = vld [vmem:[#allocation10 + $0x6c0] sm:$0xff]  ;;  %v927_v5 = vld [vmem:[#allocation10 + $0x688] sm:$0xff] }
  0x6d   :  { %988 = vmatprep.subr.mxu0 %v783_v6  ;;  %1059 = vmatprep.subr.mxu1 %v785_v7  ;;  %v929_v6 = vld [vmem:[#allocation10 + $0x698] sm:$0xff]  ;;  %v926_v7 = vld [vmem:[#allocation10 + $0x680] sm:$0xff] }
  0x6e   :  { %989 = vmatpush1.msra.mxu0 %v782_v8  ;;  %1060 = vmatpush1.msra.mxu1 %v784_v9  ;;  %v928_v8 = vld [vmem:[#allocation10 + $0x690] sm:$0xff]  ;;  %v919_v9 = vld [vmem:[#allocation10 + $0x648] sm:$0xff] }
  0x6f   :  { %990 = vmatprep.subr.mxu0 %v775_v10  ;;  %1061 = vmatprep.subr.mxu1 %v777_v11  ;;  %v921_v10 = vld [vmem:[#allocation10 + $0x658] sm:$0xff]  ;;  %v918_v11 = vld [vmem:[#allocation10 + $0x640] sm:$0xff] }
  0x70   :  { %991 = vmatpush1.msra.mxu0 %v774_v12  ;;  %1062 = vmatpush1.msra.mxu1 %v776_v13  ;;  %v911_v12 = vld [vmem:[#allocation10 + $0x608] sm:$0xff]  ;;  %v913_v13 = vld [vmem:[#allocation10 + $0x618] sm:$0xff] }
  0x71   :  { %992 = vmatprep.subr.mxu0 %v767_v14  ;;  %1063 = vmatprep.subr.mxu1 %v769_v15  ;;  %v910_v14 = vld [vmem:[#allocation10 + $0x600] sm:$0xff]  ;;  %v912_v15 = vld [vmem:[#allocation10 + $0x610] sm:$0xff] }
  0x72   :  { %993 = vmatpush1.msra.mxu0 %v766_v16  ;;  %1064 = vmatpush1.msra.mxu1 %v768_v17  ;;  %v903_v16 = vld [vmem:[#allocation10 + $0x5c8] sm:$0xff]  ;;  %v905_v17 = vld [vmem:[#allocation10 + $0x5d8] sm:$0xff] }
  0x73   :  { %994 = vmatprep.subr.mxu0 %v759_v18  ;;  %1065 = vmatprep.subr.mxu1 %v761_v19  ;;  %v902_v18 = vld [vmem:[#allocation10 + $0x5c0] sm:$0xff]  ;;  %v895_v19 = vld [vmem:[#allocation10 + $0x588] sm:$0xff] }
  0x74   :  { %995 = vmatpush1.msra.mxu0 %v758_v20  ;;  %1066 = vmatpush1.msra.mxu1 %v760_v21  ;;  %v897_v20 = vld [vmem:[#allocation10 + $0x598] sm:$0xff]  ;;  %v894_v21 = vld [vmem:[#allocation10 + $0x580] sm:$0xff] }
  0x75   :  { %996 = vmatprep.subr.mxu0 %v751_v23  ;;  %1067 = vmatprep.subr.mxu1 %v753_v24  ;;  %v896_v23 = vld [vmem:[#allocation10 + $0x590] sm:$0xff]  ;;  %v887_v24 = vld [vmem:[#allocation10 + $0x548] sm:$0xff] }
  0x76   :  { %997 = vmatpush1.msra.mxu0 %v750_v25  ;;  %1068 = vmatpush1.msra.mxu1 %v752_v26  ;;  %v889_v25 = vld [vmem:[#allocation10 + $0x558] sm:$0xff]  ;;  %v886_v26 = vld [vmem:[#allocation10 + $0x540] sm:$0xff] }
  0x77   :  { %998 = vmatprep.subr.mxu0 %v743_v28  ;;  %1069 = vmatprep.subr.mxu1 %v745_v29  ;;  %v879_v28 = vld [vmem:[#allocation10 + $0x508] sm:$0xff]  ;;  %v881_v29 = vld [vmem:[#allocation10 + $0x518] sm:$0xff] }
  0x78   :  { %999 = vmatpush1.msra.mxu0 %v742_v30  ;;  %1070 = vmatpush1.msra.mxu1 %v744_v31  ;;  %v878_v30 = vld [vmem:[#allocation10 + $0x500] sm:$0xff]  ;;  %v880_v31 = vld [vmem:[#allocation10 + $0x510] sm:$0xff] }
  0x79   :  { %1000 = vmatprep.subr.mxu0 %v735_v33  ;;  %1071 = vmatprep.subr.mxu1 %v737_v34  ;;  %v871_v33 = vld [vmem:[#allocation10 + $0x4c8] sm:$0xff]  ;;  %v873_v34 = vld [vmem:[#allocation10 + $0x4d8] sm:$0xff] }
  0x7a   :  { %1001 = vmatpush1.msra.mxu0 %v734_v35  ;;  %1072 = vmatpush1.msra.mxu1 %v736_v36  ;;  %v870_v35 = vld [vmem:[#allocation10 + $0x4c0] sm:$0xff]  ;;  %v863_v36 = vld [vmem:[#allocation10 + $0x488] sm:$0xff] }
  0x7b   :  { %1002 = vmatprep.subr.mxu0 %v727_v38  ;;  %1073 = vmatprep.subr.mxu1 %v729_v39  ;;  %v865_v38 = vld [vmem:[#allocation10 + $0x498] sm:$0xff]  ;;  %v862_v39 = vld [vmem:[#allocation10 + $0x480] sm:$0xff] }
  0x7c   :  { %1003 = vmatpush1.msra.mxu0 %v726_v43  ;;  %1074 = vmatpush1.msra.mxu1 %v728_v44  ;;  %v864_v43 = vld [vmem:[#allocation10 + $0x490] sm:$0xff]  ;;  %v855_v44 = vld [vmem:[#allocation10 + $0x448] sm:$0xff] }
  0x7d   :  { %1004 = vmatprep.subr.mxu0 %v719_v45  ;;  %1075 = vmatprep.subr.mxu1 %v721_v46  ;;  %v857_v45 = vld [vmem:[#allocation10 + $0x458] sm:$0xff]  ;;  %v854_v46 = vld [vmem:[#allocation10 + $0x440] sm:$0xff] }
  0x7e   :  { %1005 = vmatpush1.msra.mxu0 %v718_v47  ;;  %1076 = vmatpush1.msra.mxu1 %v720_v48  ;;  %v847_v47 = vld [vmem:[#allocation10 + $0x408] sm:$0xff]  ;;  %v849_v48 = vld [vmem:[#allocation10 + $0x418] sm:$0xff] }
  0x7f   :  { %1006 = vmatprep.subr.mxu0 %v967_v49  ;;  %1077 = vmatprep.subr.mxu1 %v969_v50  ;;  %v846_v49 = vld [vmem:[#allocation10 + $0x400] sm:$0xff]  ;;  %v848_v50 = vld [vmem:[#allocation10 + $0x410] sm:$0xff] }
  0x80   :  { %1007 = vmatpush2.msra.mxu0 %v966_v51  ;;  %1078 = vmatpush2.msra.mxu1 %v968_v52  ;;  %v843_v51 = vld [vmem:[#allocation10 + $0x3e8] sm:$0xff]  ;;  %v845_v52 = vld [vmem:[#allocation10 + $0x3f8] sm:$0xff] }
  0x81   :  { %1008 = vmatprep.subr.mxu0 %v959_v53  ;;  %1079 = vmatprep.subr.mxu1 %v961_v54  ;;  %v842_v53 = vld [vmem:[#allocation10 + $0x3e0] sm:$0xff]  ;;  %v835_v54 = vld [vmem:[#allocation10 + $0x3a8] sm:$0xff] }
  0x82   :  { %486 = vmatprep.mubr.f32.mxu0 %v6197_v0  ;;  %599 = vmatprep.mubr.f32.mxu1 %v6197_v0 }
  0x83   :  { %1009 = vmatpush2.msra.mxu0 %v958_v55  ;;  %1080 = vmatpush2.msra.mxu1 %v960_v56  ;;  %v837_v55 = vld [vmem:[#allocation10 + $0x3b8] sm:$0xff]  ;;  %v834_v56 = vld [vmem:[#allocation10 + $0x3a0] sm:$0xff] }
  0x84   :  { %5706 = vmatmul.mubr.msk.f32.gmra.mxu0 %vm165_vm0, %v6264_v22  ;;  %5714 = vmatmul.mubr.msk.f32.gmra.mxu1 %vm165_vm0, %v6264_v22  ;;  %v936_v22 = vld [vmem:[#allocation10 + $0x6d0] sm:$0xff] }
  0x85   :  { %1010 = vmatprep.subr.mxu0 %v951_v57  ;;  %1081 = vmatprep.subr.mxu1 %v953_v58  ;;  %v836_v57 = vld [vmem:[#allocation10 + $0x3b0] sm:$0xff]  ;;  %v827_v58 = vld [vmem:[#allocation10 + $0x368] sm:$0xff] }
  0x86   :  { %1011 = vmatpush2.msra.mxu0 %v950_v59  ;;  %1082 = vmatpush2.msra.mxu1 %v952_v60  ;;  %v829_v59 = vld [vmem:[#allocation10 + $0x378] sm:$0xff]  ;;  %v826_v60 = vld [vmem:[#allocation10 + $0x360] sm:$0xff] }
  0x87   :  { %1012 = vmatprep.subr.mxu0 %v943_v61  ;;  %1083 = vmatprep.subr.mxu1 %v945_v62  ;;  %v828_v61 = vld [vmem:[#allocation10 + $0x370] sm:$0xff]  ;;  %v819_v62 = vld [vmem:[#allocation10 + $0x328] sm:$0xff] }
  0x88   :  { %492 = vmatprep.mubr.f32.mxu0 %v6197_v0  ;;  %605 = vmatprep.mubr.f32.mxu1 %v6197_v0 }
  0x89   :  { %1013 = vmatpush2.msra.mxu0 %v942_v63  ;;  %1084 = vmatpush2.msra.mxu1 %v944_v1  ;;  %v821_v63 = vld [vmem:[#allocation10 + $0x338] sm:$0xff]  ;;  %v818_v1 = vld [vmem:[#allocation10 + $0x320] sm:$0xff] }
  0x8a   :  { %5707 = vmatmul.mubr.msk.f32.gmra.mxu0 %vm165_vm0, %v6274_v27  ;;  %5715 = vmatmul.mubr.msk.f32.gmra.mxu1 %vm165_vm0, %v6274_v27  ;;  %v920_v27 = vld [vmem:[#allocation10 + $0x650] sm:$0xff] }
  0x8b   :  { %1014 = vmatprep.subr.mxu0 %v935_v2  ;;  %1085 = vmatprep.subr.mxu1 %v937_v3  ;;  %v820_v2 = vld [vmem:[#allocation10 + $0x330] sm:$0xff]  ;;  %v811_v3 = vld [vmem:[#allocation10 + $0x2e8] sm:$0xff] }
  0x8c   :  { %1015 = vmatpush2.msra.mxu0 %v934_v4  ;;  %1086 = vmatpush2.msra.mxu1 %v936_v22  ;;  %v813_v4 = vld [vmem:[#allocation10 + $0x2f8] sm:$0xff]  ;;  %v810_v22 = vld [vmem:[#allocation10 + $0x2e0] sm:$0xff] }
  0x8d   :  { %1016 = vmatprep.subr.mxu0 %v927_v5  ;;  %1087 = vmatprep.subr.mxu1 %v929_v6  ;;  %v812_v5 = vld [vmem:[#allocation10 + $0x2f0] sm:$0xff]  ;;  %v803_v6 = vld [vmem:[#allocation10 + $0x2a8] sm:$0xff] }
  0x8e   :  { %498 = vmatprep.mubr.f32.mxu0 %v6197_v0  ;;  %611 = vmatprep.mubr.f32.mxu1 %v6197_v0 }
  0x8f   :  { %1017 = vmatpush2.msra.mxu0 %v926_v7  ;;  %1088 = vmatpush2.msra.mxu1 %v928_v8  ;;  %v805_v7 = vld [vmem:[#allocation10 + $0x2b8] sm:$0xff]  ;;  %v802_v8 = vld [vmem:[#allocation10 + $0x2a0] sm:$0xff] }
  0x90   :  { %5708 = vmatmul.mubr.msk.f32.gmra.mxu0 %vm165_vm0, %v6282_v32  ;;  %5716 = vmatmul.mubr.msk.f32.gmra.mxu1 %vm165_vm0, %v6282_v32  ;;  %v904_v32 = vld [vmem:[#allocation10 + $0x5d0] sm:$0xff] }
  0x91   :  { %1018 = vmatprep.subr.mxu0 %v919_v9  ;;  %1089 = vmatprep.subr.mxu1 %v921_v10  ;;  %v804_v9 = vld [vmem:[#allocation10 + $0x2b0] sm:$0xff]  ;;  %v795_v10 = vld [vmem:[#allocation10 + $0x268] sm:$0xff] }
  0x92   :  { %1019 = vmatpush2.msra.mxu0 %v918_v11  ;;  %1090 = vmatpush2.msra.mxu1 %v920_v27  ;;  %v797_v11 = vld [vmem:[#allocation10 + $0x278] sm:$0xff]  ;;  %v794_v27 = vld [vmem:[#allocation10 + $0x260] sm:$0xff] }
  0x93   :  { %1020 = vmatprep.subr.mxu0 %v911_v12  ;;  %1091 = vmatprep.subr.mxu1 %v913_v13  ;;  %v796_v12 = vld [vmem:[#allocation10 + $0x270] sm:$0xff]  ;;  %v787_v13 = vld [vmem:[#allocation10 + $0x228] sm:$0xff] }
  0x94   :  { %504 = vmatprep.mubr.f32.mxu0 %v6197_v0  ;;  %617 = vmatprep.mubr.f32.mxu1 %v6197_v0 }
  0x95   :  { %1021 = vmatpush2.msra.mxu0 %v910_v14  ;;  %1092 = vmatpush2.msra.mxu1 %v912_v15  ;;  %v789_v14 = vld [vmem:[#allocation10 + $0x238] sm:$0xff]  ;;  %v786_v15 = vld [vmem:[#allocation10 + $0x220] sm:$0xff] }
  0x96   :  { %5709 = vmatmul.mubr.msk.f32.gmra.mxu0 %vm165_vm0, %v6290_v37  ;;  %5717 = vmatmul.mubr.msk.f32.gmra.mxu1 %vm165_vm0, %v6290_v37  ;;  %v888_v37 = vld [vmem:[#allocation10 + $0x550] sm:$0xff] }
  0x97   :  { %1022 = vmatprep.subr.mxu0 %v903_v16  ;;  %1093 = vmatprep.subr.mxu1 %v905_v17  ;;  %v788_v16 = vld [vmem:[#allocation10 + $0x230] sm:$0xff]  ;;  %v779_v17 = vld [vmem:[#allocation10 + $0x1e8] sm:$0xff] }
  0x98   :  { %1023 = vmatpush2.msra.mxu0 %v902_v18  ;;  %1094 = vmatpush2.msra.mxu1 %v904_v32  ;;  %v781_v18 = vld [vmem:[#allocation10 + $0x1f8] sm:$0xff]  ;;  %v778_v32 = vld [vmem:[#allocation10 + $0x1e0] sm:$0xff] }
  0x99   :  { %1024 = vmatprep.subr.mxu0 %v895_v19  ;;  %1095 = vmatprep.subr.mxu1 %v897_v20  ;;  %v780_v19 = vld [vmem:[#allocation10 + $0x1f0] sm:$0xff]  ;;  %v771_v20 = vld [vmem:[#allocation10 + $0x1a8] sm:$0xff] }
  0x9a   :  { %510 = vmatprep.mubr.f32.mxu0 %v6197_v0  ;;  %623 = vmatprep.mubr.f32.mxu1 %v6197_v0 }
  0x9b   :  { %1025 = vmatpush2.msra.mxu0 %v894_v21  ;;  %1096 = vmatpush2.msra.mxu1 %v896_v23  ;;  %v773_v21 = vld [vmem:[#allocation10 + $0x1b8] sm:$0xff]  ;;  %v770_v23 = vld [vmem:[#allocation10 + $0x1a0] sm:$0xff] }
  0x9c   :  { %5710 = vmatmul.mubr.msk.f32.gmra.mxu0 %vm165_vm0, %v6298_v40  ;;  %5718 = vmatmul.mubr.msk.f32.gmra.mxu1 %vm165_vm0, %v6298_v40  ;;  %v872_v40 = vld [vmem:[#allocation10 + $0x4d0] sm:$0xff] }
  0x9d   :  { %1026 = vmatprep.subr.mxu0 %v887_v24  ;;  %1097 = vmatprep.subr.mxu1 %v889_v25  ;;  %v772_v24 = vld [vmem:[#allocation10 + $0x1b0] sm:$0xff]  ;;  %v763_v25 = vld [vmem:[#allocation10 + $0x168] sm:$0xff] }
  0x9e   :  { %1027 = vmatpush2.msra.mxu0 %v886_v26  ;;  %1098 = vmatpush2.msra.mxu1 %v888_v37  ;;  %v765_v26 = vld [vmem:[#allocation10 + $0x178] sm:$0xff]  ;;  %v762_v37 = vld [vmem:[#allocation10 + $0x160] sm:$0xff] }
  0x9f   :  { %1028 = vmatprep.subr.mxu0 %v879_v28  ;;  %1099 = vmatprep.subr.mxu1 %v881_v29  ;;  %v764_v28 = vld [vmem:[#allocation10 + $0x170] sm:$0xff]  ;;  %v755_v29 = vld [vmem:[#allocation10 + $0x128] sm:$0xff] }
  0xa0   :  { %516 = vmatprep.mubr.f32.mxu0 %v6197_v0  ;;  %629 = vmatprep.mubr.f32.mxu1 %v6197_v0 }
  0xa1   :  { %1029 = vmatpush2.msra.mxu0 %v878_v30  ;;  %1100 = vmatpush2.msra.mxu1 %v880_v31  ;;  %v757_v30 = vld [vmem:[#allocation10 + $0x138] sm:$0xff]  ;;  %v754_v31 = vld [vmem:[#allocation10 + $0x120] sm:$0xff] }
  0xa2   :  { %5711 = vmatmul.mubr.msk.f32.gmra.mxu0 %vm165_vm0, %v6306_v41  ;;  %5719 = vmatmul.mubr.msk.f32.gmra.mxu1 %vm165_vm0, %v6306_v41  ;;  %v856_v41 = vld [vmem:[#allocation10 + $0x450] sm:$0xff] }
  0xa3   :  { %1030 = vmatprep.subr.mxu0 %v871_v33  ;;  %1101 = vmatprep.subr.mxu1 %v873_v34  ;;  %v756_v33 = vld [vmem:[#allocation10 + $0x130] sm:$0xff]  ;;  %v747_v34 = vld [vmem:[#allocation10 + $0xe8] sm:$0xff] }
  0xa4   :  { %1031 = vmatpush2.msra.mxu0 %v870_v35  ;;  %1102 = vmatpush2.msra.mxu1 %v872_v40  ;;  %v749_v35 = vld [vmem:[#allocation10 + $0xf8] sm:$0xff]  ;;  %v746_v40 = vld [vmem:[#allocation10 + $0xe0] sm:$0xff] }
  0xa5   :  { %1032 = vmatprep.subr.mxu0 %v863_v36  ;;  %1103 = vmatprep.subr.mxu1 %v865_v38  ;;  %v748_v36 = vld [vmem:[#allocation10 + $0xf0] sm:$0xff]  ;;  %v739_v38 = vld [vmem:[#allocation10 + $0xa8] sm:$0xff] }
  0xa6   :  { %522 = vmatprep.mubr.f32.mxu0 %v6197_v0  ;;  %635 = vmatprep.mubr.f32.mxu1 %v6197_v0 }
  0xa7   :  { %1033 = vmatpush2.msra.mxu0 %v862_v39  ;;  %1104 = vmatpush2.msra.mxu1 %v864_v43  ;;  %v741_v39 = vld [vmem:[#allocation10 + $0xb8] sm:$0xff]  ;;  %v738_v43 = vld [vmem:[#allocation10 + $0xa0] sm:$0xff] }
  0xa8   :  { %5712 = vmatmul.mubr.msk.f32.gmra.mxu0 %vm165_vm0, %v6314_v42  ;;  %5720 = vmatmul.mubr.msk.f32.gmra.mxu1 %vm165_vm0, %v6314_v42  ;;  %v844_v42 = vld [vmem:[#allocation10 + $0x3f0] sm:$0xff] }
  0xa9   :  { %1034 = vmatprep.subr.mxu0 %v855_v44  ;;  %1105 = vmatprep.subr.mxu1 %v857_v45  ;;  %v740_v44 = vld [vmem:[#allocation10 + $0xb0] sm:$0xff]  ;;  %v731_v45 = vld [vmem:[#allocation10 + $0x68] sm:$0xff] }
  0xaa   :  { %1035 = vmatpush2.msra.mxu0 %v854_v46  ;;  %1106 = vmatpush2.msra.mxu1 %v856_v41  ;;  %v733_v46 = vld [vmem:[#allocation10 + $0x78] sm:$0xff]  ;;  %v730_v41 = vld [vmem:[#allocation10 + $0x60] sm:$0xff] }
  0xab   :  { %1036 = vmatprep.subr.mxu0 %v847_v47  ;;  %1107 = vmatprep.subr.mxu1 %v849_v48  ;;  %v732_v47 = vld [vmem:[#allocation10 + $0x70] sm:$0xff]  ;;  %v723_v48 = vld [vmem:[#allocation10 + $0x28] sm:$0xff] }
  0xac   :  { %1037 = vmatpush2.msra.mxu0 %v846_v49  ;;  %1038 = vmatprep.mubr.f32.mxu0 %v6197_v0  ;;  %v725_v49 = vld [vmem:[#allocation10 + $0x38] sm:$0xff] }
  0xad   :  { %1108 = vmatpush2.msra.mxu1 %v848_v50  ;;  %1109 = vmatprep.mubr.f32.mxu1 %v6197_v0  ;;  %v722_v50 = vld [vmem:[#allocation10 + $0x20] sm:$0xff] }
  0xae   :  { %1039 = vmatmul.mubr.f32.vlgmr.msra.gmra.mxu0 %v6197_v0  ;;  %1110 = vmatmul.mubr.f32.vlgmr.msra.gmra.mxu1 %v6197_v0 }
  0xaf   :  { %1116 = vmatprep.subr.mxu0 %v843_v51  ;;  %1187 = vmatprep.subr.mxu1 %v845_v52  ;;  %v724_v51 = vld [vmem:[#allocation10 + $0x30] sm:$0xff]  ;;  %v971_v52 = vld [vmem:[#allocation10 + $0x7e8] sm:$0xff] }
  0xb0   :  { %1117 = vmatpush1.msra.mxu0 %v842_v53  ;;  %1188 = vmatpush1.msra.mxu1 %v844_v42  ;;  %v973_v53 = vld [vmem:[#allocation10 + $0x7f8] sm:$0xff]  ;;  %v970_v42 = vld [vmem:[#allocation10 + $0x7e0] sm:$0xff] }
  0xb1   :  { %1118 = vmatprep.subr.mxu0 %v835_v54  ;;  %1189 = vmatprep.subr.mxu1 %v837_v55  ;;  %v972_v54 = vld [vmem:[#allocation10 + $0x7f0] sm:$0xff]  ;;  %v963_v55 = vld [vmem:[#allocation10 + $0x7a8] sm:$0xff] }
  0xb2   :  { %1119 = vmatpush1.msra.mxu0 %v834_v56  ;;  %1190 = vmatpush1.msra.mxu1 %v836_v57  ;;  %v965_v56 = vld [vmem:[#allocation10 + $0x7b8] sm:$0xff]  ;;  %v962_v57 = vld [vmem:[#allocation10 + $0x7a0] sm:$0xff] }
  0xb3   :  { %1120 = vmatprep.subr.mxu0 %v827_v58  ;;  %1191 = vmatprep.subr.mxu1 %v829_v59  ;;  %v964_v58 = vld [vmem:[#allocation10 + $0x7b0] sm:$0xff]  ;;  %v955_v59 = vld [vmem:[#allocation10 + $0x768] sm:$0xff] }
  0xb4   :  { %1121 = vmatpush1.msra.mxu0 %v826_v60  ;;  %1192 = vmatpush1.msra.mxu1 %v828_v61  ;;  %v957_v60 = vld [vmem:[#allocation10 + $0x778] sm:$0xff]  ;;  %v954_v61 = vld [vmem:[#allocation10 + $0x760] sm:$0xff] }
  0xb5   :  { %1122 = vmatprep.subr.mxu0 %v819_v62  ;;  %1193 = vmatprep.subr.mxu1 %v821_v63  ;;  %v956_v62 = vld [vmem:[#allocation10 + $0x770] sm:$0xff]  ;;  %v947_v63 = vld [vmem:[#allocation10 + $0x728] sm:$0xff] }
  0xb6   :  { %1123 = vmatpush1.msra.mxu0 %v818_v1  ;;  %1194 = vmatpush1.msra.mxu1 %v820_v2  ;;  %v949_v1 = vld [vmem:[#allocation10 + $0x738] sm:$0xff]  ;;  %v946_v2 = vld [vmem:[#allocation10 + $0x720] sm:$0xff] }
  0xb7   :  { %1124 = vmatprep.subr.mxu0 %v811_v3  ;;  %1195 = vmatprep.subr.mxu1 %v813_v4  ;;  %v948_v3 = vld [vmem:[#allocation10 + $0x730] sm:$0xff]  ;;  %v939_v4 = vld [vmem:[#allocation10 + $0x6e8] sm:$0xff] }
  0xb8   :  { %1125 = vmatpush1.msra.mxu0 %v810_v22  ;;  %1196 = vmatpush1.msra.mxu1 %v812_v5  ;;  %v941_v22 = vld [vmem:[#allocation10 + $0x6f8] sm:$0xff]  ;;  %v938_v5 = vld [vmem:[#allocation10 + $0x6e0] sm:$0xff] }
  0xb9   :  { %1126 = vmatprep.subr.mxu0 %v803_v6  ;;  %1197 = vmatprep.subr.mxu1 %v805_v7  ;;  %v940_v6 = vld [vmem:[#allocation10 + $0x6f0] sm:$0xff]  ;;  %v931_v7 = vld [vmem:[#allocation10 + $0x6a8] sm:$0xff] }
  0xba   :  { %1127 = vmatpush1.msra.mxu0 %v802_v8  ;;  %1198 = vmatpush1.msra.mxu1 %v804_v9  ;;  %v933_v8 = vld [vmem:[#allocation10 + $0x6b8] sm:$0xff]  ;;  %v930_v9 = vld [vmem:[#allocation10 + $0x6a0] sm:$0xff] }
  0xbb   :  { %1128 = vmatprep.subr.mxu0 %v795_v10  ;;  %1199 = vmatprep.subr.mxu1 %v797_v11  ;;  %v932_v10 = vld [vmem:[#allocation10 + $0x6b0] sm:$0xff]  ;;  %v923_v11 = vld [vmem:[#allocation10 + $0x668] sm:$0xff] }
  0xbc   :  { %1129 = vmatpush1.msra.mxu0 %v794_v27  ;;  %1200 = vmatpush1.msra.mxu1 %v796_v12  ;;  %v925_v27 = vld [vmem:[#allocation10 + $0x678] sm:$0xff]  ;;  %v922_v12 = vld [vmem:[#allocation10 + $0x660] sm:$0xff] }
  0xbd   :  { %1130 = vmatprep.subr.mxu0 %v787_v13  ;;  %1201 = vmatprep.subr.mxu1 %v789_v14  ;;  %v924_v13 = vld [vmem:[#allocation10 + $0x670] sm:$0xff]  ;;  %v915_v14 = vld [vmem:[#allocation10 + $0x628] sm:$0xff] }
  0xbe   :  { %1131 = vmatpush1.msra.mxu0 %v786_v15  ;;  %1202 = vmatpush1.msra.mxu1 %v788_v16  ;;  %v917_v15 = vld [vmem:[#allocation10 + $0x638] sm:$0xff]  ;;  %v914_v16 = vld [vmem:[#allocation10 + $0x620] sm:$0xff] }
  0xbf   :  { %1132 = vmatprep.subr.mxu0 %v779_v17  ;;  %1203 = vmatprep.subr.mxu1 %v781_v18  ;;  %v916_v17 = vld [vmem:[#allocation10 + $0x630] sm:$0xff]  ;;  %v907_v18 = vld [vmem:[#allocation10 + $0x5e8] sm:$0xff] }
  0xc0   :  { %1133 = vmatpush1.msra.mxu0 %v778_v32  ;;  %1204 = vmatpush1.msra.mxu1 %v780_v19  ;;  %v909_v32 = vld [vmem:[#allocation10 + $0x5f8] sm:$0xff]  ;;  %v906_v19 = vld [vmem:[#allocation10 + $0x5e0] sm:$0xff] }
  0xc1   :  { %1134 = vmatprep.subr.mxu0 %v771_v20  ;;  %1205 = vmatprep.subr.mxu1 %v773_v21  ;;  %v908_v20 = vld [vmem:[#allocation10 + $0x5f0] sm:$0xff]  ;;  %v899_v21 = vld [vmem:[#allocation10 + $0x5a8] sm:$0xff] }
  0xc2   :  { %1135 = vmatpush1.msra.mxu0 %v770_v23  ;;  %1206 = vmatpush1.msra.mxu1 %v772_v24  ;;  %v901_v23 = vld [vmem:[#allocation10 + $0x5b8] sm:$0xff]  ;;  %v898_v24 = vld [vmem:[#allocation10 + $0x5a0] sm:$0xff] }
  0xc3   :  { %1136 = vmatprep.subr.mxu0 %v763_v25  ;;  %1207 = vmatprep.subr.mxu1 %v765_v26  ;;  %v900_v25 = vld [vmem:[#allocation10 + $0x5b0] sm:$0xff]  ;;  %v891_v26 = vld [vmem:[#allocation10 + $0x568] sm:$0xff] }
  0xc4   :  { %1137 = vmatpush1.msra.mxu0 %v762_v37  ;;  %1208 = vmatpush1.msra.mxu1 %v764_v28  ;;  %v893_v37 = vld [vmem:[#allocation10 + $0x578] sm:$0xff]  ;;  %v890_v28 = vld [vmem:[#allocation10 + $0x560] sm:$0xff] }
  0xc5   :  { %1138 = vmatprep.subr.mxu0 %v755_v29  ;;  %1209 = vmatprep.subr.mxu1 %v757_v30  ;;  %v892_v29 = vld [vmem:[#allocation10 + $0x570] sm:$0xff]  ;;  %v883_v30 = vld [vmem:[#allocation10 + $0x528] sm:$0xff] }
  0xc6   :  { %1139 = vmatpush1.msra.mxu0 %v754_v31  ;;  %1210 = vmatpush1.msra.mxu1 %v756_v33  ;;  %v885_v31 = vld [vmem:[#allocation10 + $0x538] sm:$0xff]  ;;  %v882_v33 = vld [vmem:[#allocation10 + $0x520] sm:$0xff] }
  0xc7   :  { %1140 = vmatprep.subr.mxu0 %v747_v34  ;;  %1211 = vmatprep.subr.mxu1 %v749_v35  ;;  %v884_v34 = vld [vmem:[#allocation10 + $0x530] sm:$0xff]  ;;  %v875_v35 = vld [vmem:[#allocation10 + $0x4e8] sm:$0xff] }
  0xc8   :  { %1141 = vmatpush1.msra.mxu0 %v746_v40  ;;  %1212 = vmatpush1.msra.mxu1 %v748_v36  ;;  %v877_v40 = vld [vmem:[#allocation10 + $0x4f8] sm:$0xff]  ;;  %v874_v36 = vld [vmem:[#allocation10 + $0x4e0] sm:$0xff] }
  0xc9   :  { %1142 = vmatprep.subr.mxu0 %v739_v38  ;;  %1213 = vmatprep.subr.mxu1 %v741_v39  ;;  %v876_v38 = vld [vmem:[#allocation10 + $0x4f0] sm:$0xff]  ;;  %v867_v39 = vld [vmem:[#allocation10 + $0x4a8] sm:$0xff] }
  0xca   :  { %1143 = vmatpush1.msra.mxu0 %v738_v43  ;;  %1214 = vmatpush1.msra.mxu1 %v740_v44  ;;  %v869_v43 = vld [vmem:[#allocation10 + $0x4b8] sm:$0xff]  ;;  %v866_v44 = vld [vmem:[#allocation10 + $0x4a0] sm:$0xff] }
  0xcb   :  { %1144 = vmatprep.subr.mxu0 %v731_v45  ;;  %1215 = vmatprep.subr.mxu1 %v733_v46  ;;  %v868_v45 = vld [vmem:[#allocation10 + $0x4b0] sm:$0xff]  ;;  %v859_v46 = vld [vmem:[#allocation10 + $0x468] sm:$0xff] }
  0xcc   :  { %1145 = vmatpush1.msra.mxu0 %v730_v41  ;;  %1216 = vmatpush1.msra.mxu1 %v732_v47  ;;  %v861_v41 = vld [vmem:[#allocation10 + $0x478] sm:$0xff]  ;;  %v858_v47 = vld [vmem:[#allocation10 + $0x460] sm:$0xff] }
  0xcd   :  { %1146 = vmatprep.subr.mxu0 %v723_v48  ;;  %1217 = vmatprep.subr.mxu1 %v725_v49  ;;  %v860_v48 = vld [vmem:[#allocation10 + $0x470] sm:$0xff]  ;;  %v851_v49 = vld [vmem:[#allocation10 + $0x428] sm:$0xff] }
  0xce   :  { %1147 = vmatpush1.msra.mxu0 %v722_v50  ;;  %1218 = vmatpush1.msra.mxu1 %v724_v51  ;;  %v853_v50 = vld [vmem:[#allocation10 + $0x438] sm:$0xff]  ;;  %v850_v51 = vld [vmem:[#allocation10 + $0x420] sm:$0xff] }
  0xcf   :  { %1148 = vmatprep.subr.mxu0 %v971_v52  ;;  %1219 = vmatprep.subr.mxu1 %v973_v53  ;;  %v852_v52 = vld [vmem:[#allocation10 + $0x430] sm:$0xff]  ;;  %v125_v53 = vlaneseq }
  0xd0   :  { %1149 = vmatpush2.msra.mxu0 %v970_v42  ;;  %1220 = vmatpush2.msra.mxu1 %v972_v54 }
  0xd1   :  { %1150 = vmatprep.subr.mxu0 %v963_v55  ;;  %1221 = vmatprep.subr.mxu1 %v965_v56  ;;  %v6376_v42 = vshrl.u32 %v125_v53, 7  ;;  %v6380_v56 = vld [vmem:[#allocation11] sm:$0xff] }
  0xd2   :  { %1151 = vmatpush2.msra.mxu0 %v962_v57  ;;  %1222 = vmatpush2.msra.mxu1 %v964_v58 }
  0xd3   :  { %1152 = vmatprep.subr.mxu0 %v955_v59  ;;  %1223 = vmatprep.subr.mxu1 %v957_v60  ;;  %v127_v54 = vsub.s32 0, %v6376_v42  ;;  %v135_v55 = vsub.s32 2, %v6376_v42  ;;  %v131_v59 = vsub.s32 1, %v6376_v42  ;;  %v139_v60 = vsub.s32 3, %v6376_v42 }
  0xd4   :  { %1153 = vmatpush2.msra.mxu0 %v954_v61  ;;  %1224 = vmatpush2.msra.mxu1 %v956_v62 }
  0xd5   :  { %1154 = vmatprep.subr.mxu0 %v947_v63  ;;  %1225 = vmatprep.subr.mxu1 %v949_v1  ;;  %v6393_v62 = vrot.slane %v6380_v56, %v127_v54  ;;  %v6396_v63 = vrot.slane %v6380_v56, %v135_v55  ;;  %v1440_v55 = vld [vmem:[#allocation10 + $0x358] sm:$0xff] }
  0xd6   :  { %1155 = vmatpush2.msra.mxu0 %v946_v2  ;;  %1226 = vmatpush2.msra.mxu1 %v948_v3  ;;  %v6399_v3 = vrot.slane %v6380_v56, %v131_v59  ;;  %v1437_v59 = vld [vmem:[#allocation10 + $0x340] sm:$0xff] }
  0xd7   :  { %1156 = vmatprep.subr.mxu0 %v939_v4  ;;  %1227 = vmatprep.subr.mxu1 %v941_v22  ;;  %v6402_v4 = vrot.slane %v6380_v56, %v139_v60  ;;  %v1439_v60 = vld [vmem:[#allocation10 + $0x350] sm:$0xff] }
  0xd8   :  { %1157 = vmatpush2.msra.mxu0 %v938_v5  ;;  %1228 = vmatpush2.msra.mxu1 %v940_v6 }
  0xd9   :  { %1158 = vmatprep.subr.mxu0 %v931_v7  ;;  %1229 = vmatprep.subr.mxu1 %v933_v8 }
  0xda   :  { %1159 = vmatpush2.msra.mxu0 %v930_v9  ;;  %1230 = vmatpush2.msra.mxu1 %v932_v10 }
  0xdb   :  { %1160 = vmatprep.subr.mxu0 %v923_v11  ;;  %1231 = vmatprep.subr.mxu1 %v925_v27 }
  0xdc   :  { %1161 = vmatpush2.msra.mxu0 %v922_v12  ;;  %1232 = vmatpush2.msra.mxu1 %v924_v13 }
  0xdd   :  { %1162 = vmatprep.subr.mxu0 %v915_v14  ;;  %1233 = vmatprep.subr.mxu1 %v917_v15 }
  0xde   :  { %1163 = vmatpush2.msra.mxu0 %v914_v16  ;;  %1234 = vmatpush2.msra.mxu1 %v916_v17 }
  0xdf   :  { %1164 = vmatprep.subr.mxu0 %v907_v18  ;;  %1235 = vmatprep.subr.mxu1 %v909_v32 }
  0xe0   :  { %1165 = vmatpush2.msra.mxu0 %v906_v19  ;;  %1236 = vmatpush2.msra.mxu1 %v908_v20 }
  0xe1   :  { %1166 = vmatprep.subr.mxu0 %v899_v21  ;;  %1237 = vmatprep.subr.mxu1 %v901_v23 }
  0xe2   :  { %1167 = vmatpush2.msra.mxu0 %v898_v24  ;;  %1238 = vmatpush2.msra.mxu1 %v900_v25 }
  0xe3   :  { %1168 = vmatprep.subr.mxu0 %v891_v26  ;;  %1239 = vmatprep.subr.mxu1 %v893_v37 }
  0xe4   :  { %1169 = vmatpush2.msra.mxu0 %v890_v28  ;;  %1240 = vmatpush2.msra.mxu1 %v892_v29 }
  0xe5   :  { %1170 = vmatprep.subr.mxu0 %v883_v30  ;;  %1241 = vmatprep.subr.mxu1 %v885_v31 }
  0xe6   :  { %1171 = vmatpush2.msra.mxu0 %v882_v33  ;;  %1242 = vmatpush2.msra.mxu1 %v884_v34 }
  0xe7   :  { %1172 = vmatprep.subr.mxu0 %v875_v35  ;;  %1243 = vmatprep.subr.mxu1 %v877_v40 }
  0xe8   :  { %1173 = vmatpush2.msra.mxu0 %v874_v36  ;;  %1244 = vmatpush2.msra.mxu1 %v876_v38  ;;  %v1454_v38 = vld [vmem:[#allocation10 + $0x3c8] sm:$0xff] }
  0xe9   :  { %1174 = vmatprep.subr.mxu0 %v867_v39  ;;  %1245 = vmatprep.subr.mxu1 %v869_v43  ;;  %v1456_v39 = vld [vmem:[#allocation10 + $0x3d8] sm:$0xff]  ;;  %v1453_v43 = vld [vmem:[#allocation10 + $0x3c0] sm:$0xff] }
  0xea   :  { %1175 = vmatpush2.msra.mxu0 %v866_v44  ;;  %1246 = vmatpush2.msra.mxu1 %v868_v45 }
  0xeb   :  { %1176 = vmatprep.subr.mxu0 %v859_v46  ;;  %1247 = vmatprep.subr.mxu1 %v861_v41  ;;  %v1455_v46 = vld [vmem:[#allocation10 + $0x3d0] sm:$0xff]  ;;  %v1446_v41 = vld [vmem:[#allocation10 + $0x388] sm:$0xff] }
  0xec   :  { %1177 = vmatpush2.msra.mxu0 %v858_v47  ;;  %1248 = vmatpush2.msra.mxu1 %v860_v48  ;;  %v1448_v47 = vld [vmem:[#allocation10 + $0x398] sm:$0xff] }
  0xed   :  { %1178 = vmatprep.subr.mxu0 %v851_v49  ;;  %1249 = vmatprep.subr.mxu1 %v853_v50  ;;  %v1445_v50 = vld [vmem:[#allocation10 + $0x380] sm:$0xff] }
  0xee   :  { %1179 = vmatpush2.msra.mxu0 %v850_v51  ;;  %1180 = vmatprep.mubr.f32.mxu0 %v6197_v0  ;;  %v1447_v51 = vld [vmem:[#allocation10 + $0x390] sm:$0xff] }
  0xef   :  { %1250 = vmatpush2.msra.mxu1 %v852_v52  ;;  %1251 = vmatprep.mubr.f32.mxu1 %v6197_v0  ;;  %v1438_v52 = vld [vmem:[#allocation10 + $0x348] sm:$0xff] }
  0xf0   :  { %1181 = vmatmul.mubr.f32.vlgmr.msra.gmra.mxu0 %v6197_v0  ;;  %1252 = vmatmul.mubr.f32.vlgmr.msra.gmra.mxu1 %v6197_v0 }
  0xf1   :  { %1589 = vmatprep.subr.mxu0 %v1454_v38  ;;  %1660 = vmatprep.subr.mxu1 %v1456_v39  ;;  %v1414_v38 = vld [vmem:[#allocation10 + $0x288] sm:$0xff]  ;;  %v1416_v39 = vld [vmem:[#allocation10 + $0x298] sm:$0xff] }
  0xf2   :  { %1590 = vmatpush1.msra.mxu0 %v1453_v43  ;;  %1661 = vmatpush1.msra.mxu1 %v1455_v46  ;;  %v1415_v46 = vld [vmem:[#allocation10 + $0x290] sm:$0xff] }
  0xf3   :  { %1591 = vmatprep.subr.mxu0 %v1446_v41  ;;  %1662 = vmatprep.subr.mxu1 %v1448_v47 }
  0xf4   :  { %1592 = vmatpush1.msra.mxu0 %v1445_v50  ;;  %1663 = vmatpush1.msra.mxu1 %v1447_v51  ;;  %v1406_v50 = vld [vmem:[#allocation10 + $0x248] sm:$0xff]  ;;  %v1408_v51 = vld [vmem:[#allocation10 + $0x258] sm:$0xff] }
  0xf5   :  { %1593 = vmatprep.subr.mxu0 %v1438_v52  ;;  %1664 = vmatprep.subr.mxu1 %v1440_v55  ;;  %v1405_v52 = vld [vmem:[#allocation10 + $0x240] sm:$0xff]  ;;  %v1400_v55 = vld [vmem:[#allocation10 + $0x218] sm:$0xff] }
  0xf6   :  { %1594 = vmatpush1.msra.mxu0 %v1437_v59  ;;  %1665 = vmatpush1.msra.mxu1 %v1439_v60  ;;  %v1397_v59 = vld [vmem:[#allocation10 + $0x200] sm:$0xff]  ;;  %v1399_v60 = vld [vmem:[#allocation10 + $0x210] sm:$0xff] }
  0xff   :  { %v6382_v57 = vpop.f32.mrf.mxu0  ;;  %v6384_v58 = vpop.f32.mrf.mxu1 }
 0x101   :  { %v6388_v61 = vpop.f32.mrf.mxu0  ;;  %v6390_v0 = vpop.f32.mrf.mxu1 }
 0x103   :  { %v262_v1 = vpop.f32.mrf.mxu0  ;;  %v375_v2 = vpop.f32.mrf.mxu1 }
 0x104   :  { %v6405_v22 = vadd.f32 %v262_v1, %v6393_v62  ;;  %v6408_v5 = vadd.f32 %v375_v2, %v6396_v63 }
 0x105   :  { %v264_v6 = vpop.f32.mrf.mxu0  ;;  %v377_v7 = vpop.f32.mrf.mxu1 }
 0x106   :  { %v6411_v8 = vadd.f32 %v264_v6, %v6399_v3  ;;  %v6414_v9 = vadd.f32 %v377_v7, %v6402_v4  ;;  %v1430_v6 = vld [vmem:[#allocation10 + $0x308] sm:$0xff]  ;;  %v1432_v7 = vld [vmem:[#allocation10 + $0x318] sm:$0xff] }
 0x107   :  { %v268_v10 = vpop.f32.mrf.mxu0  ;;  %v381_v11 = vpop.f32.mrf.mxu1  ;;  %1595 = vmatprep.subr.mxu0 %v1430_v6  ;;  %1666 = vmatprep.subr.mxu1 %v1432_v7  ;;  %v1390_v6 = vld [vmem:[#allocation10 + $0x1c8] sm:$0xff]  ;;  %v1392_v7 = vld [vmem:[#allocation10 + $0x1d8] sm:$0xff] }
 0x108   :  { %v6417_v27 = vadd.f32 %v268_v10, %v6393_v62  ;;  %v6420_v12 = vadd.f32 %v381_v11, %v6396_v63 }
 0x109   :  { %v270_v13 = vpop.f32.mrf.mxu0  ;;  %v383_v14 = vpop.f32.mrf.mxu1 }
 0x10a   :  { %v6423_v15 = vadd.f32 %v270_v13, %v6399_v3  ;;  %v6426_v16 = vadd.f32 %v383_v14, %v6402_v4  ;;  %v1429_v13 = vld [vmem:[#allocation10 + $0x300] sm:$0xff]  ;;  %v1431_v14 = vld [vmem:[#allocation10 + $0x310] sm:$0xff] }
 0x10b   :  { %v274_v17 = vpop.f32.mrf.mxu0  ;;  %v387_v18 = vpop.f32.mrf.mxu1  ;;  %1596 = vmatpush1.msra.mxu0 %v1429_v13  ;;  %1667 = vmatpush1.msra.mxu1 %v1431_v14  ;;  %v1382_v13 = vld [vmem:[#allocation10 + $0x188] sm:$0xff]  ;;  %v1384_v14 = vld [vmem:[#allocation10 + $0x198] sm:$0xff] }
 0x10c   :  { %v6429_v32 = vadd.f32 %v274_v17, %v6393_v62  ;;  %v6432_v19 = vadd.f32 %v387_v18, %v6396_v63 }
 0x10d   :  { %v276_v20 = vpop.f32.mrf.mxu0  ;;  %v389_v21 = vpop.f32.mrf.mxu1 }
 0x10e   :  { %v6435_v23 = vadd.f32 %v276_v20, %v6399_v3  ;;  %v6438_v24 = vadd.f32 %v389_v21, %v6402_v4  ;;  %v1422_v20 = vld [vmem:[#allocation10 + $0x2c8] sm:$0xff]  ;;  %v1424_v21 = vld [vmem:[#allocation10 + $0x2d8] sm:$0xff] }
 0x10f   :  { %v280_v25 = vpop.f32.mrf.mxu0  ;;  %v393_v26 = vpop.f32.mrf.mxu1  ;;  %1597 = vmatprep.subr.mxu0 %v1422_v20  ;;  %1668 = vmatprep.subr.mxu1 %v1424_v21  ;;  %v1381_v20 = vld [vmem:[#allocation10 + $0x180] sm:$0xff]  ;;  %v1383_v21 = vld [vmem:[#allocation10 + $0x190] sm:$0xff] }
 0x110   :  { %v6441_v37 = vadd.f32 %v280_v25, %v6393_v62  ;;  %v6444_v28 = vadd.f32 %v393_v26, %v6396_v63 }
 0x111   :  { %v282_v29 = vpop.f32.mrf.mxu0  ;;  %v395_v30 = vpop.f32.mrf.mxu1 }
 0x112   :  { %v6447_v31 = vadd.f32 %v282_v29, %v6399_v3  ;;  %v6450_v33 = vadd.f32 %v395_v30, %v6402_v4  ;;  %v1421_v29 = vld [vmem:[#allocation10 + $0x2c0] sm:$0xff]  ;;  %v1423_v30 = vld [vmem:[#allocation10 + $0x2d0] sm:$0xff] }
 0x113   :  { %v286_v34 = vpop.f32.mrf.mxu0  ;;  %v399_v35 = vpop.f32.mrf.mxu1  ;;  %1598 = vmatpush1.msra.mxu0 %v1421_v29  ;;  %1669 = vmatpush1.msra.mxu1 %v1423_v30  ;;  %v1373_v29 = vld [vmem:[#allocation10 + $0x140] sm:$0xff]  ;;  %v1375_v30 = vld [vmem:[#allocation10 + $0x150] sm:$0xff] }
 0x114   :  { %v6453_v40 = vadd.f32 %v286_v34, %v6393_v62  ;;  %v6456_v36 = vadd.f32 %v399_v35, %v6396_v63  ;;  %1599 = vmatprep.subr.mxu0 %v1414_v38  ;;  %1670 = vmatprep.subr.mxu1 %v1416_v39  ;;  %v1366_v38 = vld [vmem:[#allocation10 + $0x108] sm:$0xff]  ;;  %v1368_v39 = vld [vmem:[#allocation10 + $0x118] sm:$0xff] }
 0x115   :  { %v288_v44 = vpop.f32.mrf.mxu0  ;;  %v401_v45 = vpop.f32.mrf.mxu1  ;;  %1671 = vmatpush1.msra.mxu1 %v1415_v46  ;;  %v1360_v46 = vld [vmem:[#allocation10 + $0xd8] sm:$0xff] }
 0x116   :  { %v6459_v48 = vadd.f32 %v288_v44, %v6399_v3  ;;  %v6462_v49 = vadd.f32 %v401_v45, %v6402_v4  ;;  %v1413_v45 = vld [vmem:[#allocation10 + $0x280] sm:$0xff]  ;;  %1672 = vmatprep.subr.mxu1 %v1408_v51  ;;  %v1359_v51 = vld [vmem:[#allocation10 + $0xd0] sm:$0xff] }
 0x117   :  { %v292_v53 = vpop.f32.mrf.mxu0  ;;  %v405_v54 = vpop.f32.mrf.mxu1  ;;  %1600 = vmatpush1.msra.mxu0 %v1413_v45  ;;  %v1358_v45 = vld [vmem:[#allocation10 + $0xc8] sm:$0xff] }
 0x118   :  { %6789 = vst [vmem:[#allocation22_spill] sm:$0xff] %v6462_v49  ;;  %v6465_v1 = vadd.f32 %v292_v53, %v6393_v62  ;;  %v6468_v2 = vadd.f32 %v405_v54, %v6396_v63  ;;  %v1407_v53 = vld [vmem:[#allocation10 + $0x250] sm:$0xff]  ;;  %v1398_v54 = vld [vmem:[#allocation10 + $0x208] sm:$0xff]  ;;  %1601 = vmatprep.subr.mxu0 %v1406_v50  ;;  %v1357_v50 = vld [vmem:[#allocation10 + $0xc0] sm:$0xff] }
 0x119   :  { %v294_v10 = vpop.f32.mrf.mxu0  ;;  %v407_v11 = vpop.f32.mrf.mxu1  ;;  %1602 = vmatpush1.msra.mxu0 %v1405_v52  ;;  %1673 = vmatpush1.msra.mxu1 %v1407_v53  ;;  %v1350_v52 = vld [vmem:[#allocation10 + $0x88] sm:$0xff]  ;;  %v1352_v53 = vld [vmem:[#allocation10 + $0x98] sm:$0xff] }
 0x11a   :  { %6790 = vst [vmem:[#allocation23_spill] sm:$0xff] %v6465_v1  ;;  %6791 = vst [vmem:[#allocation24_spill] sm:$0xff] %v6468_v2  ;;  %v6471_v17 = vadd.f32 %v294_v10, %v6399_v3  ;;  %v6474_v18 = vadd.f32 %v407_v11, %v6402_v4  ;;  %1603 = vmatprep.subr.mxu0 %v1398_v54  ;;  %1674 = vmatprep.subr.mxu1 %v1400_v55  ;;  %v1389_v10 = vld [vmem:[#allocation10 + $0x1c0] sm:$0xff]  ;;  %v1391_v11 = vld [vmem:[#allocation10 + $0x1d0] sm:$0xff] }
 0x11b   :  { %v298_v25 = vpop.f32.mrf.mxu0  ;;  %v411_v26 = vpop.f32.mrf.mxu1  ;;  %1604 = vmatpush1.msra.mxu0 %v1397_v59  ;;  %1675 = vmatpush1.msra.mxu1 %v1399_v60  ;;  %v1349_v54 = vld [vmem:[#allocation10 + $0x80] sm:$0xff]  ;;  %v1351_v55 = vld [vmem:[#allocation10 + $0x90] sm:$0xff]  ;;  %v1342_v59 = vld [vmem:[#allocation10 + $0x48] sm:$0xff] }
 0x11c   :  { %6792 = vst [vmem:[#allocation25_spill] sm:$0xff] %v6471_v17  ;;  %6793 = vst [vmem:[#allocation26_spill] sm:$0xff] %v6474_v18  ;;  %v6477_v34 = vadd.f32 %v298_v25, %v6393_v62  ;;  %v6480_v35 = vadd.f32 %v411_v26, %v6396_v63  ;;  %1605 = vmatprep.subr.mxu0 %v1390_v6  ;;  %1676 = vmatprep.subr.mxu1 %v1392_v7  ;;  %v1374_v25 = vld [vmem:[#allocation10 + $0x148] sm:$0xff]  ;;  %v1376_v26 = vld [vmem:[#allocation10 + $0x158] sm:$0xff] }
 0x11d   :  { %v300_v43 = vpop.f32.mrf.mxu0  ;;  %v413_v44 = vpop.f32.mrf.mxu1  ;;  %1606 = vmatpush1.msra.mxu0 %v1389_v10  ;;  %1677 = vmatpush1.msra.mxu1 %v1391_v11  ;;  %v1344_v60 = vld [vmem:[#allocation10 + $0x58] sm:$0xff]  ;;  %v1341_v6 = vld [vmem:[#allocation10 + $0x40] sm:$0xff]  ;;  %v1343_v7 = vld [vmem:[#allocation10 + $0x50] sm:$0xff] }
 0x11e   :  { %6794 = vst [vmem:[#allocation27_spill] sm:$0xff] %v6477_v34  ;;  %6795 = vst [vmem:[#allocation28_spill] sm:$0xff] %v6480_v35  ;;  %v6483_v41 = vadd.f32 %v300_v43, %v6399_v3  ;;  %v6486_v47 = vadd.f32 %v413_v44, %v6402_v4  ;;  %1607 = vmatprep.subr.mxu0 %v1382_v13  ;;  %1678 = vmatprep.subr.mxu1 %v1384_v14  ;;  %v1365_v43 = vld [vmem:[#allocation10 + $0x100] sm:$0xff]  ;;  %v1367_v44 = vld [vmem:[#allocation10 + $0x110] sm:$0xff] }
 0x11f   :  { %1608 = vmatpush1.msra.mxu0 %v1381_v20  ;;  %1679 = vmatpush1.msra.mxu1 %v1383_v21  ;;  %v1334_v10 = vld [vmem:[#allocation10 + $0x8] sm:$0xff]  ;;  %v1336_v11 = vld [vmem:[#allocation10 + $0x18] sm:$0xff]  ;;  %v1333_v13 = vld [vmem:[#allocation10] sm:$0xff] }
 0x120   :  { %6796 = vst [vmem:[#allocation29_spill] sm:$0xff] %v6483_v41  ;;  %6797 = vst [vmem:[#allocation30_spill] sm:$0xff] %v6486_v47  ;;  %1609 = vmatprep.subr.mxu0 %v1374_v25  ;;  %1680 = vmatprep.subr.mxu1 %v1376_v26  ;;  %v1335_v14 = vld [vmem:[#allocation10 + $0x10] sm:$0xff]  ;;  %v1582_v20 = vld [vmem:[#allocation10 + $0x7c8] sm:$0xff] }
 0x121   :  { %1610 = vmatpush1.msra.mxu0 %v1373_v29  ;;  %1681 = vmatpush1.msra.mxu1 %v1375_v30  ;;  %v1584_v21 = vld [vmem:[#allocation10 + $0x7d8] sm:$0xff]  ;;  %v1581_v25 = vld [vmem:[#allocation10 + $0x7c0] sm:$0xff]  ;;  %v1583_v26 = vld [vmem:[#allocation10 + $0x7d0] sm:$0xff] }
 0x122   :  { %1611 = vmatprep.subr.mxu0 %v1366_v38  ;;  %1682 = vmatprep.subr.mxu1 %v1368_v39  ;;  %v1574_v29 = vld [vmem:[#allocation10 + $0x788] sm:$0xff]  ;;  %v1576_v30 = vld [vmem:[#allocation10 + $0x798] sm:$0xff]  ;;  %v1573_v38 = vld [vmem:[#allocation10 + $0x780] sm:$0xff] }
 0x123   :  { %1612 = vmatpush1.msra.mxu0 %v1365_v43  ;;  %1683 = vmatpush1.msra.mxu1 %v1367_v44  ;;  %v1575_v39 = vld [vmem:[#allocation10 + $0x790] sm:$0xff]  ;;  %v1566_v43 = vld [vmem:[#allocation10 + $0x748] sm:$0xff]  ;;  %v1568_v44 = vld [vmem:[#allocation10 + $0x758] sm:$0xff] }
 0x124   :  { %1613 = vmatprep.subr.mxu0 %v1358_v45  ;;  %1684 = vmatprep.subr.mxu1 %v1360_v46  ;;  %v1565_v45 = vld [vmem:[#allocation10 + $0x740] sm:$0xff]  ;;  %v1567_v46 = vld [vmem:[#allocation10 + $0x750] sm:$0xff] }
 0x125   :  { %1614 = vmatpush1.msra.mxu0 %v1357_v50  ;;  %1685 = vmatpush1.msra.mxu1 %v1359_v51  ;;  %v1558_v50 = vld [vmem:[#allocation10 + $0x708] sm:$0xff]  ;;  %v1560_v51 = vld [vmem:[#allocation10 + $0x718] sm:$0xff] }
 0x126   :  { %1615 = vmatprep.subr.mxu0 %v1350_v52  ;;  %1686 = vmatprep.subr.mxu1 %v1352_v53  ;;  %v1557_v52 = vld [vmem:[#allocation10 + $0x700] sm:$0xff]  ;;  %v1559_v53 = vld [vmem:[#allocation10 + $0x710] sm:$0xff] }
 0x127   :  { %1616 = vmatpush1.msra.mxu0 %v1349_v54  ;;  %1687 = vmatpush1.msra.mxu1 %v1351_v55  ;;  %v1550_v54 = vld [vmem:[#allocation10 + $0x6c8] sm:$0xff]  ;;  %v1552_v55 = vld [vmem:[#allocation10 + $0x6d8] sm:$0xff] }
 0x128   :  { %1617 = vmatprep.subr.mxu0 %v1342_v59  ;;  %1688 = vmatprep.subr.mxu1 %v1344_v60  ;;  %v1549_v59 = vld [vmem:[#allocation10 + $0x6c0] sm:$0xff]  ;;  %v1551_v60 = vld [vmem:[#allocation10 + $0x6d0] sm:$0xff] }
 0x129   :  { %1618 = vmatpush1.msra.mxu0 %v1341_v6  ;;  %1689 = vmatpush1.msra.mxu1 %v1343_v7  ;;  %v1542_v6 = vld [vmem:[#allocation10 + $0x688] sm:$0xff]  ;;  %v1544_v7 = vld [vmem:[#allocation10 + $0x698] sm:$0xff] }
 0x12a   :  { %1619 = vmatprep.subr.mxu0 %v1334_v10  ;;  %1690 = vmatprep.subr.mxu1 %v1336_v11  ;;  %v1541_v10 = vld [vmem:[#allocation10 + $0x680] sm:$0xff]  ;;  %v1543_v11 = vld [vmem:[#allocation10 + $0x690] sm:$0xff] }
 0x12b   :  { %1620 = vmatpush1.msra.mxu0 %v1333_v13  ;;  %1691 = vmatpush1.msra.mxu1 %v1335_v14  ;;  %v1534_v13 = vld [vmem:[#allocation10 + $0x648] sm:$0xff]  ;;  %v1536_v14 = vld [vmem:[#allocation10 + $0x658] sm:$0xff] }
 0x12c   :  { %1621 = vmatprep.subr.mxu0 %v1582_v20  ;;  %1692 = vmatprep.subr.mxu1 %v1584_v21  ;;  %v1533_v20 = vld [vmem:[#allocation10 + $0x640] sm:$0xff]  ;;  %v1535_v21 = vld [vmem:[#allocation10 + $0x650] sm:$0xff] }
 0x12d   :  { %1622 = vmatpush2.msra.mxu0 %v1581_v25  ;;  %1693 = vmatpush2.msra.mxu1 %v1583_v26  ;;  %v1526_v25 = vld [vmem:[#allocation10 + $0x608] sm:$0xff]  ;;  %v1528_v26 = vld [vmem:[#allocation10 + $0x618] sm:$0xff] }
 0x12e   :  { %1623 = vmatprep.subr.mxu0 %v1574_v29  ;;  %1694 = vmatprep.subr.mxu1 %v1576_v30  ;;  %v1525_v29 = vld [vmem:[#allocation10 + $0x600] sm:$0xff]  ;;  %v1527_v30 = vld [vmem:[#allocation10 + $0x610] sm:$0xff] }
 0x12f   :  { %1624 = vmatpush2.msra.mxu0 %v1573_v38  ;;  %1695 = vmatpush2.msra.mxu1 %v1575_v39  ;;  %v1518_v38 = vld [vmem:[#allocation10 + $0x5c8] sm:$0xff]  ;;  %v1520_v39 = vld [vmem:[#allocation10 + $0x5d8] sm:$0xff] }
 0x130   :  { %1625 = vmatprep.subr.mxu0 %v1566_v43  ;;  %1696 = vmatprep.subr.mxu1 %v1568_v44  ;;  %v1517_v43 = vld [vmem:[#allocation10 + $0x5c0] sm:$0xff]  ;;  %v1519_v44 = vld [vmem:[#allocation10 + $0x5d0] sm:$0xff] }
 0x131   :  { %1626 = vmatpush2.msra.mxu0 %v1565_v45  ;;  %1697 = vmatpush2.msra.mxu1 %v1567_v46  ;;  %v1510_v45 = vld [vmem:[#allocation10 + $0x588] sm:$0xff]  ;;  %v1512_v46 = vld [vmem:[#allocation10 + $0x598] sm:$0xff] }
 0x132   :  { %1627 = vmatprep.subr.mxu0 %v1558_v50  ;;  %1698 = vmatprep.subr.mxu1 %v1560_v51  ;;  %v1509_v50 = vld [vmem:[#allocation10 + $0x580] sm:$0xff]  ;;  %v1511_v51 = vld [vmem:[#allocation10 + $0x590] sm:$0xff] }
 0x133   :  { %1628 = vmatpush2.msra.mxu0 %v1557_v52  ;;  %1699 = vmatpush2.msra.mxu1 %v1559_v53  ;;  %v1502_v52 = vld [vmem:[#allocation10 + $0x548] sm:$0xff]  ;;  %v1504_v53 = vld [vmem:[#allocation10 + $0x558] sm:$0xff] }
 0x134   :  { %1629 = vmatprep.subr.mxu0 %v1550_v54  ;;  %1700 = vmatprep.subr.mxu1 %v1552_v55  ;;  %v1501_v54 = vld [vmem:[#allocation10 + $0x540] sm:$0xff]  ;;  %v1503_v55 = vld [vmem:[#allocation10 + $0x550] sm:$0xff] }
 0x135   :  { %1630 = vmatpush2.msra.mxu0 %v1549_v59  ;;  %1701 = vmatpush2.msra.mxu1 %v1551_v60  ;;  %v1494_v59 = vld [vmem:[#allocation10 + $0x508] sm:$0xff]  ;;  %v1496_v60 = vld [vmem:[#allocation10 + $0x518] sm:$0xff] }
 0x136   :  { %1631 = vmatprep.subr.mxu0 %v1542_v6  ;;  %1702 = vmatprep.subr.mxu1 %v1544_v7  ;;  %v1493_v6 = vld [vmem:[#allocation10 + $0x500] sm:$0xff]  ;;  %v1495_v7 = vld [vmem:[#allocation10 + $0x510] sm:$0xff] }
 0x137   :  { %1632 = vmatpush2.msra.mxu0 %v1541_v10  ;;  %1703 = vmatpush2.msra.mxu1 %v1543_v11  ;;  %v1486_v10 = vld [vmem:[#allocation10 + $0x4c8] sm:$0xff]  ;;  %v1488_v11 = vld [vmem:[#allocation10 + $0x4d8] sm:$0xff] }
 0x138   :  { %1633 = vmatprep.subr.mxu0 %v1534_v13  ;;  %1704 = vmatprep.subr.mxu1 %v1536_v14  ;;  %v1485_v13 = vld [vmem:[#allocation10 + $0x4c0] sm:$0xff]  ;;  %v1487_v14 = vld [vmem:[#allocation10 + $0x4d0] sm:$0xff] }
 0x139   :  { %1634 = vmatpush2.msra.mxu0 %v1533_v20  ;;  %1705 = vmatpush2.msra.mxu1 %v1535_v21  ;;  %v1478_v20 = vld [vmem:[#allocation10 + $0x488] sm:$0xff]  ;;  %v1480_v21 = vld [vmem:[#allocation10 + $0x498] sm:$0xff] }
 0x13a   :  { %1635 = vmatprep.subr.mxu0 %v1526_v25  ;;  %1706 = vmatprep.subr.mxu1 %v1528_v26  ;;  %v1477_v25 = vld [vmem:[#allocation10 + $0x480] sm:$0xff]  ;;  %v1479_v26 = vld [vmem:[#allocation10 + $0x490] sm:$0xff] }
 0x13b   :  { %1636 = vmatpush2.msra.mxu0 %v1525_v29  ;;  %1707 = vmatpush2.msra.mxu1 %v1527_v30  ;;  %v6488_v29 = vpop.f32.mrf.mxu0  ;;  %v1470_v30 = vld [vmem:[#allocation10 + $0x448] sm:$0xff] }
 0x13c   :  { %1637 = vmatprep.subr.mxu0 %v1518_v38  ;;  %1708 = vmatprep.subr.mxu1 %v1520_v39  ;;  %v1472_v38 = vld [vmem:[#allocation10 + $0x458] sm:$0xff]  ;;  %v1469_v39 = vld [vmem:[#allocation10 + $0x440] sm:$0xff] }
 0x13d   :  { %1638 = vmatpush2.msra.mxu0 %v1517_v43  ;;  %1709 = vmatpush2.msra.mxu1 %v1519_v44  ;;  %v1471_v43 = vld [vmem:[#allocation10 + $0x450] sm:$0xff]  ;;  %v6490_v44 = vpop.f32.mrf.mxu1 }
 0x13e   :  { %1639 = vmatprep.subr.mxu0 %v1510_v45  ;;  %1710 = vmatprep.subr.mxu1 %v1512_v46  ;;  %v1462_v45 = vld [vmem:[#allocation10 + $0x408] sm:$0xff]  ;;  %v1464_v46 = vld [vmem:[#allocation10 + $0x418] sm:$0xff] }
 0x13f   :  { %1640 = vmatpush2.msra.mxu0 %v1509_v50  ;;  %1711 = vmatpush2.msra.mxu1 %v1511_v51  ;;  %v1461_v50 = vld [vmem:[#allocation10 + $0x400] sm:$0xff]  ;;  %v1463_v51 = vld [vmem:[#allocation10 + $0x410] sm:$0xff] }
 0x140   :  { %1641 = vmatprep.subr.mxu0 %v1502_v52  ;;  %1712 = vmatprep.subr.mxu1 %v1504_v53  ;;  %v6492_v52 = vpop.f32.mrf.mxu0  ;;  %v6494_v53 = vpop.f32.mrf.mxu1 }
 0x141   :  { %1642 = vmatpush2.msra.mxu0 %v1501_v54  ;;  %1713 = vmatpush2.msra.mxu1 %v1503_v55  ;;  %v1458_v55 = vld [vmem:[#allocation10 + $0x3e8] sm:$0xff] }
 0x142   :  { %1643 = vmatprep.subr.mxu0 %v1494_v59  ;;  %1714 = vmatprep.subr.mxu1 %v1496_v60  ;;  %v1460_v59 = vld [vmem:[#allocation10 + $0x3f8] sm:$0xff] }
 0x143   :  { %1644 = vmatpush2.msra.mxu0 %v1493_v6  ;;  %1715 = vmatpush2.msra.mxu1 %v1495_v7 }
 0x144   :  { %1645 = vmatprep.subr.mxu0 %v1486_v10  ;;  %1716 = vmatprep.subr.mxu1 %v1488_v11  ;;  %v6496_v54 = vpop.f32.mrf.mxu0  ;;  %v6498_v60 = vpop.f32.mrf.mxu1 }
 0x145   :  { %1646 = vmatpush2.msra.mxu0 %v1485_v13  ;;  %1717 = vmatpush2.msra.mxu1 %v1487_v14 }
 0x146   :  { %1647 = vmatprep.subr.mxu0 %v1478_v20  ;;  %1718 = vmatprep.subr.mxu1 %v1480_v21  ;;  %v6500_v6 = vpop.f32.mrf.mxu0  ;;  %v6502_v7 = vpop.f32.mrf.mxu1 }
 0x147   :  { %1648 = vmatpush2.msra.mxu0 %v1477_v25  ;;  %1719 = vmatpush2.msra.mxu1 %v1479_v26 }
 0x148   :  { %1649 = vmatprep.subr.mxu0 %v1470_v30  ;;  %1720 = vmatprep.subr.mxu1 %v1472_v38 }
 0x149   :  { %1650 = vmatpush2.msra.mxu0 %v1469_v39  ;;  %1721 = vmatpush2.msra.mxu1 %v1471_v43 }
 0x14a   :  { %1651 = vmatprep.subr.mxu0 %v1462_v45  ;;  %1722 = vmatprep.subr.mxu1 %v1464_v46  ;;  %v6504_v10 = vpop.f32.mrf.mxu0  ;;  %v6506_v11 = vpop.f32.mrf.mxu1 }
 0x14b   :  { %1652 = vmatpush2.msra.mxu0 %v1461_v50  ;;  %1723 = vmatpush2.msra.mxu1 %v1463_v51 }
 0x14c   :  { %1731 = vmatprep.subr.mxu0 %v1458_v55  ;;  %1802 = vmatprep.subr.mxu1 %v1460_v59  ;;  %v6508_v13 = vpop.f32.mrf.mxu0  ;;  %v6510_v14 = vpop.f32.mrf.mxu1 }
 0x150   :  { %v6512_v20 = vpop.f32.mrf.mxu0  ;;  %v6514_v21 = vpop.f32.mrf.mxu1 }
 0x152   :  { %v6516_v25 = vpop.f32.mrf.mxu0  ;;  %v6518_v26 = vpop.f32.mrf.mxu1 }
 0x156   :  { %v6520_v30 = vpop.f32.mrf.mxu0  ;;  %v6522_v38 = vpop.f32.mrf.mxu1 }
 0x158   :  { %v6524_v39 = vpop.f32.mrf.mxu0  ;;  %v6526_v43 = vpop.f32.mrf.mxu1 }
 0x15c   :  { %v6528_v45 = vpop.f32.mrf.mxu0  ;;  %v6530_v46 = vpop.f32.mrf.mxu1 }
 0x15d   :  { %6798 = vst [vmem:[#allocation31_spill] sm:$0xff] %v6528_v45  ;;  %6799 = vst [vmem:[#allocation32_spill] sm:$0xff] %v6530_v46 }
 0x15e   :  { %v6532_v50 = vpop.f32.mrf.mxu0  ;;  %v6534_v51 = vpop.f32.mrf.mxu1 }
 0x15f   :  { %6800 = vst [vmem:[#allocation33_spill] sm:$0xff] %v6532_v50  ;;  %6801 = vst [vmem:[#allocation34_spill] sm:$0xff] %v6534_v51  ;;  %v257_v51 = vadd.f32 %v6382_v57, %v6393_v62  ;;  %v147_v62 = vsub.s32 5, %v6376_v42 }
 0x162   :  { %v6536_v55 = vpop.f32.mrf.mxu0  ;;  %v6538_v59 = vpop.f32.mrf.mxu1 }
 0x163   :  { %6802 = vst [vmem:[#allocation35_spill] sm:$0xff] %v6536_v55  ;;  %6803 = vst [vmem:[#allocation36_spill] sm:$0xff] %v6538_v59  ;;  %v370_v59 = vadd.f32 %v6384_v58, %v6396_v63  ;;  %v143_v58 = vsub.s32 4, %v6376_v42 }
 0x164   :  { %v6540_v47 = vpop.f32.mrf.mxu0  ;;  %v6542_v41 = vpop.f32.mrf.mxu1 }
 0x165   :  { %6804 = vst [vmem:[#allocation37_spill] sm:$0xff] %v6540_v47  ;;  %6805 = vst [vmem:[#allocation38_spill] sm:$0xff] %v6542_v41  ;;  %v259_v41 = vadd.f32 %v6388_v61, %v6399_v3  ;;  %v151_v61 = vsub.s32 6, %v6376_v42  ;;  %v155_v3 = vsub.s32 7, %v6376_v42 }
 0x168   :  { %v6544_v35 = vpop.f32.mrf.mxu0  ;;  %v6546_v34 = vpop.f32.mrf.mxu1 }
 0x169   :  { %6806 = vst [vmem:[#allocation39_spill] sm:$0xff] %v6544_v35  ;;  %6807 = vst [vmem:[#allocation40_spill] sm:$0xff] %v6546_v34 }
 0x16a   :  { %v6548_v18 = vpop.f32.mrf.mxu0  ;;  %v6550_v17 = vpop.f32.mrf.mxu1 }
 0x16b   :  { %6808 = vst [vmem:[#allocation41_spill] sm:$0xff] %v6548_v18  ;;  %6809 = vst [vmem:[#allocation42_spill] sm:$0xff] %v6550_v17  ;;  %v372_v18 = vadd.f32 %v6390_v0, %v6402_v4 }
 0x16e   :  { %v1040_v2 = vpop.f32.mrf.mxu0  ;;  %v1111_v1 = vpop.f32.mrf.mxu1 }
 0x16f   :  { %v1258_v47 = vadd.f32 %v1040_v2, %v257_v51  ;;  %v1260_v35 = vadd.f32 %v1111_v1, %v370_v59  ;;  %v6565_v1 = vrot.slane %v6380_v56, %v143_v58  ;;  %v6568_v2 = vrot.slane %v6380_v56, %v151_v61 }
 0x170   :  { %v1042_v55 = vpop.f32.mrf.mxu0  ;;  %v1113_v50 = vpop.f32.mrf.mxu1 }
 0x171   :  { %v1259_v34 = vadd.f32 %v1042_v55, %v259_v41  ;;  %v5721_v17 = vmul.f32 -1.442695, %v1258_v47  ;;  %v1261_v46 = vadd.f32 %v1113_v50, %v372_v18  ;;  %v5723_v45 = vmul.f32 -1.442695, %v1260_v35 }
 0x172   :  { %v483_v42 = vadd.f32 %v6488_v29, %v6565_v1  ;;  %v596_v47 = vadd.f32 %v6490_v44, %v6568_v2 }
 0x173   :  { %v5722_v49 = vmul.f32 -1.442695, %v1259_v34  ;;  %5783 = vpow2.f32 %v5721_v17  ;;  %v5724_v57 = vmul.f32 -1.442695, %v1261_v46  ;;  %v6574_v34 = vrot.slane %v6380_v56, %v155_v3 }
 0x174   :  { %5785 = vpow2.f32 %v5723_v45 }
 0x175   :  { %5787 = vpow2.f32 %v5722_v49  ;;  %v6571_v49 = vrot.slane %v6380_v56, %v147_v62  ;;  %v598_v55 = vadd.f32 %v6494_v53, %v6574_v34 }
 0x176   :  { %5789 = vpow2.f32 %v5724_v57 }
 0x177   :  { %v485_v45 = vadd.f32 %v6492_v52, %v6571_v49 }
 0x180   :  { %v5784_v63 = vpop.eup %5783 }
 0x181   :  { %v5786_v0 = vpop.eup %5785  ;;  %v1272_v17 = vadd.f32 1.0, %v5784_v63 }
 0x182   :  { %v5788_v4 = vpop.eup %5787  ;;  %v1284_v35 = vadd.f32 1.0, %v5786_v0 }
 0x183   :  { %v5790_v18 = vpop.eup %5789  ;;  %v1273_v41 = vadd.f32 1.0, %v5788_v4  ;;  %5791 = vrcp.f32 %v1272_v17 }
 0x184   :  { %v1285_v46 = vadd.f32 1.0, %v5790_v18  ;;  %5793 = vrcp.f32 %v1284_v35 }
 0x185   :  { %5795 = vrcp.f32 %v1273_v41 }
 0x190   :  { %v5792_v62 = vpop.eup %5791 }
 0x191   :  { %v5794_v63 = vpop.eup %5793 }
 0x192   :  { %v5796_v3 = vpop.eup %5795  ;;  %v1304_v4 = vmul.f32 0.0, %v5794_v63  ;;  %v1449_v63 = vld [vmem:[#allocation10 + $0x3a0] sm:$0xff] }
 0x1b0   :  { %v1182_v50 = vpop.f32.mrf.mxu0  ;;  %v1253_v51 = vpop.f32.mrf.mxu1 }
 0x1b1   :  { %v1262_v56 = vadd.f32 %v1182_v50, %v483_v42  ;;  %v1264_v59 = vadd.f32 %v1253_v51, %v596_v47 }
 0x1b2   :  { %v1184_v57 = vpop.f32.mrf.mxu0  ;;  %v1255_v58 = vpop.f32.mrf.mxu1 }
 0x1b3   :  { %5797 = vtanh.f32 %v1262_v56  ;;  %v5725_v29 = vmul.f32 -1.442695, %v1264_v59  ;;  %v1263_v61 = vadd.f32 %v1184_v57, %v485_v45  ;;  %v1265_v44 = vadd.f32 %v1255_v58, %v598_v55 }
 0x1b4   :  { %5799 = vrcp.f32 %v1285_v46 }
 0x1b5   :  { %5801 = vpow2.f32 %v5725_v29  ;;  %v5726_v52 = vmul.f32 -1.442695, %v1265_v44  ;;  %v1459_v44 = vld [vmem:[#allocation10 + $0x3f0] sm:$0xff] }
 0x1b6   :  { %5803 = vtanh.f32 %v1263_v61  ;;  %v1457_v61 = vld [vmem:[#allocation10 + $0x3e0] sm:$0xff] }
 0x1b7   :  { %5805 = vpow2.f32 %v5726_v52  ;;  %v1450_v52 = vld [vmem:[#allocation10 + $0x3a8] sm:$0xff] }
 0x1c0   :  { %v5798_v0 = vpop.eup %5797 }
 0x1c1   :  { %v5800_v53 = vpop.eup %5799  ;;  %v1306_v17 = vmul.f32 %v5798_v0, %v5792_v62  ;;  %v1452_v62 = vld [vmem:[#allocation10 + $0x3b8] sm:$0xff]  ;;  %v1442_v0 = vld [vmem:[#allocation10 + $0x368] sm:$0xff] }
 0x1c2   :  { %v5802_v18 = vpop.eup %5801  ;;  %v1305_v45 = vmul.f32 0.0, %v5800_v53  ;;  %v1444_v53 = vld [vmem:[#allocation10 + $0x378] sm:$0xff] }
 0x1c3   :  { %v5804_v35 = vpop.eup %5803  ;;  %v6584_v41 = vadd.f32 %v1306_v17, %v1304_v4  ;;  %v1298_v42 = vadd.f32 1.0, %v5802_v18  ;;  %v1441_v4 = vld [vmem:[#allocation10 + $0x360] sm:$0xff]  ;;  %v1443_v17 = vld [vmem:[#allocation10 + $0x370] sm:$0xff]  ;;  %v1434_v18 = vld [vmem:[#allocation10 + $0x328] sm:$0xff] }
 0x1c4   :  { %v5806_v47 = vpop.eup %5805  ;;  %v1307_v50 = vmul.f32 %v5804_v35, %v5796_v3  ;;  %v1451_v3 = vld [vmem:[#allocation10 + $0x3b0] sm:$0xff]  ;;  %v1436_v35 = vld [vmem:[#allocation10 + $0x338] sm:$0xff] }
 0x1c5   :  { %5807 = vtanh.f32 %v6584_v41  ;;  %v1299_v46 = vadd.f32 1.0, %v5806_v47  ;;  %v1435_v47 = vld [vmem:[#allocation10 + $0x330] sm:$0xff] }
 0x1c6   :  { %5809 = vrcp.f32 %v1298_v42  ;;  %v6587_v51 = vadd.f32 %v1307_v50, %v1305_v45  ;;  %v1433_v42 = vld [vmem:[#allocation10 + $0x320] sm:$0xff]  ;;  %v1426_v45 = vld [vmem:[#allocation10 + $0x2e8] sm:$0xff]  ;;  %v1428_v50 = vld [vmem:[#allocation10 + $0x2f8] sm:$0xff] }
 0x1c7   :  { %5811 = vrcp.f32 %v1299_v46  ;;  %v1425_v46 = vld [vmem:[#allocation10 + $0x2e0] sm:$0xff] }
 0x1c8   :  { %5813 = vtanh.f32 %v6587_v51 }
 0x1d2   :  { %v5808_v55 = vpop.eup %5807 }
 0x1d3   :  { %v5810_v56 = vpop.eup %5809 }
 0x1d4   :  { %v5812_v59 = vpop.eup %5811  ;;  %v6590_v57 = vmul.f32 %v5810_v56, %v5808_v55  ;;  %v1427_v55 = vld [vmem:[#allocation10 + $0x2f0] sm:$0xff]  ;;  %v1418_v56 = vld [vmem:[#allocation10 + $0x2a8] sm:$0xff] }
 0x1d5   :  { %v5814_v58 = vpop.eup %5813 }
 0x1d6   :  { %v1313_v29 = vmul.f32 %v5814_v58, %v5812_v59  ;;  %1318 = vst [vmem:[#allocation13] sm:$0xff] %v6590_v57  ;;  %v1420_v59 = vld [vmem:[#allocation10 + $0x2b8] sm:$0xff]  ;;  %v1417_v58 = vld [vmem:[#allocation10 + $0x2a0] sm:$0xff] }
 0x1d8   :  { %1319 = vst [vmem:[#allocation13 + $0x8] sm:$0xff] %v1313_v29  ;;  %1653 = vmatprep.mubr.f32.mxu0 %v1313_v29  ;;  %1724 = vmatprep.mubr.f32.mxu1 %v1313_v29 }
 0x1d9   :  { %1654 = vmatmul.mubr.f32.vlgmr.msra.gmra.mxu0 %v6590_v57  ;;  %1725 = vmatmul.mubr.f32.vlgmr.msra.gmra.mxu1 %v6590_v57 }
 0x1da   :  { %1732 = vmatpush1.msra.mxu0 %v1457_v61  ;;  %1803 = vmatpush1.msra.mxu1 %v1459_v44  ;;  %v1410_v61 = vld [vmem:[#allocation10 + $0x268] sm:$0xff]  ;;  %v1412_v44 = vld [vmem:[#allocation10 + $0x278] sm:$0xff] }
 0x1db   :  { %1733 = vmatprep.subr.mxu0 %v1450_v52  ;;  %1795 = vmatprep.mubr.f32.mxu0 %v1313_v29  ;;  %v1409_v52 = vld [vmem:[#allocation10 + $0x260] sm:$0xff] }
 0x1dc   :  { %1804 = vmatprep.subr.mxu1 %v1452_v62  ;;  %1866 = vmatprep.mubr.f32.mxu1 %v1313_v29  ;;  %v1419_v29 = vld [vmem:[#allocation10 + $0x2b0] sm:$0xff] }
 0x1dd   :  { %1734 = vmatpush1.msra.mxu0 %v1449_v63  ;;  %1805 = vmatpush1.msra.mxu1 %v1451_v3  ;;  %v1411_v62 = vld [vmem:[#allocation10 + $0x270] sm:$0xff]  ;;  %v1402_v63 = vld [vmem:[#allocation10 + $0x228] sm:$0xff]  ;;  %v1404_v3 = vld [vmem:[#allocation10 + $0x238] sm:$0xff] }
 0x1de   :  { %1735 = vmatprep.subr.mxu0 %v1442_v0  ;;  %1806 = vmatprep.subr.mxu1 %v1444_v53  ;;  %v1401_v0 = vld [vmem:[#allocation10 + $0x220] sm:$0xff]  ;;  %v1403_v53 = vld [vmem:[#allocation10 + $0x230] sm:$0xff] }
 0x1df   :  { %1736 = vmatpush1.msra.mxu0 %v1441_v4  ;;  %1807 = vmatpush1.msra.mxu1 %v1443_v17  ;;  %v1394_v4 = vld [vmem:[#allocation10 + $0x1e8] sm:$0xff]  ;;  %v1396_v17 = vld [vmem:[#allocation10 + $0x1f8] sm:$0xff] }
 0x1e0   :  { %1737 = vmatprep.subr.mxu0 %v1434_v18  ;;  %1808 = vmatprep.subr.mxu1 %v1436_v35  ;;  %v1393_v18 = vld [vmem:[#allocation10 + $0x1e0] sm:$0xff]  ;;  %v1395_v35 = vld [vmem:[#allocation10 + $0x1f0] sm:$0xff] }
 0x1e1   :  { %1738 = vmatpush1.msra.mxu0 %v1433_v42  ;;  %1809 = vmatpush1.msra.mxu1 %v1435_v47  ;;  %v1386_v42 = vld [vmem:[#allocation10 + $0x1a8] sm:$0xff]  ;;  %v1388_v47 = vld [vmem:[#allocation10 + $0x1b8] sm:$0xff] }
 0x1e2   :  { %1739 = vmatprep.subr.mxu0 %v1426_v45  ;;  %1810 = vmatprep.subr.mxu1 %v1428_v50  ;;  %v1385_v45 = vld [vmem:[#allocation10 + $0x1a0] sm:$0xff]  ;;  %v1387_v50 = vld [vmem:[#allocation10 + $0x1b0] sm:$0xff] }
 0x1e3   :  { %1740 = vmatpush1.msra.mxu0 %v1425_v46  ;;  %1811 = vmatpush1.msra.mxu1 %v1427_v55  ;;  %v1378_v46 = vld [vmem:[#allocation10 + $0x168] sm:$0xff]  ;;  %v1380_v55 = vld [vmem:[#allocation10 + $0x178] sm:$0xff] }
 0x1e4   :  { %1741 = vmatprep.subr.mxu0 %v1418_v56  ;;  %1812 = vmatprep.subr.mxu1 %v1420_v59  ;;  %v1377_v56 = vld [vmem:[#allocation10 + $0x160] sm:$0xff]  ;;  %v1379_v59 = vld [vmem:[#allocation10 + $0x170] sm:$0xff] }
 0x1e5   :  { %1742 = vmatpush1.msra.mxu0 %v1417_v58  ;;  %1813 = vmatpush1.msra.mxu1 %v1419_v29  ;;  %v1370_v58 = vld [vmem:[#allocation10 + $0x128] sm:$0xff]  ;;  %v1372_v29 = vld [vmem:[#allocation10 + $0x138] sm:$0xff] }
 0x1e6   :  { %1743 = vmatprep.subr.mxu0 %v1410_v61  ;;  %1814 = vmatprep.subr.mxu1 %v1412_v44  ;;  %v1369_v61 = vld [vmem:[#allocation10 + $0x120] sm:$0xff]  ;;  %v1371_v44 = vld [vmem:[#allocation10 + $0x130] sm:$0xff] }
 0x1e7   :  { %1744 = vmatpush1.msra.mxu0 %v1409_v52  ;;  %1815 = vmatpush1.msra.mxu1 %v1411_v62  ;;  %v1362_v52 = vld [vmem:[#allocation10 + $0xe8] sm:$0xff]  ;;  %v1364_v62 = vld [vmem:[#allocation10 + $0xf8] sm:$0xff] }
 0x1e8   :  { %1745 = vmatprep.subr.mxu0 %v1402_v63  ;;  %1816 = vmatprep.subr.mxu1 %v1404_v3  ;;  %v1361_v63 = vld [vmem:[#allocation10 + $0xe0] sm:$0xff]  ;;  %v1363_v3 = vld [vmem:[#allocation10 + $0xf0] sm:$0xff] }
 0x1e9   :  { %1746 = vmatpush1.msra.mxu0 %v1401_v0  ;;  %1817 = vmatpush1.msra.mxu1 %v1403_v53  ;;  %v1354_v0 = vld [vmem:[#allocation10 + $0xa8] sm:$0xff]  ;;  %v1356_v53 = vld [vmem:[#allocation10 + $0xb8] sm:$0xff] }
 0x1ea   :  { %1747 = vmatprep.subr.mxu0 %v1394_v4  ;;  %1818 = vmatprep.subr.mxu1 %v1396_v17  ;;  %v1353_v4 = vld [vmem:[#allocation10 + $0xa0] sm:$0xff]  ;;  %v1355_v17 = vld [vmem:[#allocation10 + $0xb0] sm:$0xff] }
 0x1eb   :  { %1748 = vmatpush1.msra.mxu0 %v1393_v18  ;;  %1819 = vmatpush1.msra.mxu1 %v1395_v35  ;;  %v1346_v18 = vld [vmem:[#allocation10 + $0x68] sm:$0xff]  ;;  %v1348_v35 = vld [vmem:[#allocation10 + $0x78] sm:$0xff] }
 0x1ec   :  { %1749 = vmatprep.subr.mxu0 %v1386_v42  ;;  %1820 = vmatprep.subr.mxu1 %v1388_v47  ;;  %v1345_v42 = vld [vmem:[#allocation10 + $0x60] sm:$0xff]  ;;  %v1347_v47 = vld [vmem:[#allocation10 + $0x70] sm:$0xff] }
 0x1ed   :  { %1750 = vmatpush1.msra.mxu0 %v1385_v45  ;;  %1821 = vmatpush1.msra.mxu1 %v1387_v50  ;;  %v1338_v45 = vld [vmem:[#allocation10 + $0x28] sm:$0xff]  ;;  %v1340_v50 = vld [vmem:[#allocation10 + $0x38] sm:$0xff] }
 0x1ee   :  { %1751 = vmatprep.subr.mxu0 %v1378_v46  ;;  %1822 = vmatprep.subr.mxu1 %v1380_v55  ;;  %v1337_v46 = vld [vmem:[#allocation10 + $0x20] sm:$0xff]  ;;  %v1339_v55 = vld [vmem:[#allocation10 + $0x30] sm:$0xff] }
 0x1ef   :  { %1752 = vmatpush1.msra.mxu0 %v1377_v56  ;;  %1823 = vmatpush1.msra.mxu1 %v1379_v59  ;;  %v1586_v56 = vld [vmem:[#allocation10 + $0x7e8] sm:$0xff]  ;;  %v1588_v59 = vld [vmem:[#allocation10 + $0x7f8] sm:$0xff] }
 0x1f0   :  { %1753 = vmatprep.subr.mxu0 %v1370_v58  ;;  %1824 = vmatprep.subr.mxu1 %v1372_v29  ;;  %v1585_v58 = vld [vmem:[#allocation10 + $0x7e0] sm:$0xff]  ;;  %v1587_v29 = vld [vmem:[#allocation10 + $0x7f0] sm:$0xff] }
 0x1f1   :  { %1754 = vmatpush1.msra.mxu0 %v1369_v61  ;;  %1825 = vmatpush1.msra.mxu1 %v1371_v44  ;;  %v1578_v61 = vld [vmem:[#allocation10 + $0x7a8] sm:$0xff]  ;;  %v1580_v44 = vld [vmem:[#allocation10 + $0x7b8] sm:$0xff] }
 0x1f2   :  { %1755 = vmatprep.subr.mxu0 %v1362_v52  ;;  %1826 = vmatprep.subr.mxu1 %v1364_v62  ;;  %v1577_v52 = vld [vmem:[#allocation10 + $0x7a0] sm:$0xff]  ;;  %v1579_v62 = vld [vmem:[#allocation10 + $0x7b0] sm:$0xff] }
 0x1f3   :  { %1756 = vmatpush1.msra.mxu0 %v1361_v63  ;;  %1827 = vmatpush1.msra.mxu1 %v1363_v3  ;;  %v1570_v63 = vld [vmem:[#allocation10 + $0x768] sm:$0xff]  ;;  %v1572_v3 = vld [vmem:[#allocation10 + $0x778] sm:$0xff] }
 0x1f4   :  { %1757 = vmatprep.subr.mxu0 %v1354_v0  ;;  %1828 = vmatprep.subr.mxu1 %v1356_v53  ;;  %v1569_v0 = vld [vmem:[#allocation10 + $0x760] sm:$0xff]  ;;  %v1571_v53 = vld [vmem:[#allocation10 + $0x770] sm:$0xff] }
 0x1f5   :  { %1758 = vmatpush1.msra.mxu0 %v1353_v4  ;;  %1829 = vmatpush1.msra.mxu1 %v1355_v17  ;;  %v1562_v4 = vld [vmem:[#allocation10 + $0x728] sm:$0xff]  ;;  %v1564_v17 = vld [vmem:[#allocation10 + $0x738] sm:$0xff] }
 0x1f6   :  { %1759 = vmatprep.subr.mxu0 %v1346_v18  ;;  %1830 = vmatprep.subr.mxu1 %v1348_v35  ;;  %v1561_v18 = vld [vmem:[#allocation10 + $0x720] sm:$0xff]  ;;  %v1563_v35 = vld [vmem:[#allocation10 + $0x730] sm:$0xff] }
 0x1f7   :  { %1760 = vmatpush1.msra.mxu0 %v1345_v42  ;;  %1831 = vmatpush1.msra.mxu1 %v1347_v47  ;;  %v1554_v42 = vld [vmem:[#allocation10 + $0x6e8] sm:$0xff]  ;;  %v1556_v47 = vld [vmem:[#allocation10 + $0x6f8] sm:$0xff] }
 0x1f8   :  { %1761 = vmatprep.subr.mxu0 %v1338_v45  ;;  %1832 = vmatprep.subr.mxu1 %v1340_v50  ;;  %v1553_v45 = vld [vmem:[#allocation10 + $0x6e0] sm:$0xff]  ;;  %v1555_v50 = vld [vmem:[#allocation10 + $0x6f0] sm:$0xff] }
 0x1f9   :  { %1762 = vmatpush1.msra.mxu0 %v1337_v46  ;;  %1833 = vmatpush1.msra.mxu1 %v1339_v55  ;;  %v1546_v46 = vld [vmem:[#allocation10 + $0x6a8] sm:$0xff]  ;;  %v1548_v55 = vld [vmem:[#allocation10 + $0x6b8] sm:$0xff] }
 0x1fa   :  { %1763 = vmatprep.subr.mxu0 %v1586_v56  ;;  %1834 = vmatprep.subr.mxu1 %v1588_v59  ;;  %v1545_v56 = vld [vmem:[#allocation10 + $0x6a0] sm:$0xff]  ;;  %v1547_v59 = vld [vmem:[#allocation10 + $0x6b0] sm:$0xff] }
 0x1fb   :  { %1764 = vmatpush2.msra.mxu0 %v1585_v58  ;;  %1835 = vmatpush2.msra.mxu1 %v1587_v29  ;;  %v1538_v58 = vld [vmem:[#allocation10 + $0x668] sm:$0xff]  ;;  %v1540_v29 = vld [vmem:[#allocation10 + $0x678] sm:$0xff] }
 0x1fc   :  { %1765 = vmatprep.subr.mxu0 %v1578_v61  ;;  %1836 = vmatprep.subr.mxu1 %v1580_v44  ;;  %v1537_v61 = vld [vmem:[#allocation10 + $0x660] sm:$0xff]  ;;  %v1539_v44 = vld [vmem:[#allocation10 + $0x670] sm:$0xff] }
 0x1fd   :  { %1766 = vmatpush2.msra.mxu0 %v1577_v52  ;;  %1837 = vmatpush2.msra.mxu1 %v1579_v62  ;;  %v1530_v52 = vld [vmem:[#allocation10 + $0x628] sm:$0xff]  ;;  %v1532_v62 = vld [vmem:[#allocation10 + $0x638] sm:$0xff] }
 0x1fe   :  { %1767 = vmatprep.subr.mxu0 %v1570_v63  ;;  %1838 = vmatprep.subr.mxu1 %v1572_v3  ;;  %v1529_v63 = vld [vmem:[#allocation10 + $0x620] sm:$0xff]  ;;  %v1531_v3 = vld [vmem:[#allocation10 + $0x630] sm:$0xff] }
 0x1ff   :  { %1768 = vmatpush2.msra.mxu0 %v1569_v0  ;;  %1839 = vmatpush2.msra.mxu1 %v1571_v53  ;;  %v1522_v0 = vld [vmem:[#allocation10 + $0x5e8] sm:$0xff]  ;;  %v1524_v53 = vld [vmem:[#allocation10 + $0x5f8] sm:$0xff] }
 0x200   :  { %1769 = vmatprep.subr.mxu0 %v1562_v4  ;;  %1840 = vmatprep.subr.mxu1 %v1564_v17  ;;  %v1521_v4 = vld [vmem:[#allocation10 + $0x5e0] sm:$0xff]  ;;  %v1523_v17 = vld [vmem:[#allocation10 + $0x5f0] sm:$0xff] }
 0x201   :  { %1770 = vmatpush2.msra.mxu0 %v1561_v18  ;;  %1841 = vmatpush2.msra.mxu1 %v1563_v35  ;;  %v1514_v18 = vld [vmem:[#allocation10 + $0x5a8] sm:$0xff]  ;;  %v1516_v35 = vld [vmem:[#allocation10 + $0x5b8] sm:$0xff] }
 0x202   :  { %1771 = vmatprep.subr.mxu0 %v1554_v42  ;;  %1842 = vmatprep.subr.mxu1 %v1556_v47  ;;  %v1513_v42 = vld [vmem:[#allocation10 + $0x5a0] sm:$0xff]  ;;  %v1515_v47 = vld [vmem:[#allocation10 + $0x5b0] sm:$0xff] }
 0x203   :  { %1772 = vmatpush2.msra.mxu0 %v1553_v45  ;;  %1843 = vmatpush2.msra.mxu1 %v1555_v50  ;;  %v1506_v45 = vld [vmem:[#allocation10 + $0x568] sm:$0xff]  ;;  %v1508_v50 = vld [vmem:[#allocation10 + $0x578] sm:$0xff] }
 0x204   :  { %1773 = vmatprep.subr.mxu0 %v1546_v46  ;;  %1844 = vmatprep.subr.mxu1 %v1548_v55  ;;  %v1505_v46 = vld [vmem:[#allocation10 + $0x560] sm:$0xff]  ;;  %v1507_v55 = vld [vmem:[#allocation10 + $0x570] sm:$0xff] }
 0x205   :  { %1774 = vmatpush2.msra.mxu0 %v1545_v56  ;;  %1845 = vmatpush2.msra.mxu1 %v1547_v59  ;;  %v1498_v56 = vld [vmem:[#allocation10 + $0x528] sm:$0xff]  ;;  %v1500_v59 = vld [vmem:[#allocation10 + $0x538] sm:$0xff] }
 0x206   :  { %1775 = vmatprep.subr.mxu0 %v1538_v58  ;;  %1846 = vmatprep.subr.mxu1 %v1540_v29  ;;  %v1497_v58 = vld [vmem:[#allocation10 + $0x520] sm:$0xff]  ;;  %v1499_v29 = vld [vmem:[#allocation10 + $0x530] sm:$0xff] }
 0x207   :  { %1776 = vmatpush2.msra.mxu0 %v1537_v61  ;;  %1847 = vmatpush2.msra.mxu1 %v1539_v44  ;;  %v1490_v61 = vld [vmem:[#allocation10 + $0x4e8] sm:$0xff]  ;;  %v1492_v44 = vld [vmem:[#allocation10 + $0x4f8] sm:$0xff] }
 0x208   :  { %1777 = vmatprep.subr.mxu0 %v1530_v52  ;;  %1848 = vmatprep.subr.mxu1 %v1532_v62  ;;  %v1489_v52 = vld [vmem:[#allocation10 + $0x4e0] sm:$0xff]  ;;  %v1491_v62 = vld [vmem:[#allocation10 + $0x4f0] sm:$0xff] }
 0x209   :  { %1778 = vmatpush2.msra.mxu0 %v1529_v63  ;;  %1849 = vmatpush2.msra.mxu1 %v1531_v3  ;;  %v1482_v63 = vld [vmem:[#allocation10 + $0x4a8] sm:$0xff]  ;;  %v1484_v3 = vld [vmem:[#allocation10 + $0x4b8] sm:$0xff] }
 0x20a   :  { %1779 = vmatprep.subr.mxu0 %v1522_v0  ;;  %1850 = vmatprep.subr.mxu1 %v1524_v53  ;;  %v1481_v0 = vld [vmem:[#allocation10 + $0x4a0] sm:$0xff]  ;;  %v1483_v53 = vld [vmem:[#allocation10 + $0x4b0] sm:$0xff] }
 0x20b   :  { %1780 = vmatpush2.msra.mxu0 %v1521_v4  ;;  %1851 = vmatpush2.msra.mxu1 %v1523_v17  ;;  %v1474_v4 = vld [vmem:[#allocation10 + $0x468] sm:$0xff]  ;;  %v1476_v17 = vld [vmem:[#allocation10 + $0x478] sm:$0xff] }
 0x20c   :  { %1781 = vmatprep.subr.mxu0 %v1514_v18  ;;  %1852 = vmatprep.subr.mxu1 %v1516_v35  ;;  %v1473_v18 = vld [vmem:[#allocation10 + $0x460] sm:$0xff]  ;;  %v1475_v35 = vld [vmem:[#allocation10 + $0x470] sm:$0xff] }
 0x20d   :  { %1782 = vmatpush2.msra.mxu0 %v1513_v42  ;;  %1853 = vmatpush2.msra.mxu1 %v1515_v47  ;;  %v1466_v42 = vld [vmem:[#allocation10 + $0x428] sm:$0xff]  ;;  %v1468_v47 = vld [vmem:[#allocation10 + $0x438] sm:$0xff] }
 0x20e   :  { %1783 = vmatprep.subr.mxu0 %v1506_v45  ;;  %1854 = vmatprep.subr.mxu1 %v1508_v50  ;;  %v1465_v45 = vld [vmem:[#allocation10 + $0x420] sm:$0xff]  ;;  %v1467_v50 = vld [vmem:[#allocation10 + $0x430] sm:$0xff] }
 0x20f   :  { %1784 = vmatpush2.msra.mxu0 %v1505_v46  ;;  %1855 = vmatpush2.msra.mxu1 %v1507_v55  ;;  %v2070_v46 = vld [vmem:[#allocation10 + $0x3c8] sm:$0xff]  ;;  %v2072_v55 = vld [vmem:[#allocation10 + $0x3d8] sm:$0xff] }
 0x210   :  { %1785 = vmatprep.subr.mxu0 %v1498_v56  ;;  %1856 = vmatprep.subr.mxu1 %v1500_v59  ;;  %v2069_v56 = vld [vmem:[#allocation10 + $0x3c0] sm:$0xff]  ;;  %v2071_v59 = vld [vmem:[#allocation10 + $0x3d0] sm:$0xff] }
 0x211   :  { %1786 = vmatpush2.msra.mxu0 %v1497_v58  ;;  %1857 = vmatpush2.msra.mxu1 %v1499_v29  ;;  %v2062_v58 = vld [vmem:[#allocation10 + $0x388] sm:$0xff]  ;;  %v2064_v29 = vld [vmem:[#allocation10 + $0x398] sm:$0xff] }
 0x212   :  { %1787 = vmatprep.subr.mxu0 %v1490_v61  ;;  %1858 = vmatprep.subr.mxu1 %v1492_v44  ;;  %v2061_v61 = vld [vmem:[#allocation10 + $0x380] sm:$0xff]  ;;  %v2063_v44 = vld [vmem:[#allocation10 + $0x390] sm:$0xff] }
 0x213   :  { %1788 = vmatpush2.msra.mxu0 %v1489_v52  ;;  %1859 = vmatpush2.msra.mxu1 %v1491_v62  ;;  %v2054_v52 = vld [vmem:[#allocation10 + $0x348] sm:$0xff]  ;;  %v2056_v62 = vld [vmem:[#allocation10 + $0x358] sm:$0xff] }
 0x214   :  { %1789 = vmatprep.subr.mxu0 %v1482_v63  ;;  %1860 = vmatprep.subr.mxu1 %v1484_v3  ;;  %v2053_v63 = vld [vmem:[#allocation10 + $0x340] sm:$0xff]  ;;  %v2055_v3 = vld [vmem:[#allocation10 + $0x350] sm:$0xff] }
 0x215   :  { %1790 = vmatpush2.msra.mxu0 %v1481_v0  ;;  %1861 = vmatpush2.msra.mxu1 %v1483_v53  ;;  %v2048_v0 = vld [vmem:[#allocation10 + $0x318] sm:$0xff]  ;;  %v2045_v53 = vld [vmem:[#allocation10 + $0x300] sm:$0xff] }
 0x216   :  { %1791 = vmatprep.subr.mxu0 %v1474_v4  ;;  %1862 = vmatprep.subr.mxu1 %v1476_v17  ;;  %v2047_v4 = vld [vmem:[#allocation10 + $0x310] sm:$0xff]  ;;  %v2038_v17 = vld [vmem:[#allocation10 + $0x2c8] sm:$0xff] }
 0x217   :  { %1792 = vmatpush2.msra.mxu0 %v1473_v18  ;;  %1863 = vmatpush2.msra.mxu1 %v1475_v35  ;;  %v2040_v18 = vld [vmem:[#allocation10 + $0x2d8] sm:$0xff]  ;;  %v2037_v35 = vld [vmem:[#allocation10 + $0x2c0] sm:$0xff] }
 0x218   :  { %1793 = vmatprep.subr.mxu0 %v1466_v42  ;;  %1864 = vmatprep.subr.mxu1 %v1468_v47  ;;  %v2039_v42 = vld [vmem:[#allocation10 + $0x2d0] sm:$0xff]  ;;  %v2030_v47 = vld [vmem:[#allocation10 + $0x288] sm:$0xff] }
 0x219   :  { %1794 = vmatpush2.msra.mxu0 %v1465_v45  ;;  %1865 = vmatpush2.msra.mxu1 %v1467_v50  ;;  %v2032_v45 = vld [vmem:[#allocation10 + $0x298] sm:$0xff]  ;;  %v2029_v50 = vld [vmem:[#allocation10 + $0x280] sm:$0xff] }
 0x21a   :  { %1796 = vmatmul.mubr.f32.vlgmr.msra.gmra.mxu0 %v6590_v57  ;;  %1867 = vmatmul.mubr.f32.vlgmr.msra.gmra.mxu1 %v6590_v57  ;;  %v2046_v57 = vld [vmem:[#allocation10 + $0x308] sm:$0xff] }
 0x21b   :  { %2205 = vmatprep.subr.mxu0 %v2070_v46  ;;  %2276 = vmatprep.subr.mxu1 %v2072_v55  ;;  %v2031_v46 = vld [vmem:[#allocation10 + $0x290] sm:$0xff]  ;;  %v2022_v55 = vld [vmem:[#allocation10 + $0x248] sm:$0xff] }
 0x21c   :  { %2206 = vmatpush1.msra.mxu0 %v2069_v56  ;;  %2277 = vmatpush1.msra.mxu1 %v2071_v59  ;;  %v2024_v56 = vld [vmem:[#allocation10 + $0x258] sm:$0xff]  ;;  %v2021_v59 = vld [vmem:[#allocation10 + $0x240] sm:$0xff] }
 0x21d   :  { %2207 = vmatprep.subr.mxu0 %v2062_v58  ;;  %2278 = vmatprep.subr.mxu1 %v2064_v29  ;;  %v2023_v58 = vld [vmem:[#allocation10 + $0x250] sm:$0xff]  ;;  %v2014_v29 = vld [vmem:[#allocation10 + $0x208] sm:$0xff] }
 0x21e   :  { %2208 = vmatpush1.msra.mxu0 %v2061_v61  ;;  %2279 = vmatpush1.msra.mxu1 %v2063_v44  ;;  %v2016_v61 = vld [vmem:[#allocation10 + $0x218] sm:$0xff]  ;;  %v2013_v44 = vld [vmem:[#allocation10 + $0x200] sm:$0xff] }
 0x21f   :  { %2209 = vmatprep.subr.mxu0 %v2054_v52  ;;  %2280 = vmatprep.subr.mxu1 %v2056_v62  ;;  %v2015_v52 = vld [vmem:[#allocation10 + $0x210] sm:$0xff]  ;;  %v2006_v62 = vld [vmem:[#allocation10 + $0x1c8] sm:$0xff] }
 0x220   :  { %2210 = vmatpush1.msra.mxu0 %v2053_v63  ;;  %2281 = vmatpush1.msra.mxu1 %v2055_v3  ;;  %v2008_v63 = vld [vmem:[#allocation10 + $0x1d8] sm:$0xff]  ;;  %v2005_v3 = vld [vmem:[#allocation10 + $0x1c0] sm:$0xff] }
 0x221   :  { %2211 = vmatprep.subr.mxu0 %v2046_v57  ;;  %2282 = vmatprep.subr.mxu1 %v2048_v0  ;;  %v2007_v57 = vld [vmem:[#allocation10 + $0x1d0] sm:$0xff]  ;;  %v1998_v0 = vld [vmem:[#allocation10 + $0x188] sm:$0xff] }
 0x222   :  { %2212 = vmatpush1.msra.mxu0 %v2045_v53  ;;  %2283 = vmatpush1.msra.mxu1 %v2047_v4  ;;  %v2000_v53 = vld [vmem:[#allocation10 + $0x198] sm:$0xff]  ;;  %v1997_v4 = vld [vmem:[#allocation10 + $0x180] sm:$0xff] }
 0x223   :  { %2213 = vmatprep.subr.mxu0 %v2038_v17  ;;  %2284 = vmatprep.subr.mxu1 %v2040_v18  ;;  %v1999_v17 = vld [vmem:[#allocation10 + $0x190] sm:$0xff]  ;;  %v1990_v18 = vld [vmem:[#allocation10 + $0x148] sm:$0xff] }
 0x224   :  { %2214 = vmatpush1.msra.mxu0 %v2037_v35  ;;  %2285 = vmatpush1.msra.mxu1 %v2039_v42  ;;  %v1992_v35 = vld [vmem:[#allocation10 + $0x158] sm:$0xff]  ;;  %v1989_v42 = vld [vmem:[#allocation10 + $0x140] sm:$0xff] }
 0x225   :  { %2215 = vmatprep.subr.mxu0 %v2030_v47  ;;  %2286 = vmatprep.subr.mxu1 %v2032_v45  ;;  %v1991_v47 = vld [vmem:[#allocation10 + $0x150] sm:$0xff]  ;;  %v1982_v45 = vld [vmem:[#allocation10 + $0x108] sm:$0xff] }
 0x226   :  { %2216 = vmatpush1.msra.mxu0 %v2029_v50  ;;  %2287 = vmatpush1.msra.mxu1 %v2031_v46  ;;  %v1984_v50 = vld [vmem:[#allocation10 + $0x118] sm:$0xff]  ;;  %v1981_v46 = vld [vmem:[#allocation10 + $0x100] sm:$0xff] }
 0x227   :  { %2217 = vmatprep.subr.mxu0 %v2022_v55  ;;  %2288 = vmatprep.subr.mxu1 %v2024_v56  ;;  %v1983_v55 = vld [vmem:[#allocation10 + $0x110] sm:$0xff]  ;;  %v1974_v56 = vld [vmem:[#allocation10 + $0xc8] sm:$0xff] }
 0x228   :  { %2218 = vmatpush1.msra.mxu0 %v2021_v59  ;;  %2289 = vmatpush1.msra.mxu1 %v2023_v58  ;;  %v1976_v59 = vld [vmem:[#allocation10 + $0xd8] sm:$0xff]  ;;  %v1973_v58 = vld [vmem:[#allocation10 + $0xc0] sm:$0xff] }
 0x229   :  { %2219 = vmatprep.subr.mxu0 %v2014_v29  ;;  %2290 = vmatprep.subr.mxu1 %v2016_v61  ;;  %v1975_v29 = vld [vmem:[#allocation10 + $0xd0] sm:$0xff]  ;;  %v1966_v61 = vld [vmem:[#allocation10 + $0x88] sm:$0xff] }
 0x22a   :  { %2220 = vmatpush1.msra.mxu0 %v2013_v44  ;;  %2291 = vmatpush1.msra.mxu1 %v2015_v52  ;;  %v1968_v44 = vld [vmem:[#allocation10 + $0x98] sm:$0xff]  ;;  %v1965_v52 = vld [vmem:[#allocation10 + $0x80] sm:$0xff] }
 0x22b   :  { %2221 = vmatprep.subr.mxu0 %v2006_v62  ;;  %2292 = vmatprep.subr.mxu1 %v2008_v63  ;;  %v1967_v62 = vld [vmem:[#allocation10 + $0x90] sm:$0xff]  ;;  %v1958_v63 = vld [vmem:[#allocation10 + $0x48] sm:$0xff] }
 0x22c   :  { %2222 = vmatpush1.msra.mxu0 %v2005_v3  ;;  %2293 = vmatpush1.msra.mxu1 %v2007_v57  ;;  %v1960_v3 = vld [vmem:[#allocation10 + $0x58] sm:$0xff]  ;;  %v1957_v57 = vld [vmem:[#allocation10 + $0x40] sm:$0xff] }
 0x22d   :  { %2223 = vmatprep.subr.mxu0 %v1998_v0  ;;  %2294 = vmatprep.subr.mxu1 %v2000_v53  ;;  %v1959_v0 = vld [vmem:[#allocation10 + $0x50] sm:$0xff]  ;;  %v1950_v53 = vld [vmem:[#allocation10 + $0x8] sm:$0xff] }
 0x22e   :  { %2224 = vmatpush1.msra.mxu0 %v1997_v4  ;;  %2295 = vmatpush1.msra.mxu1 %v1999_v17  ;;  %v1952_v4 = vld [vmem:[#allocation10 + $0x18] sm:$0xff]  ;;  %v1949_v17 = vld [vmem:[#allocation10] sm:$0xff] }
 0x22f   :  { %2225 = vmatprep.subr.mxu0 %v1990_v18  ;;  %2296 = vmatprep.subr.mxu1 %v1992_v35  ;;  %v1951_v18 = vld [vmem:[#allocation10 + $0x10] sm:$0xff]  ;;  %v2198_v35 = vld [vmem:[#allocation10 + $0x7c8] sm:$0xff] }
 0x230   :  { %2226 = vmatpush1.msra.mxu0 %v1989_v42  ;;  %2297 = vmatpush1.msra.mxu1 %v1991_v47  ;;  %v2200_v42 = vld [vmem:[#allocation10 + $0x7d8] sm:$0xff]  ;;  %v2197_v47 = vld [vmem:[#allocation10 + $0x7c0] sm:$0xff] }
 0x231   :  { %2227 = vmatprep.subr.mxu0 %v1982_v45  ;;  %2298 = vmatprep.subr.mxu1 %v1984_v50  ;;  %v2199_v45 = vld [vmem:[#allocation10 + $0x7d0] sm:$0xff]  ;;  %v2190_v50 = vld [vmem:[#allocation10 + $0x788] sm:$0xff] }
 0x232   :  { %2228 = vmatpush1.msra.mxu0 %v1981_v46  ;;  %2299 = vmatpush1.msra.mxu1 %v1983_v55  ;;  %v2192_v46 = vld [vmem:[#allocation10 + $0x798] sm:$0xff]  ;;  %v2189_v55 = vld [vmem:[#allocation10 + $0x780] sm:$0xff] }
 0x233   :  { %2229 = vmatprep.subr.mxu0 %v1974_v56  ;;  %2300 = vmatprep.subr.mxu1 %v1976_v59  ;;  %v2191_v56 = vld [vmem:[#allocation10 + $0x790] sm:$0xff]  ;;  %v2182_v59 = vld [vmem:[#allocation10 + $0x748] sm:$0xff] }
 0x234   :  { %2230 = vmatpush1.msra.mxu0 %v1973_v58  ;;  %2301 = vmatpush1.msra.mxu1 %v1975_v29  ;;  %v2184_v58 = vld [vmem:[#allocation10 + $0x758] sm:$0xff]  ;;  %v2181_v29 = vld [vmem:[#allocation10 + $0x740] sm:$0xff] }
 0x235   :  { %2231 = vmatprep.subr.mxu0 %v1966_v61  ;;  %2302 = vmatprep.subr.mxu1 %v1968_v44  ;;  %v2183_v61 = vld [vmem:[#allocation10 + $0x750] sm:$0xff]  ;;  %v2174_v44 = vld [vmem:[#allocation10 + $0x708] sm:$0xff] }
 0x236   :  { %2232 = vmatpush1.msra.mxu0 %v1965_v52  ;;  %2303 = vmatpush1.msra.mxu1 %v1967_v62  ;;  %v2176_v52 = vld [vmem:[#allocation10 + $0x718] sm:$0xff]  ;;  %v2173_v62 = vld [vmem:[#allocation10 + $0x700] sm:$0xff] }
 0x237   :  { %2233 = vmatprep.subr.mxu0 %v1958_v63  ;;  %2304 = vmatprep.subr.mxu1 %v1960_v3  ;;  %v2175_v63 = vld [vmem:[#allocation10 + $0x710] sm:$0xff]  ;;  %v2166_v3 = vld [vmem:[#allocation10 + $0x6c8] sm:$0xff] }
 0x238   :  { %2234 = vmatpush1.msra.mxu0 %v1957_v57  ;;  %2305 = vmatpush1.msra.mxu1 %v1959_v0  ;;  %v2168_v57 = vld [vmem:[#allocation10 + $0x6d8] sm:$0xff]  ;;  %v2165_v0 = vld [vmem:[#allocation10 + $0x6c0] sm:$0xff] }
 0x239   :  { %2235 = vmatprep.subr.mxu0 %v1950_v53  ;;  %2306 = vmatprep.subr.mxu1 %v1952_v4  ;;  %v2167_v53 = vld [vmem:[#allocation10 + $0x6d0] sm:$0xff]  ;;  %v2158_v4 = vld [vmem:[#allocation10 + $0x688] sm:$0xff] }
 0x23a   :  { %2236 = vmatpush1.msra.mxu0 %v1949_v17  ;;  %2307 = vmatpush1.msra.mxu1 %v1951_v18  ;;  %v2160_v17 = vld [vmem:[#allocation10 + $0x698] sm:$0xff]  ;;  %v2157_v18 = vld [vmem:[#allocation10 + $0x680] sm:$0xff] }
 0x23b   :  { %2237 = vmatprep.subr.mxu0 %v2198_v35  ;;  %2308 = vmatprep.subr.mxu1 %v2200_v42  ;;  %v2159_v35 = vld [vmem:[#allocation10 + $0x690] sm:$0xff]  ;;  %v2150_v42 = vld [vmem:[#allocation10 + $0x648] sm:$0xff] }
 0x23c   :  { %2238 = vmatpush2.msra.mxu0 %v2197_v47  ;;  %2309 = vmatpush2.msra.mxu1 %v2199_v45  ;;  %v2152_v47 = vld [vmem:[#allocation10 + $0x658] sm:$0xff]  ;;  %v2149_v45 = vld [vmem:[#allocation10 + $0x640] sm:$0xff] }
 0x23d   :  { %2239 = vmatprep.subr.mxu0 %v2190_v50  ;;  %2310 = vmatprep.subr.mxu1 %v2192_v46  ;;  %v2151_v50 = vld [vmem:[#allocation10 + $0x650] sm:$0xff]  ;;  %v2142_v46 = vld [vmem:[#allocation10 + $0x608] sm:$0xff] }
 0x23e   :  { %2240 = vmatpush2.msra.mxu0 %v2189_v55  ;;  %2311 = vmatpush2.msra.mxu1 %v2191_v56  ;;  %v2144_v55 = vld [vmem:[#allocation10 + $0x618] sm:$0xff]  ;;  %v2141_v56 = vld [vmem:[#allocation10 + $0x600] sm:$0xff] }
 0x23f   :  { %2241 = vmatprep.subr.mxu0 %v2182_v59  ;;  %2312 = vmatprep.subr.mxu1 %v2184_v58  ;;  %v2143_v59 = vld [vmem:[#allocation10 + $0x610] sm:$0xff]  ;;  %v2134_v58 = vld [vmem:[#allocation10 + $0x5c8] sm:$0xff] }
 0x240   :  { %2242 = vmatpush2.msra.mxu0 %v2181_v29  ;;  %2313 = vmatpush2.msra.mxu1 %v2183_v61  ;;  %v2136_v29 = vld [vmem:[#allocation10 + $0x5d8] sm:$0xff]  ;;  %v2133_v61 = vld [vmem:[#allocation10 + $0x5c0] sm:$0xff] }
 0x241   :  { %2243 = vmatprep.subr.mxu0 %v2174_v44  ;;  %2314 = vmatprep.subr.mxu1 %v2176_v52  ;;  %v2135_v44 = vld [vmem:[#allocation10 + $0x5d0] sm:$0xff]  ;;  %v2126_v52 = vld [vmem:[#allocation10 + $0x588] sm:$0xff] }
 0x242   :  { %2244 = vmatpush2.msra.mxu0 %v2173_v62  ;;  %2315 = vmatpush2.msra.mxu1 %v2175_v63  ;;  %v2128_v62 = vld [vmem:[#allocation10 + $0x598] sm:$0xff]  ;;  %v2125_v63 = vld [vmem:[#allocation10 + $0x580] sm:$0xff] }
 0x243   :  { %2245 = vmatprep.subr.mxu0 %v2166_v3  ;;  %2316 = vmatprep.subr.mxu1 %v2168_v57  ;;  %v2127_v3 = vld [vmem:[#allocation10 + $0x590] sm:$0xff]  ;;  %v2118_v57 = vld [vmem:[#allocation10 + $0x548] sm:$0xff] }
 0x244   :  { %2246 = vmatpush2.msra.mxu0 %v2165_v0  ;;  %2317 = vmatpush2.msra.mxu1 %v2167_v53  ;;  %v2120_v0 = vld [vmem:[#allocation10 + $0x558] sm:$0xff]  ;;  %v2117_v53 = vld [vmem:[#allocation10 + $0x540] sm:$0xff] }
 0x245   :  { %2247 = vmatprep.subr.mxu0 %v2158_v4  ;;  %2318 = vmatprep.subr.mxu1 %v2160_v17  ;;  %v2119_v4 = vld [vmem:[#allocation10 + $0x550] sm:$0xff]  ;;  %v2110_v17 = vld [vmem:[#allocation10 + $0x508] sm:$0xff] }
 0x246   :  { %2248 = vmatpush2.msra.mxu0 %v2157_v18  ;;  %2319 = vmatpush2.msra.mxu1 %v2159_v35  ;;  %v2112_v18 = vld [vmem:[#allocation10 + $0x518] sm:$0xff]  ;;  %v2109_v35 = vld [vmem:[#allocation10 + $0x500] sm:$0xff] }
 0x247   :  { %2249 = vmatprep.subr.mxu0 %v2150_v42  ;;  %2320 = vmatprep.subr.mxu1 %v2152_v47  ;;  %v2111_v42 = vld [vmem:[#allocation10 + $0x510] sm:$0xff]  ;;  %v2102_v47 = vld [vmem:[#allocation10 + $0x4c8] sm:$0xff] }
 0x248   :  { %2250 = vmatpush2.msra.mxu0 %v2149_v45  ;;  %2321 = vmatpush2.msra.mxu1 %v2151_v50  ;;  %v2104_v45 = vld [vmem:[#allocation10 + $0x4d8] sm:$0xff]  ;;  %v2101_v50 = vld [vmem:[#allocation10 + $0x4c0] sm:$0xff] }
 0x249   :  { %2251 = vmatprep.subr.mxu0 %v2142_v46  ;;  %2322 = vmatprep.subr.mxu1 %v2144_v55  ;;  %v2103_v46 = vld [vmem:[#allocation10 + $0x4d0] sm:$0xff]  ;;  %v2094_v55 = vld [vmem:[#allocation10 + $0x488] sm:$0xff] }
 0x24a   :  { %2252 = vmatpush2.msra.mxu0 %v2141_v56  ;;  %2323 = vmatpush2.msra.mxu1 %v2143_v59  ;;  %v2096_v56 = vld [vmem:[#allocation10 + $0x498] sm:$0xff]  ;;  %v2093_v59 = vld [vmem:[#allocation10 + $0x480] sm:$0xff] }
 0x24b   :  { %2253 = vmatprep.subr.mxu0 %v2134_v58  ;;  %2324 = vmatprep.subr.mxu1 %v2136_v29  ;;  %v2095_v58 = vld [vmem:[#allocation10 + $0x490] sm:$0xff]  ;;  %v2086_v29 = vld [vmem:[#allocation10 + $0x448] sm:$0xff] }
 0x24c   :  { %2254 = vmatpush2.msra.mxu0 %v2133_v61  ;;  %2325 = vmatpush2.msra.mxu1 %v2135_v44  ;;  %v2088_v61 = vld [vmem:[#allocation10 + $0x458] sm:$0xff]  ;;  %v2085_v44 = vld [vmem:[#allocation10 + $0x440] sm:$0xff] }
 0x24d   :  { %2255 = vmatprep.subr.mxu0 %v2126_v52  ;;  %2326 = vmatprep.subr.mxu1 %v2128_v62  ;;  %v2087_v52 = vld [vmem:[#allocation10 + $0x450] sm:$0xff]  ;;  %v2078_v62 = vld [vmem:[#allocation10 + $0x408] sm:$0xff] }
 0x24e   :  { %2256 = vmatpush2.msra.mxu0 %v2125_v63  ;;  %2327 = vmatpush2.msra.mxu1 %v2127_v3  ;;  %v2080_v63 = vld [vmem:[#allocation10 + $0x418] sm:$0xff]  ;;  %v2077_v3 = vld [vmem:[#allocation10 + $0x400] sm:$0xff] }
 0x24f   :  { %2257 = vmatprep.subr.mxu0 %v2118_v57  ;;  %2328 = vmatprep.subr.mxu1 %v2120_v0  ;;  %v2079_v57 = vld [vmem:[#allocation10 + $0x410] sm:$0xff]  ;;  %v2074_v0 = vld [vmem:[#allocation10 + $0x3e8] sm:$0xff] }
 0x250   :  { %2258 = vmatpush2.msra.mxu0 %v2117_v53  ;;  %2329 = vmatpush2.msra.mxu1 %v2119_v4  ;;  %v2076_v53 = vld [vmem:[#allocation10 + $0x3f8] sm:$0xff] }
 0x251   :  { %2259 = vmatprep.subr.mxu0 %v2110_v17  ;;  %2330 = vmatprep.subr.mxu1 %v2112_v18 }
 0x252   :  { %2260 = vmatpush2.msra.mxu0 %v2109_v35  ;;  %2331 = vmatpush2.msra.mxu1 %v2111_v42 }
 0x253   :  { %2261 = vmatprep.subr.mxu0 %v2102_v47  ;;  %2332 = vmatprep.subr.mxu1 %v2104_v45 }
 0x254   :  { %2262 = vmatpush2.msra.mxu0 %v2101_v50  ;;  %2333 = vmatpush2.msra.mxu1 %v2103_v46 }
 0x255   :  { %2263 = vmatprep.subr.mxu0 %v2094_v55  ;;  %2334 = vmatprep.subr.mxu1 %v2096_v56 }
 0x256   :  { %2264 = vmatpush2.msra.mxu0 %v2093_v59  ;;  %2335 = vmatpush2.msra.mxu1 %v2095_v58 }
 0x257   :  { %2265 = vmatprep.subr.mxu0 %v2086_v29  ;;  %2336 = vmatprep.subr.mxu1 %v2088_v61 }
 0x258   :  { %2266 = vmatpush2.msra.mxu0 %v2085_v44  ;;  %2337 = vmatpush2.msra.mxu1 %v2087_v52 }
 0x259   :  { %2267 = vmatprep.subr.mxu0 %v2078_v62  ;;  %2338 = vmatprep.subr.mxu1 %v2080_v63  ;;  %v491_v62 = vadd.f32 %v6500_v6, %v6571_v49 }
 0x25a   :  { %2268 = vmatpush2.msra.mxu0 %v2077_v3  ;;  %2339 = vmatpush2.msra.mxu1 %v2079_v57 }
 0x25b   :  { %2347 = vmatprep.subr.mxu0 %v2074_v0  ;;  %2418 = vmatprep.subr.mxu1 %v2076_v53  ;;  %v604_v0 = vadd.f32 %v6502_v7, %v6574_v34 }
 0x299   :  { %v1655_v4 = vpop.f32.mrf.mxu0  ;;  %v1726_v17 = vpop.f32.mrf.mxu1 }
 0x29a   :  { %v1873_v35 = vadd.f32 %v1655_v4, %v6405_v22  ;;  %v1875_v42 = vadd.f32 %v1726_v17, %v6408_v5 }
 0x29b   :  { %v1657_v18 = vpop.f32.mrf.mxu0  ;;  %v1728_v47 = vpop.f32.mrf.mxu1 }
 0x29c   :  { %v1874_v45 = vadd.f32 %v1657_v18, %v6411_v8  ;;  %v5727_v50 = vmul.f32 -1.442695, %v1873_v35  ;;  %v1876_v46 = vadd.f32 %v1728_v47, %v6414_v9  ;;  %v5729_v55 = vmul.f32 -1.442695, %v1875_v42 }
 0x29d   :  { %v489_v8 = vadd.f32 %v6496_v54, %v6565_v1  ;;  %v602_v9 = vadd.f32 %v6498_v60, %v6568_v2 }
 0x29e   :  { %v5728_v56 = vmul.f32 -1.442695, %v1874_v45  ;;  %5815 = vpow2.f32 %v5727_v50  ;;  %v5730_v59 = vmul.f32 -1.442695, %v1876_v46 }
 0x29f   :  { %5817 = vpow2.f32 %v5729_v55 }
 0x2a0   :  { %5819 = vpow2.f32 %v5728_v56 }
 0x2a1   :  { %5821 = vpow2.f32 %v5730_v59 }
 0x2ab   :  { %v5816_v58 = vpop.eup %5815 }
 0x2ac   :  { %v5818_v29 = vpop.eup %5817  ;;  %v1887_v44 = vadd.f32 1.0, %v5816_v58 }
 0x2ad   :  { %v5820_v61 = vpop.eup %5819  ;;  %v1899_v52 = vadd.f32 1.0, %v5818_v29 }
 0x2ae   :  { %v5822_v22 = vpop.eup %5821  ;;  %v1888_v5 = vadd.f32 1.0, %v5820_v61  ;;  %5823 = vrcp.f32 %v1887_v44 }
 0x2af   :  { %v1900_v63 = vadd.f32 1.0, %v5822_v22  ;;  %5825 = vrcp.f32 %v1899_v52 }
 0x2b0   :  { %5827 = vrcp.f32 %v1888_v5 }
 0x2bb   :  { %v5824_v42 = vpop.eup %5823 }
 0x2bc   :  { %v5826_v47 = vpop.eup %5825 }
 0x2bd   :  { %v5828_v45 = vpop.eup %5827  ;;  %v1919_v46 = vmul.f32 %v5826_v47, %v6584_v41  ;;  %v2049_v47 = vld [vmem:[#allocation10 + $0x320] sm:$0xff] }
 0x2da   :  { %v1797_v3 = vpop.f32.mrf.mxu0  ;;  %v1868_v57 = vpop.f32.mrf.mxu1 }
 0x2db   :  { %v1877_v53 = vadd.f32 %v1797_v3, %v489_v8  ;;  %v1879_v4 = vadd.f32 %v1868_v57, %v602_v9  ;;  %v2075_v57 = vld [vmem:[#allocation10 + $0x3f0] sm:$0xff] }
 0x2dc   :  { %v1799_v17 = vpop.f32.mrf.mxu0  ;;  %v1870_v18 = vpop.f32.mrf.mxu1 }
 0x2dd   :  { %5829 = vtanh.f32 %v1877_v53  ;;  %v5731_v54 = vmul.f32 -1.442695, %v1879_v4  ;;  %v1878_v35 = vadd.f32 %v1799_v17, %v491_v62  ;;  %v1880_v60 = vadd.f32 %v1870_v18, %v604_v0  ;;  %v2066_v0 = vld [vmem:[#allocation10 + $0x3a8] sm:$0xff]  ;;  %v2068_v53 = vld [vmem:[#allocation10 + $0x3b8] sm:$0xff]  ;;  %v2065_v4 = vld [vmem:[#allocation10 + $0x3a0] sm:$0xff] }
 0x2de   :  { %5831 = vrcp.f32 %v1900_v63  ;;  %v2067_v17 = vld [vmem:[#allocation10 + $0x3b0] sm:$0xff]  ;;  %v2058_v18 = vld [vmem:[#allocation10 + $0x368] sm:$0xff] }
 0x2df   :  { %5833 = vpow2.f32 %v5731_v54  ;;  %v5732_v6 = vmul.f32 -1.442695, %v1880_v60  ;;  %v2060_v54 = vld [vmem:[#allocation10 + $0x378] sm:$0xff]  ;;  %v2059_v60 = vld [vmem:[#allocation10 + $0x370] sm:$0xff] }
 0x2e0   :  { %5835 = vtanh.f32 %v1878_v35  ;;  %v2057_v35 = vld [vmem:[#allocation10 + $0x360] sm:$0xff] }
 0x2e1   :  { %5837 = vpow2.f32 %v5732_v6  ;;  %v2050_v6 = vld [vmem:[#allocation10 + $0x328] sm:$0xff] }
 0x2ea   :  { %v5830_v50 = vpop.eup %5829 }
 0x2eb   :  { %v5832_v7 = vpop.eup %5831  ;;  %v1921_v55 = vmul.f32 %v5830_v50, %v5824_v42  ;;  %v2052_v42 = vld [vmem:[#allocation10 + $0x338] sm:$0xff]  ;;  %v2042_v50 = vld [vmem:[#allocation10 + $0x2e8] sm:$0xff] }
 0x2ec   :  { %v5834_v56 = vpop.eup %5833  ;;  %v1920_v44 = vmul.f32 %v5832_v7, %v6587_v51  ;;  %v2073_v51 = vld [vmem:[#allocation10 + $0x3e0] sm:$0xff]  ;;  %v2044_v7 = vld [vmem:[#allocation10 + $0x2f8] sm:$0xff] }
 0x2ed   :  { %v5836_v59 = vpop.eup %5835  ;;  %v6610_v58 = vadd.f32 %v1921_v55, %v1919_v46  ;;  %v1913_v29 = vadd.f32 1.0, %v5834_v56  ;;  %v2041_v46 = vld [vmem:[#allocation10 + $0x2e0] sm:$0xff]  ;;  %v2043_v55 = vld [vmem:[#allocation10 + $0x2f0] sm:$0xff]  ;;  %v2034_v56 = vld [vmem:[#allocation10 + $0x2a8] sm:$0xff] }
 0x2ee   :  { %v5838_v61 = vpop.eup %5837  ;;  %v1922_v22 = vmul.f32 %v5836_v59, %v5828_v45  ;;  %v2051_v45 = vld [vmem:[#allocation10 + $0x330] sm:$0xff]  ;;  %v2036_v59 = vld [vmem:[#allocation10 + $0x2b8] sm:$0xff] }
 0x2ef   :  { %5839 = vtanh.f32 %v6610_v58  ;;  %v1914_v52 = vadd.f32 1.0, %v5838_v61  ;;  %v2035_v61 = vld [vmem:[#allocation10 + $0x2b0] sm:$0xff] }
 0x2f0   :  { %5841 = vrcp.f32 %v1913_v29  ;;  %v6614_v5 = vadd.f32 %v1922_v22, %v1920_v44  ;;  %v2033_v29 = vld [vmem:[#allocation10 + $0x2a0] sm:$0xff]  ;;  %v2026_v44 = vld [vmem:[#allocation10 + $0x268] sm:$0xff]  ;;  %v2028_v22 = vld [vmem:[#allocation10 + $0x278] sm:$0xff] }
 0x2f1   :  { %5843 = vrcp.f32 %v1914_v52  ;;  %v2025_v52 = vld [vmem:[#allocation10 + $0x260] sm:$0xff] }
 0x2f2   :  { %5845 = vtanh.f32 %v6614_v5 }
 0x2fc   :  { %v5840_v41 = vpop.eup %5839 }
 0x2fd   :  { %v5842_v8 = vpop.eup %5841 }
 0x2fe   :  { %v5844_v9 = vpop.eup %5843  ;;  %v6617_v62 = vmul.f32 %v5842_v8, %v5840_v41  ;;  %v2027_v41 = vld [vmem:[#allocation10 + $0x270] sm:$0xff]  ;;  %v2018_v8 = vld [vmem:[#allocation10 + $0x228] sm:$0xff] }
 0x2ff   :  { %v5846_v63 = vpop.eup %5845 }
 0x300   :  { %v1928_v3 = vmul.f32 %v5846_v63, %v5844_v9  ;;  %1934 = vst [vmem:[#allocation13 + $0x10] sm:$0xff] %v6617_v62  ;;  %v2020_v9 = vld [vmem:[#allocation10 + $0x238] sm:$0xff]  ;;  %v2017_v63 = vld [vmem:[#allocation10 + $0x220] sm:$0xff] }
 0x302   :  { %1935 = vst [vmem:[#allocation13 + $0x18] sm:$0xff] %v1928_v3  ;;  %2269 = vmatprep.mubr.f32.mxu0 %v1928_v3  ;;  %2340 = vmatprep.mubr.f32.mxu1 %v1928_v3 }
 0x303   :  { %2270 = vmatmul.mubr.f32.vlgmr.msra.gmra.mxu0 %v6617_v62  ;;  %2341 = vmatmul.mubr.f32.vlgmr.msra.gmra.mxu1 %v6617_v62 }
 0x304   :  { %2348 = vmatpush1.msra.mxu0 %v2073_v51  ;;  %2419 = vmatpush1.msra.mxu1 %v2075_v57  ;;  %v2010_v51 = vld [vmem:[#allocation10 + $0x1e8] sm:$0xff]  ;;  %v2012_v57 = vld [vmem:[#allocation10 + $0x1f8] sm:$0xff] }
 0x305   :  { %2349 = vmatprep.subr.mxu0 %v2066_v0  ;;  %2411 = vmatprep.mubr.f32.mxu0 %v1928_v3  ;;  %v2009_v0 = vld [vmem:[#allocation10 + $0x1e0] sm:$0xff] }
 0x306   :  { %2420 = vmatprep.subr.mxu1 %v2068_v53  ;;  %2482 = vmatprep.mubr.f32.mxu1 %v1928_v3  ;;  %v2019_v3 = vld [vmem:[#allocation10 + $0x230] sm:$0xff] }
 0x307   :  { %2350 = vmatpush1.msra.mxu0 %v2065_v4  ;;  %2421 = vmatpush1.msra.mxu1 %v2067_v17  ;;  %v2011_v53 = vld [vmem:[#allocation10 + $0x1f0] sm:$0xff]  ;;  %v2002_v4 = vld [vmem:[#allocation10 + $0x1a8] sm:$0xff]  ;;  %v2004_v17 = vld [vmem:[#allocation10 + $0x1b8] sm:$0xff] }
 0x308   :  { %2351 = vmatprep.subr.mxu0 %v2058_v18  ;;  %2422 = vmatprep.subr.mxu1 %v2060_v54  ;;  %v2001_v18 = vld [vmem:[#allocation10 + $0x1a0] sm:$0xff]  ;;  %v2003_v54 = vld [vmem:[#allocation10 + $0x1b0] sm:$0xff] }
 0x309   :  { %2352 = vmatpush1.msra.mxu0 %v2057_v35  ;;  %2423 = vmatpush1.msra.mxu1 %v2059_v60  ;;  %v1994_v35 = vld [vmem:[#allocation10 + $0x168] sm:$0xff]  ;;  %v1996_v60 = vld [vmem:[#allocation10 + $0x178] sm:$0xff] }
 0x30a   :  { %2353 = vmatprep.subr.mxu0 %v2050_v6  ;;  %2424 = vmatprep.subr.mxu1 %v2052_v42  ;;  %v1993_v6 = vld [vmem:[#allocation10 + $0x160] sm:$0xff]  ;;  %v1995_v42 = vld [vmem:[#allocation10 + $0x170] sm:$0xff] }
 0x30b   :  { %2354 = vmatpush1.msra.mxu0 %v2049_v47  ;;  %2425 = vmatpush1.msra.mxu1 %v2051_v45  ;;  %v1986_v47 = vld [vmem:[#allocation10 + $0x128] sm:$0xff]  ;;  %v1988_v45 = vld [vmem:[#allocation10 + $0x138] sm:$0xff] }
 0x30c   :  { %2355 = vmatprep.subr.mxu0 %v2042_v50  ;;  %2426 = vmatprep.subr.mxu1 %v2044_v7  ;;  %v1985_v50 = vld [vmem:[#allocation10 + $0x120] sm:$0xff]  ;;  %v1987_v7 = vld [vmem:[#allocation10 + $0x130] sm:$0xff] }
 0x30d   :  { %2356 = vmatpush1.msra.mxu0 %v2041_v46  ;;  %2427 = vmatpush1.msra.mxu1 %v2043_v55  ;;  %v1978_v46 = vld [vmem:[#allocation10 + $0xe8] sm:$0xff]  ;;  %v1980_v55 = vld [vmem:[#allocation10 + $0xf8] sm:$0xff] }
 0x30e   :  { %2357 = vmatprep.subr.mxu0 %v2034_v56  ;;  %2428 = vmatprep.subr.mxu1 %v2036_v59  ;;  %v1977_v56 = vld [vmem:[#allocation10 + $0xe0] sm:$0xff]  ;;  %v1979_v59 = vld [vmem:[#allocation10 + $0xf0] sm:$0xff] }
 0x30f   :  { %2358 = vmatpush1.msra.mxu0 %v2033_v29  ;;  %2429 = vmatpush1.msra.mxu1 %v2035_v61  ;;  %v1970_v29 = vld [vmem:[#allocation10 + $0xa8] sm:$0xff]  ;;  %v1972_v61 = vld [vmem:[#allocation10 + $0xb8] sm:$0xff] }
 0x310   :  { %2359 = vmatprep.subr.mxu0 %v2026_v44  ;;  %2430 = vmatprep.subr.mxu1 %v2028_v22  ;;  %v1969_v44 = vld [vmem:[#allocation10 + $0xa0] sm:$0xff]  ;;  %v1971_v22 = vld [vmem:[#allocation10 + $0xb0] sm:$0xff] }
 0x311   :  { %2360 = vmatpush1.msra.mxu0 %v2025_v52  ;;  %2431 = vmatpush1.msra.mxu1 %v2027_v41  ;;  %v1962_v52 = vld [vmem:[#allocation10 + $0x68] sm:$0xff]  ;;  %v1964_v41 = vld [vmem:[#allocation10 + $0x78] sm:$0xff] }
 0x312   :  { %2361 = vmatprep.subr.mxu0 %v2018_v8  ;;  %2432 = vmatprep.subr.mxu1 %v2020_v9  ;;  %v1961_v8 = vld [vmem:[#allocation10 + $0x60] sm:$0xff]  ;;  %v1963_v9 = vld [vmem:[#allocation10 + $0x70] sm:$0xff] }
 0x313   :  { %2362 = vmatpush1.msra.mxu0 %v2017_v63  ;;  %2433 = vmatpush1.msra.mxu1 %v2019_v3  ;;  %v1954_v63 = vld [vmem:[#allocation10 + $0x28] sm:$0xff]  ;;  %v1956_v3 = vld [vmem:[#allocation10 + $0x38] sm:$0xff] }
 0x314   :  { %2363 = vmatprep.subr.mxu0 %v2010_v51  ;;  %2434 = vmatprep.subr.mxu1 %v2012_v57  ;;  %v1953_v51 = vld [vmem:[#allocation10 + $0x20] sm:$0xff]  ;;  %v1955_v57 = vld [vmem:[#allocation10 + $0x30] sm:$0xff] }
 0x315   :  { %2364 = vmatpush1.msra.mxu0 %v2009_v0  ;;  %2435 = vmatpush1.msra.mxu1 %v2011_v53  ;;  %v2202_v0 = vld [vmem:[#allocation10 + $0x7e8] sm:$0xff]  ;;  %v2204_v53 = vld [vmem:[#allocation10 + $0x7f8] sm:$0xff] }
 0x316   :  { %2365 = vmatprep.subr.mxu0 %v2002_v4  ;;  %2436 = vmatprep.subr.mxu1 %v2004_v17  ;;  %v2201_v4 = vld [vmem:[#allocation10 + $0x7e0] sm:$0xff]  ;;  %v2203_v17 = vld [vmem:[#allocation10 + $0x7f0] sm:$0xff] }
 0x317   :  { %2366 = vmatpush1.msra.mxu0 %v2001_v18  ;;  %2437 = vmatpush1.msra.mxu1 %v2003_v54  ;;  %v2194_v18 = vld [vmem:[#allocation10 + $0x7a8] sm:$0xff]  ;;  %v2196_v54 = vld [vmem:[#allocation10 + $0x7b8] sm:$0xff] }
 0x318   :  { %2367 = vmatprep.subr.mxu0 %v1994_v35  ;;  %2438 = vmatprep.subr.mxu1 %v1996_v60  ;;  %v2193_v35 = vld [vmem:[#allocation10 + $0x7a0] sm:$0xff]  ;;  %v2195_v60 = vld [vmem:[#allocation10 + $0x7b0] sm:$0xff] }
 0x319   :  { %2368 = vmatpush1.msra.mxu0 %v1993_v6  ;;  %2439 = vmatpush1.msra.mxu1 %v1995_v42  ;;  %v2186_v6 = vld [vmem:[#allocation10 + $0x768] sm:$0xff]  ;;  %v2188_v42 = vld [vmem:[#allocation10 + $0x778] sm:$0xff] }
 0x31a   :  { %2369 = vmatprep.subr.mxu0 %v1986_v47  ;;  %2440 = vmatprep.subr.mxu1 %v1988_v45  ;;  %v2185_v47 = vld [vmem:[#allocation10 + $0x760] sm:$0xff]  ;;  %v2187_v45 = vld [vmem:[#allocation10 + $0x770] sm:$0xff] }
 0x31b   :  { %2370 = vmatpush1.msra.mxu0 %v1985_v50  ;;  %2441 = vmatpush1.msra.mxu1 %v1987_v7  ;;  %v2178_v50 = vld [vmem:[#allocation10 + $0x728] sm:$0xff]  ;;  %v2180_v7 = vld [vmem:[#allocation10 + $0x738] sm:$0xff] }
 0x31c   :  { %2371 = vmatprep.subr.mxu0 %v1978_v46  ;;  %2442 = vmatprep.subr.mxu1 %v1980_v55  ;;  %v2177_v46 = vld [vmem:[#allocation10 + $0x720] sm:$0xff]  ;;  %v2179_v55 = vld [vmem:[#allocation10 + $0x730] sm:$0xff] }
 0x31d   :  { %2372 = vmatpush1.msra.mxu0 %v1977_v56  ;;  %2443 = vmatpush1.msra.mxu1 %v1979_v59  ;;  %v2170_v56 = vld [vmem:[#allocation10 + $0x6e8] sm:$0xff]  ;;  %v2172_v59 = vld [vmem:[#allocation10 + $0x6f8] sm:$0xff] }
 0x31e   :  { %2373 = vmatprep.subr.mxu0 %v1970_v29  ;;  %2444 = vmatprep.subr.mxu1 %v1972_v61  ;;  %v2169_v29 = vld [vmem:[#allocation10 + $0x6e0] sm:$0xff]  ;;  %v2171_v61 = vld [vmem:[#allocation10 + $0x6f0] sm:$0xff] }
 0x31f   :  { %2374 = vmatpush1.msra.mxu0 %v1969_v44  ;;  %2445 = vmatpush1.msra.mxu1 %v1971_v22  ;;  %v2162_v44 = vld [vmem:[#allocation10 + $0x6a8] sm:$0xff]  ;;  %v2164_v22 = vld [vmem:[#allocation10 + $0x6b8] sm:$0xff] }
 0x320   :  { %2375 = vmatprep.subr.mxu0 %v1962_v52  ;;  %2446 = vmatprep.subr.mxu1 %v1964_v41  ;;  %v2161_v52 = vld [vmem:[#allocation10 + $0x6a0] sm:$0xff]  ;;  %v2163_v41 = vld [vmem:[#allocation10 + $0x6b0] sm:$0xff] }
 0x321   :  { %2376 = vmatpush1.msra.mxu0 %v1961_v8  ;;  %2447 = vmatpush1.msra.mxu1 %v1963_v9  ;;  %v2154_v8 = vld [vmem:[#allocation10 + $0x668] sm:$0xff]  ;;  %v2156_v9 = vld [vmem:[#allocation10 + $0x678] sm:$0xff] }
 0x322   :  { %2377 = vmatprep.subr.mxu0 %v1954_v63  ;;  %2448 = vmatprep.subr.mxu1 %v1956_v3  ;;  %v2153_v63 = vld [vmem:[#allocation10 + $0x660] sm:$0xff]  ;;  %v2155_v3 = vld [vmem:[#allocation10 + $0x670] sm:$0xff] }
 0x323   :  { %2378 = vmatpush1.msra.mxu0 %v1953_v51  ;;  %2449 = vmatpush1.msra.mxu1 %v1955_v57  ;;  %v2146_v51 = vld [vmem:[#allocation10 + $0x628] sm:$0xff]  ;;  %v2148_v57 = vld [vmem:[#allocation10 + $0x638] sm:$0xff] }
 0x324   :  { %2379 = vmatprep.subr.mxu0 %v2202_v0  ;;  %2450 = vmatprep.subr.mxu1 %v2204_v53  ;;  %v2145_v0 = vld [vmem:[#allocation10 + $0x620] sm:$0xff]  ;;  %v2147_v53 = vld [vmem:[#allocation10 + $0x630] sm:$0xff] }
 0x325   :  { %2380 = vmatpush2.msra.mxu0 %v2201_v4  ;;  %2451 = vmatpush2.msra.mxu1 %v2203_v17  ;;  %v2138_v4 = vld [vmem:[#allocation10 + $0x5e8] sm:$0xff]  ;;  %v2140_v17 = vld [vmem:[#allocation10 + $0x5f8] sm:$0xff] }
 0x326   :  { %2381 = vmatprep.subr.mxu0 %v2194_v18  ;;  %2452 = vmatprep.subr.mxu1 %v2196_v54  ;;  %v2137_v18 = vld [vmem:[#allocation10 + $0x5e0] sm:$0xff]  ;;  %v2139_v54 = vld [vmem:[#allocation10 + $0x5f0] sm:$0xff] }
 0x327   :  { %2382 = vmatpush2.msra.mxu0 %v2193_v35  ;;  %2453 = vmatpush2.msra.mxu1 %v2195_v60  ;;  %v2130_v35 = vld [vmem:[#allocation10 + $0x5a8] sm:$0xff]  ;;  %v2132_v60 = vld [vmem:[#allocation10 + $0x5b8] sm:$0xff] }
 0x328   :  { %2383 = vmatprep.subr.mxu0 %v2186_v6  ;;  %2454 = vmatprep.subr.mxu1 %v2188_v42  ;;  %v2129_v6 = vld [vmem:[#allocation10 + $0x5a0] sm:$0xff]  ;;  %v2131_v42 = vld [vmem:[#allocation10 + $0x5b0] sm:$0xff] }
 0x329   :  { %2384 = vmatpush2.msra.mxu0 %v2185_v47  ;;  %2455 = vmatpush2.msra.mxu1 %v2187_v45  ;;  %v2122_v47 = vld [vmem:[#allocation10 + $0x568] sm:$0xff]  ;;  %v2124_v45 = vld [vmem:[#allocation10 + $0x578] sm:$0xff] }
 0x32a   :  { %2385 = vmatprep.subr.mxu0 %v2178_v50  ;;  %2456 = vmatprep.subr.mxu1 %v2180_v7  ;;  %v2121_v50 = vld [vmem:[#allocation10 + $0x560] sm:$0xff]  ;;  %v2123_v7 = vld [vmem:[#allocation10 + $0x570] sm:$0xff] }
 0x32b   :  { %2386 = vmatpush2.msra.mxu0 %v2177_v46  ;;  %2457 = vmatpush2.msra.mxu1 %v2179_v55  ;;  %v2114_v46 = vld [vmem:[#allocation10 + $0x528] sm:$0xff]  ;;  %v2116_v55 = vld [vmem:[#allocation10 + $0x538] sm:$0xff] }
 0x32c   :  { %2387 = vmatprep.subr.mxu0 %v2170_v56  ;;  %2458 = vmatprep.subr.mxu1 %v2172_v59  ;;  %v2113_v56 = vld [vmem:[#allocation10 + $0x520] sm:$0xff]  ;;  %v2115_v59 = vld [vmem:[#allocation10 + $0x530] sm:$0xff] }
 0x32d   :  { %2388 = vmatpush2.msra.mxu0 %v2169_v29  ;;  %2459 = vmatpush2.msra.mxu1 %v2171_v61  ;;  %v2106_v29 = vld [vmem:[#allocation10 + $0x4e8] sm:$0xff]  ;;  %v2108_v61 = vld [vmem:[#allocation10 + $0x4f8] sm:$0xff] }
 0x32e   :  { %2389 = vmatprep.subr.mxu0 %v2162_v44  ;;  %2460 = vmatprep.subr.mxu1 %v2164_v22  ;;  %v2105_v44 = vld [vmem:[#allocation10 + $0x4e0] sm:$0xff]  ;;  %v2107_v22 = vld [vmem:[#allocation10 + $0x4f0] sm:$0xff] }
 0x32f   :  { %2390 = vmatpush2.msra.mxu0 %v2161_v52  ;;  %2461 = vmatpush2.msra.mxu1 %v2163_v41  ;;  %v2098_v52 = vld [vmem:[#allocation10 + $0x4a8] sm:$0xff]  ;;  %v2100_v41 = vld [vmem:[#allocation10 + $0x4b8] sm:$0xff] }
 0x330   :  { %2391 = vmatprep.subr.mxu0 %v2154_v8  ;;  %2462 = vmatprep.subr.mxu1 %v2156_v9  ;;  %v2097_v8 = vld [vmem:[#allocation10 + $0x4a0] sm:$0xff]  ;;  %v2099_v9 = vld [vmem:[#allocation10 + $0x4b0] sm:$0xff] }
 0x331   :  { %2392 = vmatpush2.msra.mxu0 %v2153_v63  ;;  %2463 = vmatpush2.msra.mxu1 %v2155_v3  ;;  %v2090_v63 = vld [vmem:[#allocation10 + $0x468] sm:$0xff]  ;;  %v2092_v3 = vld [vmem:[#allocation10 + $0x478] sm:$0xff] }
 0x332   :  { %2393 = vmatprep.subr.mxu0 %v2146_v51  ;;  %2464 = vmatprep.subr.mxu1 %v2148_v57  ;;  %v2089_v51 = vld [vmem:[#allocation10 + $0x460] sm:$0xff]  ;;  %v2091_v57 = vld [vmem:[#allocation10 + $0x470] sm:$0xff] }
 0x333   :  { %2394 = vmatpush2.msra.mxu0 %v2145_v0  ;;  %2465 = vmatpush2.msra.mxu1 %v2147_v53  ;;  %v2082_v0 = vld [vmem:[#allocation10 + $0x428] sm:$0xff]  ;;  %v2084_v53 = vld [vmem:[#allocation10 + $0x438] sm:$0xff] }
 0x334   :  { %2395 = vmatprep.subr.mxu0 %v2138_v4  ;;  %2466 = vmatprep.subr.mxu1 %v2140_v17  ;;  %v2081_v4 = vld [vmem:[#allocation10 + $0x420] sm:$0xff]  ;;  %v2083_v17 = vld [vmem:[#allocation10 + $0x430] sm:$0xff] }
 0x335   :  { %2396 = vmatpush2.msra.mxu0 %v2137_v18  ;;  %2467 = vmatpush2.msra.mxu1 %v2139_v54  ;;  %v2686_v18 = vld [vmem:[#allocation10 + $0x3c8] sm:$0xff]  ;;  %v2688_v54 = vld [vmem:[#allocation10 + $0x3d8] sm:$0xff] }
 0x336   :  { %2397 = vmatprep.subr.mxu0 %v2130_v35  ;;  %2468 = vmatprep.subr.mxu1 %v2132_v60  ;;  %v2685_v35 = vld [vmem:[#allocation10 + $0x3c0] sm:$0xff]  ;;  %v2687_v60 = vld [vmem:[#allocation10 + $0x3d0] sm:$0xff] }
 0x337   :  { %2398 = vmatpush2.msra.mxu0 %v2129_v6  ;;  %2469 = vmatpush2.msra.mxu1 %v2131_v42  ;;  %v2678_v6 = vld [vmem:[#allocation10 + $0x388] sm:$0xff]  ;;  %v2680_v42 = vld [vmem:[#allocation10 + $0x398] sm:$0xff] }
 0x338   :  { %2399 = vmatprep.subr.mxu0 %v2122_v47  ;;  %2470 = vmatprep.subr.mxu1 %v2124_v45  ;;  %v2677_v47 = vld [vmem:[#allocation10 + $0x380] sm:$0xff]  ;;  %v2679_v45 = vld [vmem:[#allocation10 + $0x390] sm:$0xff] }
 0x339   :  { %2400 = vmatpush2.msra.mxu0 %v2121_v50  ;;  %2471 = vmatpush2.msra.mxu1 %v2123_v7  ;;  %v2670_v50 = vld [vmem:[#allocation10 + $0x348] sm:$0xff]  ;;  %v2672_v7 = vld [vmem:[#allocation10 + $0x358] sm:$0xff] }
 0x33a   :  { %2401 = vmatprep.subr.mxu0 %v2114_v46  ;;  %2472 = vmatprep.subr.mxu1 %v2116_v55  ;;  %v2669_v46 = vld [vmem:[#allocation10 + $0x340] sm:$0xff]  ;;  %v2671_v55 = vld [vmem:[#allocation10 + $0x350] sm:$0xff] }
 0x33b   :  { %2402 = vmatpush2.msra.mxu0 %v2113_v56  ;;  %2473 = vmatpush2.msra.mxu1 %v2115_v59  ;;  %v2664_v56 = vld [vmem:[#allocation10 + $0x318] sm:$0xff]  ;;  %v2661_v59 = vld [vmem:[#allocation10 + $0x300] sm:$0xff] }
 0x33c   :  { %2403 = vmatprep.subr.mxu0 %v2106_v29  ;;  %2474 = vmatprep.subr.mxu1 %v2108_v61  ;;  %v2663_v29 = vld [vmem:[#allocation10 + $0x310] sm:$0xff]  ;;  %v2654_v61 = vld [vmem:[#allocation10 + $0x2c8] sm:$0xff] }
 0x33d   :  { %2404 = vmatpush2.msra.mxu0 %v2105_v44  ;;  %2475 = vmatpush2.msra.mxu1 %v2107_v22  ;;  %v2656_v44 = vld [vmem:[#allocation10 + $0x2d8] sm:$0xff]  ;;  %v2653_v22 = vld [vmem:[#allocation10 + $0x2c0] sm:$0xff] }
 0x33e   :  { %2405 = vmatprep.subr.mxu0 %v2098_v52  ;;  %2476 = vmatprep.subr.mxu1 %v2100_v41  ;;  %v2655_v52 = vld [vmem:[#allocation10 + $0x2d0] sm:$0xff]  ;;  %v2646_v41 = vld [vmem:[#allocation10 + $0x288] sm:$0xff] }
 0x33f   :  { %2406 = vmatpush2.msra.mxu0 %v2097_v8  ;;  %2477 = vmatpush2.msra.mxu1 %v2099_v9  ;;  %v2648_v8 = vld [vmem:[#allocation10 + $0x298] sm:$0xff]  ;;  %v2645_v9 = vld [vmem:[#allocation10 + $0x280] sm:$0xff] }
 0x340   :  { %2407 = vmatprep.subr.mxu0 %v2090_v63  ;;  %2478 = vmatprep.subr.mxu1 %v2092_v3  ;;  %v2647_v63 = vld [vmem:[#allocation10 + $0x290] sm:$0xff]  ;;  %v2638_v3 = vld [vmem:[#allocation10 + $0x248] sm:$0xff] }
 0x341   :  { %2408 = vmatpush2.msra.mxu0 %v2089_v51  ;;  %2479 = vmatpush2.msra.mxu1 %v2091_v57  ;;  %v2640_v51 = vld [vmem:[#allocation10 + $0x258] sm:$0xff]  ;;  %v2637_v57 = vld [vmem:[#allocation10 + $0x240] sm:$0xff] }
 0x342   :  { %2409 = vmatprep.subr.mxu0 %v2082_v0  ;;  %2480 = vmatprep.subr.mxu1 %v2084_v53  ;;  %v2639_v0 = vld [vmem:[#allocation10 + $0x250] sm:$0xff]  ;;  %v2630_v53 = vld [vmem:[#allocation10 + $0x208] sm:$0xff] }
 0x343   :  { %2410 = vmatpush2.msra.mxu0 %v2081_v4  ;;  %2481 = vmatpush2.msra.mxu1 %v2083_v17  ;;  %v2632_v4 = vld [vmem:[#allocation10 + $0x218] sm:$0xff]  ;;  %v2629_v17 = vld [vmem:[#allocation10 + $0x200] sm:$0xff] }
 0x344   :  { %2412 = vmatmul.mubr.f32.vlgmr.msra.gmra.mxu0 %v6617_v62  ;;  %2483 = vmatmul.mubr.f32.vlgmr.msra.gmra.mxu1 %v6617_v62  ;;  %v2662_v62 = vld [vmem:[#allocation10 + $0x308] sm:$0xff] }
 0x345   :  { %2821 = vmatprep.subr.mxu0 %v2686_v18  ;;  %2892 = vmatprep.subr.mxu1 %v2688_v54  ;;  %v2631_v18 = vld [vmem:[#allocation10 + $0x210] sm:$0xff]  ;;  %v2622_v54 = vld [vmem:[#allocation10 + $0x1c8] sm:$0xff] }
 0x346   :  { %2822 = vmatpush1.msra.mxu0 %v2685_v35  ;;  %2893 = vmatpush1.msra.mxu1 %v2687_v60  ;;  %v2624_v35 = vld [vmem:[#allocation10 + $0x1d8] sm:$0xff]  ;;  %v2621_v60 = vld [vmem:[#allocation10 + $0x1c0] sm:$0xff] }
 0x347   :  { %2823 = vmatprep.subr.mxu0 %v2678_v6  ;;  %2894 = vmatprep.subr.mxu1 %v2680_v42  ;;  %v2623_v6 = vld [vmem:[#allocation10 + $0x1d0] sm:$0xff]  ;;  %v2614_v42 = vld [vmem:[#allocation10 + $0x188] sm:$0xff] }
 0x348   :  { %2824 = vmatpush1.msra.mxu0 %v2677_v47  ;;  %2895 = vmatpush1.msra.mxu1 %v2679_v45  ;;  %v2616_v47 = vld [vmem:[#allocation10 + $0x198] sm:$0xff]  ;;  %v2613_v45 = vld [vmem:[#allocation10 + $0x180] sm:$0xff] }
 0x349   :  { %2825 = vmatprep.subr.mxu0 %v2670_v50  ;;  %2896 = vmatprep.subr.mxu1 %v2672_v7  ;;  %v2615_v50 = vld [vmem:[#allocation10 + $0x190] sm:$0xff]  ;;  %v2606_v7 = vld [vmem:[#allocation10 + $0x148] sm:$0xff] }
 0x34a   :  { %2826 = vmatpush1.msra.mxu0 %v2669_v46  ;;  %2897 = vmatpush1.msra.mxu1 %v2671_v55  ;;  %v2608_v46 = vld [vmem:[#allocation10 + $0x158] sm:$0xff]  ;;  %v2605_v55 = vld [vmem:[#allocation10 + $0x140] sm:$0xff] }
 0x34b   :  { %2827 = vmatprep.subr.mxu0 %v2662_v62  ;;  %2898 = vmatprep.subr.mxu1 %v2664_v56  ;;  %v2607_v62 = vld [vmem:[#allocation10 + $0x150] sm:$0xff]  ;;  %v2598_v56 = vld [vmem:[#allocation10 + $0x108] sm:$0xff] }
 0x34c   :  { %2828 = vmatpush1.msra.mxu0 %v2661_v59  ;;  %2899 = vmatpush1.msra.mxu1 %v2663_v29  ;;  %v2600_v59 = vld [vmem:[#allocation10 + $0x118] sm:$0xff]  ;;  %v2597_v29 = vld [vmem:[#allocation10 + $0x100] sm:$0xff] }
 0x34d   :  { %2829 = vmatprep.subr.mxu0 %v2654_v61  ;;  %2900 = vmatprep.subr.mxu1 %v2656_v44  ;;  %v2599_v61 = vld [vmem:[#allocation10 + $0x110] sm:$0xff]  ;;  %v2590_v44 = vld [vmem:[#allocation10 + $0xc8] sm:$0xff] }
 0x34e   :  { %2830 = vmatpush1.msra.mxu0 %v2653_v22  ;;  %2901 = vmatpush1.msra.mxu1 %v2655_v52  ;;  %v2592_v22 = vld [vmem:[#allocation10 + $0xd8] sm:$0xff]  ;;  %v2589_v52 = vld [vmem:[#allocation10 + $0xc0] sm:$0xff] }
 0x34f   :  { %2831 = vmatprep.subr.mxu0 %v2646_v41  ;;  %2902 = vmatprep.subr.mxu1 %v2648_v8  ;;  %v2591_v41 = vld [vmem:[#allocation10 + $0xd0] sm:$0xff]  ;;  %v2582_v8 = vld [vmem:[#allocation10 + $0x88] sm:$0xff] }
 0x350   :  { %2832 = vmatpush1.msra.mxu0 %v2645_v9  ;;  %2903 = vmatpush1.msra.mxu1 %v2647_v63  ;;  %v2584_v9 = vld [vmem:[#allocation10 + $0x98] sm:$0xff]  ;;  %v2581_v63 = vld [vmem:[#allocation10 + $0x80] sm:$0xff] }
 0x351   :  { %2833 = vmatprep.subr.mxu0 %v2638_v3  ;;  %2904 = vmatprep.subr.mxu1 %v2640_v51  ;;  %v2583_v3 = vld [vmem:[#allocation10 + $0x90] sm:$0xff]  ;;  %v2574_v51 = vld [vmem:[#allocation10 + $0x48] sm:$0xff] }
 0x352   :  { %2834 = vmatpush1.msra.mxu0 %v2637_v57  ;;  %2905 = vmatpush1.msra.mxu1 %v2639_v0  ;;  %v2576_v57 = vld [vmem:[#allocation10 + $0x58] sm:$0xff]  ;;  %v2573_v0 = vld [vmem:[#allocation10 + $0x40] sm:$0xff] }
 0x353   :  { %2835 = vmatprep.subr.mxu0 %v2630_v53  ;;  %2906 = vmatprep.subr.mxu1 %v2632_v4  ;;  %v2575_v53 = vld [vmem:[#allocation10 + $0x50] sm:$0xff]  ;;  %v2566_v4 = vld [vmem:[#allocation10 + $0x8] sm:$0xff] }
 0x354   :  { %2836 = vmatpush1.msra.mxu0 %v2629_v17  ;;  %2907 = vmatpush1.msra.mxu1 %v2631_v18  ;;  %v2568_v17 = vld [vmem:[#allocation10 + $0x18] sm:$0xff]  ;;  %v2565_v18 = vld [vmem:[#allocation10] sm:$0xff] }
 0x355   :  { %2837 = vmatprep.subr.mxu0 %v2622_v54  ;;  %2908 = vmatprep.subr.mxu1 %v2624_v35  ;;  %v2567_v54 = vld [vmem:[#allocation10 + $0x10] sm:$0xff]  ;;  %v2814_v35 = vld [vmem:[#allocation10 + $0x7c8] sm:$0xff] }
 0x356   :  { %2838 = vmatpush1.msra.mxu0 %v2621_v60  ;;  %2909 = vmatpush1.msra.mxu1 %v2623_v6  ;;  %v2816_v60 = vld [vmem:[#allocation10 + $0x7d8] sm:$0xff]  ;;  %v2813_v6 = vld [vmem:[#allocation10 + $0x7c0] sm:$0xff] }
 0x357   :  { %2839 = vmatprep.subr.mxu0 %v2614_v42  ;;  %2910 = vmatprep.subr.mxu1 %v2616_v47  ;;  %v2815_v42 = vld [vmem:[#allocation10 + $0x7d0] sm:$0xff]  ;;  %v2806_v47 = vld [vmem:[#allocation10 + $0x788] sm:$0xff] }
 0x358   :  { %2840 = vmatpush1.msra.mxu0 %v2613_v45  ;;  %2911 = vmatpush1.msra.mxu1 %v2615_v50  ;;  %v2808_v45 = vld [vmem:[#allocation10 + $0x798] sm:$0xff]  ;;  %v2805_v50 = vld [vmem:[#allocation10 + $0x780] sm:$0xff] }
 0x359   :  { %2841 = vmatprep.subr.mxu0 %v2606_v7  ;;  %2912 = vmatprep.subr.mxu1 %v2608_v46  ;;  %v2807_v7 = vld [vmem:[#allocation10 + $0x790] sm:$0xff]  ;;  %v2798_v46 = vld [vmem:[#allocation10 + $0x748] sm:$0xff] }
 0x35a   :  { %2842 = vmatpush1.msra.mxu0 %v2605_v55  ;;  %2913 = vmatpush1.msra.mxu1 %v2607_v62  ;;  %v2800_v55 = vld [vmem:[#allocation10 + $0x758] sm:$0xff]  ;;  %v2797_v62 = vld [vmem:[#allocation10 + $0x740] sm:$0xff] }
 0x35b   :  { %2843 = vmatprep.subr.mxu0 %v2598_v56  ;;  %2914 = vmatprep.subr.mxu1 %v2600_v59  ;;  %v2799_v56 = vld [vmem:[#allocation10 + $0x750] sm:$0xff]  ;;  %v2790_v59 = vld [vmem:[#allocation10 + $0x708] sm:$0xff] }
 0x35c   :  { %2844 = vmatpush1.msra.mxu0 %v2597_v29  ;;  %2915 = vmatpush1.msra.mxu1 %v2599_v61  ;;  %v2792_v29 = vld [vmem:[#allocation10 + $0x718] sm:$0xff]  ;;  %v2789_v61 = vld [vmem:[#allocation10 + $0x700] sm:$0xff] }
 0x35d   :  { %2845 = vmatprep.subr.mxu0 %v2590_v44  ;;  %2916 = vmatprep.subr.mxu1 %v2592_v22  ;;  %v2791_v44 = vld [vmem:[#allocation10 + $0x710] sm:$0xff]  ;;  %v2782_v22 = vld [vmem:[#allocation10 + $0x6c8] sm:$0xff] }
 0x35e   :  { %2846 = vmatpush1.msra.mxu0 %v2589_v52  ;;  %2917 = vmatpush1.msra.mxu1 %v2591_v41  ;;  %v2784_v52 = vld [vmem:[#allocation10 + $0x6d8] sm:$0xff]  ;;  %v2781_v41 = vld [vmem:[#allocation10 + $0x6c0] sm:$0xff] }
 0x35f   :  { %2847 = vmatprep.subr.mxu0 %v2582_v8  ;;  %2918 = vmatprep.subr.mxu1 %v2584_v9  ;;  %v2783_v8 = vld [vmem:[#allocation10 + $0x6d0] sm:$0xff]  ;;  %v2774_v9 = vld [vmem:[#allocation10 + $0x688] sm:$0xff] }
 0x360   :  { %2848 = vmatpush1.msra.mxu0 %v2581_v63  ;;  %2919 = vmatpush1.msra.mxu1 %v2583_v3  ;;  %v2776_v63 = vld [vmem:[#allocation10 + $0x698] sm:$0xff]  ;;  %v2773_v3 = vld [vmem:[#allocation10 + $0x680] sm:$0xff] }
 0x361   :  { %2849 = vmatprep.subr.mxu0 %v2574_v51  ;;  %2920 = vmatprep.subr.mxu1 %v2576_v57  ;;  %v2775_v51 = vld [vmem:[#allocation10 + $0x690] sm:$0xff]  ;;  %v2766_v57 = vld [vmem:[#allocation10 + $0x648] sm:$0xff] }
 0x362   :  { %2850 = vmatpush1.msra.mxu0 %v2573_v0  ;;  %2921 = vmatpush1.msra.mxu1 %v2575_v53  ;;  %v2768_v0 = vld [vmem:[#allocation10 + $0x658] sm:$0xff]  ;;  %v2765_v53 = vld [vmem:[#allocation10 + $0x640] sm:$0xff] }
 0x363   :  { %2851 = vmatprep.subr.mxu0 %v2566_v4  ;;  %2922 = vmatprep.subr.mxu1 %v2568_v17  ;;  %v2767_v4 = vld [vmem:[#allocation10 + $0x650] sm:$0xff]  ;;  %v2758_v17 = vld [vmem:[#allocation10 + $0x608] sm:$0xff] }
 0x364   :  { %2852 = vmatpush1.msra.mxu0 %v2565_v18  ;;  %2923 = vmatpush1.msra.mxu1 %v2567_v54  ;;  %v2760_v18 = vld [vmem:[#allocation10 + $0x618] sm:$0xff]  ;;  %v2757_v54 = vld [vmem:[#allocation10 + $0x600] sm:$0xff] }
 0x365   :  { %2853 = vmatprep.subr.mxu0 %v2814_v35  ;;  %2924 = vmatprep.subr.mxu1 %v2816_v60  ;;  %v2759_v35 = vld [vmem:[#allocation10 + $0x610] sm:$0xff]  ;;  %v2750_v60 = vld [vmem:[#allocation10 + $0x5c8] sm:$0xff] }
 0x366   :  { %2854 = vmatpush2.msra.mxu0 %v2813_v6  ;;  %2925 = vmatpush2.msra.mxu1 %v2815_v42  ;;  %v2752_v6 = vld [vmem:[#allocation10 + $0x5d8] sm:$0xff]  ;;  %v2749_v42 = vld [vmem:[#allocation10 + $0x5c0] sm:$0xff] }
 0x367   :  { %2855 = vmatprep.subr.mxu0 %v2806_v47  ;;  %2926 = vmatprep.subr.mxu1 %v2808_v45  ;;  %v2751_v47 = vld [vmem:[#allocation10 + $0x5d0] sm:$0xff]  ;;  %v2742_v45 = vld [vmem:[#allocation10 + $0x588] sm:$0xff] }
 0x368   :  { %2856 = vmatpush2.msra.mxu0 %v2805_v50  ;;  %2927 = vmatpush2.msra.mxu1 %v2807_v7  ;;  %v2744_v50 = vld [vmem:[#allocation10 + $0x598] sm:$0xff]  ;;  %v2741_v7 = vld [vmem:[#allocation10 + $0x580] sm:$0xff] }
 0x369   :  { %2857 = vmatprep.subr.mxu0 %v2798_v46  ;;  %2928 = vmatprep.subr.mxu1 %v2800_v55  ;;  %v2743_v46 = vld [vmem:[#allocation10 + $0x590] sm:$0xff]  ;;  %v2734_v55 = vld [vmem:[#allocation10 + $0x548] sm:$0xff] }
 0x36a   :  { %2858 = vmatpush2.msra.mxu0 %v2797_v62  ;;  %2929 = vmatpush2.msra.mxu1 %v2799_v56  ;;  %v2736_v62 = vld [vmem:[#allocation10 + $0x558] sm:$0xff]  ;;  %v2733_v56 = vld [vmem:[#allocation10 + $0x540] sm:$0xff] }
 0x36b   :  { %2859 = vmatprep.subr.mxu0 %v2790_v59  ;;  %2930 = vmatprep.subr.mxu1 %v2792_v29  ;;  %v2735_v59 = vld [vmem:[#allocation10 + $0x550] sm:$0xff]  ;;  %v2726_v29 = vld [vmem:[#allocation10 + $0x508] sm:$0xff] }
 0x36c   :  { %2860 = vmatpush2.msra.mxu0 %v2789_v61  ;;  %2931 = vmatpush2.msra.mxu1 %v2791_v44  ;;  %v2728_v61 = vld [vmem:[#allocation10 + $0x518] sm:$0xff]  ;;  %v2725_v44 = vld [vmem:[#allocation10 + $0x500] sm:$0xff] }
 0x36d   :  { %2861 = vmatprep.subr.mxu0 %v2782_v22  ;;  %2932 = vmatprep.subr.mxu1 %v2784_v52  ;;  %v2727_v22 = vld [vmem:[#allocation10 + $0x510] sm:$0xff]  ;;  %v2718_v52 = vld [vmem:[#allocation10 + $0x4c8] sm:$0xff] }
 0x36e   :  { %2862 = vmatpush2.msra.mxu0 %v2781_v41  ;;  %2933 = vmatpush2.msra.mxu1 %v2783_v8  ;;  %v2720_v41 = vld [vmem:[#allocation10 + $0x4d8] sm:$0xff]  ;;  %v2717_v8 = vld [vmem:[#allocation10 + $0x4c0] sm:$0xff] }
 0x36f   :  { %2863 = vmatprep.subr.mxu0 %v2774_v9  ;;  %2934 = vmatprep.subr.mxu1 %v2776_v63  ;;  %v2719_v9 = vld [vmem:[#allocation10 + $0x4d0] sm:$0xff]  ;;  %v2710_v63 = vld [vmem:[#allocation10 + $0x488] sm:$0xff] }
 0x370   :  { %2864 = vmatpush2.msra.mxu0 %v2773_v3  ;;  %2935 = vmatpush2.msra.mxu1 %v2775_v51  ;;  %v2712_v3 = vld [vmem:[#allocation10 + $0x498] sm:$0xff]  ;;  %v2709_v51 = vld [vmem:[#allocation10 + $0x480] sm:$0xff] }
 0x371   :  { %2865 = vmatprep.subr.mxu0 %v2766_v57  ;;  %2936 = vmatprep.subr.mxu1 %v2768_v0  ;;  %v2711_v57 = vld [vmem:[#allocation10 + $0x490] sm:$0xff]  ;;  %v2702_v0 = vld [vmem:[#allocation10 + $0x448] sm:$0xff] }
 0x372   :  { %2866 = vmatpush2.msra.mxu0 %v2765_v53  ;;  %2937 = vmatpush2.msra.mxu1 %v2767_v4  ;;  %v2704_v53 = vld [vmem:[#allocation10 + $0x458] sm:$0xff]  ;;  %v2701_v4 = vld [vmem:[#allocation10 + $0x440] sm:$0xff] }
 0x373   :  { %2867 = vmatprep.subr.mxu0 %v2758_v17  ;;  %2938 = vmatprep.subr.mxu1 %v2760_v18  ;;  %v2703_v17 = vld [vmem:[#allocation10 + $0x450] sm:$0xff]  ;;  %v2694_v18 = vld [vmem:[#allocation10 + $0x408] sm:$0xff] }
 0x374   :  { %2868 = vmatpush2.msra.mxu0 %v2757_v54  ;;  %2939 = vmatpush2.msra.mxu1 %v2759_v35  ;;  %v2696_v54 = vld [vmem:[#allocation10 + $0x418] sm:$0xff]  ;;  %v2693_v35 = vld [vmem:[#allocation10 + $0x400] sm:$0xff] }
 0x375   :  { %2869 = vmatprep.subr.mxu0 %v2750_v60  ;;  %2940 = vmatprep.subr.mxu1 %v2752_v6  ;;  %v2695_v60 = vld [vmem:[#allocation10 + $0x410] sm:$0xff]  ;;  %v2690_v6 = vld [vmem:[#allocation10 + $0x3e8] sm:$0xff] }
 0x376   :  { %2870 = vmatpush2.msra.mxu0 %v2749_v42  ;;  %2941 = vmatpush2.msra.mxu1 %v2751_v47  ;;  %v2692_v42 = vld [vmem:[#allocation10 + $0x3f8] sm:$0xff] }
 0x377   :  { %2871 = vmatprep.subr.mxu0 %v2742_v45  ;;  %2942 = vmatprep.subr.mxu1 %v2744_v50 }
 0x378   :  { %2872 = vmatpush2.msra.mxu0 %v2741_v7  ;;  %2943 = vmatpush2.msra.mxu1 %v2743_v46 }
 0x379   :  { %2873 = vmatprep.subr.mxu0 %v2734_v55  ;;  %2944 = vmatprep.subr.mxu1 %v2736_v62 }
 0x37a   :  { %2874 = vmatpush2.msra.mxu0 %v2733_v56  ;;  %2945 = vmatpush2.msra.mxu1 %v2735_v59 }
 0x37b   :  { %2875 = vmatprep.subr.mxu0 %v2726_v29  ;;  %2946 = vmatprep.subr.mxu1 %v2728_v61 }
 0x37c   :  { %2876 = vmatpush2.msra.mxu0 %v2725_v44  ;;  %2947 = vmatpush2.msra.mxu1 %v2727_v22 }
 0x37d   :  { %2877 = vmatprep.subr.mxu0 %v2718_v52  ;;  %2948 = vmatprep.subr.mxu1 %v2720_v41 }
 0x37e   :  { %2878 = vmatpush2.msra.mxu0 %v2717_v8  ;;  %2949 = vmatpush2.msra.mxu1 %v2719_v9 }
 0x37f   :  { %2879 = vmatprep.subr.mxu0 %v2710_v63  ;;  %2950 = vmatprep.subr.mxu1 %v2712_v3  ;;  %v497_v63 = vadd.f32 %v6508_v13, %v6571_v49 }
 0x380   :  { %2880 = vmatpush2.msra.mxu0 %v2709_v51  ;;  %2951 = vmatpush2.msra.mxu1 %v2711_v57 }
 0x381   :  { %2881 = vmatprep.subr.mxu0 %v2702_v0  ;;  %2952 = vmatprep.subr.mxu1 %v2704_v53  ;;  %v610_v0 = vadd.f32 %v6510_v14, %v6574_v34 }
 0x382   :  { %2882 = vmatpush2.msra.mxu0 %v2701_v4  ;;  %2953 = vmatpush2.msra.mxu1 %v2703_v17 }
 0x383   :  { %2883 = vmatprep.subr.mxu0 %v2694_v18  ;;  %2954 = vmatprep.subr.mxu1 %v2696_v54 }
 0x384   :  { %2884 = vmatpush2.msra.mxu0 %v2693_v35  ;;  %2955 = vmatpush2.msra.mxu1 %v2695_v60 }
 0x385   :  { %2963 = vmatprep.subr.mxu0 %v2690_v6  ;;  %3034 = vmatprep.subr.mxu1 %v2692_v42 }
 0x3c3   :  { %v2271_v47 = vpop.f32.mrf.mxu0  ;;  %v2342_v45 = vpop.f32.mrf.mxu1 }
 0x3c4   :  { %v2489_v7 = vadd.f32 %v2271_v47, %v6417_v27  ;;  %v2491_v46 = vadd.f32 %v2342_v45, %v6420_v12 }
 0x3c5   :  { %v2273_v50 = vpop.f32.mrf.mxu0  ;;  %v2344_v55 = vpop.f32.mrf.mxu1 }
 0x3c6   :  { %v2490_v62 = vadd.f32 %v2273_v50, %v6423_v15  ;;  %v5733_v56 = vmul.f32 -1.442695, %v2489_v7  ;;  %v2492_v59 = vadd.f32 %v2344_v55, %v6426_v16  ;;  %v5735_v29 = vmul.f32 -1.442695, %v2491_v46 }
 0x3c7   :  { %v495_v15 = vadd.f32 %v6504_v10, %v6565_v1  ;;  %v608_v16 = vadd.f32 %v6506_v11, %v6568_v2 }
 0x3c8   :  { %v5734_v61 = vmul.f32 -1.442695, %v2490_v62  ;;  %5847 = vpow2.f32 %v5733_v56  ;;  %v5736_v44 = vmul.f32 -1.442695, %v2492_v59 }
 0x3c9   :  { %5849 = vpow2.f32 %v5735_v29 }
 0x3ca   :  { %5851 = vpow2.f32 %v5734_v61 }
 0x3cb   :  { %5853 = vpow2.f32 %v5736_v44 }
 0x3d5   :  { %v5848_v22 = vpop.eup %5847 }
 0x3d6   :  { %v5850_v52 = vpop.eup %5849  ;;  %v2503_v8 = vadd.f32 1.0, %v5848_v22 }
 0x3d7   :  { %v5852_v41 = vpop.eup %5851  ;;  %v2515_v9 = vadd.f32 1.0, %v5850_v52 }
 0x3d8   :  { %v5854_v27 = vpop.eup %5853  ;;  %v2504_v12 = vadd.f32 1.0, %v5852_v41  ;;  %5855 = vrcp.f32 %v2503_v8 }
 0x3d9   :  { %v2516_v3 = vadd.f32 1.0, %v5854_v27  ;;  %5857 = vrcp.f32 %v2515_v9  ;;  %v2691_v27 = vld [vmem:[#allocation10 + $0x3f0] sm:$0xff]  ;;  %v2682_v9 = vld [vmem:[#allocation10 + $0x3a8] sm:$0xff] }
 0x3da   :  { %5859 = vrcp.f32 %v2504_v12  ;;  %v2684_v12 = vld [vmem:[#allocation10 + $0x3b8] sm:$0xff] }
 0x3e5   :  { %v5856_v35 = vpop.eup %5855 }
 0x3e6   :  { %v5858_v60 = vpop.eup %5857 }
 0x3e7   :  { %v5860_v6 = vpop.eup %5859  ;;  %v2535_v47 = vmul.f32 %v5858_v60, %v6610_v58  ;;  %v2649_v60 = vld [vmem:[#allocation10 + $0x2a0] sm:$0xff] }
 0x404   :  { %v2413_v51 = vpop.f32.mrf.mxu0  ;;  %v2484_v57 = vpop.f32.mrf.mxu1 }
 0x405   :  { %v2493_v53 = vadd.f32 %v2413_v51, %v495_v15  ;;  %v2495_v4 = vadd.f32 %v2484_v57, %v608_v16  ;;  %v2681_v15 = vld [vmem:[#allocation10 + $0x3a0] sm:$0xff]  ;;  %v2683_v16 = vld [vmem:[#allocation10 + $0x3b0] sm:$0xff] }
 0x406   :  { %v2415_v17 = vpop.f32.mrf.mxu0  ;;  %v2486_v18 = vpop.f32.mrf.mxu1  ;;  %v2673_v51 = vld [vmem:[#allocation10 + $0x360] sm:$0xff]  ;;  %v2675_v57 = vld [vmem:[#allocation10 + $0x370] sm:$0xff] }
 0x407   :  { %5861 = vtanh.f32 %v2493_v53  ;;  %v5737_v10 = vmul.f32 -1.442695, %v2495_v4  ;;  %v2494_v54 = vadd.f32 %v2415_v17, %v497_v63  ;;  %v2496_v11 = vadd.f32 %v2486_v18, %v610_v0  ;;  %v2674_v63 = vld [vmem:[#allocation10 + $0x368] sm:$0xff]  ;;  %v2668_v53 = vld [vmem:[#allocation10 + $0x338] sm:$0xff]  ;;  %v2665_v4 = vld [vmem:[#allocation10 + $0x320] sm:$0xff] }
 0x408   :  { %5863 = vrcp.f32 %v2516_v3  ;;  %v2676_v3 = vld [vmem:[#allocation10 + $0x378] sm:$0xff]  ;;  %v2666_v0 = vld [vmem:[#allocation10 + $0x328] sm:$0xff]  ;;  %v2667_v17 = vld [vmem:[#allocation10 + $0x330] sm:$0xff] }
 0x409   :  { %5865 = vpow2.f32 %v5737_v10  ;;  %v5738_v13 = vmul.f32 -1.442695, %v2496_v11  ;;  %v2658_v18 = vld [vmem:[#allocation10 + $0x2e8] sm:$0xff]  ;;  %v2660_v10 = vld [vmem:[#allocation10 + $0x2f8] sm:$0xff]  ;;  %v2659_v11 = vld [vmem:[#allocation10 + $0x2f0] sm:$0xff] }
 0x40a   :  { %5867 = vtanh.f32 %v2494_v54  ;;  %v2657_v54 = vld [vmem:[#allocation10 + $0x2e0] sm:$0xff] }
 0x40b   :  { %5869 = vpow2.f32 %v5738_v13  ;;  %v2650_v13 = vld [vmem:[#allocation10 + $0x2a8] sm:$0xff] }
 0x414   :  { %v5862_v42 = vpop.eup %5861 }
 0x415   :  { %v5864_v14 = vpop.eup %5863  ;;  %v2537_v45 = vmul.f32 %v5862_v42, %v5856_v35  ;;  %v2652_v35 = vld [vmem:[#allocation10 + $0x2b8] sm:$0xff]  ;;  %v2642_v42 = vld [vmem:[#allocation10 + $0x268] sm:$0xff] }
 0x416   :  { %v5866_v50 = vpop.eup %5865  ;;  %v2536_v56 = vmul.f32 %v5864_v14, %v6614_v5  ;;  %v2689_v5 = vld [vmem:[#allocation10 + $0x3e0] sm:$0xff]  ;;  %v2644_v14 = vld [vmem:[#allocation10 + $0x278] sm:$0xff] }
 0x417   :  { %v5868_v7 = vpop.eup %5867  ;;  %v6637_v46 = vadd.f32 %v2537_v45, %v2535_v47  ;;  %v2529_v55 = vadd.f32 1.0, %v5866_v50  ;;  %v2641_v47 = vld [vmem:[#allocation10 + $0x260] sm:$0xff]  ;;  %v2643_v45 = vld [vmem:[#allocation10 + $0x270] sm:$0xff]  ;;  %v2634_v50 = vld [vmem:[#allocation10 + $0x228] sm:$0xff] }
 0x418   :  { %v5870_v62 = vpop.eup %5869  ;;  %v2538_v59 = vmul.f32 %v5868_v7, %v5860_v6  ;;  %v2651_v6 = vld [vmem:[#allocation10 + $0x2b0] sm:$0xff]  ;;  %v2636_v7 = vld [vmem:[#allocation10 + $0x238] sm:$0xff] }
 0x419   :  { %5871 = vtanh.f32 %v6637_v46  ;;  %v2530_v29 = vadd.f32 1.0, %v5870_v62  ;;  %v2635_v62 = vld [vmem:[#allocation10 + $0x230] sm:$0xff] }
 0x41a   :  { %5873 = vrcp.f32 %v2529_v55  ;;  %v6641_v61 = vadd.f32 %v2538_v59, %v2536_v56  ;;  %v2633_v55 = vld [vmem:[#allocation10 + $0x220] sm:$0xff]  ;;  %v2626_v56 = vld [vmem:[#allocation10 + $0x1e8] sm:$0xff]  ;;  %v2628_v59 = vld [vmem:[#allocation10 + $0x1f8] sm:$0xff] }
 0x41b   :  { %5875 = vrcp.f32 %v2530_v29  ;;  %v2625_v29 = vld [vmem:[#allocation10 + $0x1e0] sm:$0xff] }
 0x41c   :  { %5877 = vtanh.f32 %v6641_v61 }
 0x426   :  { %v5872_v58 = vpop.eup %5871 }
 0x427   :  { %v5874_v44 = vpop.eup %5873 }
 0x428   :  { %v5876_v22 = vpop.eup %5875  ;;  %v6644_v52 = vmul.f32 %v5874_v44, %v5872_v58  ;;  %v2627_v58 = vld [vmem:[#allocation10 + $0x1f0] sm:$0xff]  ;;  %v2618_v44 = vld [vmem:[#allocation10 + $0x1a8] sm:$0xff] }
 0x429   :  { %v5878_v41 = vpop.eup %5877 }
 0x42a   :  { %v2544_v8 = vmul.f32 %v5878_v41, %v5876_v22  ;;  %2550 = vst [vmem:[#allocation13 + $0x20] sm:$0xff] %v6644_v52  ;;  %v2620_v22 = vld [vmem:[#allocation10 + $0x1b8] sm:$0xff]  ;;  %v2617_v41 = vld [vmem:[#allocation10 + $0x1a0] sm:$0xff] }
 0x42c   :  { %2551 = vst [vmem:[#allocation13 + $0x28] sm:$0xff] %v2544_v8  ;;  %2885 = vmatprep.mubr.f32.mxu0 %v2544_v8  ;;  %2956 = vmatprep.mubr.f32.mxu1 %v2544_v8 }
 0x42d   :  { %2886 = vmatmul.mubr.f32.vlgmr.msra.gmra.mxu0 %v6644_v52  ;;  %2957 = vmatmul.mubr.f32.vlgmr.msra.gmra.mxu1 %v6644_v52 }
 0x42e   :  { %2964 = vmatpush1.msra.mxu0 %v2689_v5  ;;  %3035 = vmatpush1.msra.mxu1 %v2691_v27  ;;  %v2610_v5 = vld [vmem:[#allocation10 + $0x168] sm:$0xff]  ;;  %v2612_v27 = vld [vmem:[#allocation10 + $0x178] sm:$0xff] }
 0x42f   :  { %2965 = vmatprep.subr.mxu0 %v2682_v9  ;;  %3027 = vmatprep.mubr.f32.mxu0 %v2544_v8  ;;  %v2609_v9 = vld [vmem:[#allocation10 + $0x160] sm:$0xff] }
 0x430   :  { %3036 = vmatprep.subr.mxu1 %v2684_v12  ;;  %3098 = vmatprep.mubr.f32.mxu1 %v2544_v8  ;;  %v2619_v8 = vld [vmem:[#allocation10 + $0x1b0] sm:$0xff] }
 0x431   :  { %2966 = vmatpush1.msra.mxu0 %v2681_v15  ;;  %3037 = vmatpush1.msra.mxu1 %v2683_v16  ;;  %v2611_v12 = vld [vmem:[#allocation10 + $0x170] sm:$0xff]  ;;  %v2602_v15 = vld [vmem:[#allocation10 + $0x128] sm:$0xff]  ;;  %v2604_v16 = vld [vmem:[#allocation10 + $0x138] sm:$0xff] }
 0x432   :  { %2967 = vmatprep.subr.mxu0 %v2674_v63  ;;  %3038 = vmatprep.subr.mxu1 %v2676_v3  ;;  %v2601_v63 = vld [vmem:[#allocation10 + $0x120] sm:$0xff]  ;;  %v2603_v3 = vld [vmem:[#allocation10 + $0x130] sm:$0xff] }
 0x433   :  { %2968 = vmatpush1.msra.mxu0 %v2673_v51  ;;  %3039 = vmatpush1.msra.mxu1 %v2675_v57  ;;  %v2594_v51 = vld [vmem:[#allocation10 + $0xe8] sm:$0xff]  ;;  %v2596_v57 = vld [vmem:[#allocation10 + $0xf8] sm:$0xff] }
 0x434   :  { %2969 = vmatprep.subr.mxu0 %v2666_v0  ;;  %3040 = vmatprep.subr.mxu1 %v2668_v53  ;;  %v2593_v0 = vld [vmem:[#allocation10 + $0xe0] sm:$0xff]  ;;  %v2595_v53 = vld [vmem:[#allocation10 + $0xf0] sm:$0xff] }
 0x435   :  { %2970 = vmatpush1.msra.mxu0 %v2665_v4  ;;  %3041 = vmatpush1.msra.mxu1 %v2667_v17  ;;  %v2586_v4 = vld [vmem:[#allocation10 + $0xa8] sm:$0xff]  ;;  %v2588_v17 = vld [vmem:[#allocation10 + $0xb8] sm:$0xff] }
 0x436   :  { %2971 = vmatprep.subr.mxu0 %v2658_v18  ;;  %3042 = vmatprep.subr.mxu1 %v2660_v10  ;;  %v2585_v18 = vld [vmem:[#allocation10 + $0xa0] sm:$0xff]  ;;  %v2587_v10 = vld [vmem:[#allocation10 + $0xb0] sm:$0xff] }
 0x437   :  { %2972 = vmatpush1.msra.mxu0 %v2657_v54  ;;  %3043 = vmatpush1.msra.mxu1 %v2659_v11  ;;  %v2578_v54 = vld [vmem:[#allocation10 + $0x68] sm:$0xff]  ;;  %v2580_v11 = vld [vmem:[#allocation10 + $0x78] sm:$0xff] }
 0x438   :  { %2973 = vmatprep.subr.mxu0 %v2650_v13  ;;  %3044 = vmatprep.subr.mxu1 %v2652_v35  ;;  %v2577_v13 = vld [vmem:[#allocation10 + $0x60] sm:$0xff]  ;;  %v2579_v35 = vld [vmem:[#allocation10 + $0x70] sm:$0xff] }
 0x439   :  { %2974 = vmatpush1.msra.mxu0 %v2649_v60  ;;  %3045 = vmatpush1.msra.mxu1 %v2651_v6  ;;  %v2570_v60 = vld [vmem:[#allocation10 + $0x28] sm:$0xff]  ;;  %v2572_v6 = vld [vmem:[#allocation10 + $0x38] sm:$0xff] }
 0x43a   :  { %2975 = vmatprep.subr.mxu0 %v2642_v42  ;;  %3046 = vmatprep.subr.mxu1 %v2644_v14  ;;  %v2569_v42 = vld [vmem:[#allocation10 + $0x20] sm:$0xff]  ;;  %v2571_v14 = vld [vmem:[#allocation10 + $0x30] sm:$0xff] }
 0x43b   :  { %2976 = vmatpush1.msra.mxu0 %v2641_v47  ;;  %3047 = vmatpush1.msra.mxu1 %v2643_v45  ;;  %v2818_v47 = vld [vmem:[#allocation10 + $0x7e8] sm:$0xff]  ;;  %v2820_v45 = vld [vmem:[#allocation10 + $0x7f8] sm:$0xff] }
 0x43c   :  { %2977 = vmatprep.subr.mxu0 %v2634_v50  ;;  %3048 = vmatprep.subr.mxu1 %v2636_v7  ;;  %v2817_v50 = vld [vmem:[#allocation10 + $0x7e0] sm:$0xff]  ;;  %v2819_v7 = vld [vmem:[#allocation10 + $0x7f0] sm:$0xff] }
 0x43d   :  { %2978 = vmatpush1.msra.mxu0 %v2633_v55  ;;  %3049 = vmatpush1.msra.mxu1 %v2635_v62  ;;  %v2810_v55 = vld [vmem:[#allocation10 + $0x7a8] sm:$0xff]  ;;  %v2812_v62 = vld [vmem:[#allocation10 + $0x7b8] sm:$0xff] }
 0x43e   :  { %2979 = vmatprep.subr.mxu0 %v2626_v56  ;;  %3050 = vmatprep.subr.mxu1 %v2628_v59  ;;  %v2809_v56 = vld [vmem:[#allocation10 + $0x7a0] sm:$0xff]  ;;  %v2811_v59 = vld [vmem:[#allocation10 + $0x7b0] sm:$0xff] }
 0x43f   :  { %2980 = vmatpush1.msra.mxu0 %v2625_v29  ;;  %3051 = vmatpush1.msra.mxu1 %v2627_v58  ;;  %v2802_v29 = vld [vmem:[#allocation10 + $0x768] sm:$0xff]  ;;  %v2804_v58 = vld [vmem:[#allocation10 + $0x778] sm:$0xff] }
 0x440   :  { %2981 = vmatprep.subr.mxu0 %v2618_v44  ;;  %3052 = vmatprep.subr.mxu1 %v2620_v22  ;;  %v2801_v44 = vld [vmem:[#allocation10 + $0x760] sm:$0xff]  ;;  %v2803_v22 = vld [vmem:[#allocation10 + $0x770] sm:$0xff] }
 0x441   :  { %2982 = vmatpush1.msra.mxu0 %v2617_v41  ;;  %3053 = vmatpush1.msra.mxu1 %v2619_v8  ;;  %v2794_v41 = vld [vmem:[#allocation10 + $0x728] sm:$0xff]  ;;  %v2796_v8 = vld [vmem:[#allocation10 + $0x738] sm:$0xff] }
 0x442   :  { %2983 = vmatprep.subr.mxu0 %v2610_v5  ;;  %3054 = vmatprep.subr.mxu1 %v2612_v27  ;;  %v2793_v5 = vld [vmem:[#allocation10 + $0x720] sm:$0xff]  ;;  %v2795_v27 = vld [vmem:[#allocation10 + $0x730] sm:$0xff] }
 0x443   :  { %2984 = vmatpush1.msra.mxu0 %v2609_v9  ;;  %3055 = vmatpush1.msra.mxu1 %v2611_v12  ;;  %v2786_v9 = vld [vmem:[#allocation10 + $0x6e8] sm:$0xff]  ;;  %v2788_v12 = vld [vmem:[#allocation10 + $0x6f8] sm:$0xff] }
 0x444   :  { %2985 = vmatprep.subr.mxu0 %v2602_v15  ;;  %3056 = vmatprep.subr.mxu1 %v2604_v16  ;;  %v2785_v15 = vld [vmem:[#allocation10 + $0x6e0] sm:$0xff]  ;;  %v2787_v16 = vld [vmem:[#allocation10 + $0x6f0] sm:$0xff] }
 0x445   :  { %2986 = vmatpush1.msra.mxu0 %v2601_v63  ;;  %3057 = vmatpush1.msra.mxu1 %v2603_v3  ;;  %v2778_v63 = vld [vmem:[#allocation10 + $0x6a8] sm:$0xff]  ;;  %v2780_v3 = vld [vmem:[#allocation10 + $0x6b8] sm:$0xff] }
 0x446   :  { %2987 = vmatprep.subr.mxu0 %v2594_v51  ;;  %3058 = vmatprep.subr.mxu1 %v2596_v57  ;;  %v2777_v51 = vld [vmem:[#allocation10 + $0x6a0] sm:$0xff]  ;;  %v2779_v57 = vld [vmem:[#allocation10 + $0x6b0] sm:$0xff] }
 0x447   :  { %2988 = vmatpush1.msra.mxu0 %v2593_v0  ;;  %3059 = vmatpush1.msra.mxu1 %v2595_v53  ;;  %v2770_v0 = vld [vmem:[#allocation10 + $0x668] sm:$0xff]  ;;  %v2772_v53 = vld [vmem:[#allocation10 + $0x678] sm:$0xff] }
 0x448   :  { %2989 = vmatprep.subr.mxu0 %v2586_v4  ;;  %3060 = vmatprep.subr.mxu1 %v2588_v17  ;;  %v2769_v4 = vld [vmem:[#allocation10 + $0x660] sm:$0xff]  ;;  %v2771_v17 = vld [vmem:[#allocation10 + $0x670] sm:$0xff] }
 0x449   :  { %2990 = vmatpush1.msra.mxu0 %v2585_v18  ;;  %3061 = vmatpush1.msra.mxu1 %v2587_v10  ;;  %v2762_v18 = vld [vmem:[#allocation10 + $0x628] sm:$0xff]  ;;  %v2764_v10 = vld [vmem:[#allocation10 + $0x638] sm:$0xff] }
 0x44a   :  { %2991 = vmatprep.subr.mxu0 %v2578_v54  ;;  %3062 = vmatprep.subr.mxu1 %v2580_v11  ;;  %v2761_v54 = vld [vmem:[#allocation10 + $0x620] sm:$0xff]  ;;  %v2763_v11 = vld [vmem:[#allocation10 + $0x630] sm:$0xff] }
 0x44b   :  { %2992 = vmatpush1.msra.mxu0 %v2577_v13  ;;  %3063 = vmatpush1.msra.mxu1 %v2579_v35  ;;  %v2754_v13 = vld [vmem:[#allocation10 + $0x5e8] sm:$0xff]  ;;  %v2756_v35 = vld [vmem:[#allocation10 + $0x5f8] sm:$0xff] }
 0x44c   :  { %2993 = vmatprep.subr.mxu0 %v2570_v60  ;;  %3064 = vmatprep.subr.mxu1 %v2572_v6  ;;  %v2753_v60 = vld [vmem:[#allocation10 + $0x5e0] sm:$0xff]  ;;  %v2755_v6 = vld [vmem:[#allocation10 + $0x5f0] sm:$0xff] }
 0x44d   :  { %2994 = vmatpush1.msra.mxu0 %v2569_v42  ;;  %3065 = vmatpush1.msra.mxu1 %v2571_v14  ;;  %v2746_v42 = vld [vmem:[#allocation10 + $0x5a8] sm:$0xff]  ;;  %v2748_v14 = vld [vmem:[#allocation10 + $0x5b8] sm:$0xff] }
 0x44e   :  { %2995 = vmatprep.subr.mxu0 %v2818_v47  ;;  %3066 = vmatprep.subr.mxu1 %v2820_v45  ;;  %v2745_v47 = vld [vmem:[#allocation10 + $0x5a0] sm:$0xff]  ;;  %v2747_v45 = vld [vmem:[#allocation10 + $0x5b0] sm:$0xff] }
 0x44f   :  { %2996 = vmatpush2.msra.mxu0 %v2817_v50  ;;  %3067 = vmatpush2.msra.mxu1 %v2819_v7  ;;  %v2738_v50 = vld [vmem:[#allocation10 + $0x568] sm:$0xff]  ;;  %v2740_v7 = vld [vmem:[#allocation10 + $0x578] sm:$0xff] }
 0x450   :  { %2997 = vmatprep.subr.mxu0 %v2810_v55  ;;  %3068 = vmatprep.subr.mxu1 %v2812_v62  ;;  %v2737_v55 = vld [vmem:[#allocation10 + $0x560] sm:$0xff]  ;;  %v2739_v62 = vld [vmem:[#allocation10 + $0x570] sm:$0xff] }
 0x451   :  { %2998 = vmatpush2.msra.mxu0 %v2809_v56  ;;  %3069 = vmatpush2.msra.mxu1 %v2811_v59  ;;  %v2730_v56 = vld [vmem:[#allocation10 + $0x528] sm:$0xff]  ;;  %v2732_v59 = vld [vmem:[#allocation10 + $0x538] sm:$0xff] }
 0x452   :  { %2999 = vmatprep.subr.mxu0 %v2802_v29  ;;  %3070 = vmatprep.subr.mxu1 %v2804_v58  ;;  %v2729_v29 = vld [vmem:[#allocation10 + $0x520] sm:$0xff]  ;;  %v2731_v58 = vld [vmem:[#allocation10 + $0x530] sm:$0xff] }
 0x453   :  { %3000 = vmatpush2.msra.mxu0 %v2801_v44  ;;  %3071 = vmatpush2.msra.mxu1 %v2803_v22  ;;  %v2722_v44 = vld [vmem:[#allocation10 + $0x4e8] sm:$0xff]  ;;  %v2724_v22 = vld [vmem:[#allocation10 + $0x4f8] sm:$0xff] }
 0x454   :  { %3001 = vmatprep.subr.mxu0 %v2794_v41  ;;  %3072 = vmatprep.subr.mxu1 %v2796_v8  ;;  %v2721_v41 = vld [vmem:[#allocation10 + $0x4e0] sm:$0xff]  ;;  %v2723_v8 = vld [vmem:[#allocation10 + $0x4f0] sm:$0xff] }
 0x455   :  { %3002 = vmatpush2.msra.mxu0 %v2793_v5  ;;  %3073 = vmatpush2.msra.mxu1 %v2795_v27  ;;  %v2714_v5 = vld [vmem:[#allocation10 + $0x4a8] sm:$0xff]  ;;  %v2716_v27 = vld [vmem:[#allocation10 + $0x4b8] sm:$0xff] }
 0x456   :  { %3003 = vmatprep.subr.mxu0 %v2786_v9  ;;  %3074 = vmatprep.subr.mxu1 %v2788_v12  ;;  %v2713_v9 = vld [vmem:[#allocation10 + $0x4a0] sm:$0xff]  ;;  %v2715_v12 = vld [vmem:[#allocation10 + $0x4b0] sm:$0xff] }
 0x457   :  { %3004 = vmatpush2.msra.mxu0 %v2785_v15  ;;  %3075 = vmatpush2.msra.mxu1 %v2787_v16  ;;  %v2706_v15 = vld [vmem:[#allocation10 + $0x468] sm:$0xff]  ;;  %v2708_v16 = vld [vmem:[#allocation10 + $0x478] sm:$0xff] }
 0x458   :  { %3005 = vmatprep.subr.mxu0 %v2778_v63  ;;  %3076 = vmatprep.subr.mxu1 %v2780_v3  ;;  %v2705_v63 = vld [vmem:[#allocation10 + $0x460] sm:$0xff]  ;;  %v2707_v3 = vld [vmem:[#allocation10 + $0x470] sm:$0xff] }
 0x459   :  { %3006 = vmatpush2.msra.mxu0 %v2777_v51  ;;  %3077 = vmatpush2.msra.mxu1 %v2779_v57  ;;  %v2698_v51 = vld [vmem:[#allocation10 + $0x428] sm:$0xff]  ;;  %v2700_v57 = vld [vmem:[#allocation10 + $0x438] sm:$0xff] }
 0x45a   :  { %3007 = vmatprep.subr.mxu0 %v2770_v0  ;;  %3078 = vmatprep.subr.mxu1 %v2772_v53  ;;  %v2697_v0 = vld [vmem:[#allocation10 + $0x420] sm:$0xff]  ;;  %v2699_v53 = vld [vmem:[#allocation10 + $0x430] sm:$0xff] }
 0x45b   :  { %3008 = vmatpush2.msra.mxu0 %v2769_v4  ;;  %3079 = vmatpush2.msra.mxu1 %v2771_v17  ;;  %v3302_v4 = vld [vmem:[#allocation10 + $0x3c8] sm:$0xff]  ;;  %v3304_v17 = vld [vmem:[#allocation10 + $0x3d8] sm:$0xff] }
 0x45c   :  { %3009 = vmatprep.subr.mxu0 %v2762_v18  ;;  %3080 = vmatprep.subr.mxu1 %v2764_v10  ;;  %v3301_v18 = vld [vmem:[#allocation10 + $0x3c0] sm:$0xff]  ;;  %v3303_v10 = vld [vmem:[#allocation10 + $0x3d0] sm:$0xff] }
 0x45d   :  { %3010 = vmatpush2.msra.mxu0 %v2761_v54  ;;  %3081 = vmatpush2.msra.mxu1 %v2763_v11  ;;  %v3294_v54 = vld [vmem:[#allocation10 + $0x388] sm:$0xff]  ;;  %v3296_v11 = vld [vmem:[#allocation10 + $0x398] sm:$0xff] }
 0x45e   :  { %3011 = vmatprep.subr.mxu0 %v2754_v13  ;;  %3082 = vmatprep.subr.mxu1 %v2756_v35  ;;  %v3293_v13 = vld [vmem:[#allocation10 + $0x380] sm:$0xff]  ;;  %v3295_v35 = vld [vmem:[#allocation10 + $0x390] sm:$0xff] }
 0x45f   :  { %3012 = vmatpush2.msra.mxu0 %v2753_v60  ;;  %3083 = vmatpush2.msra.mxu1 %v2755_v6  ;;  %v3286_v60 = vld [vmem:[#allocation10 + $0x348] sm:$0xff]  ;;  %v3288_v6 = vld [vmem:[#allocation10 + $0x358] sm:$0xff] }
 0x460   :  { %3013 = vmatprep.subr.mxu0 %v2746_v42  ;;  %3084 = vmatprep.subr.mxu1 %v2748_v14  ;;  %v3285_v42 = vld [vmem:[#allocation10 + $0x340] sm:$0xff]  ;;  %v3287_v14 = vld [vmem:[#allocation10 + $0x350] sm:$0xff] }
 0x461   :  { %3014 = vmatpush2.msra.mxu0 %v2745_v47  ;;  %3085 = vmatpush2.msra.mxu1 %v2747_v45  ;;  %v3280_v47 = vld [vmem:[#allocation10 + $0x318] sm:$0xff]  ;;  %v3277_v45 = vld [vmem:[#allocation10 + $0x300] sm:$0xff] }
 0x462   :  { %3015 = vmatprep.subr.mxu0 %v2738_v50  ;;  %3086 = vmatprep.subr.mxu1 %v2740_v7  ;;  %v3279_v50 = vld [vmem:[#allocation10 + $0x310] sm:$0xff]  ;;  %v3270_v7 = vld [vmem:[#allocation10 + $0x2c8] sm:$0xff] }
 0x463   :  { %3016 = vmatpush2.msra.mxu0 %v2737_v55  ;;  %3087 = vmatpush2.msra.mxu1 %v2739_v62  ;;  %v3272_v55 = vld [vmem:[#allocation10 + $0x2d8] sm:$0xff]  ;;  %v3269_v62 = vld [vmem:[#allocation10 + $0x2c0] sm:$0xff] }
 0x464   :  { %3017 = vmatprep.subr.mxu0 %v2730_v56  ;;  %3088 = vmatprep.subr.mxu1 %v2732_v59  ;;  %v3271_v56 = vld [vmem:[#allocation10 + $0x2d0] sm:$0xff]  ;;  %v3262_v59 = vld [vmem:[#allocation10 + $0x288] sm:$0xff] }
 0x465   :  { %3018 = vmatpush2.msra.mxu0 %v2729_v29  ;;  %3089 = vmatpush2.msra.mxu1 %v2731_v58  ;;  %v3264_v29 = vld [vmem:[#allocation10 + $0x298] sm:$0xff]  ;;  %v3261_v58 = vld [vmem:[#allocation10 + $0x280] sm:$0xff] }
 0x466   :  { %3019 = vmatprep.subr.mxu0 %v2722_v44  ;;  %3090 = vmatprep.subr.mxu1 %v2724_v22  ;;  %v3263_v44 = vld [vmem:[#allocation10 + $0x290] sm:$0xff]  ;;  %v3254_v22 = vld [vmem:[#allocation10 + $0x248] sm:$0xff] }
 0x467   :  { %3020 = vmatpush2.msra.mxu0 %v2721_v41  ;;  %3091 = vmatpush2.msra.mxu1 %v2723_v8  ;;  %v3256_v41 = vld [vmem:[#allocation10 + $0x258] sm:$0xff]  ;;  %v3253_v8 = vld [vmem:[#allocation10 + $0x240] sm:$0xff] }
 0x468   :  { %3021 = vmatprep.subr.mxu0 %v2714_v5  ;;  %3092 = vmatprep.subr.mxu1 %v2716_v27  ;;  %v3255_v5 = vld [vmem:[#allocation10 + $0x250] sm:$0xff]  ;;  %v3246_v27 = vld [vmem:[#allocation10 + $0x208] sm:$0xff] }
 0x469   :  { %3022 = vmatpush2.msra.mxu0 %v2713_v9  ;;  %3093 = vmatpush2.msra.mxu1 %v2715_v12  ;;  %v3248_v9 = vld [vmem:[#allocation10 + $0x218] sm:$0xff]  ;;  %v3245_v12 = vld [vmem:[#allocation10 + $0x200] sm:$0xff] }
 0x46a   :  { %3023 = vmatprep.subr.mxu0 %v2706_v15  ;;  %3094 = vmatprep.subr.mxu1 %v2708_v16  ;;  %v3247_v15 = vld [vmem:[#allocation10 + $0x210] sm:$0xff]  ;;  %v3238_v16 = vld [vmem:[#allocation10 + $0x1c8] sm:$0xff] }
 0x46b   :  { %3024 = vmatpush2.msra.mxu0 %v2705_v63  ;;  %3095 = vmatpush2.msra.mxu1 %v2707_v3  ;;  %v3240_v63 = vld [vmem:[#allocation10 + $0x1d8] sm:$0xff]  ;;  %v3237_v3 = vld [vmem:[#allocation10 + $0x1c0] sm:$0xff] }
 0x46c   :  { %3025 = vmatprep.subr.mxu0 %v2698_v51  ;;  %3096 = vmatprep.subr.mxu1 %v2700_v57  ;;  %v3239_v51 = vld [vmem:[#allocation10 + $0x1d0] sm:$0xff]  ;;  %v3230_v57 = vld [vmem:[#allocation10 + $0x188] sm:$0xff] }
 0x46d   :  { %3026 = vmatpush2.msra.mxu0 %v2697_v0  ;;  %3097 = vmatpush2.msra.mxu1 %v2699_v53  ;;  %v3232_v0 = vld [vmem:[#allocation10 + $0x198] sm:$0xff]  ;;  %v3229_v53 = vld [vmem:[#allocation10 + $0x180] sm:$0xff] }
 0x46e   :  { %3028 = vmatmul.mubr.f32.vlgmr.msra.gmra.mxu0 %v6644_v52  ;;  %3099 = vmatmul.mubr.f32.vlgmr.msra.gmra.mxu1 %v6644_v52  ;;  %v3278_v52 = vld [vmem:[#allocation10 + $0x308] sm:$0xff] }
 0x46f   :  { %3437 = vmatprep.subr.mxu0 %v3302_v4  ;;  %3508 = vmatprep.subr.mxu1 %v3304_v17  ;;  %v3231_v4 = vld [vmem:[#allocation10 + $0x190] sm:$0xff]  ;;  %v3222_v17 = vld [vmem:[#allocation10 + $0x148] sm:$0xff] }
 0x470   :  { %3438 = vmatpush1.msra.mxu0 %v3301_v18  ;;  %3509 = vmatpush1.msra.mxu1 %v3303_v10  ;;  %v3224_v18 = vld [vmem:[#allocation10 + $0x158] sm:$0xff]  ;;  %v3221_v10 = vld [vmem:[#allocation10 + $0x140] sm:$0xff] }
 0x471   :  { %3439 = vmatprep.subr.mxu0 %v3294_v54  ;;  %3510 = vmatprep.subr.mxu1 %v3296_v11  ;;  %v3223_v54 = vld [vmem:[#allocation10 + $0x150] sm:$0xff]  ;;  %v3214_v11 = vld [vmem:[#allocation10 + $0x108] sm:$0xff] }
 0x472   :  { %3440 = vmatpush1.msra.mxu0 %v3293_v13  ;;  %3511 = vmatpush1.msra.mxu1 %v3295_v35  ;;  %v3216_v13 = vld [vmem:[#allocation10 + $0x118] sm:$0xff]  ;;  %v3213_v35 = vld [vmem:[#allocation10 + $0x100] sm:$0xff] }
 0x473   :  { %3441 = vmatprep.subr.mxu0 %v3286_v60  ;;  %3512 = vmatprep.subr.mxu1 %v3288_v6  ;;  %v3215_v60 = vld [vmem:[#allocation10 + $0x110] sm:$0xff]  ;;  %v3206_v6 = vld [vmem:[#allocation10 + $0xc8] sm:$0xff] }
 0x474   :  { %3442 = vmatpush1.msra.mxu0 %v3285_v42  ;;  %3513 = vmatpush1.msra.mxu1 %v3287_v14  ;;  %v3208_v42 = vld [vmem:[#allocation10 + $0xd8] sm:$0xff]  ;;  %v3205_v14 = vld [vmem:[#allocation10 + $0xc0] sm:$0xff] }
 0x475   :  { %3443 = vmatprep.subr.mxu0 %v3278_v52  ;;  %3514 = vmatprep.subr.mxu1 %v3280_v47  ;;  %v3207_v52 = vld [vmem:[#allocation10 + $0xd0] sm:$0xff]  ;;  %v3198_v47 = vld [vmem:[#allocation10 + $0x88] sm:$0xff] }
 0x476   :  { %3444 = vmatpush1.msra.mxu0 %v3277_v45  ;;  %3515 = vmatpush1.msra.mxu1 %v3279_v50  ;;  %v3200_v45 = vld [vmem:[#allocation10 + $0x98] sm:$0xff]  ;;  %v3197_v50 = vld [vmem:[#allocation10 + $0x80] sm:$0xff] }
 0x477   :  { %3445 = vmatprep.subr.mxu0 %v3270_v7  ;;  %3516 = vmatprep.subr.mxu1 %v3272_v55  ;;  %v3199_v7 = vld [vmem:[#allocation10 + $0x90] sm:$0xff]  ;;  %v3190_v55 = vld [vmem:[#allocation10 + $0x48] sm:$0xff] }
 0x478   :  { %3446 = vmatpush1.msra.mxu0 %v3269_v62  ;;  %3517 = vmatpush1.msra.mxu1 %v3271_v56  ;;  %v3192_v62 = vld [vmem:[#allocation10 + $0x58] sm:$0xff]  ;;  %v3189_v56 = vld [vmem:[#allocation10 + $0x40] sm:$0xff] }
 0x479   :  { %3447 = vmatprep.subr.mxu0 %v3262_v59  ;;  %3518 = vmatprep.subr.mxu1 %v3264_v29  ;;  %v3191_v59 = vld [vmem:[#allocation10 + $0x50] sm:$0xff]  ;;  %v3182_v29 = vld [vmem:[#allocation10 + $0x8] sm:$0xff] }
 0x47a   :  { %3448 = vmatpush1.msra.mxu0 %v3261_v58  ;;  %3519 = vmatpush1.msra.mxu1 %v3263_v44  ;;  %v3184_v58 = vld [vmem:[#allocation10 + $0x18] sm:$0xff]  ;;  %v3181_v44 = vld [vmem:[#allocation10] sm:$0xff] }
 0x47b   :  { %3449 = vmatprep.subr.mxu0 %v3254_v22  ;;  %3520 = vmatprep.subr.mxu1 %v3256_v41  ;;  %v3183_v22 = vld [vmem:[#allocation10 + $0x10] sm:$0xff]  ;;  %v3430_v41 = vld [vmem:[#allocation10 + $0x7c8] sm:$0xff] }
 0x47c   :  { %3450 = vmatpush1.msra.mxu0 %v3253_v8  ;;  %3521 = vmatpush1.msra.mxu1 %v3255_v5  ;;  %v3432_v8 = vld [vmem:[#allocation10 + $0x7d8] sm:$0xff]  ;;  %v3429_v5 = vld [vmem:[#allocation10 + $0x7c0] sm:$0xff] }
 0x47d   :  { %3451 = vmatprep.subr.mxu0 %v3246_v27  ;;  %3522 = vmatprep.subr.mxu1 %v3248_v9  ;;  %v3431_v27 = vld [vmem:[#allocation10 + $0x7d0] sm:$0xff]  ;;  %v3422_v9 = vld [vmem:[#allocation10 + $0x788] sm:$0xff] }
 0x47e   :  { %3452 = vmatpush1.msra.mxu0 %v3245_v12  ;;  %3523 = vmatpush1.msra.mxu1 %v3247_v15  ;;  %v3424_v12 = vld [vmem:[#allocation10 + $0x798] sm:$0xff]  ;;  %v3421_v15 = vld [vmem:[#allocation10 + $0x780] sm:$0xff] }
 0x47f   :  { %3453 = vmatprep.subr.mxu0 %v3238_v16  ;;  %3524 = vmatprep.subr.mxu1 %v3240_v63  ;;  %v3423_v16 = vld [vmem:[#allocation10 + $0x790] sm:$0xff]  ;;  %v3414_v63 = vld [vmem:[#allocation10 + $0x748] sm:$0xff] }
 0x480   :  { %3454 = vmatpush1.msra.mxu0 %v3237_v3  ;;  %3525 = vmatpush1.msra.mxu1 %v3239_v51  ;;  %v3416_v3 = vld [vmem:[#allocation10 + $0x758] sm:$0xff]  ;;  %v3413_v51 = vld [vmem:[#allocation10 + $0x740] sm:$0xff] }
 0x481   :  { %3455 = vmatprep.subr.mxu0 %v3230_v57  ;;  %3526 = vmatprep.subr.mxu1 %v3232_v0  ;;  %v3415_v57 = vld [vmem:[#allocation10 + $0x750] sm:$0xff]  ;;  %v3406_v0 = vld [vmem:[#allocation10 + $0x708] sm:$0xff] }
 0x482   :  { %3456 = vmatpush1.msra.mxu0 %v3229_v53  ;;  %3527 = vmatpush1.msra.mxu1 %v3231_v4  ;;  %v3408_v53 = vld [vmem:[#allocation10 + $0x718] sm:$0xff]  ;;  %v3405_v4 = vld [vmem:[#allocation10 + $0x700] sm:$0xff] }
 0x483   :  { %3457 = vmatprep.subr.mxu0 %v3222_v17  ;;  %3528 = vmatprep.subr.mxu1 %v3224_v18  ;;  %v3407_v17 = vld [vmem:[#allocation10 + $0x710] sm:$0xff]  ;;  %v3398_v18 = vld [vmem:[#allocation10 + $0x6c8] sm:$0xff] }
 0x484   :  { %3458 = vmatpush1.msra.mxu0 %v3221_v10  ;;  %3529 = vmatpush1.msra.mxu1 %v3223_v54  ;;  %v3400_v10 = vld [vmem:[#allocation10 + $0x6d8] sm:$0xff]  ;;  %v3397_v54 = vld [vmem:[#allocation10 + $0x6c0] sm:$0xff] }
 0x485   :  { %3459 = vmatprep.subr.mxu0 %v3214_v11  ;;  %3530 = vmatprep.subr.mxu1 %v3216_v13  ;;  %v3399_v11 = vld [vmem:[#allocation10 + $0x6d0] sm:$0xff]  ;;  %v3390_v13 = vld [vmem:[#allocation10 + $0x688] sm:$0xff] }
 0x486   :  { %3460 = vmatpush1.msra.mxu0 %v3213_v35  ;;  %3531 = vmatpush1.msra.mxu1 %v3215_v60  ;;  %v3392_v35 = vld [vmem:[#allocation10 + $0x698] sm:$0xff]  ;;  %v3389_v60 = vld [vmem:[#allocation10 + $0x680] sm:$0xff] }
 0x487   :  { %3461 = vmatprep.subr.mxu0 %v3206_v6  ;;  %3532 = vmatprep.subr.mxu1 %v3208_v42  ;;  %v3391_v6 = vld [vmem:[#allocation10 + $0x690] sm:$0xff]  ;;  %v3382_v42 = vld [vmem:[#allocation10 + $0x648] sm:$0xff] }
 0x488   :  { %3462 = vmatpush1.msra.mxu0 %v3205_v14  ;;  %3533 = vmatpush1.msra.mxu1 %v3207_v52  ;;  %v3384_v14 = vld [vmem:[#allocation10 + $0x658] sm:$0xff]  ;;  %v3381_v52 = vld [vmem:[#allocation10 + $0x640] sm:$0xff] }
 0x489   :  { %3463 = vmatprep.subr.mxu0 %v3198_v47  ;;  %3534 = vmatprep.subr.mxu1 %v3200_v45  ;;  %v3383_v47 = vld [vmem:[#allocation10 + $0x650] sm:$0xff]  ;;  %v3374_v45 = vld [vmem:[#allocation10 + $0x608] sm:$0xff] }
 0x48a   :  { %3464 = vmatpush1.msra.mxu0 %v3197_v50  ;;  %3535 = vmatpush1.msra.mxu1 %v3199_v7  ;;  %v3376_v50 = vld [vmem:[#allocation10 + $0x618] sm:$0xff]  ;;  %v3373_v7 = vld [vmem:[#allocation10 + $0x600] sm:$0xff] }
 0x48b   :  { %3465 = vmatprep.subr.mxu0 %v3190_v55  ;;  %3536 = vmatprep.subr.mxu1 %v3192_v62  ;;  %v3375_v55 = vld [vmem:[#allocation10 + $0x610] sm:$0xff]  ;;  %v3366_v62 = vld [vmem:[#allocation10 + $0x5c8] sm:$0xff] }
 0x48c   :  { %3466 = vmatpush1.msra.mxu0 %v3189_v56  ;;  %3537 = vmatpush1.msra.mxu1 %v3191_v59  ;;  %v3368_v56 = vld [vmem:[#allocation10 + $0x5d8] sm:$0xff]  ;;  %v3365_v59 = vld [vmem:[#allocation10 + $0x5c0] sm:$0xff] }
 0x48d   :  { %3467 = vmatprep.subr.mxu0 %v3182_v29  ;;  %3538 = vmatprep.subr.mxu1 %v3184_v58  ;;  %v3367_v29 = vld [vmem:[#allocation10 + $0x5d0] sm:$0xff]  ;;  %v3358_v58 = vld [vmem:[#allocation10 + $0x588] sm:$0xff] }
 0x48e   :  { %3468 = vmatpush1.msra.mxu0 %v3181_v44  ;;  %3539 = vmatpush1.msra.mxu1 %v3183_v22  ;;  %v3360_v44 = vld [vmem:[#allocation10 + $0x598] sm:$0xff]  ;;  %v3357_v22 = vld [vmem:[#allocation10 + $0x580] sm:$0xff] }
 0x48f   :  { %3469 = vmatprep.subr.mxu0 %v3430_v41  ;;  %3540 = vmatprep.subr.mxu1 %v3432_v8  ;;  %v3359_v41 = vld [vmem:[#allocation10 + $0x590] sm:$0xff]  ;;  %v3350_v8 = vld [vmem:[#allocation10 + $0x548] sm:$0xff] }
 0x490   :  { %3470 = vmatpush2.msra.mxu0 %v3429_v5  ;;  %3541 = vmatpush2.msra.mxu1 %v3431_v27  ;;  %v3352_v5 = vld [vmem:[#allocation10 + $0x558] sm:$0xff]  ;;  %v3349_v27 = vld [vmem:[#allocation10 + $0x540] sm:$0xff] }
 0x491   :  { %3471 = vmatprep.subr.mxu0 %v3422_v9  ;;  %3542 = vmatprep.subr.mxu1 %v3424_v12  ;;  %v3351_v9 = vld [vmem:[#allocation10 + $0x550] sm:$0xff]  ;;  %v3342_v12 = vld [vmem:[#allocation10 + $0x508] sm:$0xff] }
 0x492   :  { %3472 = vmatpush2.msra.mxu0 %v3421_v15  ;;  %3543 = vmatpush2.msra.mxu1 %v3423_v16  ;;  %v3344_v15 = vld [vmem:[#allocation10 + $0x518] sm:$0xff]  ;;  %v3341_v16 = vld [vmem:[#allocation10 + $0x500] sm:$0xff] }
 0x493   :  { %3473 = vmatprep.subr.mxu0 %v3414_v63  ;;  %3544 = vmatprep.subr.mxu1 %v3416_v3  ;;  %v3343_v63 = vld [vmem:[#allocation10 + $0x510] sm:$0xff]  ;;  %v3334_v3 = vld [vmem:[#allocation10 + $0x4c8] sm:$0xff] }
 0x494   :  { %3474 = vmatpush2.msra.mxu0 %v3413_v51  ;;  %3545 = vmatpush2.msra.mxu1 %v3415_v57  ;;  %v3336_v51 = vld [vmem:[#allocation10 + $0x4d8] sm:$0xff]  ;;  %v3333_v57 = vld [vmem:[#allocation10 + $0x4c0] sm:$0xff] }
 0x495   :  { %3475 = vmatprep.subr.mxu0 %v3406_v0  ;;  %3546 = vmatprep.subr.mxu1 %v3408_v53  ;;  %v3335_v0 = vld [vmem:[#allocation10 + $0x4d0] sm:$0xff]  ;;  %v3326_v53 = vld [vmem:[#allocation10 + $0x488] sm:$0xff] }
 0x496   :  { %3476 = vmatpush2.msra.mxu0 %v3405_v4  ;;  %3547 = vmatpush2.msra.mxu1 %v3407_v17  ;;  %v3328_v4 = vld [vmem:[#allocation10 + $0x498] sm:$0xff]  ;;  %v3325_v17 = vld [vmem:[#allocation10 + $0x480] sm:$0xff] }
 0x497   :  { %3477 = vmatprep.subr.mxu0 %v3398_v18  ;;  %3548 = vmatprep.subr.mxu1 %v3400_v10  ;;  %v3327_v18 = vld [vmem:[#allocation10 + $0x490] sm:$0xff]  ;;  %v3318_v10 = vld [vmem:[#allocation10 + $0x448] sm:$0xff] }
 0x498   :  { %3478 = vmatpush2.msra.mxu0 %v3397_v54  ;;  %3549 = vmatpush2.msra.mxu1 %v3399_v11  ;;  %v3320_v54 = vld [vmem:[#allocation10 + $0x458] sm:$0xff]  ;;  %v3317_v11 = vld [vmem:[#allocation10 + $0x440] sm:$0xff] }
 0x499   :  { %3479 = vmatprep.subr.mxu0 %v3390_v13  ;;  %3550 = vmatprep.subr.mxu1 %v3392_v35  ;;  %v3319_v13 = vld [vmem:[#allocation10 + $0x450] sm:$0xff]  ;;  %v3310_v35 = vld [vmem:[#allocation10 + $0x408] sm:$0xff] }
 0x49a   :  { %3480 = vmatpush2.msra.mxu0 %v3389_v60  ;;  %3551 = vmatpush2.msra.mxu1 %v3391_v6  ;;  %v3312_v60 = vld [vmem:[#allocation10 + $0x418] sm:$0xff]  ;;  %v3309_v6 = vld [vmem:[#allocation10 + $0x400] sm:$0xff] }
 0x49b   :  { %3481 = vmatprep.subr.mxu0 %v3382_v42  ;;  %3552 = vmatprep.subr.mxu1 %v3384_v14  ;;  %v3311_v42 = vld [vmem:[#allocation10 + $0x410] sm:$0xff]  ;;  %v3306_v14 = vld [vmem:[#allocation10 + $0x3e8] sm:$0xff] }
 0x49c   :  { %3482 = vmatpush2.msra.mxu0 %v3381_v52  ;;  %3553 = vmatpush2.msra.mxu1 %v3383_v47  ;;  %v3308_v52 = vld [vmem:[#allocation10 + $0x3f8] sm:$0xff] }
 0x49d   :  { %3483 = vmatprep.subr.mxu0 %v3374_v45  ;;  %3554 = vmatprep.subr.mxu1 %v3376_v50 }
 0x49e   :  { %3484 = vmatpush2.msra.mxu0 %v3373_v7  ;;  %3555 = vmatpush2.msra.mxu1 %v3375_v55 }
 0x49f   :  { %3485 = vmatprep.subr.mxu0 %v3366_v62  ;;  %3556 = vmatprep.subr.mxu1 %v3368_v56 }
 0x4a0   :  { %3486 = vmatpush2.msra.mxu0 %v3365_v59  ;;  %3557 = vmatpush2.msra.mxu1 %v3367_v29 }
 0x4a1   :  { %3487 = vmatprep.subr.mxu0 %v3358_v58  ;;  %3558 = vmatprep.subr.mxu1 %v3360_v44 }
 0x4a2   :  { %3488 = vmatpush2.msra.mxu0 %v3357_v22  ;;  %3559 = vmatpush2.msra.mxu1 %v3359_v41 }
 0x4a3   :  { %3489 = vmatprep.subr.mxu0 %v3350_v8  ;;  %3560 = vmatprep.subr.mxu1 %v3352_v5 }
 0x4a4   :  { %3490 = vmatpush2.msra.mxu0 %v3349_v27  ;;  %3561 = vmatpush2.msra.mxu1 %v3351_v9 }
 0x4a5   :  { %3491 = vmatprep.subr.mxu0 %v3342_v12  ;;  %3562 = vmatprep.subr.mxu1 %v3344_v15  ;;  %v503_v12 = vadd.f32 %v6516_v25, %v6571_v49 }
 0x4a6   :  { %3492 = vmatpush2.msra.mxu0 %v3341_v16  ;;  %3563 = vmatpush2.msra.mxu1 %v3343_v63 }
 0x4a7   :  { %3493 = vmatprep.subr.mxu0 %v3334_v3  ;;  %3564 = vmatprep.subr.mxu1 %v3336_v51  ;;  %v616_v3 = vadd.f32 %v6518_v26, %v6574_v34 }
 0x4a8   :  { %3494 = vmatpush2.msra.mxu0 %v3333_v57  ;;  %3565 = vmatpush2.msra.mxu1 %v3335_v0 }
 0x4a9   :  { %3495 = vmatprep.subr.mxu0 %v3326_v53  ;;  %3566 = vmatprep.subr.mxu1 %v3328_v4 }
 0x4aa   :  { %3496 = vmatpush2.msra.mxu0 %v3325_v17  ;;  %3567 = vmatpush2.msra.mxu1 %v3327_v18 }
 0x4ab   :  { %3497 = vmatprep.subr.mxu0 %v3318_v10  ;;  %3568 = vmatprep.subr.mxu1 %v3320_v54 }
 0x4ac   :  { %3498 = vmatpush2.msra.mxu0 %v3317_v11  ;;  %3569 = vmatpush2.msra.mxu1 %v3319_v13 }
 0x4ad   :  { %3499 = vmatprep.subr.mxu0 %v3310_v35  ;;  %3570 = vmatprep.subr.mxu1 %v3312_v60 }
 0x4ae   :  { %3500 = vmatpush2.msra.mxu0 %v3309_v6  ;;  %3571 = vmatpush2.msra.mxu1 %v3311_v42 }
 0x4af   :  { %3579 = vmatprep.subr.mxu0 %v3306_v14  ;;  %3650 = vmatprep.subr.mxu1 %v3308_v52 }
 0x4ed   :  { %v2887_v47 = vpop.f32.mrf.mxu0  ;;  %v2958_v45 = vpop.f32.mrf.mxu1 }
 0x4ee   :  { %v3105_v7 = vadd.f32 %v2887_v47, %v6429_v32  ;;  %v3107_v55 = vadd.f32 %v2958_v45, %v6432_v19 }
 0x4ef   :  { %v2889_v50 = vpop.f32.mrf.mxu0  ;;  %v2960_v62 = vpop.f32.mrf.mxu1 }
 0x4f0   :  { %v3106_v56 = vadd.f32 %v2889_v50, %v6435_v23  ;;  %v5739_v59 = vmul.f32 -1.442695, %v3105_v7  ;;  %v3108_v29 = vadd.f32 %v2960_v62, %v6438_v24  ;;  %v5741_v58 = vmul.f32 -1.442695, %v3107_v55 }
 0x4f1   :  { %v501_v23 = vadd.f32 %v6512_v20, %v6565_v1  ;;  %v614_v24 = vadd.f32 %v6514_v21, %v6568_v2 }
 0x4f2   :  { %v5740_v44 = vmul.f32 -1.442695, %v3106_v56  ;;  %5879 = vpow2.f32 %v5739_v59  ;;  %v5742_v22 = vmul.f32 -1.442695, %v3108_v29  ;;  %v3307_v29 = vld [vmem:[#allocation10 + $0x3f0] sm:$0xff] }
 0x4f3   :  { %5881 = vpow2.f32 %v5741_v58  ;;  %v3298_v58 = vld [vmem:[#allocation10 + $0x3a8] sm:$0xff] }
 0x4f4   :  { %5883 = vpow2.f32 %v5740_v44  ;;  %v3300_v44 = vld [vmem:[#allocation10 + $0x3b8] sm:$0xff] }
 0x4f5   :  { %5885 = vpow2.f32 %v5742_v22  ;;  %v3297_v22 = vld [vmem:[#allocation10 + $0x3a0] sm:$0xff] }
 0x4ff   :  { %v5880_v41 = vpop.eup %5879 }
 0x500   :  { %v5882_v8 = vpop.eup %5881  ;;  %v3119_v27 = vadd.f32 1.0, %v5880_v41  ;;  %v3299_v41 = vld [vmem:[#allocation10 + $0x3b0] sm:$0xff] }
 0x501   :  { %v5884_v5 = vpop.eup %5883  ;;  %v3131_v9 = vadd.f32 1.0, %v5882_v8  ;;  %v3290_v8 = vld [vmem:[#allocation10 + $0x368] sm:$0xff] }
 0x502   :  { %v5886_v32 = vpop.eup %5885  ;;  %v3120_v19 = vadd.f32 1.0, %v5884_v5  ;;  %5887 = vrcp.f32 %v3119_v27  ;;  %v3292_v5 = vld [vmem:[#allocation10 + $0x378] sm:$0xff]  ;;  %v3289_v27 = vld [vmem:[#allocation10 + $0x360] sm:$0xff] }
 0x503   :  { %v3132_v15 = vadd.f32 1.0, %v5886_v32  ;;  %5889 = vrcp.f32 %v3131_v9  ;;  %v3291_v32 = vld [vmem:[#allocation10 + $0x370] sm:$0xff]  ;;  %v3282_v9 = vld [vmem:[#allocation10 + $0x328] sm:$0xff] }
 0x504   :  { %5891 = vrcp.f32 %v3120_v19  ;;  %v3284_v19 = vld [vmem:[#allocation10 + $0x338] sm:$0xff] }
 0x50f   :  { %v5888_v17 = vpop.eup %5887 }
 0x510   :  { %v5890_v18 = vpop.eup %5889 }
 0x511   :  { %v5892_v10 = vpop.eup %5891  ;;  %v3151_v11 = vmul.f32 %v5890_v18, %v6637_v46  ;;  %v3249_v18 = vld [vmem:[#allocation10 + $0x220] sm:$0xff] }
 0x52e   :  { %v3029_v16 = vpop.f32.mrf.mxu0  ;;  %v3100_v63 = vpop.f32.mrf.mxu1 }
 0x52f   :  { %v3109_v51 = vadd.f32 %v3029_v16, %v501_v23  ;;  %v3111_v57 = vadd.f32 %v3100_v63, %v614_v24  ;;  %v3281_v23 = vld [vmem:[#allocation10 + $0x320] sm:$0xff]  ;;  %v3283_v24 = vld [vmem:[#allocation10 + $0x330] sm:$0xff] }
 0x530   :  { %v3031_v0 = vpop.f32.mrf.mxu0  ;;  %v3102_v53 = vpop.f32.mrf.mxu1  ;;  %v3273_v16 = vld [vmem:[#allocation10 + $0x2e0] sm:$0xff]  ;;  %v3275_v63 = vld [vmem:[#allocation10 + $0x2f0] sm:$0xff] }
 0x531   :  { %5893 = vtanh.f32 %v3109_v51  ;;  %v5743_v20 = vmul.f32 -1.442695, %v3111_v57  ;;  %v3110_v4 = vadd.f32 %v3031_v0, %v503_v12  ;;  %v3112_v21 = vadd.f32 %v3102_v53, %v616_v3  ;;  %v3274_v12 = vld [vmem:[#allocation10 + $0x2e8] sm:$0xff]  ;;  %v3268_v51 = vld [vmem:[#allocation10 + $0x2b8] sm:$0xff]  ;;  %v3265_v57 = vld [vmem:[#allocation10 + $0x2a0] sm:$0xff] }
 0x532   :  { %5895 = vrcp.f32 %v3132_v15  ;;  %v3276_v15 = vld [vmem:[#allocation10 + $0x2f8] sm:$0xff]  ;;  %v3266_v3 = vld [vmem:[#allocation10 + $0x2a8] sm:$0xff]  ;;  %v3267_v0 = vld [vmem:[#allocation10 + $0x2b0] sm:$0xff] }
 0x533   :  { %5897 = vpow2.f32 %v5743_v20  ;;  %v5744_v25 = vmul.f32 -1.442695, %v3112_v21  ;;  %v3258_v53 = vld [vmem:[#allocation10 + $0x268] sm:$0xff]  ;;  %v3260_v20 = vld [vmem:[#allocation10 + $0x278] sm:$0xff]  ;;  %v3259_v21 = vld [vmem:[#allocation10 + $0x270] sm:$0xff] }
 0x534   :  { %5899 = vtanh.f32 %v3110_v4  ;;  %v3257_v4 = vld [vmem:[#allocation10 + $0x260] sm:$0xff] }
 0x535   :  { %5901 = vpow2.f32 %v5744_v25  ;;  %v3250_v25 = vld [vmem:[#allocation10 + $0x228] sm:$0xff] }
 0x53e   :  { %v5894_v54 = vpop.eup %5893 }
 0x53f   :  { %v5896_v26 = vpop.eup %5895  ;;  %v3153_v13 = vmul.f32 %v5894_v54, %v5888_v17  ;;  %v3252_v17 = vld [vmem:[#allocation10 + $0x238] sm:$0xff]  ;;  %v3242_v54 = vld [vmem:[#allocation10 + $0x1e8] sm:$0xff] }
 0x540   :  { %v5898_v35 = vpop.eup %5897  ;;  %v3152_v52 = vmul.f32 %v5896_v26, %v6641_v61  ;;  %v3305_v61 = vld [vmem:[#allocation10 + $0x3e0] sm:$0xff]  ;;  %v3244_v26 = vld [vmem:[#allocation10 + $0x1f8] sm:$0xff] }
 0x541   :  { %v5900_v60 = vpop.eup %5899  ;;  %v6664_v6 = vadd.f32 %v3153_v13, %v3151_v11  ;;  %v3145_v42 = vadd.f32 1.0, %v5898_v35  ;;  %v3241_v11 = vld [vmem:[#allocation10 + $0x1e0] sm:$0xff]  ;;  %v3243_v13 = vld [vmem:[#allocation10 + $0x1f0] sm:$0xff]  ;;  %v3234_v35 = vld [vmem:[#allocation10 + $0x1a8] sm:$0xff] }
 0x542   :  { %v5902_v14 = vpop.eup %5901  ;;  %v3154_v47 = vmul.f32 %v5900_v60, %v5892_v10  ;;  %v3251_v10 = vld [vmem:[#allocation10 + $0x230] sm:$0xff]  ;;  %v3236_v60 = vld [vmem:[#allocation10 + $0x1b8] sm:$0xff] }
 0x543   :  { %5903 = vtanh.f32 %v6664_v6  ;;  %v3146_v45 = vadd.f32 1.0, %v5902_v14  ;;  %v3235_v14 = vld [vmem:[#allocation10 + $0x1b0] sm:$0xff] }
 0x544   :  { %5905 = vrcp.f32 %v3145_v42  ;;  %v6668_v50 = vadd.f32 %v3154_v47, %v3152_v52  ;;  %v3233_v42 = vld [vmem:[#allocation10 + $0x1a0] sm:$0xff]  ;;  %v3226_v52 = vld [vmem:[#allocation10 + $0x168] sm:$0xff]  ;;  %v3228_v47 = vld [vmem:[#allocation10 + $0x178] sm:$0xff] }
 0x545   :  { %5907 = vrcp.f32 %v3146_v45  ;;  %v3225_v45 = vld [vmem:[#allocation10 + $0x160] sm:$0xff] }
 0x546   :  { %5909 = vtanh.f32 %v6668_v50 }
 0x550   :  { %v5904_v46 = vpop.eup %5903 }
 0x551   :  { %v5906_v7 = vpop.eup %5905 }
 0x552   :  { %v5908_v55 = vpop.eup %5907  ;;  %v6671_v62 = vmul.f32 %v5906_v7, %v5904_v46  ;;  %v3227_v46 = vld [vmem:[#allocation10 + $0x170] sm:$0xff]  ;;  %v3218_v7 = vld [vmem:[#allocation10 + $0x128] sm:$0xff] }
 0x553   :  { %v5910_v56 = vpop.eup %5909 }
 0x554   :  { %v3160_v59 = vmul.f32 %v5910_v56, %v5908_v55  ;;  %3166 = vst [vmem:[#allocation13 + $0x30] sm:$0xff] %v6671_v62  ;;  %v3220_v55 = vld [vmem:[#allocation10 + $0x138] sm:$0xff]  ;;  %v3217_v56 = vld [vmem:[#allocation10 + $0x120] sm:$0xff] }
 0x556   :  { %3167 = vst [vmem:[#allocation13 + $0x38] sm:$0xff] %v3160_v59  ;;  %3501 = vmatprep.mubr.f32.mxu0 %v3160_v59  ;;  %3572 = vmatprep.mubr.f32.mxu1 %v3160_v59 }
 0x557   :  { %3502 = vmatmul.mubr.f32.vlgmr.msra.gmra.mxu0 %v6671_v62  ;;  %3573 = vmatmul.mubr.f32.vlgmr.msra.gmra.mxu1 %v6671_v62 }
 0x558   :  { %3580 = vmatpush1.msra.mxu0 %v3305_v61  ;;  %3651 = vmatpush1.msra.mxu1 %v3307_v29  ;;  %v3210_v61 = vld [vmem:[#allocation10 + $0xe8] sm:$0xff]  ;;  %v3212_v29 = vld [vmem:[#allocation10 + $0xf8] sm:$0xff] }
 0x559   :  { %3581 = vmatprep.subr.mxu0 %v3298_v58  ;;  %3643 = vmatprep.mubr.f32.mxu0 %v3160_v59  ;;  %v3209_v58 = vld [vmem:[#allocation10 + $0xe0] sm:$0xff] }
 0x55a   :  { %3652 = vmatprep.subr.mxu1 %v3300_v44  ;;  %3714 = vmatprep.mubr.f32.mxu1 %v3160_v59  ;;  %v3219_v59 = vld [vmem:[#allocation10 + $0x130] sm:$0xff] }
 0x55b   :  { %3582 = vmatpush1.msra.mxu0 %v3297_v22  ;;  %3653 = vmatpush1.msra.mxu1 %v3299_v41  ;;  %v3211_v44 = vld [vmem:[#allocation10 + $0xf0] sm:$0xff]  ;;  %v3202_v22 = vld [vmem:[#allocation10 + $0xa8] sm:$0xff]  ;;  %v3204_v41 = vld [vmem:[#allocation10 + $0xb8] sm:$0xff] }
 0x55c   :  { %3583 = vmatprep.subr.mxu0 %v3290_v8  ;;  %3654 = vmatprep.subr.mxu1 %v3292_v5  ;;  %v3201_v8 = vld [vmem:[#allocation10 + $0xa0] sm:$0xff]  ;;  %v3203_v5 = vld [vmem:[#allocation10 + $0xb0] sm:$0xff] }
 0x55d   :  { %3584 = vmatpush1.msra.mxu0 %v3289_v27  ;;  %3655 = vmatpush1.msra.mxu1 %v3291_v32  ;;  %v3194_v27 = vld [vmem:[#allocation10 + $0x68] sm:$0xff]  ;;  %v3196_v32 = vld [vmem:[#allocation10 + $0x78] sm:$0xff] }
 0x55e   :  { %3585 = vmatprep.subr.mxu0 %v3282_v9  ;;  %3656 = vmatprep.subr.mxu1 %v3284_v19  ;;  %v3193_v9 = vld [vmem:[#allocation10 + $0x60] sm:$0xff]  ;;  %v3195_v19 = vld [vmem:[#allocation10 + $0x70] sm:$0xff] }
 0x55f   :  { %3586 = vmatpush1.msra.mxu0 %v3281_v23  ;;  %3657 = vmatpush1.msra.mxu1 %v3283_v24  ;;  %v3186_v23 = vld [vmem:[#allocation10 + $0x28] sm:$0xff]  ;;  %v3188_v24 = vld [vmem:[#allocation10 + $0x38] sm:$0xff] }
 0x560   :  { %3587 = vmatprep.subr.mxu0 %v3274_v12  ;;  %3658 = vmatprep.subr.mxu1 %v3276_v15  ;;  %v3185_v12 = vld [vmem:[#allocation10 + $0x20] sm:$0xff]  ;;  %v3187_v15 = vld [vmem:[#allocation10 + $0x30] sm:$0xff] }
 0x561   :  { %3588 = vmatpush1.msra.mxu0 %v3273_v16  ;;  %3659 = vmatpush1.msra.mxu1 %v3275_v63  ;;  %v3434_v16 = vld [vmem:[#allocation10 + $0x7e8] sm:$0xff]  ;;  %v3436_v63 = vld [vmem:[#allocation10 + $0x7f8] sm:$0xff] }
 0x562   :  { %3589 = vmatprep.subr.mxu0 %v3266_v3  ;;  %3660 = vmatprep.subr.mxu1 %v3268_v51  ;;  %v3433_v3 = vld [vmem:[#allocation10 + $0x7e0] sm:$0xff]  ;;  %v3435_v51 = vld [vmem:[#allocation10 + $0x7f0] sm:$0xff] }
 0x563   :  { %3590 = vmatpush1.msra.mxu0 %v3265_v57  ;;  %3661 = vmatpush1.msra.mxu1 %v3267_v0  ;;  %v3426_v57 = vld [vmem:[#allocation10 + $0x7a8] sm:$0xff]  ;;  %v3428_v0 = vld [vmem:[#allocation10 + $0x7b8] sm:$0xff] }
 0x564   :  { %3591 = vmatprep.subr.mxu0 %v3258_v53  ;;  %3662 = vmatprep.subr.mxu1 %v3260_v20  ;;  %v3425_v53 = vld [vmem:[#allocation10 + $0x7a0] sm:$0xff]  ;;  %v3427_v20 = vld [vmem:[#allocation10 + $0x7b0] sm:$0xff] }
 0x565   :  { %3592 = vmatpush1.msra.mxu0 %v3257_v4  ;;  %3663 = vmatpush1.msra.mxu1 %v3259_v21  ;;  %v3418_v4 = vld [vmem:[#allocation10 + $0x768] sm:$0xff]  ;;  %v3420_v21 = vld [vmem:[#allocation10 + $0x778] sm:$0xff] }
 0x566   :  { %3593 = vmatprep.subr.mxu0 %v3250_v25  ;;  %3664 = vmatprep.subr.mxu1 %v3252_v17  ;;  %v3417_v25 = vld [vmem:[#allocation10 + $0x760] sm:$0xff]  ;;  %v3419_v17 = vld [vmem:[#allocation10 + $0x770] sm:$0xff] }
 0x567   :  { %3594 = vmatpush1.msra.mxu0 %v3249_v18  ;;  %3665 = vmatpush1.msra.mxu1 %v3251_v10  ;;  %v3410_v18 = vld [vmem:[#allocation10 + $0x728] sm:$0xff]  ;;  %v3412_v10 = vld [vmem:[#allocation10 + $0x738] sm:$0xff] }
 0x568   :  { %3595 = vmatprep.subr.mxu0 %v3242_v54  ;;  %3666 = vmatprep.subr.mxu1 %v3244_v26  ;;  %v3409_v54 = vld [vmem:[#allocation10 + $0x720] sm:$0xff]  ;;  %v3411_v26 = vld [vmem:[#allocation10 + $0x730] sm:$0xff] }
 0x569   :  { %3596 = vmatpush1.msra.mxu0 %v3241_v11  ;;  %3667 = vmatpush1.msra.mxu1 %v3243_v13  ;;  %v3402_v11 = vld [vmem:[#allocation10 + $0x6e8] sm:$0xff]  ;;  %v3404_v13 = vld [vmem:[#allocation10 + $0x6f8] sm:$0xff] }
 0x56a   :  { %3597 = vmatprep.subr.mxu0 %v3234_v35  ;;  %3668 = vmatprep.subr.mxu1 %v3236_v60  ;;  %v3401_v35 = vld [vmem:[#allocation10 + $0x6e0] sm:$0xff]  ;;  %v3403_v60 = vld [vmem:[#allocation10 + $0x6f0] sm:$0xff] }
 0x56b   :  { %3598 = vmatpush1.msra.mxu0 %v3233_v42  ;;  %3669 = vmatpush1.msra.mxu1 %v3235_v14  ;;  %v3394_v42 = vld [vmem:[#allocation10 + $0x6a8] sm:$0xff]  ;;  %v3396_v14 = vld [vmem:[#allocation10 + $0x6b8] sm:$0xff] }
 0x56c   :  { %3599 = vmatprep.subr.mxu0 %v3226_v52  ;;  %3670 = vmatprep.subr.mxu1 %v3228_v47  ;;  %v3393_v52 = vld [vmem:[#allocation10 + $0x6a0] sm:$0xff]  ;;  %v3395_v47 = vld [vmem:[#allocation10 + $0x6b0] sm:$0xff] }
 0x56d   :  { %3600 = vmatpush1.msra.mxu0 %v3225_v45  ;;  %3671 = vmatpush1.msra.mxu1 %v3227_v46  ;;  %v3386_v45 = vld [vmem:[#allocation10 + $0x668] sm:$0xff]  ;;  %v3388_v46 = vld [vmem:[#allocation10 + $0x678] sm:$0xff] }
 0x56e   :  { %3601 = vmatprep.subr.mxu0 %v3218_v7  ;;  %3672 = vmatprep.subr.mxu1 %v3220_v55  ;;  %v3385_v7 = vld [vmem:[#allocation10 + $0x660] sm:$0xff]  ;;  %v3387_v55 = vld [vmem:[#allocation10 + $0x670] sm:$0xff] }
 0x56f   :  { %3602 = vmatpush1.msra.mxu0 %v3217_v56  ;;  %3673 = vmatpush1.msra.mxu1 %v3219_v59  ;;  %v3378_v56 = vld [vmem:[#allocation10 + $0x628] sm:$0xff]  ;;  %v3380_v59 = vld [vmem:[#allocation10 + $0x638] sm:$0xff] }
 0x570   :  { %3603 = vmatprep.subr.mxu0 %v3210_v61  ;;  %3674 = vmatprep.subr.mxu1 %v3212_v29  ;;  %v3377_v61 = vld [vmem:[#allocation10 + $0x620] sm:$0xff]  ;;  %v3379_v29 = vld [vmem:[#allocation10 + $0x630] sm:$0xff] }
 0x571   :  { %3604 = vmatpush1.msra.mxu0 %v3209_v58  ;;  %3675 = vmatpush1.msra.mxu1 %v3211_v44  ;;  %v3370_v58 = vld [vmem:[#allocation10 + $0x5e8] sm:$0xff]  ;;  %v3372_v44 = vld [vmem:[#allocation10 + $0x5f8] sm:$0xff] }
 0x572   :  { %3605 = vmatprep.subr.mxu0 %v3202_v22  ;;  %3676 = vmatprep.subr.mxu1 %v3204_v41  ;;  %v3369_v22 = vld [vmem:[#allocation10 + $0x5e0] sm:$0xff]  ;;  %v3371_v41 = vld [vmem:[#allocation10 + $0x5f0] sm:$0xff] }
 0x573   :  { %3606 = vmatpush1.msra.mxu0 %v3201_v8  ;;  %3677 = vmatpush1.msra.mxu1 %v3203_v5  ;;  %v3362_v8 = vld [vmem:[#allocation10 + $0x5a8] sm:$0xff]  ;;  %v3364_v5 = vld [vmem:[#allocation10 + $0x5b8] sm:$0xff] }
 0x574   :  { %3607 = vmatprep.subr.mxu0 %v3194_v27  ;;  %3678 = vmatprep.subr.mxu1 %v3196_v32  ;;  %v3361_v27 = vld [vmem:[#allocation10 + $0x5a0] sm:$0xff]  ;;  %v3363_v32 = vld [vmem:[#allocation10 + $0x5b0] sm:$0xff] }
 0x575   :  { %3608 = vmatpush1.msra.mxu0 %v3193_v9  ;;  %3679 = vmatpush1.msra.mxu1 %v3195_v19  ;;  %v3354_v9 = vld [vmem:[#allocation10 + $0x568] sm:$0xff]  ;;  %v3356_v19 = vld [vmem:[#allocation10 + $0x578] sm:$0xff] }
 0x576   :  { %3609 = vmatprep.subr.mxu0 %v3186_v23  ;;  %3680 = vmatprep.subr.mxu1 %v3188_v24  ;;  %v3353_v23 = vld [vmem:[#allocation10 + $0x560] sm:$0xff]  ;;  %v3355_v24 = vld [vmem:[#allocation10 + $0x570] sm:$0xff] }
 0x577   :  { %3610 = vmatpush1.msra.mxu0 %v3185_v12  ;;  %3681 = vmatpush1.msra.mxu1 %v3187_v15  ;;  %v3346_v12 = vld [vmem:[#allocation10 + $0x528] sm:$0xff]  ;;  %v3348_v15 = vld [vmem:[#allocation10 + $0x538] sm:$0xff] }
 0x578   :  { %3611 = vmatprep.subr.mxu0 %v3434_v16  ;;  %3682 = vmatprep.subr.mxu1 %v3436_v63  ;;  %v3345_v16 = vld [vmem:[#allocation10 + $0x520] sm:$0xff]  ;;  %v3347_v63 = vld [vmem:[#allocation10 + $0x530] sm:$0xff] }
 0x579   :  { %3612 = vmatpush2.msra.mxu0 %v3433_v3  ;;  %3683 = vmatpush2.msra.mxu1 %v3435_v51  ;;  %v3338_v3 = vld [vmem:[#allocation10 + $0x4e8] sm:$0xff]  ;;  %v3340_v51 = vld [vmem:[#allocation10 + $0x4f8] sm:$0xff] }
 0x57a   :  { %3613 = vmatprep.subr.mxu0 %v3426_v57  ;;  %3684 = vmatprep.subr.mxu1 %v3428_v0  ;;  %v3337_v57 = vld [vmem:[#allocation10 + $0x4e0] sm:$0xff]  ;;  %v3339_v0 = vld [vmem:[#allocation10 + $0x4f0] sm:$0xff] }
 0x57b   :  { %3614 = vmatpush2.msra.mxu0 %v3425_v53  ;;  %3685 = vmatpush2.msra.mxu1 %v3427_v20  ;;  %v3330_v53 = vld [vmem:[#allocation10 + $0x4a8] sm:$0xff]  ;;  %v3332_v20 = vld [vmem:[#allocation10 + $0x4b8] sm:$0xff] }
 0x57c   :  { %3615 = vmatprep.subr.mxu0 %v3418_v4  ;;  %3686 = vmatprep.subr.mxu1 %v3420_v21  ;;  %v3329_v4 = vld [vmem:[#allocation10 + $0x4a0] sm:$0xff]  ;;  %v3331_v21 = vld [vmem:[#allocation10 + $0x4b0] sm:$0xff] }
 0x57d   :  { %3616 = vmatpush2.msra.mxu0 %v3417_v25  ;;  %3687 = vmatpush2.msra.mxu1 %v3419_v17  ;;  %v3322_v25 = vld [vmem:[#allocation10 + $0x468] sm:$0xff]  ;;  %v3324_v17 = vld [vmem:[#allocation10 + $0x478] sm:$0xff] }
 0x57e   :  { %3617 = vmatprep.subr.mxu0 %v3410_v18  ;;  %3688 = vmatprep.subr.mxu1 %v3412_v10  ;;  %v3321_v18 = vld [vmem:[#allocation10 + $0x460] sm:$0xff]  ;;  %v3323_v10 = vld [vmem:[#allocation10 + $0x470] sm:$0xff] }
 0x57f   :  { %3618 = vmatpush2.msra.mxu0 %v3409_v54  ;;  %3689 = vmatpush2.msra.mxu1 %v3411_v26  ;;  %v3314_v54 = vld [vmem:[#allocation10 + $0x428] sm:$0xff]  ;;  %v3316_v26 = vld [vmem:[#allocation10 + $0x438] sm:$0xff] }
 0x580   :  { %3619 = vmatprep.subr.mxu0 %v3402_v11  ;;  %3690 = vmatprep.subr.mxu1 %v3404_v13  ;;  %v3313_v11 = vld [vmem:[#allocation10 + $0x420] sm:$0xff]  ;;  %v3315_v13 = vld [vmem:[#allocation10 + $0x430] sm:$0xff] }
 0x581   :  { %3620 = vmatpush2.msra.mxu0 %v3401_v35  ;;  %3691 = vmatpush2.msra.mxu1 %v3403_v60  ;;  %v3918_v35 = vld [vmem:[#allocation10 + $0x3c8] sm:$0xff]  ;;  %v3920_v60 = vld [vmem:[#allocation10 + $0x3d8] sm:$0xff] }
 0x582   :  { %3621 = vmatprep.subr.mxu0 %v3394_v42  ;;  %3692 = vmatprep.subr.mxu1 %v3396_v14  ;;  %v3917_v42 = vld [vmem:[#allocation10 + $0x3c0] sm:$0xff]  ;;  %v3919_v14 = vld [vmem:[#allocation10 + $0x3d0] sm:$0xff] }
 0x583   :  { %3622 = vmatpush2.msra.mxu0 %v3393_v52  ;;  %3693 = vmatpush2.msra.mxu1 %v3395_v47  ;;  %v3910_v52 = vld [vmem:[#allocation10 + $0x388] sm:$0xff]  ;;  %v3912_v47 = vld [vmem:[#allocation10 + $0x398] sm:$0xff] }
 0x584   :  { %3623 = vmatprep.subr.mxu0 %v3386_v45  ;;  %3694 = vmatprep.subr.mxu1 %v3388_v46  ;;  %v3909_v45 = vld [vmem:[#allocation10 + $0x380] sm:$0xff]  ;;  %v3911_v46 = vld [vmem:[#allocation10 + $0x390] sm:$0xff] }
 0x585   :  { %3624 = vmatpush2.msra.mxu0 %v3385_v7  ;;  %3695 = vmatpush2.msra.mxu1 %v3387_v55  ;;  %v3902_v7 = vld [vmem:[#allocation10 + $0x348] sm:$0xff]  ;;  %v3904_v55 = vld [vmem:[#allocation10 + $0x358] sm:$0xff] }
 0x586   :  { %3625 = vmatprep.subr.mxu0 %v3378_v56  ;;  %3696 = vmatprep.subr.mxu1 %v3380_v59  ;;  %v3901_v56 = vld [vmem:[#allocation10 + $0x340] sm:$0xff]  ;;  %v3903_v59 = vld [vmem:[#allocation10 + $0x350] sm:$0xff] }
 0x587   :  { %3626 = vmatpush2.msra.mxu0 %v3377_v61  ;;  %3697 = vmatpush2.msra.mxu1 %v3379_v29  ;;  %v3896_v61 = vld [vmem:[#allocation10 + $0x318] sm:$0xff]  ;;  %v3893_v29 = vld [vmem:[#allocation10 + $0x300] sm:$0xff] }
 0x588   :  { %3627 = vmatprep.subr.mxu0 %v3370_v58  ;;  %3698 = vmatprep.subr.mxu1 %v3372_v44  ;;  %v3895_v58 = vld [vmem:[#allocation10 + $0x310] sm:$0xff]  ;;  %v3886_v44 = vld [vmem:[#allocation10 + $0x2c8] sm:$0xff] }
 0x589   :  { %3628 = vmatpush2.msra.mxu0 %v3369_v22  ;;  %3699 = vmatpush2.msra.mxu1 %v3371_v41  ;;  %v3888_v22 = vld [vmem:[#allocation10 + $0x2d8] sm:$0xff]  ;;  %v3885_v41 = vld [vmem:[#allocation10 + $0x2c0] sm:$0xff] }
 0x58a   :  { %3629 = vmatprep.subr.mxu0 %v3362_v8  ;;  %3700 = vmatprep.subr.mxu1 %v3364_v5  ;;  %v3887_v8 = vld [vmem:[#allocation10 + $0x2d0] sm:$0xff]  ;;  %v3878_v5 = vld [vmem:[#allocation10 + $0x288] sm:$0xff] }
 0x58b   :  { %3630 = vmatpush2.msra.mxu0 %v3361_v27  ;;  %3701 = vmatpush2.msra.mxu1 %v3363_v32  ;;  %v3880_v27 = vld [vmem:[#allocation10 + $0x298] sm:$0xff]  ;;  %v3877_v32 = vld [vmem:[#allocation10 + $0x280] sm:$0xff] }
 0x58c   :  { %3631 = vmatprep.subr.mxu0 %v3354_v9  ;;  %3702 = vmatprep.subr.mxu1 %v3356_v19  ;;  %v3879_v9 = vld [vmem:[#allocation10 + $0x290] sm:$0xff]  ;;  %v3870_v19 = vld [vmem:[#allocation10 + $0x248] sm:$0xff] }
 0x58d   :  { %3632 = vmatpush2.msra.mxu0 %v3353_v23  ;;  %3703 = vmatpush2.msra.mxu1 %v3355_v24  ;;  %v3872_v23 = vld [vmem:[#allocation10 + $0x258] sm:$0xff]  ;;  %v3869_v24 = vld [vmem:[#allocation10 + $0x240] sm:$0xff] }
 0x58e   :  { %3633 = vmatprep.subr.mxu0 %v3346_v12  ;;  %3704 = vmatprep.subr.mxu1 %v3348_v15  ;;  %v3871_v12 = vld [vmem:[#allocation10 + $0x250] sm:$0xff]  ;;  %v3862_v15 = vld [vmem:[#allocation10 + $0x208] sm:$0xff] }
 0x58f   :  { %3634 = vmatpush2.msra.mxu0 %v3345_v16  ;;  %3705 = vmatpush2.msra.mxu1 %v3347_v63  ;;  %v3864_v16 = vld [vmem:[#allocation10 + $0x218] sm:$0xff]  ;;  %v3861_v63 = vld [vmem:[#allocation10 + $0x200] sm:$0xff] }
 0x590   :  { %3635 = vmatprep.subr.mxu0 %v3338_v3  ;;  %3706 = vmatprep.subr.mxu1 %v3340_v51  ;;  %v3863_v3 = vld [vmem:[#allocation10 + $0x210] sm:$0xff]  ;;  %v3854_v51 = vld [vmem:[#allocation10 + $0x1c8] sm:$0xff] }
 0x591   :  { %3636 = vmatpush2.msra.mxu0 %v3337_v57  ;;  %3707 = vmatpush2.msra.mxu1 %v3339_v0  ;;  %v3856_v57 = vld [vmem:[#allocation10 + $0x1d8] sm:$0xff]  ;;  %v3853_v0 = vld [vmem:[#allocation10 + $0x1c0] sm:$0xff] }
 0x592   :  { %3637 = vmatprep.subr.mxu0 %v3330_v53  ;;  %3708 = vmatprep.subr.mxu1 %v3332_v20  ;;  %v3855_v53 = vld [vmem:[#allocation10 + $0x1d0] sm:$0xff]  ;;  %v3846_v20 = vld [vmem:[#allocation10 + $0x188] sm:$0xff] }
 0x593   :  { %3638 = vmatpush2.msra.mxu0 %v3329_v4  ;;  %3709 = vmatpush2.msra.mxu1 %v3331_v21  ;;  %v3848_v4 = vld [vmem:[#allocation10 + $0x198] sm:$0xff]  ;;  %v3845_v21 = vld [vmem:[#allocation10 + $0x180] sm:$0xff] }
 0x594   :  { %3639 = vmatprep.subr.mxu0 %v3322_v25  ;;  %3710 = vmatprep.subr.mxu1 %v3324_v17  ;;  %v3847_v25 = vld [vmem:[#allocation10 + $0x190] sm:$0xff]  ;;  %v3838_v17 = vld [vmem:[#allocation10 + $0x148] sm:$0xff] }
 0x595   :  { %3640 = vmatpush2.msra.mxu0 %v3321_v18  ;;  %3711 = vmatpush2.msra.mxu1 %v3323_v10  ;;  %v3840_v18 = vld [vmem:[#allocation10 + $0x158] sm:$0xff]  ;;  %v3837_v10 = vld [vmem:[#allocation10 + $0x140] sm:$0xff] }
 0x596   :  { %3641 = vmatprep.subr.mxu0 %v3314_v54  ;;  %3712 = vmatprep.subr.mxu1 %v3316_v26  ;;  %v3839_v54 = vld [vmem:[#allocation10 + $0x150] sm:$0xff]  ;;  %v3830_v26 = vld [vmem:[#allocation10 + $0x108] sm:$0xff] }
 0x597   :  { %3642 = vmatpush2.msra.mxu0 %v3313_v11  ;;  %3713 = vmatpush2.msra.mxu1 %v3315_v13  ;;  %v3832_v11 = vld [vmem:[#allocation10 + $0x118] sm:$0xff]  ;;  %v3829_v13 = vld [vmem:[#allocation10 + $0x100] sm:$0xff] }
 0x598   :  { %3644 = vmatmul.mubr.f32.vlgmr.msra.gmra.mxu0 %v6671_v62  ;;  %3715 = vmatmul.mubr.f32.vlgmr.msra.gmra.mxu1 %v6671_v62  ;;  %v3894_v62 = vld [vmem:[#allocation10 + $0x308] sm:$0xff] }
 0x599   :  { %4053 = vmatprep.subr.mxu0 %v3918_v35  ;;  %4124 = vmatprep.subr.mxu1 %v3920_v60  ;;  %v3831_v35 = vld [vmem:[#allocation10 + $0x110] sm:$0xff]  ;;  %v3822_v60 = vld [vmem:[#allocation10 + $0xc8] sm:$0xff] }
 0x59a   :  { %4054 = vmatpush1.msra.mxu0 %v3917_v42  ;;  %4125 = vmatpush1.msra.mxu1 %v3919_v14  ;;  %v3824_v42 = vld [vmem:[#allocation10 + $0xd8] sm:$0xff]  ;;  %v3821_v14 = vld [vmem:[#allocation10 + $0xc0] sm:$0xff] }
 0x59b   :  { %4055 = vmatprep.subr.mxu0 %v3910_v52  ;;  %4126 = vmatprep.subr.mxu1 %v3912_v47  ;;  %v3823_v52 = vld [vmem:[#allocation10 + $0xd0] sm:$0xff]  ;;  %v3814_v47 = vld [vmem:[#allocation10 + $0x88] sm:$0xff] }
 0x59c   :  { %4056 = vmatpush1.msra.mxu0 %v3909_v45  ;;  %4127 = vmatpush1.msra.mxu1 %v3911_v46  ;;  %v3816_v45 = vld [vmem:[#allocation10 + $0x98] sm:$0xff]  ;;  %v3813_v46 = vld [vmem:[#allocation10 + $0x80] sm:$0xff] }
 0x59d   :  { %4057 = vmatprep.subr.mxu0 %v3902_v7  ;;  %4128 = vmatprep.subr.mxu1 %v3904_v55  ;;  %v3815_v7 = vld [vmem:[#allocation10 + $0x90] sm:$0xff]  ;;  %v3806_v55 = vld [vmem:[#allocation10 + $0x48] sm:$0xff] }
 0x59e   :  { %4058 = vmatpush1.msra.mxu0 %v3901_v56  ;;  %4129 = vmatpush1.msra.mxu1 %v3903_v59  ;;  %v3808_v56 = vld [vmem:[#allocation10 + $0x58] sm:$0xff]  ;;  %v3805_v59 = vld [vmem:[#allocation10 + $0x40] sm:$0xff] }
 0x59f   :  { %4059 = vmatprep.subr.mxu0 %v3894_v62  ;;  %4130 = vmatprep.subr.mxu1 %v3896_v61  ;;  %v3807_v62 = vld [vmem:[#allocation10 + $0x50] sm:$0xff]  ;;  %v3798_v61 = vld [vmem:[#allocation10 + $0x8] sm:$0xff] }
 0x5a0   :  { %4060 = vmatpush1.msra.mxu0 %v3893_v29  ;;  %4131 = vmatpush1.msra.mxu1 %v3895_v58  ;;  %v3800_v29 = vld [vmem:[#allocation10 + $0x18] sm:$0xff]  ;;  %v3797_v58 = vld [vmem:[#allocation10] sm:$0xff] }
 0x5a1   :  { %4061 = vmatprep.subr.mxu0 %v3886_v44  ;;  %4132 = vmatprep.subr.mxu1 %v3888_v22  ;;  %v3799_v44 = vld [vmem:[#allocation10 + $0x10] sm:$0xff]  ;;  %v4046_v22 = vld [vmem:[#allocation10 + $0x7c8] sm:$0xff] }
 0x5a2   :  { %4062 = vmatpush1.msra.mxu0 %v3885_v41  ;;  %4133 = vmatpush1.msra.mxu1 %v3887_v8  ;;  %v4048_v41 = vld [vmem:[#allocation10 + $0x7d8] sm:$0xff]  ;;  %v4045_v8 = vld [vmem:[#allocation10 + $0x7c0] sm:$0xff] }
 0x5a3   :  { %4063 = vmatprep.subr.mxu0 %v3878_v5  ;;  %4134 = vmatprep.subr.mxu1 %v3880_v27  ;;  %v4047_v5 = vld [vmem:[#allocation10 + $0x7d0] sm:$0xff]  ;;  %v4038_v27 = vld [vmem:[#allocation10 + $0x788] sm:$0xff] }
 0x5a4   :  { %4064 = vmatpush1.msra.mxu0 %v3877_v32  ;;  %4135 = vmatpush1.msra.mxu1 %v3879_v9  ;;  %v4040_v32 = vld [vmem:[#allocation10 + $0x798] sm:$0xff]  ;;  %v4037_v9 = vld [vmem:[#allocation10 + $0x780] sm:$0xff] }
 0x5a5   :  { %4065 = vmatprep.subr.mxu0 %v3870_v19  ;;  %4136 = vmatprep.subr.mxu1 %v3872_v23  ;;  %v4039_v19 = vld [vmem:[#allocation10 + $0x790] sm:$0xff]  ;;  %v4030_v23 = vld [vmem:[#allocation10 + $0x748] sm:$0xff] }
 0x5a6   :  { %4066 = vmatpush1.msra.mxu0 %v3869_v24  ;;  %4137 = vmatpush1.msra.mxu1 %v3871_v12  ;;  %v4032_v24 = vld [vmem:[#allocation10 + $0x758] sm:$0xff]  ;;  %v4029_v12 = vld [vmem:[#allocation10 + $0x740] sm:$0xff] }
 0x5a7   :  { %4067 = vmatprep.subr.mxu0 %v3862_v15  ;;  %4138 = vmatprep.subr.mxu1 %v3864_v16  ;;  %v4031_v15 = vld [vmem:[#allocation10 + $0x750] sm:$0xff]  ;;  %v4022_v16 = vld [vmem:[#allocation10 + $0x708] sm:$0xff] }
 0x5a8   :  { %4068 = vmatpush1.msra.mxu0 %v3861_v63  ;;  %4139 = vmatpush1.msra.mxu1 %v3863_v3  ;;  %v4024_v63 = vld [vmem:[#allocation10 + $0x718] sm:$0xff]  ;;  %v4021_v3 = vld [vmem:[#allocation10 + $0x700] sm:$0xff] }
 0x5a9   :  { %4069 = vmatprep.subr.mxu0 %v3854_v51  ;;  %4140 = vmatprep.subr.mxu1 %v3856_v57  ;;  %v4023_v51 = vld [vmem:[#allocation10 + $0x710] sm:$0xff]  ;;  %v4014_v57 = vld [vmem:[#allocation10 + $0x6c8] sm:$0xff] }
 0x5aa   :  { %4070 = vmatpush1.msra.mxu0 %v3853_v0  ;;  %4141 = vmatpush1.msra.mxu1 %v3855_v53  ;;  %v4016_v0 = vld [vmem:[#allocation10 + $0x6d8] sm:$0xff]  ;;  %v4013_v53 = vld [vmem:[#allocation10 + $0x6c0] sm:$0xff] }
 0x5ab   :  { %4071 = vmatprep.subr.mxu0 %v3846_v20  ;;  %4142 = vmatprep.subr.mxu1 %v3848_v4  ;;  %v4015_v20 = vld [vmem:[#allocation10 + $0x6d0] sm:$0xff]  ;;  %v4006_v4 = vld [vmem:[#allocation10 + $0x688] sm:$0xff] }
 0x5ac   :  { %4072 = vmatpush1.msra.mxu0 %v3845_v21  ;;  %4143 = vmatpush1.msra.mxu1 %v3847_v25  ;;  %v4008_v21 = vld [vmem:[#allocation10 + $0x698] sm:$0xff]  ;;  %v4005_v25 = vld [vmem:[#allocation10 + $0x680] sm:$0xff] }
 0x5ad   :  { %4073 = vmatprep.subr.mxu0 %v3838_v17  ;;  %4144 = vmatprep.subr.mxu1 %v3840_v18  ;;  %v4007_v17 = vld [vmem:[#allocation10 + $0x690] sm:$0xff]  ;;  %v3998_v18 = vld [vmem:[#allocation10 + $0x648] sm:$0xff] }
 0x5ae   :  { %4074 = vmatpush1.msra.mxu0 %v3837_v10  ;;  %4145 = vmatpush1.msra.mxu1 %v3839_v54  ;;  %v4000_v10 = vld [vmem:[#allocation10 + $0x658] sm:$0xff]  ;;  %v3997_v54 = vld [vmem:[#allocation10 + $0x640] sm:$0xff] }
 0x5af   :  { %4075 = vmatprep.subr.mxu0 %v3830_v26  ;;  %4146 = vmatprep.subr.mxu1 %v3832_v11  ;;  %v3999_v26 = vld [vmem:[#allocation10 + $0x650] sm:$0xff]  ;;  %v3990_v11 = vld [vmem:[#allocation10 + $0x608] sm:$0xff] }
 0x5b0   :  { %4076 = vmatpush1.msra.mxu0 %v3829_v13  ;;  %4147 = vmatpush1.msra.mxu1 %v3831_v35  ;;  %v3992_v13 = vld [vmem:[#allocation10 + $0x618] sm:$0xff]  ;;  %v3989_v35 = vld [vmem:[#allocation10 + $0x600] sm:$0xff] }
 0x5b1   :  { %4077 = vmatprep.subr.mxu0 %v3822_v60  ;;  %4148 = vmatprep.subr.mxu1 %v3824_v42  ;;  %v3991_v60 = vld [vmem:[#allocation10 + $0x610] sm:$0xff]  ;;  %v3982_v42 = vld [vmem:[#allocation10 + $0x5c8] sm:$0xff] }
 0x5b2   :  { %4078 = vmatpush1.msra.mxu0 %v3821_v14  ;;  %4149 = vmatpush1.msra.mxu1 %v3823_v52  ;;  %v3984_v14 = vld [vmem:[#allocation10 + $0x5d8] sm:$0xff]  ;;  %v3981_v52 = vld [vmem:[#allocation10 + $0x5c0] sm:$0xff] }
 0x5b3   :  { %4079 = vmatprep.subr.mxu0 %v3814_v47  ;;  %4150 = vmatprep.subr.mxu1 %v3816_v45  ;;  %v3983_v47 = vld [vmem:[#allocation10 + $0x5d0] sm:$0xff]  ;;  %v3974_v45 = vld [vmem:[#allocation10 + $0x588] sm:$0xff] }
 0x5b4   :  { %4080 = vmatpush1.msra.mxu0 %v3813_v46  ;;  %4151 = vmatpush1.msra.mxu1 %v3815_v7  ;;  %v3976_v46 = vld [vmem:[#allocation10 + $0x598] sm:$0xff]  ;;  %v3973_v7 = vld [vmem:[#allocation10 + $0x580] sm:$0xff] }
 0x5b5   :  { %4081 = vmatprep.subr.mxu0 %v3806_v55  ;;  %4152 = vmatprep.subr.mxu1 %v3808_v56  ;;  %v3975_v55 = vld [vmem:[#allocation10 + $0x590] sm:$0xff]  ;;  %v3966_v56 = vld [vmem:[#allocation10 + $0x548] sm:$0xff] }
 0x5b6   :  { %4082 = vmatpush1.msra.mxu0 %v3805_v59  ;;  %4153 = vmatpush1.msra.mxu1 %v3807_v62  ;;  %v3968_v59 = vld [vmem:[#allocation10 + $0x558] sm:$0xff]  ;;  %v3965_v62 = vld [vmem:[#allocation10 + $0x540] sm:$0xff] }
 0x5b7   :  { %4083 = vmatprep.subr.mxu0 %v3798_v61  ;;  %4154 = vmatprep.subr.mxu1 %v3800_v29  ;;  %v3967_v61 = vld [vmem:[#allocation10 + $0x550] sm:$0xff]  ;;  %v3958_v29 = vld [vmem:[#allocation10 + $0x508] sm:$0xff] }
 0x5b8   :  { %4084 = vmatpush1.msra.mxu0 %v3797_v58  ;;  %4155 = vmatpush1.msra.mxu1 %v3799_v44  ;;  %v3960_v58 = vld [vmem:[#allocation10 + $0x518] sm:$0xff]  ;;  %v3957_v44 = vld [vmem:[#allocation10 + $0x500] sm:$0xff] }
 0x5b9   :  { %4085 = vmatprep.subr.mxu0 %v4046_v22  ;;  %4156 = vmatprep.subr.mxu1 %v4048_v41  ;;  %v3959_v22 = vld [vmem:[#allocation10 + $0x510] sm:$0xff]  ;;  %v3950_v41 = vld [vmem:[#allocation10 + $0x4c8] sm:$0xff] }
 0x5ba   :  { %4086 = vmatpush2.msra.mxu0 %v4045_v8  ;;  %4157 = vmatpush2.msra.mxu1 %v4047_v5  ;;  %v3952_v8 = vld [vmem:[#allocation10 + $0x4d8] sm:$0xff]  ;;  %v3949_v5 = vld [vmem:[#allocation10 + $0x4c0] sm:$0xff] }
 0x5bb   :  { %4087 = vmatprep.subr.mxu0 %v4038_v27  ;;  %4158 = vmatprep.subr.mxu1 %v4040_v32  ;;  %v3951_v27 = vld [vmem:[#allocation10 + $0x4d0] sm:$0xff]  ;;  %v3942_v32 = vld [vmem:[#allocation10 + $0x488] sm:$0xff] }
 0x5bc   :  { %4088 = vmatpush2.msra.mxu0 %v4037_v9  ;;  %4159 = vmatpush2.msra.mxu1 %v4039_v19  ;;  %v3944_v9 = vld [vmem:[#allocation10 + $0x498] sm:$0xff]  ;;  %v3941_v19 = vld [vmem:[#allocation10 + $0x480] sm:$0xff] }
 0x5bd   :  { %4089 = vmatprep.subr.mxu0 %v4030_v23  ;;  %4160 = vmatprep.subr.mxu1 %v4032_v24  ;;  %v3943_v23 = vld [vmem:[#allocation10 + $0x490] sm:$0xff]  ;;  %v3934_v24 = vld [vmem:[#allocation10 + $0x448] sm:$0xff] }
 0x5be   :  { %4090 = vmatpush2.msra.mxu0 %v4029_v12  ;;  %4161 = vmatpush2.msra.mxu1 %v4031_v15  ;;  %v3936_v12 = vld [vmem:[#allocation10 + $0x458] sm:$0xff]  ;;  %v3933_v15 = vld [vmem:[#allocation10 + $0x440] sm:$0xff] }
 0x5bf   :  { %4091 = vmatprep.subr.mxu0 %v4022_v16  ;;  %4162 = vmatprep.subr.mxu1 %v4024_v63  ;;  %v3935_v16 = vld [vmem:[#allocation10 + $0x450] sm:$0xff]  ;;  %v3926_v63 = vld [vmem:[#allocation10 + $0x408] sm:$0xff] }
 0x5c0   :  { %4092 = vmatpush2.msra.mxu0 %v4021_v3  ;;  %4163 = vmatpush2.msra.mxu1 %v4023_v51  ;;  %v3928_v3 = vld [vmem:[#allocation10 + $0x418] sm:$0xff]  ;;  %v3925_v51 = vld [vmem:[#allocation10 + $0x400] sm:$0xff] }
 0x5c1   :  { %4093 = vmatprep.subr.mxu0 %v4014_v57  ;;  %4164 = vmatprep.subr.mxu1 %v4016_v0  ;;  %v3927_v57 = vld [vmem:[#allocation10 + $0x410] sm:$0xff]  ;;  %v3922_v0 = vld [vmem:[#allocation10 + $0x3e8] sm:$0xff] }
 0x5c2   :  { %4094 = vmatpush2.msra.mxu0 %v4013_v53  ;;  %4165 = vmatpush2.msra.mxu1 %v4015_v20  ;;  %v3924_v53 = vld [vmem:[#allocation10 + $0x3f8] sm:$0xff] }
 0x5c3   :  { %4095 = vmatprep.subr.mxu0 %v4006_v4  ;;  %4166 = vmatprep.subr.mxu1 %v4008_v21 }
 0x5c4   :  { %4096 = vmatpush2.msra.mxu0 %v4005_v25  ;;  %4167 = vmatpush2.msra.mxu1 %v4007_v17 }
 0x5c5   :  { %4097 = vmatprep.subr.mxu0 %v3998_v18  ;;  %4168 = vmatprep.subr.mxu1 %v4000_v10 }
 0x5c6   :  { %4098 = vmatpush2.msra.mxu0 %v3997_v54  ;;  %4169 = vmatpush2.msra.mxu1 %v3999_v26 }
 0x5c7   :  { %4099 = vmatprep.subr.mxu0 %v3990_v11  ;;  %4170 = vmatprep.subr.mxu1 %v3992_v13 }
 0x5c8   :  { %4100 = vmatpush2.msra.mxu0 %v3989_v35  ;;  %4171 = vmatpush2.msra.mxu1 %v3991_v60 }
 0x5c9   :  { %4101 = vmatprep.subr.mxu0 %v3982_v42  ;;  %4172 = vmatprep.subr.mxu1 %v3984_v14 }
 0x5ca   :  { %4102 = vmatpush2.msra.mxu0 %v3981_v52  ;;  %4173 = vmatpush2.msra.mxu1 %v3983_v47 }
 0x5cb   :  { %4103 = vmatprep.subr.mxu0 %v3974_v45  ;;  %4174 = vmatprep.subr.mxu1 %v3976_v46  ;;  %v509_v45 = vadd.f32 %v6524_v39, %v6571_v49 }
 0x5cc   :  { %4104 = vmatpush2.msra.mxu0 %v3973_v7  ;;  %4175 = vmatpush2.msra.mxu1 %v3975_v55 }
 0x5cd   :  { %4105 = vmatprep.subr.mxu0 %v3966_v56  ;;  %4176 = vmatprep.subr.mxu1 %v3968_v59  ;;  %v622_v56 = vadd.f32 %v6526_v43, %v6574_v34 }
 0x5ce   :  { %4106 = vmatpush2.msra.mxu0 %v3965_v62  ;;  %4177 = vmatpush2.msra.mxu1 %v3967_v61 }
 0x5cf   :  { %4107 = vmatprep.subr.mxu0 %v3958_v29  ;;  %4178 = vmatprep.subr.mxu1 %v3960_v58 }
 0x5d0   :  { %4108 = vmatpush2.msra.mxu0 %v3957_v44  ;;  %4179 = vmatpush2.msra.mxu1 %v3959_v22 }
 0x5d1   :  { %4109 = vmatprep.subr.mxu0 %v3950_v41  ;;  %4180 = vmatprep.subr.mxu1 %v3952_v8 }
 0x5d2   :  { %4110 = vmatpush2.msra.mxu0 %v3949_v5  ;;  %4181 = vmatpush2.msra.mxu1 %v3951_v27 }
 0x5d3   :  { %4111 = vmatprep.subr.mxu0 %v3942_v32  ;;  %4182 = vmatprep.subr.mxu1 %v3944_v9 }
 0x5d4   :  { %4112 = vmatpush2.msra.mxu0 %v3941_v19  ;;  %4183 = vmatpush2.msra.mxu1 %v3943_v23 }
 0x5d5   :  { %4113 = vmatprep.subr.mxu0 %v3934_v24  ;;  %4184 = vmatprep.subr.mxu1 %v3936_v12 }
 0x5d6   :  { %4114 = vmatpush2.msra.mxu0 %v3933_v15  ;;  %4185 = vmatpush2.msra.mxu1 %v3935_v16 }
 0x5d7   :  { %4115 = vmatprep.subr.mxu0 %v3926_v63  ;;  %4186 = vmatprep.subr.mxu1 %v3928_v3 }
 0x5d8   :  { %4116 = vmatpush2.msra.mxu0 %v3925_v51  ;;  %4187 = vmatpush2.msra.mxu1 %v3927_v57 }
 0x5d9   :  { %4195 = vmatprep.subr.mxu0 %v3922_v0  ;;  %4266 = vmatprep.subr.mxu1 %v3924_v53 }
 0x617   :  { %v3503_v20 = vpop.f32.mrf.mxu0  ;;  %v3574_v4 = vpop.f32.mrf.mxu1 }
 0x618   :  { %v3721_v25 = vadd.f32 %v3503_v20, %v6441_v37  ;;  %v3723_v17 = vadd.f32 %v3574_v4, %v6444_v28  ;;  %v3923_v20 = vld [vmem:[#allocation10 + $0x3f0] sm:$0xff]  ;;  %v3914_v4 = vld [vmem:[#allocation10 + $0x3a8] sm:$0xff] }
 0x619   :  { %v3505_v21 = vpop.f32.mrf.mxu0  ;;  %v3576_v18 = vpop.f32.mrf.mxu1 }
 0x61a   :  { %v3722_v10 = vadd.f32 %v3505_v21, %v6447_v31  ;;  %v5745_v54 = vmul.f32 -1.442695, %v3721_v25  ;;  %v3724_v26 = vadd.f32 %v3576_v18, %v6450_v33  ;;  %v5747_v11 = vmul.f32 -1.442695, %v3723_v17  ;;  %v3916_v21 = vld [vmem:[#allocation10 + $0x3b8] sm:$0xff]  ;;  %v3913_v25 = vld [vmem:[#allocation10 + $0x3a0] sm:$0xff] }
 0x61b   :  { %v507_v31 = vadd.f32 %v6520_v30, %v6565_v1  ;;  %v620_v33 = vadd.f32 %v6522_v38, %v6568_v2  ;;  %v3915_v17 = vld [vmem:[#allocation10 + $0x3b0] sm:$0xff]  ;;  %v3906_v18 = vld [vmem:[#allocation10 + $0x368] sm:$0xff] }
 0x61c   :  { %v5746_v13 = vmul.f32 -1.442695, %v3722_v10  ;;  %5911 = vpow2.f32 %v5745_v54  ;;  %v5748_v35 = vmul.f32 -1.442695, %v3724_v26  ;;  %v3908_v10 = vld [vmem:[#allocation10 + $0x378] sm:$0xff]  ;;  %v3905_v54 = vld [vmem:[#allocation10 + $0x360] sm:$0xff] }
 0x61d   :  { %5913 = vpow2.f32 %v5747_v11  ;;  %v3907_v26 = vld [vmem:[#allocation10 + $0x370] sm:$0xff]  ;;  %v3898_v11 = vld [vmem:[#allocation10 + $0x328] sm:$0xff] }
 0x61e   :  { %5915 = vpow2.f32 %v5746_v13  ;;  %v3900_v13 = vld [vmem:[#allocation10 + $0x338] sm:$0xff] }
 0x61f   :  { %5917 = vpow2.f32 %v5748_v35  ;;  %v3897_v35 = vld [vmem:[#allocation10 + $0x320] sm:$0xff] }
 0x629   :  { %v5912_v60 = vpop.eup %5911 }
 0x62a   :  { %v5914_v42 = vpop.eup %5913  ;;  %v3735_v52 = vadd.f32 1.0, %v5912_v60  ;;  %v3899_v60 = vld [vmem:[#allocation10 + $0x330] sm:$0xff] }
 0x62b   :  { %v5916_v14 = vpop.eup %5915  ;;  %v3747_v47 = vadd.f32 1.0, %v5914_v42  ;;  %v3890_v42 = vld [vmem:[#allocation10 + $0x2e8] sm:$0xff] }
 0x62c   :  { %v5918_v37 = vpop.eup %5917  ;;  %v3736_v28 = vadd.f32 1.0, %v5916_v14  ;;  %5919 = vrcp.f32 %v3735_v52  ;;  %v3892_v14 = vld [vmem:[#allocation10 + $0x2f8] sm:$0xff]  ;;  %v3889_v52 = vld [vmem:[#allocation10 + $0x2e0] sm:$0xff] }
 0x62d   :  { %v3748_v46 = vadd.f32 1.0, %v5918_v37  ;;  %5921 = vrcp.f32 %v3747_v47  ;;  %v3891_v37 = vld [vmem:[#allocation10 + $0x2f0] sm:$0xff]  ;;  %v3882_v47 = vld [vmem:[#allocation10 + $0x2a8] sm:$0xff] }
 0x62e   :  { %5923 = vrcp.f32 %v3736_v28  ;;  %v3884_v28 = vld [vmem:[#allocation10 + $0x2b8] sm:$0xff] }
 0x639   :  { %v5920_v44 = vpop.eup %5919 }
 0x63a   :  { %v5922_v22 = vpop.eup %5921 }
 0x63b   :  { %v5924_v41 = vpop.eup %5923  ;;  %v3767_v5 = vmul.f32 %v5922_v22, %v6664_v6  ;;  %v3849_v22 = vld [vmem:[#allocation10 + $0x1a0] sm:$0xff] }
 0x658   :  { %v3645_v7 = vpop.f32.mrf.mxu0  ;;  %v3716_v55 = vpop.f32.mrf.mxu1 }
 0x659   :  { %v3725_v59 = vadd.f32 %v3645_v7, %v507_v31  ;;  %v3727_v62 = vadd.f32 %v3716_v55, %v620_v33  ;;  %v3881_v31 = vld [vmem:[#allocation10 + $0x2a0] sm:$0xff]  ;;  %v3883_v33 = vld [vmem:[#allocation10 + $0x2b0] sm:$0xff] }
 0x65a   :  { %v3647_v61 = vpop.f32.mrf.mxu0  ;;  %v3718_v29 = vpop.f32.mrf.mxu1  ;;  %v3873_v7 = vld [vmem:[#allocation10 + $0x260] sm:$0xff]  ;;  %v3875_v55 = vld [vmem:[#allocation10 + $0x270] sm:$0xff] }
 0x65b   :  { %5925 = vtanh.f32 %v3725_v59  ;;  %v5749_v30 = vmul.f32 -1.442695, %v3727_v62  ;;  %v3726_v58 = vadd.f32 %v3647_v61, %v509_v45  ;;  %v3728_v38 = vadd.f32 %v3718_v29, %v622_v56  ;;  %v3874_v45 = vld [vmem:[#allocation10 + $0x268] sm:$0xff]  ;;  %v3868_v59 = vld [vmem:[#allocation10 + $0x238] sm:$0xff]  ;;  %v3865_v62 = vld [vmem:[#allocation10 + $0x220] sm:$0xff] }
 0x65c   :  { %5927 = vrcp.f32 %v3748_v46  ;;  %v3876_v46 = vld [vmem:[#allocation10 + $0x278] sm:$0xff]  ;;  %v3866_v56 = vld [vmem:[#allocation10 + $0x228] sm:$0xff]  ;;  %v3867_v61 = vld [vmem:[#allocation10 + $0x230] sm:$0xff] }
 0x65d   :  { %5929 = vpow2.f32 %v5749_v30  ;;  %v5750_v39 = vmul.f32 -1.442695, %v3728_v38  ;;  %v3858_v29 = vld [vmem:[#allocation10 + $0x1e8] sm:$0xff]  ;;  %v3860_v30 = vld [vmem:[#allocation10 + $0x1f8] sm:$0xff]  ;;  %v3859_v38 = vld [vmem:[#allocation10 + $0x1f0] sm:$0xff] }
 0x65e   :  { %5931 = vtanh.f32 %v3726_v58  ;;  %v3857_v58 = vld [vmem:[#allocation10 + $0x1e0] sm:$0xff] }
 0x65f   :  { %5933 = vpow2.f32 %v5750_v39  ;;  %v3850_v39 = vld [vmem:[#allocation10 + $0x1a8] sm:$0xff] }
 0x668   :  { %v5926_v8 = vpop.eup %5925 }
 0x669   :  { %v5928_v43 = vpop.eup %5927  ;;  %v3769_v27 = vmul.f32 %v5926_v8, %v5920_v44  ;;  %v3852_v44 = vld [vmem:[#allocation10 + $0x1b8] sm:$0xff]  ;;  %v3842_v8 = vld [vmem:[#allocation10 + $0x168] sm:$0xff] }
 0x66a   :  { %v5930_v32 = vpop.eup %5929  ;;  %v3768_v12 = vmul.f32 %v5928_v43, %v6668_v50  ;;  %v3921_v50 = vld [vmem:[#allocation10 + $0x3e0] sm:$0xff]  ;;  %v3844_v43 = vld [vmem:[#allocation10 + $0x178] sm:$0xff] }
 0x66b   :  { %v5932_v9 = vpop.eup %5931  ;;  %v6691_v19 = vadd.f32 %v3769_v27, %v3767_v5  ;;  %v3761_v23 = vadd.f32 1.0, %v5930_v32  ;;  %v3841_v5 = vld [vmem:[#allocation10 + $0x160] sm:$0xff]  ;;  %v3843_v27 = vld [vmem:[#allocation10 + $0x170] sm:$0xff]  ;;  %v3834_v32 = vld [vmem:[#allocation10 + $0x128] sm:$0xff] }
 0x66c   :  { %v5934_v24 = vpop.eup %5933  ;;  %v3770_v15 = vmul.f32 %v5932_v9, %v5924_v41  ;;  %v3851_v41 = vld [vmem:[#allocation10 + $0x1b0] sm:$0xff]  ;;  %v3836_v9 = vld [vmem:[#allocation10 + $0x138] sm:$0xff] }
 0x66d   :  { %5935 = vtanh.f32 %v6691_v19  ;;  %v3762_v16 = vadd.f32 1.0, %v5934_v24  ;;  %v3835_v24 = vld [vmem:[#allocation10 + $0x130] sm:$0xff] }
 0x66e   :  { %5937 = vrcp.f32 %v3761_v23  ;;  %v6695_v63 = vadd.f32 %v3770_v15, %v3768_v12  ;;  %v3833_v23 = vld [vmem:[#allocation10 + $0x120] sm:$0xff]  ;;  %v3826_v12 = vld [vmem:[#allocation10 + $0xe8] sm:$0xff]  ;;  %v3828_v15 = vld [vmem:[#allocation10 + $0xf8] sm:$0xff] }
 0x66f   :  { %5939 = vrcp.f32 %v3762_v16  ;;  %v3825_v16 = vld [vmem:[#allocation10 + $0xe0] sm:$0xff] }
 0x670   :  { %5941 = vtanh.f32 %v6695_v63 }
 0x67a   :  { %v5936_v6 = vpop.eup %5935 }
 0x67b   :  { %v5938_v3 = vpop.eup %5937 }
 0x67c   :  { %v5940_v51 = vpop.eup %5939  ;;  %v6698_v57 = vmul.f32 %v5938_v3, %v5936_v6  ;;  %v3827_v6 = vld [vmem:[#allocation10 + $0xf0] sm:$0xff]  ;;  %v3818_v3 = vld [vmem:[#allocation10 + $0xa8] sm:$0xff] }
 0x67d   :  { %v5942_v0 = vpop.eup %5941 }
 0x67e   :  { %v3776_v53 = vmul.f32 %v5942_v0, %v5940_v51  ;;  %3782 = vst [vmem:[#allocation13 + $0x40] sm:$0xff] %v6698_v57  ;;  %v3820_v51 = vld [vmem:[#allocation10 + $0xb8] sm:$0xff]  ;;  %v3817_v0 = vld [vmem:[#allocation10 + $0xa0] sm:$0xff] }
 0x680   :  { %3783 = vst [vmem:[#allocation13 + $0x48] sm:$0xff] %v3776_v53  ;;  %4117 = vmatprep.mubr.f32.mxu0 %v3776_v53  ;;  %4188 = vmatprep.mubr.f32.mxu1 %v3776_v53 }
 0x681   :  { %4118 = vmatmul.mubr.f32.vlgmr.msra.gmra.mxu0 %v6698_v57  ;;  %4189 = vmatmul.mubr.f32.vlgmr.msra.gmra.mxu1 %v6698_v57 }
 0x682   :  { %4196 = vmatpush1.msra.mxu0 %v3921_v50  ;;  %4267 = vmatpush1.msra.mxu1 %v3923_v20  ;;  %v3810_v50 = vld [vmem:[#allocation10 + $0x68] sm:$0xff]  ;;  %v3812_v20 = vld [vmem:[#allocation10 + $0x78] sm:$0xff] }
 0x683   :  { %4197 = vmatprep.subr.mxu0 %v3914_v4  ;;  %4259 = vmatprep.mubr.f32.mxu0 %v3776_v53  ;;  %v3809_v4 = vld [vmem:[#allocation10 + $0x60] sm:$0xff] }
 0x684   :  { %4268 = vmatprep.subr.mxu1 %v3916_v21  ;;  %4330 = vmatprep.mubr.f32.mxu1 %v3776_v53  ;;  %v3819_v53 = vld [vmem:[#allocation10 + $0xb0] sm:$0xff] }
 0x685   :  { %4198 = vmatpush1.msra.mxu0 %v3913_v25  ;;  %4269 = vmatpush1.msra.mxu1 %v3915_v17  ;;  %v3811_v21 = vld [vmem:[#allocation10 + $0x70] sm:$0xff]  ;;  %v3802_v25 = vld [vmem:[#allocation10 + $0x28] sm:$0xff]  ;;  %v3804_v17 = vld [vmem:[#allocation10 + $0x38] sm:$0xff] }
 0x686   :  { %4199 = vmatprep.subr.mxu0 %v3906_v18  ;;  %4270 = vmatprep.subr.mxu1 %v3908_v10  ;;  %v3801_v18 = vld [vmem:[#allocation10 + $0x20] sm:$0xff]  ;;  %v3803_v10 = vld [vmem:[#allocation10 + $0x30] sm:$0xff] }
 0x687   :  { %4200 = vmatpush1.msra.mxu0 %v3905_v54  ;;  %4271 = vmatpush1.msra.mxu1 %v3907_v26  ;;  %v4050_v54 = vld [vmem:[#allocation10 + $0x7e8] sm:$0xff]  ;;  %v4052_v26 = vld [vmem:[#allocation10 + $0x7f8] sm:$0xff] }
 0x688   :  { %4201 = vmatprep.subr.mxu0 %v3898_v11  ;;  %4272 = vmatprep.subr.mxu1 %v3900_v13  ;;  %v4049_v11 = vld [vmem:[#allocation10 + $0x7e0] sm:$0xff]  ;;  %v4051_v13 = vld [vmem:[#allocation10 + $0x7f0] sm:$0xff] }
 0x689   :  { %4202 = vmatpush1.msra.mxu0 %v3897_v35  ;;  %4273 = vmatpush1.msra.mxu1 %v3899_v60  ;;  %v4042_v35 = vld [vmem:[#allocation10 + $0x7a8] sm:$0xff]  ;;  %v4044_v60 = vld [vmem:[#allocation10 + $0x7b8] sm:$0xff] }
 0x68a   :  { %4203 = vmatprep.subr.mxu0 %v3890_v42  ;;  %4274 = vmatprep.subr.mxu1 %v3892_v14  ;;  %v4041_v42 = vld [vmem:[#allocation10 + $0x7a0] sm:$0xff]  ;;  %v4043_v14 = vld [vmem:[#allocation10 + $0x7b0] sm:$0xff] }
 0x68b   :  { %4204 = vmatpush1.msra.mxu0 %v3889_v52  ;;  %4275 = vmatpush1.msra.mxu1 %v3891_v37  ;;  %v4034_v52 = vld [vmem:[#allocation10 + $0x768] sm:$0xff]  ;;  %v4036_v37 = vld [vmem:[#allocation10 + $0x778] sm:$0xff] }
 0x68c   :  { %4205 = vmatprep.subr.mxu0 %v3882_v47  ;;  %4276 = vmatprep.subr.mxu1 %v3884_v28  ;;  %v4033_v47 = vld [vmem:[#allocation10 + $0x760] sm:$0xff]  ;;  %v4035_v28 = vld [vmem:[#allocation10 + $0x770] sm:$0xff] }
 0x68d   :  { %4206 = vmatpush1.msra.mxu0 %v3881_v31  ;;  %4277 = vmatpush1.msra.mxu1 %v3883_v33  ;;  %v4026_v31 = vld [vmem:[#allocation10 + $0x728] sm:$0xff]  ;;  %v4028_v33 = vld [vmem:[#allocation10 + $0x738] sm:$0xff] }
 0x68e   :  { %4207 = vmatprep.subr.mxu0 %v3874_v45  ;;  %4278 = vmatprep.subr.mxu1 %v3876_v46  ;;  %v4025_v45 = vld [vmem:[#allocation10 + $0x720] sm:$0xff]  ;;  %v4027_v46 = vld [vmem:[#allocation10 + $0x730] sm:$0xff] }
 0x68f   :  { %4208 = vmatpush1.msra.mxu0 %v3873_v7  ;;  %4279 = vmatpush1.msra.mxu1 %v3875_v55  ;;  %v4018_v7 = vld [vmem:[#allocation10 + $0x6e8] sm:$0xff]  ;;  %v4020_v55 = vld [vmem:[#allocation10 + $0x6f8] sm:$0xff] }
 0x690   :  { %4209 = vmatprep.subr.mxu0 %v3866_v56  ;;  %4280 = vmatprep.subr.mxu1 %v3868_v59  ;;  %v4017_v56 = vld [vmem:[#allocation10 + $0x6e0] sm:$0xff]  ;;  %v4019_v59 = vld [vmem:[#allocation10 + $0x6f0] sm:$0xff] }
 0x691   :  { %4210 = vmatpush1.msra.mxu0 %v3865_v62  ;;  %4281 = vmatpush1.msra.mxu1 %v3867_v61  ;;  %v4010_v62 = vld [vmem:[#allocation10 + $0x6a8] sm:$0xff]  ;;  %v4012_v61 = vld [vmem:[#allocation10 + $0x6b8] sm:$0xff] }
 0x692   :  { %4211 = vmatprep.subr.mxu0 %v3858_v29  ;;  %4282 = vmatprep.subr.mxu1 %v3860_v30  ;;  %v4009_v29 = vld [vmem:[#allocation10 + $0x6a0] sm:$0xff]  ;;  %v4011_v30 = vld [vmem:[#allocation10 + $0x6b0] sm:$0xff] }
 0x693   :  { %4212 = vmatpush1.msra.mxu0 %v3857_v58  ;;  %4283 = vmatpush1.msra.mxu1 %v3859_v38  ;;  %v4002_v58 = vld [vmem:[#allocation10 + $0x668] sm:$0xff]  ;;  %v4004_v38 = vld [vmem:[#allocation10 + $0x678] sm:$0xff] }
 0x694   :  { %4213 = vmatprep.subr.mxu0 %v3850_v39  ;;  %4284 = vmatprep.subr.mxu1 %v3852_v44  ;;  %v4001_v39 = vld [vmem:[#allocation10 + $0x660] sm:$0xff]  ;;  %v4003_v44 = vld [vmem:[#allocation10 + $0x670] sm:$0xff] }
 0x695   :  { %4214 = vmatpush1.msra.mxu0 %v3849_v22  ;;  %4285 = vmatpush1.msra.mxu1 %v3851_v41  ;;  %v3994_v22 = vld [vmem:[#allocation10 + $0x628] sm:$0xff]  ;;  %v3996_v41 = vld [vmem:[#allocation10 + $0x638] sm:$0xff] }
 0x696   :  { %4215 = vmatprep.subr.mxu0 %v3842_v8  ;;  %4286 = vmatprep.subr.mxu1 %v3844_v43  ;;  %v3993_v8 = vld [vmem:[#allocation10 + $0x620] sm:$0xff]  ;;  %v3995_v43 = vld [vmem:[#allocation10 + $0x630] sm:$0xff] }
 0x697   :  { %4216 = vmatpush1.msra.mxu0 %v3841_v5  ;;  %4287 = vmatpush1.msra.mxu1 %v3843_v27  ;;  %v3986_v5 = vld [vmem:[#allocation10 + $0x5e8] sm:$0xff]  ;;  %v3988_v27 = vld [vmem:[#allocation10 + $0x5f8] sm:$0xff] }
 0x698   :  { %4217 = vmatprep.subr.mxu0 %v3834_v32  ;;  %4288 = vmatprep.subr.mxu1 %v3836_v9  ;;  %v3985_v32 = vld [vmem:[#allocation10 + $0x5e0] sm:$0xff]  ;;  %v3987_v9 = vld [vmem:[#allocation10 + $0x5f0] sm:$0xff] }
 0x699   :  { %4218 = vmatpush1.msra.mxu0 %v3833_v23  ;;  %4289 = vmatpush1.msra.mxu1 %v3835_v24  ;;  %v3978_v23 = vld [vmem:[#allocation10 + $0x5a8] sm:$0xff]  ;;  %v3980_v24 = vld [vmem:[#allocation10 + $0x5b8] sm:$0xff] }
 0x69a   :  { %4219 = vmatprep.subr.mxu0 %v3826_v12  ;;  %4290 = vmatprep.subr.mxu1 %v3828_v15  ;;  %v3977_v12 = vld [vmem:[#allocation10 + $0x5a0] sm:$0xff]  ;;  %v3979_v15 = vld [vmem:[#allocation10 + $0x5b0] sm:$0xff] }
 0x69b   :  { %4220 = vmatpush1.msra.mxu0 %v3825_v16  ;;  %4291 = vmatpush1.msra.mxu1 %v3827_v6  ;;  %v3970_v16 = vld [vmem:[#allocation10 + $0x568] sm:$0xff]  ;;  %v3972_v6 = vld [vmem:[#allocation10 + $0x578] sm:$0xff] }
 0x69c   :  { %4221 = vmatprep.subr.mxu0 %v3818_v3  ;;  %4292 = vmatprep.subr.mxu1 %v3820_v51  ;;  %v3969_v3 = vld [vmem:[#allocation10 + $0x560] sm:$0xff]  ;;  %v3971_v51 = vld [vmem:[#allocation10 + $0x570] sm:$0xff] }
 0x69d   :  { %4222 = vmatpush1.msra.mxu0 %v3817_v0  ;;  %4293 = vmatpush1.msra.mxu1 %v3819_v53  ;;  %v3962_v0 = vld [vmem:[#allocation10 + $0x528] sm:$0xff]  ;;  %v3964_v53 = vld [vmem:[#allocation10 + $0x538] sm:$0xff] }
 0x69e   :  { %4223 = vmatprep.subr.mxu0 %v3810_v50  ;;  %4294 = vmatprep.subr.mxu1 %v3812_v20  ;;  %v3961_v50 = vld [vmem:[#allocation10 + $0x520] sm:$0xff]  ;;  %v3963_v20 = vld [vmem:[#allocation10 + $0x530] sm:$0xff] }
 0x69f   :  { %4224 = vmatpush1.msra.mxu0 %v3809_v4  ;;  %4295 = vmatpush1.msra.mxu1 %v3811_v21  ;;  %v3954_v4 = vld [vmem:[#allocation10 + $0x4e8] sm:$0xff]  ;;  %v3956_v21 = vld [vmem:[#allocation10 + $0x4f8] sm:$0xff] }
 0x6a0   :  { %4225 = vmatprep.subr.mxu0 %v3802_v25  ;;  %4296 = vmatprep.subr.mxu1 %v3804_v17  ;;  %v3953_v25 = vld [vmem:[#allocation10 + $0x4e0] sm:$0xff]  ;;  %v3955_v17 = vld [vmem:[#allocation10 + $0x4f0] sm:$0xff] }
 0x6a1   :  { %4226 = vmatpush1.msra.mxu0 %v3801_v18  ;;  %4297 = vmatpush1.msra.mxu1 %v3803_v10  ;;  %v3946_v18 = vld [vmem:[#allocation10 + $0x4a8] sm:$0xff]  ;;  %v3948_v10 = vld [vmem:[#allocation10 + $0x4b8] sm:$0xff] }
 0x6a2   :  { %4227 = vmatprep.subr.mxu0 %v4050_v54  ;;  %4298 = vmatprep.subr.mxu1 %v4052_v26  ;;  %v3945_v54 = vld [vmem:[#allocation10 + $0x4a0] sm:$0xff]  ;;  %v3947_v26 = vld [vmem:[#allocation10 + $0x4b0] sm:$0xff] }
 0x6a3   :  { %4228 = vmatpush2.msra.mxu0 %v4049_v11  ;;  %4299 = vmatpush2.msra.mxu1 %v4051_v13  ;;  %v3938_v11 = vld [vmem:[#allocation10 + $0x468] sm:$0xff]  ;;  %v3940_v13 = vld [vmem:[#allocation10 + $0x478] sm:$0xff] }
 0x6a4   :  { %4229 = vmatprep.subr.mxu0 %v4042_v35  ;;  %4300 = vmatprep.subr.mxu1 %v4044_v60  ;;  %v3937_v35 = vld [vmem:[#allocation10 + $0x460] sm:$0xff]  ;;  %v3939_v60 = vld [vmem:[#allocation10 + $0x470] sm:$0xff] }
 0x6a5   :  { %4230 = vmatpush2.msra.mxu0 %v4041_v42  ;;  %4301 = vmatpush2.msra.mxu1 %v4043_v14  ;;  %v3930_v42 = vld [vmem:[#allocation10 + $0x428] sm:$0xff]  ;;  %v3932_v14 = vld [vmem:[#allocation10 + $0x438] sm:$0xff] }
 0x6a6   :  { %4231 = vmatprep.subr.mxu0 %v4034_v52  ;;  %4302 = vmatprep.subr.mxu1 %v4036_v37  ;;  %v3929_v52 = vld [vmem:[#allocation10 + $0x420] sm:$0xff]  ;;  %v3931_v37 = vld [vmem:[#allocation10 + $0x430] sm:$0xff] }
 0x6a7   :  { %4232 = vmatpush2.msra.mxu0 %v4033_v47  ;;  %4303 = vmatpush2.msra.mxu1 %v4035_v28  ;;  %v4534_v47 = vld [vmem:[#allocation10 + $0x3c8] sm:$0xff]  ;;  %v4536_v28 = vld [vmem:[#allocation10 + $0x3d8] sm:$0xff] }
 0x6a8   :  { %4233 = vmatprep.subr.mxu0 %v4026_v31  ;;  %4304 = vmatprep.subr.mxu1 %v4028_v33  ;;  %v4533_v31 = vld [vmem:[#allocation10 + $0x3c0] sm:$0xff]  ;;  %v4535_v33 = vld [vmem:[#allocation10 + $0x3d0] sm:$0xff] }
 0x6a9   :  { %4234 = vmatpush2.msra.mxu0 %v4025_v45  ;;  %4305 = vmatpush2.msra.mxu1 %v4027_v46  ;;  %v4526_v45 = vld [vmem:[#allocation10 + $0x388] sm:$0xff]  ;;  %v4528_v46 = vld [vmem:[#allocation10 + $0x398] sm:$0xff] }
 0x6aa   :  { %4235 = vmatprep.subr.mxu0 %v4018_v7  ;;  %4306 = vmatprep.subr.mxu1 %v4020_v55  ;;  %v4525_v7 = vld [vmem:[#allocation10 + $0x380] sm:$0xff]  ;;  %v4527_v55 = vld [vmem:[#allocation10 + $0x390] sm:$0xff] }
 0x6ab   :  { %4236 = vmatpush2.msra.mxu0 %v4017_v56  ;;  %4307 = vmatpush2.msra.mxu1 %v4019_v59  ;;  %v4518_v56 = vld [vmem:[#allocation10 + $0x348] sm:$0xff]  ;;  %v4520_v59 = vld [vmem:[#allocation10 + $0x358] sm:$0xff] }
 0x6ac   :  { %4237 = vmatprep.subr.mxu0 %v4010_v62  ;;  %4308 = vmatprep.subr.mxu1 %v4012_v61  ;;  %v4517_v62 = vld [vmem:[#allocation10 + $0x340] sm:$0xff]  ;;  %v4519_v61 = vld [vmem:[#allocation10 + $0x350] sm:$0xff] }
 0x6ad   :  { %4238 = vmatpush2.msra.mxu0 %v4009_v29  ;;  %4309 = vmatpush2.msra.mxu1 %v4011_v30  ;;  %v4512_v29 = vld [vmem:[#allocation10 + $0x318] sm:$0xff]  ;;  %v4509_v30 = vld [vmem:[#allocation10 + $0x300] sm:$0xff] }
 0x6ae   :  { %4239 = vmatprep.subr.mxu0 %v4002_v58  ;;  %4310 = vmatprep.subr.mxu1 %v4004_v38  ;;  %v4511_v58 = vld [vmem:[#allocation10 + $0x310] sm:$0xff]  ;;  %v4502_v38 = vld [vmem:[#allocation10 + $0x2c8] sm:$0xff] }
 0x6af   :  { %4240 = vmatpush2.msra.mxu0 %v4001_v39  ;;  %4311 = vmatpush2.msra.mxu1 %v4003_v44  ;;  %v4504_v39 = vld [vmem:[#allocation10 + $0x2d8] sm:$0xff]  ;;  %v4501_v44 = vld [vmem:[#allocation10 + $0x2c0] sm:$0xff] }
 0x6b0   :  { %4241 = vmatprep.subr.mxu0 %v3994_v22  ;;  %4312 = vmatprep.subr.mxu1 %v3996_v41  ;;  %v4503_v22 = vld [vmem:[#allocation10 + $0x2d0] sm:$0xff]  ;;  %v4494_v41 = vld [vmem:[#allocation10 + $0x288] sm:$0xff] }
 0x6b1   :  { %4242 = vmatpush2.msra.mxu0 %v3993_v8  ;;  %4313 = vmatpush2.msra.mxu1 %v3995_v43  ;;  %v4496_v8 = vld [vmem:[#allocation10 + $0x298] sm:$0xff]  ;;  %v4493_v43 = vld [vmem:[#allocation10 + $0x280] sm:$0xff] }
 0x6b2   :  { %4243 = vmatprep.subr.mxu0 %v3986_v5  ;;  %4314 = vmatprep.subr.mxu1 %v3988_v27  ;;  %v4495_v5 = vld [vmem:[#allocation10 + $0x290] sm:$0xff]  ;;  %v4486_v27 = vld [vmem:[#allocation10 + $0x248] sm:$0xff] }
 0x6b3   :  { %4244 = vmatpush2.msra.mxu0 %v3985_v32  ;;  %4315 = vmatpush2.msra.mxu1 %v3987_v9  ;;  %v4488_v32 = vld [vmem:[#allocation10 + $0x258] sm:$0xff]  ;;  %v4485_v9 = vld [vmem:[#allocation10 + $0x240] sm:$0xff] }
 0x6b4   :  { %4245 = vmatprep.subr.mxu0 %v3978_v23  ;;  %4316 = vmatprep.subr.mxu1 %v3980_v24  ;;  %v4487_v23 = vld [vmem:[#allocation10 + $0x250] sm:$0xff]  ;;  %v4478_v24 = vld [vmem:[#allocation10 + $0x208] sm:$0xff] }
 0x6b5   :  { %4246 = vmatpush2.msra.mxu0 %v3977_v12  ;;  %4317 = vmatpush2.msra.mxu1 %v3979_v15  ;;  %v4480_v12 = vld [vmem:[#allocation10 + $0x218] sm:$0xff]  ;;  %v4477_v15 = vld [vmem:[#allocation10 + $0x200] sm:$0xff] }
 0x6b6   :  { %4247 = vmatprep.subr.mxu0 %v3970_v16  ;;  %4318 = vmatprep.subr.mxu1 %v3972_v6  ;;  %v4479_v16 = vld [vmem:[#allocation10 + $0x210] sm:$0xff]  ;;  %v4470_v6 = vld [vmem:[#allocation10 + $0x1c8] sm:$0xff] }
 0x6b7   :  { %4248 = vmatpush2.msra.mxu0 %v3969_v3  ;;  %4319 = vmatpush2.msra.mxu1 %v3971_v51  ;;  %v4472_v3 = vld [vmem:[#allocation10 + $0x1d8] sm:$0xff]  ;;  %v4469_v51 = vld [vmem:[#allocation10 + $0x1c0] sm:$0xff] }
 0x6b8   :  { %4249 = vmatprep.subr.mxu0 %v3962_v0  ;;  %4320 = vmatprep.subr.mxu1 %v3964_v53  ;;  %v4471_v0 = vld [vmem:[#allocation10 + $0x1d0] sm:$0xff]  ;;  %v4462_v53 = vld [vmem:[#allocation10 + $0x188] sm:$0xff] }
 0x6b9   :  { %4250 = vmatpush2.msra.mxu0 %v3961_v50  ;;  %4321 = vmatpush2.msra.mxu1 %v3963_v20  ;;  %v4464_v50 = vld [vmem:[#allocation10 + $0x198] sm:$0xff]  ;;  %v4461_v20 = vld [vmem:[#allocation10 + $0x180] sm:$0xff] }
 0x6ba   :  { %4251 = vmatprep.subr.mxu0 %v3954_v4  ;;  %4322 = vmatprep.subr.mxu1 %v3956_v21  ;;  %v4463_v4 = vld [vmem:[#allocation10 + $0x190] sm:$0xff]  ;;  %v4454_v21 = vld [vmem:[#allocation10 + $0x148] sm:$0xff] }
 0x6bb   :  { %4252 = vmatpush2.msra.mxu0 %v3953_v25  ;;  %4323 = vmatpush2.msra.mxu1 %v3955_v17  ;;  %v4456_v25 = vld [vmem:[#allocation10 + $0x158] sm:$0xff]  ;;  %v4453_v17 = vld [vmem:[#allocation10 + $0x140] sm:$0xff] }
 0x6bc   :  { %4253 = vmatprep.subr.mxu0 %v3946_v18  ;;  %4324 = vmatprep.subr.mxu1 %v3948_v10  ;;  %v4455_v18 = vld [vmem:[#allocation10 + $0x150] sm:$0xff]  ;;  %v4446_v10 = vld [vmem:[#allocation10 + $0x108] sm:$0xff] }
 0x6bd   :  { %4254 = vmatpush2.msra.mxu0 %v3945_v54  ;;  %4325 = vmatpush2.msra.mxu1 %v3947_v26  ;;  %v4448_v54 = vld [vmem:[#allocation10 + $0x118] sm:$0xff]  ;;  %v4445_v26 = vld [vmem:[#allocation10 + $0x100] sm:$0xff] }
 0x6be   :  { %4255 = vmatprep.subr.mxu0 %v3938_v11  ;;  %4326 = vmatprep.subr.mxu1 %v3940_v13  ;;  %v4447_v11 = vld [vmem:[#allocation10 + $0x110] sm:$0xff]  ;;  %v4438_v13 = vld [vmem:[#allocation10 + $0xc8] sm:$0xff] }
 0x6bf   :  { %4256 = vmatpush2.msra.mxu0 %v3937_v35  ;;  %4327 = vmatpush2.msra.mxu1 %v3939_v60  ;;  %v4440_v35 = vld [vmem:[#allocation10 + $0xd8] sm:$0xff]  ;;  %v4437_v60 = vld [vmem:[#allocation10 + $0xc0] sm:$0xff] }
 0x6c0   :  { %4257 = vmatprep.subr.mxu0 %v3930_v42  ;;  %4328 = vmatprep.subr.mxu1 %v3932_v14  ;;  %v4439_v42 = vld [vmem:[#allocation10 + $0xd0] sm:$0xff]  ;;  %v4430_v14 = vld [vmem:[#allocation10 + $0x88] sm:$0xff] }
 0x6c1   :  { %4258 = vmatpush2.msra.mxu0 %v3929_v52  ;;  %4329 = vmatpush2.msra.mxu1 %v3931_v37  ;;  %v4432_v52 = vld [vmem:[#allocation10 + $0x98] sm:$0xff]  ;;  %v4429_v37 = vld [vmem:[#allocation10 + $0x80] sm:$0xff] }
 0x6c2   :  { %4260 = vmatmul.mubr.f32.vlgmr.msra.gmra.mxu0 %v6698_v57  ;;  %4331 = vmatmul.mubr.f32.vlgmr.msra.gmra.mxu1 %v6698_v57  ;;  %v4510_v57 = vld [vmem:[#allocation10 + $0x308] sm:$0xff] }
 0x6c3   :  { %4669 = vmatprep.subr.mxu0 %v4534_v47  ;;  %4740 = vmatprep.subr.mxu1 %v4536_v28  ;;  %v4431_v47 = vld [vmem:[#allocation10 + $0x90] sm:$0xff]  ;;  %v4422_v28 = vld [vmem:[#allocation10 + $0x48] sm:$0xff] }
 0x6c4   :  { %4670 = vmatpush1.msra.mxu0 %v4533_v31  ;;  %4741 = vmatpush1.msra.mxu1 %v4535_v33  ;;  %v4424_v31 = vld [vmem:[#allocation10 + $0x58] sm:$0xff]  ;;  %v4421_v33 = vld [vmem:[#allocation10 + $0x40] sm:$0xff] }
 0x6c5   :  { %4671 = vmatprep.subr.mxu0 %v4526_v45  ;;  %4742 = vmatprep.subr.mxu1 %v4528_v46  ;;  %v4423_v45 = vld [vmem:[#allocation10 + $0x50] sm:$0xff]  ;;  %v4414_v46 = vld [vmem:[#allocation10 + $0x8] sm:$0xff] }
 0x6c6   :  { %4672 = vmatpush1.msra.mxu0 %v4525_v7  ;;  %4743 = vmatpush1.msra.mxu1 %v4527_v55  ;;  %v4416_v7 = vld [vmem:[#allocation10 + $0x18] sm:$0xff]  ;;  %v4413_v55 = vld [vmem:[#allocation10] sm:$0xff] }
 0x6c7   :  { %4673 = vmatprep.subr.mxu0 %v4518_v56  ;;  %4744 = vmatprep.subr.mxu1 %v4520_v59  ;;  %v4415_v56 = vld [vmem:[#allocation10 + $0x10] sm:$0xff]  ;;  %v4662_v59 = vld [vmem:[#allocation10 + $0x7c8] sm:$0xff] }
 0x6c8   :  { %4674 = vmatpush1.msra.mxu0 %v4517_v62  ;;  %4745 = vmatpush1.msra.mxu1 %v4519_v61  ;;  %v4664_v62 = vld [vmem:[#allocation10 + $0x7d8] sm:$0xff]  ;;  %v4661_v61 = vld [vmem:[#allocation10 + $0x7c0] sm:$0xff] }
 0x6c9   :  { %4675 = vmatprep.subr.mxu0 %v4510_v57  ;;  %4746 = vmatprep.subr.mxu1 %v4512_v29  ;;  %v4663_v57 = vld [vmem:[#allocation10 + $0x7d0] sm:$0xff]  ;;  %v4654_v29 = vld [vmem:[#allocation10 + $0x788] sm:$0xff] }
 0x6ca   :  { %4676 = vmatpush1.msra.mxu0 %v4509_v30  ;;  %4747 = vmatpush1.msra.mxu1 %v4511_v58  ;;  %v4656_v30 = vld [vmem:[#allocation10 + $0x798] sm:$0xff]  ;;  %v4653_v58 = vld [vmem:[#allocation10 + $0x780] sm:$0xff] }
 0x6cb   :  { %4677 = vmatprep.subr.mxu0 %v4502_v38  ;;  %4748 = vmatprep.subr.mxu1 %v4504_v39  ;;  %v4655_v38 = vld [vmem:[#allocation10 + $0x790] sm:$0xff]  ;;  %v4646_v39 = vld [vmem:[#allocation10 + $0x748] sm:$0xff] }
 0x6cc   :  { %4678 = vmatpush1.msra.mxu0 %v4501_v44  ;;  %4749 = vmatpush1.msra.mxu1 %v4503_v22  ;;  %v4648_v44 = vld [vmem:[#allocation10 + $0x758] sm:$0xff]  ;;  %v4645_v22 = vld [vmem:[#allocation10 + $0x740] sm:$0xff] }
 0x6cd   :  { %4679 = vmatprep.subr.mxu0 %v4494_v41  ;;  %4750 = vmatprep.subr.mxu1 %v4496_v8  ;;  %v4647_v41 = vld [vmem:[#allocation10 + $0x750] sm:$0xff]  ;;  %v4638_v8 = vld [vmem:[#allocation10 + $0x708] sm:$0xff] }
 0x6ce   :  { %4680 = vmatpush1.msra.mxu0 %v4493_v43  ;;  %4751 = vmatpush1.msra.mxu1 %v4495_v5  ;;  %v4640_v43 = vld [vmem:[#allocation10 + $0x718] sm:$0xff]  ;;  %v4637_v5 = vld [vmem:[#allocation10 + $0x700] sm:$0xff] }
 0x6cf   :  { %4681 = vmatprep.subr.mxu0 %v4486_v27  ;;  %4752 = vmatprep.subr.mxu1 %v4488_v32  ;;  %v4639_v27 = vld [vmem:[#allocation10 + $0x710] sm:$0xff]  ;;  %v4630_v32 = vld [vmem:[#allocation10 + $0x6c8] sm:$0xff] }
 0x6d0   :  { %4682 = vmatpush1.msra.mxu0 %v4485_v9  ;;  %4753 = vmatpush1.msra.mxu1 %v4487_v23  ;;  %v4632_v9 = vld [vmem:[#allocation10 + $0x6d8] sm:$0xff]  ;;  %v4629_v23 = vld [vmem:[#allocation10 + $0x6c0] sm:$0xff] }
 0x6d1   :  { %4683 = vmatprep.subr.mxu0 %v4478_v24  ;;  %4754 = vmatprep.subr.mxu1 %v4480_v12  ;;  %v4631_v24 = vld [vmem:[#allocation10 + $0x6d0] sm:$0xff]  ;;  %v4622_v12 = vld [vmem:[#allocation10 + $0x688] sm:$0xff] }
 0x6d2   :  { %4684 = vmatpush1.msra.mxu0 %v4477_v15  ;;  %4755 = vmatpush1.msra.mxu1 %v4479_v16  ;;  %v4624_v15 = vld [vmem:[#allocation10 + $0x698] sm:$0xff]  ;;  %v4621_v16 = vld [vmem:[#allocation10 + $0x680] sm:$0xff] }
 0x6d3   :  { %4685 = vmatprep.subr.mxu0 %v4470_v6  ;;  %4756 = vmatprep.subr.mxu1 %v4472_v3  ;;  %v4623_v6 = vld [vmem:[#allocation10 + $0x690] sm:$0xff]  ;;  %v4614_v3 = vld [vmem:[#allocation10 + $0x648] sm:$0xff] }
 0x6d4   :  { %4686 = vmatpush1.msra.mxu0 %v4469_v51  ;;  %4757 = vmatpush1.msra.mxu1 %v4471_v0  ;;  %v4616_v51 = vld [vmem:[#allocation10 + $0x658] sm:$0xff]  ;;  %v4613_v0 = vld [vmem:[#allocation10 + $0x640] sm:$0xff] }
 0x6d5   :  { %4687 = vmatprep.subr.mxu0 %v4462_v53  ;;  %4758 = vmatprep.subr.mxu1 %v4464_v50  ;;  %v4615_v53 = vld [vmem:[#allocation10 + $0x650] sm:$0xff]  ;;  %v4606_v50 = vld [vmem:[#allocation10 + $0x608] sm:$0xff] }
 0x6d6   :  { %4688 = vmatpush1.msra.mxu0 %v4461_v20  ;;  %4759 = vmatpush1.msra.mxu1 %v4463_v4  ;;  %v4608_v20 = vld [vmem:[#allocation10 + $0x618] sm:$0xff]  ;;  %v4605_v4 = vld [vmem:[#allocation10 + $0x600] sm:$0xff] }
 0x6d7   :  { %4689 = vmatprep.subr.mxu0 %v4454_v21  ;;  %4760 = vmatprep.subr.mxu1 %v4456_v25  ;;  %v4607_v21 = vld [vmem:[#allocation10 + $0x610] sm:$0xff]  ;;  %v4598_v25 = vld [vmem:[#allocation10 + $0x5c8] sm:$0xff] }
 0x6d8   :  { %4690 = vmatpush1.msra.mxu0 %v4453_v17  ;;  %4761 = vmatpush1.msra.mxu1 %v4455_v18  ;;  %v4600_v17 = vld [vmem:[#allocation10 + $0x5d8] sm:$0xff]  ;;  %v4597_v18 = vld [vmem:[#allocation10 + $0x5c0] sm:$0xff] }
 0x6d9   :  { %4691 = vmatprep.subr.mxu0 %v4446_v10  ;;  %4762 = vmatprep.subr.mxu1 %v4448_v54  ;;  %v4599_v10 = vld [vmem:[#allocation10 + $0x5d0] sm:$0xff]  ;;  %v4590_v54 = vld [vmem:[#allocation10 + $0x588] sm:$0xff] }
 0x6da   :  { %4692 = vmatpush1.msra.mxu0 %v4445_v26  ;;  %4763 = vmatpush1.msra.mxu1 %v4447_v11  ;;  %v4592_v26 = vld [vmem:[#allocation10 + $0x598] sm:$0xff]  ;;  %v4589_v11 = vld [vmem:[#allocation10 + $0x580] sm:$0xff] }
 0x6db   :  { %4693 = vmatprep.subr.mxu0 %v4438_v13  ;;  %4764 = vmatprep.subr.mxu1 %v4440_v35  ;;  %v4591_v13 = vld [vmem:[#allocation10 + $0x590] sm:$0xff]  ;;  %v4582_v35 = vld [vmem:[#allocation10 + $0x548] sm:$0xff] }
 0x6dc   :  { %4694 = vmatpush1.msra.mxu0 %v4437_v60  ;;  %4765 = vmatpush1.msra.mxu1 %v4439_v42  ;;  %v4584_v60 = vld [vmem:[#allocation10 + $0x558] sm:$0xff]  ;;  %v4581_v42 = vld [vmem:[#allocation10 + $0x540] sm:$0xff] }
 0x6dd   :  { %4695 = vmatprep.subr.mxu0 %v4430_v14  ;;  %4766 = vmatprep.subr.mxu1 %v4432_v52  ;;  %v4583_v14 = vld [vmem:[#allocation10 + $0x550] sm:$0xff]  ;;  %v4574_v52 = vld [vmem:[#allocation10 + $0x508] sm:$0xff] }
 0x6de   :  { %4696 = vmatpush1.msra.mxu0 %v4429_v37  ;;  %4767 = vmatpush1.msra.mxu1 %v4431_v47  ;;  %v4576_v37 = vld [vmem:[#allocation10 + $0x518] sm:$0xff]  ;;  %v4573_v47 = vld [vmem:[#allocation10 + $0x500] sm:$0xff] }
 0x6df   :  { %4697 = vmatprep.subr.mxu0 %v4422_v28  ;;  %4768 = vmatprep.subr.mxu1 %v4424_v31  ;;  %v4575_v28 = vld [vmem:[#allocation10 + $0x510] sm:$0xff]  ;;  %v4566_v31 = vld [vmem:[#allocation10 + $0x4c8] sm:$0xff] }
 0x6e0   :  { %4698 = vmatpush1.msra.mxu0 %v4421_v33  ;;  %4769 = vmatpush1.msra.mxu1 %v4423_v45  ;;  %v4568_v33 = vld [vmem:[#allocation10 + $0x4d8] sm:$0xff]  ;;  %v4565_v45 = vld [vmem:[#allocation10 + $0x4c0] sm:$0xff] }
 0x6e1   :  { %4699 = vmatprep.subr.mxu0 %v4414_v46  ;;  %4770 = vmatprep.subr.mxu1 %v4416_v7  ;;  %v4567_v46 = vld [vmem:[#allocation10 + $0x4d0] sm:$0xff]  ;;  %v4558_v7 = vld [vmem:[#allocation10 + $0x488] sm:$0xff] }
 0x6e2   :  { %4700 = vmatpush1.msra.mxu0 %v4413_v55  ;;  %4771 = vmatpush1.msra.mxu1 %v4415_v56  ;;  %v4560_v55 = vld [vmem:[#allocation10 + $0x498] sm:$0xff]  ;;  %v4557_v56 = vld [vmem:[#allocation10 + $0x480] sm:$0xff] }
 0x6e3   :  { %4701 = vmatprep.subr.mxu0 %v4662_v59  ;;  %4772 = vmatprep.subr.mxu1 %v4664_v62  ;;  %v4559_v59 = vld [vmem:[#allocation10 + $0x490] sm:$0xff]  ;;  %v4550_v62 = vld [vmem:[#allocation10 + $0x448] sm:$0xff] }
 0x6e4   :  { %4702 = vmatpush2.msra.mxu0 %v4661_v61  ;;  %4773 = vmatpush2.msra.mxu1 %v4663_v57  ;;  %v4552_v61 = vld [vmem:[#allocation10 + $0x458] sm:$0xff]  ;;  %v4549_v57 = vld [vmem:[#allocation10 + $0x440] sm:$0xff] }
 0x6e5   :  { %4703 = vmatprep.subr.mxu0 %v4654_v29  ;;  %4774 = vmatprep.subr.mxu1 %v4656_v30  ;;  %v4551_v29 = vld [vmem:[#allocation10 + $0x450] sm:$0xff]  ;;  %v4542_v30 = vld [vmem:[#allocation10 + $0x408] sm:$0xff] }
 0x6e6   :  { %4704 = vmatpush2.msra.mxu0 %v4653_v58  ;;  %4775 = vmatpush2.msra.mxu1 %v4655_v38  ;;  %v4544_v58 = vld [vmem:[#allocation10 + $0x418] sm:$0xff]  ;;  %v4541_v38 = vld [vmem:[#allocation10 + $0x400] sm:$0xff] }
 0x6e7   :  { %4705 = vmatprep.subr.mxu0 %v4646_v39  ;;  %4776 = vmatprep.subr.mxu1 %v4648_v44  ;;  %v4543_v39 = vld [vmem:[#allocation10 + $0x410] sm:$0xff]  ;;  %v4538_v44 = vld [vmem:[#allocation10 + $0x3e8] sm:$0xff] }
 0x6e8   :  { %4706 = vmatpush2.msra.mxu0 %v4645_v22  ;;  %4777 = vmatpush2.msra.mxu1 %v4647_v41  ;;  %v4540_v22 = vld [vmem:[#allocation10 + $0x3f8] sm:$0xff] }
 0x6e9   :  { %4707 = vmatprep.subr.mxu0 %v4638_v8  ;;  %4778 = vmatprep.subr.mxu1 %v4640_v43 }
 0x6ea   :  { %4708 = vmatpush2.msra.mxu0 %v4637_v5  ;;  %4779 = vmatpush2.msra.mxu1 %v4639_v27 }
 0x6eb   :  { %4709 = vmatprep.subr.mxu0 %v4630_v32  ;;  %4780 = vmatprep.subr.mxu1 %v4632_v9 }
 0x6ec   :  { %4710 = vmatpush2.msra.mxu0 %v4629_v23  ;;  %4781 = vmatpush2.msra.mxu1 %v4631_v24  ;;  %v6810_v24 = vld [vmem:[#allocation22_spill] sm:$0xff] }
 0x6ed   :  { %4711 = vmatprep.subr.mxu0 %v4622_v12  ;;  %4782 = vmatprep.subr.mxu1 %v4624_v15 }
 0x6ee   :  { %4712 = vmatpush2.msra.mxu0 %v4621_v16  ;;  %4783 = vmatpush2.msra.mxu1 %v4623_v6 }
 0x6ef   :  { %4713 = vmatprep.subr.mxu0 %v4614_v3  ;;  %4784 = vmatprep.subr.mxu1 %v4616_v51 }
 0x6f0   :  { %4714 = vmatpush2.msra.mxu0 %v4613_v0  ;;  %4785 = vmatpush2.msra.mxu1 %v4615_v53 }
 0x6f1   :  { %4715 = vmatprep.subr.mxu0 %v4606_v50  ;;  %4786 = vmatprep.subr.mxu1 %v4608_v20  ;;  %v6811_v20 = vld [vmem:[#allocation31_spill] sm:$0xff] }
 0x6f2   :  { %4716 = vmatpush2.msra.mxu0 %v4605_v4  ;;  %4787 = vmatpush2.msra.mxu1 %v4607_v21  ;;  %v6812_v4 = vld [vmem:[#allocation32_spill] sm:$0xff] }
 0x6f3   :  { %4717 = vmatprep.subr.mxu0 %v4598_v25  ;;  %4788 = vmatprep.subr.mxu1 %v4600_v17  ;;  %v626_v21 = vadd.f32 %v6812_v4, %v6568_v2  ;;  %v6813_v25 = vld [vmem:[#allocation33_spill] sm:$0xff]  ;;  %v4499_v4 = vld [vmem:[#allocation10 + $0x2b0] sm:$0xff] }
 0x6f4   :  { %4718 = vmatpush2.msra.mxu0 %v4597_v18  ;;  %4789 = vmatpush2.msra.mxu1 %v4599_v10  ;;  %v515_v17 = vadd.f32 %v6813_v25, %v6571_v49  ;;  %v4492_v25 = vld [vmem:[#allocation10 + $0x278] sm:$0xff] }
 0x6f5   :  { %4719 = vmatprep.subr.mxu0 %v4590_v54  ;;  %4790 = vmatprep.subr.mxu1 %v4592_v26  ;;  %v6814_v26 = vld [vmem:[#allocation34_spill] sm:$0xff] }
 0x6f6   :  { %4720 = vmatpush2.msra.mxu0 %v4589_v11  ;;  %4791 = vmatpush2.msra.mxu1 %v4591_v13  ;;  %v628_v11 = vadd.f32 %v6814_v26, %v6574_v34  ;;  %v4481_v26 = vld [vmem:[#allocation10 + $0x220] sm:$0xff] }
 0x6f7   :  { %4721 = vmatprep.subr.mxu0 %v4582_v35  ;;  %4792 = vmatprep.subr.mxu1 %v4584_v60 }
 0x6f8   :  { %4722 = vmatpush2.msra.mxu0 %v4581_v42  ;;  %4793 = vmatpush2.msra.mxu1 %v4583_v14 }
 0x6f9   :  { %4723 = vmatprep.subr.mxu0 %v4574_v52  ;;  %4794 = vmatprep.subr.mxu1 %v4576_v37 }
 0x6fa   :  { %4724 = vmatpush2.msra.mxu0 %v4573_v47  ;;  %4795 = vmatpush2.msra.mxu1 %v4575_v28 }
 0x6fb   :  { %4725 = vmatprep.subr.mxu0 %v4566_v31  ;;  %4796 = vmatprep.subr.mxu1 %v4568_v33 }
 0x6fc   :  { %4726 = vmatpush2.msra.mxu0 %v4565_v45  ;;  %4797 = vmatpush2.msra.mxu1 %v4567_v46 }
 0x6fd   :  { %4727 = vmatprep.subr.mxu0 %v4558_v7  ;;  %4798 = vmatprep.subr.mxu1 %v4560_v55 }
 0x6fe   :  { %4728 = vmatpush2.msra.mxu0 %v4557_v56  ;;  %4799 = vmatpush2.msra.mxu1 %v4559_v59 }
 0x6ff   :  { %4729 = vmatprep.subr.mxu0 %v4550_v62  ;;  %4800 = vmatprep.subr.mxu1 %v4552_v61 }
 0x700   :  { %4730 = vmatpush2.msra.mxu0 %v4549_v57  ;;  %4801 = vmatpush2.msra.mxu1 %v4551_v29 }
 0x701   :  { %4731 = vmatprep.subr.mxu0 %v4542_v30  ;;  %4802 = vmatprep.subr.mxu1 %v4544_v58 }
 0x702   :  { %4732 = vmatpush2.msra.mxu0 %v4541_v38  ;;  %4803 = vmatpush2.msra.mxu1 %v4543_v39 }
 0x703   :  { %4811 = vmatprep.subr.mxu0 %v4538_v44  ;;  %4882 = vmatprep.subr.mxu1 %v4540_v22 }
 0x741   :  { %v4119_v41 = vpop.f32.mrf.mxu0  ;;  %v4190_v8 = vpop.f32.mrf.mxu1 }
 0x742   :  { %v4337_v5 = vadd.f32 %v4119_v41, %v6453_v40  ;;  %v4339_v27 = vadd.f32 %v4190_v8, %v6456_v36 }
 0x743   :  { %v4121_v43 = vpop.f32.mrf.mxu0  ;;  %v4192_v32 = vpop.f32.mrf.mxu1 }
 0x744   :  { %v4338_v9 = vadd.f32 %v4121_v43, %v6459_v48  ;;  %v5751_v23 = vmul.f32 -1.442695, %v4337_v5  ;;  %v4340_v12 = vadd.f32 %v4192_v32, %v6810_v24  ;;  %v5753_v15 = vmul.f32 -1.442695, %v4339_v27  ;;  %v4539_v43 = vld [vmem:[#allocation10 + $0x3f0] sm:$0xff]  ;;  %v4530_v5 = vld [vmem:[#allocation10 + $0x3a8] sm:$0xff] }
 0x745   :  { %v513_v48 = vadd.f32 %v6811_v20, %v6565_v1  ;;  %v4532_v27 = vld [vmem:[#allocation10 + $0x3b8] sm:$0xff]  ;;  %v4529_v32 = vld [vmem:[#allocation10 + $0x3a0] sm:$0xff] }
 0x746   :  { %v5752_v16 = vmul.f32 -1.442695, %v4338_v9  ;;  %5943 = vpow2.f32 %v5751_v23  ;;  %v5754_v6 = vmul.f32 -1.442695, %v4340_v12  ;;  %v4531_v9 = vld [vmem:[#allocation10 + $0x3b0] sm:$0xff]  ;;  %v4522_v23 = vld [vmem:[#allocation10 + $0x368] sm:$0xff] }
 0x747   :  { %5945 = vpow2.f32 %v5753_v15  ;;  %v4524_v24 = vld [vmem:[#allocation10 + $0x378] sm:$0xff]  ;;  %v4521_v12 = vld [vmem:[#allocation10 + $0x360] sm:$0xff]  ;;  %v4523_v15 = vld [vmem:[#allocation10 + $0x370] sm:$0xff] }
 0x748   :  { %5947 = vpow2.f32 %v5752_v16  ;;  %v4514_v16 = vld [vmem:[#allocation10 + $0x328] sm:$0xff]  ;;  %v4500_v20 = vld [vmem:[#allocation10 + $0x2b8] sm:$0xff] }
 0x749   :  { %5949 = vpow2.f32 %v5754_v6  ;;  %v4516_v6 = vld [vmem:[#allocation10 + $0x338] sm:$0xff] }
 0x753   :  { %v5944_v3 = vpop.eup %5943 }
 0x754   :  { %v5946_v51 = vpop.eup %5945  ;;  %v4351_v53 = vadd.f32 1.0, %v5944_v3  ;;  %v4513_v3 = vld [vmem:[#allocation10 + $0x320] sm:$0xff] }
 0x755   :  { %v5948_v0 = vpop.eup %5947  ;;  %v4363_v50 = vadd.f32 1.0, %v5946_v51  ;;  %v4515_v51 = vld [vmem:[#allocation10 + $0x330] sm:$0xff] }
 0x756   :  { %v5950_v40 = vpop.eup %5949  ;;  %v4352_v36 = vadd.f32 1.0, %v5948_v0  ;;  %5951 = vrcp.f32 %v4351_v53  ;;  %v4506_v0 = vld [vmem:[#allocation10 + $0x2e8] sm:$0xff]  ;;  %v4508_v53 = vld [vmem:[#allocation10 + $0x2f8] sm:$0xff] }
 0x757   :  { %v4364_v18 = vadd.f32 1.0, %v5950_v40  ;;  %5953 = vrcp.f32 %v4363_v50  ;;  %v4505_v40 = vld [vmem:[#allocation10 + $0x2e0] sm:$0xff]  ;;  %v4507_v50 = vld [vmem:[#allocation10 + $0x2f0] sm:$0xff] }
 0x758   :  { %5955 = vrcp.f32 %v4352_v36  ;;  %v4498_v36 = vld [vmem:[#allocation10 + $0x2a8] sm:$0xff] }
 0x763   :  { %v5952_v28 = vpop.eup %5951 }
 0x764   :  { %v5954_v31 = vpop.eup %5953 }
 0x765   :  { %v5956_v33 = vpop.eup %5955  ;;  %v4383_v7 = vmul.f32 %v5954_v31, %v6691_v19  ;;  %v4460_v31 = vld [vmem:[#allocation10 + $0x178] sm:$0xff] }
 0x782   :  { %v4261_v10 = vpop.f32.mrf.mxu0  ;;  %v4332_v54 = vpop.f32.mrf.mxu1 }
 0x783   :  { %v4341_v13 = vadd.f32 %v4261_v10, %v513_v48  ;;  %v4343_v35 = vadd.f32 %v4332_v54, %v626_v21  ;;  %v4497_v48 = vld [vmem:[#allocation10 + $0x2a0] sm:$0xff]  ;;  %v4490_v21 = vld [vmem:[#allocation10 + $0x268] sm:$0xff]  ;;  %v4484_v54 = vld [vmem:[#allocation10 + $0x238] sm:$0xff] }
 0x784   :  { %v4263_v60 = vpop.f32.mrf.mxu0  ;;  %v4334_v42 = vpop.f32.mrf.mxu1  ;;  %v4482_v10 = vld [vmem:[#allocation10 + $0x228] sm:$0xff] }
 0x785   :  { %5957 = vtanh.f32 %v4341_v13  ;;  %v5755_v14 = vmul.f32 -1.442695, %v4343_v35  ;;  %v4342_v52 = vadd.f32 %v4263_v60, %v515_v17  ;;  %v4344_v37 = vadd.f32 %v4334_v42, %v628_v11  ;;  %v4489_v17 = vld [vmem:[#allocation10 + $0x260] sm:$0xff]  ;;  %v4483_v11 = vld [vmem:[#allocation10 + $0x230] sm:$0xff]  ;;  %v4474_v13 = vld [vmem:[#allocation10 + $0x1e8] sm:$0xff] }
 0x786   :  { %5959 = vrcp.f32 %v4364_v18  ;;  %v4491_v18 = vld [vmem:[#allocation10 + $0x270] sm:$0xff]  ;;  %v4476_v35 = vld [vmem:[#allocation10 + $0x1f8] sm:$0xff]  ;;  %v4473_v60 = vld [vmem:[#allocation10 + $0x1e0] sm:$0xff] }
 0x787   :  { %5961 = vpow2.f32 %v5755_v14  ;;  %v5756_v47 = vmul.f32 -1.442695, %v4344_v37  ;;  %v4475_v42 = vld [vmem:[#allocation10 + $0x1f0] sm:$0xff]  ;;  %v4466_v14 = vld [vmem:[#allocation10 + $0x1a8] sm:$0xff]  ;;  %v4465_v37 = vld [vmem:[#allocation10 + $0x1a0] sm:$0xff] }
 0x788   :  { %5963 = vtanh.f32 %v4342_v52  ;;  %v4468_v52 = vld [vmem:[#allocation10 + $0x1b8] sm:$0xff] }
 0x789   :  { %5965 = vpow2.f32 %v5756_v47  ;;  %v4467_v47 = vld [vmem:[#allocation10 + $0x1b0] sm:$0xff] }
 0x792   :  { %v5958_v45 = vpop.eup %5957 }
 0x793   :  { %v5960_v46 = vpop.eup %5959  ;;  %v4385_v55 = vmul.f32 %v5958_v45, %v5952_v28  ;;  %v4458_v28 = vld [vmem:[#allocation10 + $0x168] sm:$0xff]  ;;  %v4459_v45 = vld [vmem:[#allocation10 + $0x170] sm:$0xff] }
 0x794   :  { %v5962_v56 = vpop.eup %5961  ;;  %v4384_v29 = vmul.f32 %v5960_v46, %v6695_v63  ;;  %v4537_v63 = vld [vmem:[#allocation10 + $0x3e0] sm:$0xff]  ;;  %v4450_v46 = vld [vmem:[#allocation10 + $0x128] sm:$0xff] }
 0x795   :  { %v5964_v59 = vpop.eup %5963  ;;  %v6718_v62 = vadd.f32 %v4385_v55, %v4383_v7  ;;  %v4377_v61 = vadd.f32 1.0, %v5962_v56  ;;  %v4452_v7 = vld [vmem:[#allocation10 + $0x138] sm:$0xff]  ;;  %v4449_v55 = vld [vmem:[#allocation10 + $0x120] sm:$0xff]  ;;  %v4451_v56 = vld [vmem:[#allocation10 + $0x130] sm:$0xff] }
 0x796   :  { %v5966_v57 = vpop.eup %5965  ;;  %v4386_v30 = vmul.f32 %v5964_v59, %v5956_v33  ;;  %v4457_v33 = vld [vmem:[#allocation10 + $0x160] sm:$0xff]  ;;  %v4442_v59 = vld [vmem:[#allocation10 + $0xe8] sm:$0xff] }
 0x797   :  { %5967 = vtanh.f32 %v6718_v62  ;;  %v4378_v58 = vadd.f32 1.0, %v5966_v57  ;;  %v4441_v57 = vld [vmem:[#allocation10 + $0xe0] sm:$0xff] }
 0x798   :  { %5969 = vrcp.f32 %v4377_v61  ;;  %v6722_v38 = vadd.f32 %v4386_v30, %v4384_v29  ;;  %v4444_v61 = vld [vmem:[#allocation10 + $0xf8] sm:$0xff]  ;;  %v4443_v29 = vld [vmem:[#allocation10 + $0xf0] sm:$0xff]  ;;  %v4434_v30 = vld [vmem:[#allocation10 + $0xa8] sm:$0xff] }
 0x799   :  { %5971 = vrcp.f32 %v4378_v58  ;;  %v4436_v58 = vld [vmem:[#allocation10 + $0xb8] sm:$0xff] }
 0x79a   :  { %5973 = vtanh.f32 %v6722_v38 }
 0x7a4   :  { %v5968_v19 = vpop.eup %5967 }
 0x7a5   :  { %v5970_v39 = vpop.eup %5969 }
 0x7a6   :  { %v5972_v44 = vpop.eup %5971  ;;  %v6725_v22 = vmul.f32 %v5970_v39, %v5968_v19  ;;  %v4433_v19 = vld [vmem:[#allocation10 + $0xa0] sm:$0xff]  ;;  %v4435_v39 = vld [vmem:[#allocation10 + $0xb0] sm:$0xff] }
 0x7a7   :  { %v5974_v41 = vpop.eup %5973 }
 0x7a8   :  { %v4392_v8 = vmul.f32 %v5974_v41, %v5972_v44  ;;  %4398 = vst [vmem:[#allocation13 + $0x50] sm:$0xff] %v6725_v22  ;;  %v4426_v44 = vld [vmem:[#allocation10 + $0x68] sm:$0xff]  ;;  %v4428_v41 = vld [vmem:[#allocation10 + $0x78] sm:$0xff] }
 0x7aa   :  { %4399 = vst [vmem:[#allocation13 + $0x58] sm:$0xff] %v4392_v8  ;;  %4733 = vmatprep.mubr.f32.mxu0 %v4392_v8  ;;  %4804 = vmatprep.mubr.f32.mxu1 %v4392_v8 }
 0x7ab   :  { %4734 = vmatmul.mubr.f32.vlgmr.msra.gmra.mxu0 %v6725_v22  ;;  %4805 = vmatmul.mubr.f32.vlgmr.msra.gmra.mxu1 %v6725_v22 }
 0x7ac   :  { %4812 = vmatpush1.msra.mxu0 %v4537_v63  ;;  %4883 = vmatpush1.msra.mxu1 %v4539_v43  ;;  %v4427_v63 = vld [vmem:[#allocation10 + $0x70] sm:$0xff]  ;;  %v4418_v43 = vld [vmem:[#allocation10 + $0x28] sm:$0xff] }
 0x7ad   :  { %4813 = vmatprep.subr.mxu0 %v4530_v5  ;;  %4875 = vmatprep.mubr.f32.mxu0 %v4392_v8  ;;  %v4420_v5 = vld [vmem:[#allocation10 + $0x38] sm:$0xff] }
 0x7ae   :  { %4884 = vmatprep.subr.mxu1 %v4532_v27  ;;  %4946 = vmatprep.mubr.f32.mxu1 %v4392_v8  ;;  %v4425_v8 = vld [vmem:[#allocation10 + $0x60] sm:$0xff] }
 0x7af   :  { %4814 = vmatpush1.msra.mxu0 %v4529_v32  ;;  %4885 = vmatpush1.msra.mxu1 %v4531_v9  ;;  %v4417_v27 = vld [vmem:[#allocation10 + $0x20] sm:$0xff]  ;;  %v4419_v32 = vld [vmem:[#allocation10 + $0x30] sm:$0xff]  ;;  %v4666_v9 = vld [vmem:[#allocation10 + $0x7e8] sm:$0xff] }
 0x7b0   :  { %4815 = vmatprep.subr.mxu0 %v4522_v23  ;;  %4886 = vmatprep.subr.mxu1 %v4524_v24  ;;  %v4668_v23 = vld [vmem:[#allocation10 + $0x7f8] sm:$0xff]  ;;  %v4665_v24 = vld [vmem:[#allocation10 + $0x7e0] sm:$0xff] }
 0x7b1   :  { %4816 = vmatpush1.msra.mxu0 %v4521_v12  ;;  %4887 = vmatpush1.msra.mxu1 %v4523_v15  ;;  %v4667_v12 = vld [vmem:[#allocation10 + $0x7f0] sm:$0xff]  ;;  %v4658_v15 = vld [vmem:[#allocation10 + $0x7a8] sm:$0xff] }
 0x7b2   :  { %4817 = vmatprep.subr.mxu0 %v4514_v16  ;;  %4888 = vmatprep.subr.mxu1 %v4516_v6  ;;  %v4660_v16 = vld [vmem:[#allocation10 + $0x7b8] sm:$0xff]  ;;  %v4657_v6 = vld [vmem:[#allocation10 + $0x7a0] sm:$0xff] }
 0x7b3   :  { %4818 = vmatpush1.msra.mxu0 %v4513_v3  ;;  %4889 = vmatpush1.msra.mxu1 %v4515_v51  ;;  %v4659_v3 = vld [vmem:[#allocation10 + $0x7b0] sm:$0xff]  ;;  %v4650_v51 = vld [vmem:[#allocation10 + $0x768] sm:$0xff] }
 0x7b4   :  { %4819 = vmatprep.subr.mxu0 %v4506_v0  ;;  %4890 = vmatprep.subr.mxu1 %v4508_v53  ;;  %v4652_v0 = vld [vmem:[#allocation10 + $0x778] sm:$0xff]  ;;  %v4649_v53 = vld [vmem:[#allocation10 + $0x760] sm:$0xff] }
 0x7b5   :  { %4820 = vmatpush1.msra.mxu0 %v4505_v40  ;;  %4891 = vmatpush1.msra.mxu1 %v4507_v50  ;;  %v4651_v40 = vld [vmem:[#allocation10 + $0x770] sm:$0xff]  ;;  %v4642_v50 = vld [vmem:[#allocation10 + $0x728] sm:$0xff] }
 0x7b6   :  { %4821 = vmatprep.subr.mxu0 %v4498_v36  ;;  %4892 = vmatprep.subr.mxu1 %v4500_v20  ;;  %v4644_v36 = vld [vmem:[#allocation10 + $0x738] sm:$0xff]  ;;  %v4641_v20 = vld [vmem:[#allocation10 + $0x720] sm:$0xff] }
 0x7b7   :  { %4822 = vmatpush1.msra.mxu0 %v4497_v48  ;;  %4893 = vmatpush1.msra.mxu1 %v4499_v4  ;;  %v4643_v48 = vld [vmem:[#allocation10 + $0x730] sm:$0xff]  ;;  %v4634_v4 = vld [vmem:[#allocation10 + $0x6e8] sm:$0xff] }
 0x7b8   :  { %4823 = vmatprep.subr.mxu0 %v4490_v21  ;;  %4894 = vmatprep.subr.mxu1 %v4492_v25  ;;  %v4636_v21 = vld [vmem:[#allocation10 + $0x6f8] sm:$0xff]  ;;  %v4633_v25 = vld [vmem:[#allocation10 + $0x6e0] sm:$0xff] }
 0x7b9   :  { %4824 = vmatpush1.msra.mxu0 %v4489_v17  ;;  %4895 = vmatpush1.msra.mxu1 %v4491_v18  ;;  %v4635_v17 = vld [vmem:[#allocation10 + $0x6f0] sm:$0xff]  ;;  %v4626_v18 = vld [vmem:[#allocation10 + $0x6a8] sm:$0xff] }
 0x7ba   :  { %4825 = vmatprep.subr.mxu0 %v4482_v10  ;;  %4896 = vmatprep.subr.mxu1 %v4484_v54  ;;  %v4628_v10 = vld [vmem:[#allocation10 + $0x6b8] sm:$0xff]  ;;  %v4625_v54 = vld [vmem:[#allocation10 + $0x6a0] sm:$0xff] }
 0x7bb   :  { %4826 = vmatpush1.msra.mxu0 %v4481_v26  ;;  %4897 = vmatpush1.msra.mxu1 %v4483_v11  ;;  %v4627_v26 = vld [vmem:[#allocation10 + $0x6b0] sm:$0xff]  ;;  %v4618_v11 = vld [vmem:[#allocation10 + $0x668] sm:$0xff] }
 0x7bc   :  { %4827 = vmatprep.subr.mxu0 %v4474_v13  ;;  %4898 = vmatprep.subr.mxu1 %v4476_v35  ;;  %v4620_v13 = vld [vmem:[#allocation10 + $0x678] sm:$0xff]  ;;  %v4617_v35 = vld [vmem:[#allocation10 + $0x660] sm:$0xff] }
 0x7bd   :  { %4828 = vmatpush1.msra.mxu0 %v4473_v60  ;;  %4899 = vmatpush1.msra.mxu1 %v4475_v42  ;;  %v4619_v60 = vld [vmem:[#allocation10 + $0x670] sm:$0xff]  ;;  %v4610_v42 = vld [vmem:[#allocation10 + $0x628] sm:$0xff] }
 0x7be   :  { %4829 = vmatprep.subr.mxu0 %v4466_v14  ;;  %4900 = vmatprep.subr.mxu1 %v4468_v52  ;;  %v4612_v14 = vld [vmem:[#allocation10 + $0x638] sm:$0xff]  ;;  %v4609_v52 = vld [vmem:[#allocation10 + $0x620] sm:$0xff] }
 0x7bf   :  { %4830 = vmatpush1.msra.mxu0 %v4465_v37  ;;  %4901 = vmatpush1.msra.mxu1 %v4467_v47  ;;  %v4611_v37 = vld [vmem:[#allocation10 + $0x630] sm:$0xff]  ;;  %v4602_v47 = vld [vmem:[#allocation10 + $0x5e8] sm:$0xff] }
 0x7c0   :  { %4831 = vmatprep.subr.mxu0 %v4458_v28  ;;  %4902 = vmatprep.subr.mxu1 %v4460_v31  ;;  %v4604_v28 = vld [vmem:[#allocation10 + $0x5f8] sm:$0xff]  ;;  %v4601_v31 = vld [vmem:[#allocation10 + $0x5e0] sm:$0xff] }
 0x7c1   :  { %4832 = vmatpush1.msra.mxu0 %v4457_v33  ;;  %4903 = vmatpush1.msra.mxu1 %v4459_v45  ;;  %v4603_v33 = vld [vmem:[#allocation10 + $0x5f0] sm:$0xff]  ;;  %v4594_v45 = vld [vmem:[#allocation10 + $0x5a8] sm:$0xff] }
 0x7c2   :  { %4833 = vmatprep.subr.mxu0 %v4450_v46  ;;  %4904 = vmatprep.subr.mxu1 %v4452_v7  ;;  %v4596_v46 = vld [vmem:[#allocation10 + $0x5b8] sm:$0xff]  ;;  %v4593_v7 = vld [vmem:[#allocation10 + $0x5a0] sm:$0xff] }
 0x7c3   :  { %4834 = vmatpush1.msra.mxu0 %v4449_v55  ;;  %4905 = vmatpush1.msra.mxu1 %v4451_v56  ;;  %v4595_v55 = vld [vmem:[#allocation10 + $0x5b0] sm:$0xff]  ;;  %v4586_v56 = vld [vmem:[#allocation10 + $0x568] sm:$0xff] }
 0x7c4   :  { %4835 = vmatprep.subr.mxu0 %v4442_v59  ;;  %4906 = vmatprep.subr.mxu1 %v4444_v61  ;;  %v4588_v59 = vld [vmem:[#allocation10 + $0x578] sm:$0xff]  ;;  %v4585_v61 = vld [vmem:[#allocation10 + $0x560] sm:$0xff] }
 0x7c5   :  { %4836 = vmatpush1.msra.mxu0 %v4441_v57  ;;  %4907 = vmatpush1.msra.mxu1 %v4443_v29  ;;  %v4587_v57 = vld [vmem:[#allocation10 + $0x570] sm:$0xff]  ;;  %v4578_v29 = vld [vmem:[#allocation10 + $0x528] sm:$0xff] }
 0x7c6   :  { %4837 = vmatprep.subr.mxu0 %v4434_v30  ;;  %4908 = vmatprep.subr.mxu1 %v4436_v58  ;;  %v4580_v30 = vld [vmem:[#allocation10 + $0x538] sm:$0xff]  ;;  %v4577_v58 = vld [vmem:[#allocation10 + $0x520] sm:$0xff] }
 0x7c7   :  { %4838 = vmatpush1.msra.mxu0 %v4433_v19  ;;  %4909 = vmatpush1.msra.mxu1 %v4435_v39  ;;  %v4579_v19 = vld [vmem:[#allocation10 + $0x530] sm:$0xff]  ;;  %v4570_v39 = vld [vmem:[#allocation10 + $0x4e8] sm:$0xff] }
 0x7c8   :  { %4839 = vmatprep.subr.mxu0 %v4426_v44  ;;  %4910 = vmatprep.subr.mxu1 %v4428_v41  ;;  %v4572_v44 = vld [vmem:[#allocation10 + $0x4f8] sm:$0xff]  ;;  %v4569_v41 = vld [vmem:[#allocation10 + $0x4e0] sm:$0xff] }
 0x7c9   :  { %4840 = vmatpush1.msra.mxu0 %v4425_v8  ;;  %4911 = vmatpush1.msra.mxu1 %v4427_v63  ;;  %v4571_v8 = vld [vmem:[#allocation10 + $0x4f0] sm:$0xff]  ;;  %v4562_v63 = vld [vmem:[#allocation10 + $0x4a8] sm:$0xff] }
 0x7ca   :  { %4841 = vmatprep.subr.mxu0 %v4418_v43  ;;  %4912 = vmatprep.subr.mxu1 %v4420_v5  ;;  %v4564_v43 = vld [vmem:[#allocation10 + $0x4b8] sm:$0xff]  ;;  %v4561_v5 = vld [vmem:[#allocation10 + $0x4a0] sm:$0xff] }
 0x7cb   :  { %4842 = vmatpush1.msra.mxu0 %v4417_v27  ;;  %4913 = vmatpush1.msra.mxu1 %v4419_v32  ;;  %v4563_v27 = vld [vmem:[#allocation10 + $0x4b0] sm:$0xff]  ;;  %v4554_v32 = vld [vmem:[#allocation10 + $0x468] sm:$0xff] }
 0x7cc   :  { %4843 = vmatprep.subr.mxu0 %v4666_v9  ;;  %4914 = vmatprep.subr.mxu1 %v4668_v23  ;;  %v4556_v9 = vld [vmem:[#allocation10 + $0x478] sm:$0xff]  ;;  %v4553_v23 = vld [vmem:[#allocation10 + $0x460] sm:$0xff] }
 0x7cd   :  { %4844 = vmatpush2.msra.mxu0 %v4665_v24  ;;  %4915 = vmatpush2.msra.mxu1 %v4667_v12  ;;  %v4555_v24 = vld [vmem:[#allocation10 + $0x470] sm:$0xff]  ;;  %v4546_v12 = vld [vmem:[#allocation10 + $0x428] sm:$0xff] }
 0x7ce   :  { %4845 = vmatprep.subr.mxu0 %v4658_v15  ;;  %4916 = vmatprep.subr.mxu1 %v4660_v16  ;;  %v4548_v15 = vld [vmem:[#allocation10 + $0x438] sm:$0xff]  ;;  %v4545_v16 = vld [vmem:[#allocation10 + $0x420] sm:$0xff] }
 0x7cf   :  { %4846 = vmatpush2.msra.mxu0 %v4657_v6  ;;  %4917 = vmatpush2.msra.mxu1 %v4659_v3  ;;  %v4547_v6 = vld [vmem:[#allocation10 + $0x430] sm:$0xff]  ;;  %v5150_v3 = vld [vmem:[#allocation10 + $0x3c8] sm:$0xff] }
 0x7d0   :  { %4847 = vmatprep.subr.mxu0 %v4650_v51  ;;  %4918 = vmatprep.subr.mxu1 %v4652_v0  ;;  %v5152_v51 = vld [vmem:[#allocation10 + $0x3d8] sm:$0xff]  ;;  %v5149_v0 = vld [vmem:[#allocation10 + $0x3c0] sm:$0xff] }
 0x7d1   :  { %4848 = vmatpush2.msra.mxu0 %v4649_v53  ;;  %4919 = vmatpush2.msra.mxu1 %v4651_v40  ;;  %v5151_v53 = vld [vmem:[#allocation10 + $0x3d0] sm:$0xff]  ;;  %v5142_v40 = vld [vmem:[#allocation10 + $0x388] sm:$0xff] }
 0x7d2   :  { %4849 = vmatprep.subr.mxu0 %v4642_v50  ;;  %4920 = vmatprep.subr.mxu1 %v4644_v36  ;;  %v5144_v50 = vld [vmem:[#allocation10 + $0x398] sm:$0xff]  ;;  %v5141_v36 = vld [vmem:[#allocation10 + $0x380] sm:$0xff] }
 0x7d3   :  { %4850 = vmatpush2.msra.mxu0 %v4641_v20  ;;  %4921 = vmatpush2.msra.mxu1 %v4643_v48  ;;  %v5143_v20 = vld [vmem:[#allocation10 + $0x390] sm:$0xff]  ;;  %v5134_v48 = vld [vmem:[#allocation10 + $0x348] sm:$0xff] }
 0x7d4   :  { %4851 = vmatprep.subr.mxu0 %v4634_v4  ;;  %4922 = vmatprep.subr.mxu1 %v4636_v21  ;;  %v5136_v4 = vld [vmem:[#allocation10 + $0x358] sm:$0xff]  ;;  %v5133_v21 = vld [vmem:[#allocation10 + $0x340] sm:$0xff] }
 0x7d5   :  { %4852 = vmatpush2.msra.mxu0 %v4633_v25  ;;  %4923 = vmatpush2.msra.mxu1 %v4635_v17  ;;  %v5135_v25 = vld [vmem:[#allocation10 + $0x350] sm:$0xff]  ;;  %v5128_v17 = vld [vmem:[#allocation10 + $0x318] sm:$0xff] }
 0x7d6   :  { %4853 = vmatprep.subr.mxu0 %v4626_v18  ;;  %4924 = vmatprep.subr.mxu1 %v4628_v10  ;;  %v5125_v18 = vld [vmem:[#allocation10 + $0x300] sm:$0xff]  ;;  %v5127_v10 = vld [vmem:[#allocation10 + $0x310] sm:$0xff] }
 0x7d7   :  { %4854 = vmatpush2.msra.mxu0 %v4625_v54  ;;  %4925 = vmatpush2.msra.mxu1 %v4627_v26  ;;  %v5118_v54 = vld [vmem:[#allocation10 + $0x2c8] sm:$0xff]  ;;  %v5120_v26 = vld [vmem:[#allocation10 + $0x2d8] sm:$0xff] }
 0x7d8   :  { %4855 = vmatprep.subr.mxu0 %v4618_v11  ;;  %4926 = vmatprep.subr.mxu1 %v4620_v13  ;;  %v5117_v11 = vld [vmem:[#allocation10 + $0x2c0] sm:$0xff]  ;;  %v5119_v13 = vld [vmem:[#allocation10 + $0x2d0] sm:$0xff] }
 0x7d9   :  { %4856 = vmatpush2.msra.mxu0 %v4617_v35  ;;  %4927 = vmatpush2.msra.mxu1 %v4619_v60  ;;  %v5110_v35 = vld [vmem:[#allocation10 + $0x288] sm:$0xff]  ;;  %v5112_v60 = vld [vmem:[#allocation10 + $0x298] sm:$0xff] }
 0x7da   :  { %4857 = vmatprep.subr.mxu0 %v4610_v42  ;;  %4928 = vmatprep.subr.mxu1 %v4612_v14  ;;  %v5109_v42 = vld [vmem:[#allocation10 + $0x280] sm:$0xff]  ;;  %v5111_v14 = vld [vmem:[#allocation10 + $0x290] sm:$0xff] }
 0x7db   :  { %4858 = vmatpush2.msra.mxu0 %v4609_v52  ;;  %4929 = vmatpush2.msra.mxu1 %v4611_v37  ;;  %v5102_v52 = vld [vmem:[#allocation10 + $0x248] sm:$0xff]  ;;  %v5104_v37 = vld [vmem:[#allocation10 + $0x258] sm:$0xff] }
 0x7dc   :  { %4859 = vmatprep.subr.mxu0 %v4602_v47  ;;  %4930 = vmatprep.subr.mxu1 %v4604_v28  ;;  %v5101_v47 = vld [vmem:[#allocation10 + $0x240] sm:$0xff]  ;;  %v5103_v28 = vld [vmem:[#allocation10 + $0x250] sm:$0xff] }
 0x7dd   :  { %4860 = vmatpush2.msra.mxu0 %v4601_v31  ;;  %4931 = vmatpush2.msra.mxu1 %v4603_v33  ;;  %v5094_v31 = vld [vmem:[#allocation10 + $0x208] sm:$0xff]  ;;  %v5096_v33 = vld [vmem:[#allocation10 + $0x218] sm:$0xff] }
 0x7de   :  { %4861 = vmatprep.subr.mxu0 %v4594_v45  ;;  %4932 = vmatprep.subr.mxu1 %v4596_v46  ;;  %v5093_v45 = vld [vmem:[#allocation10 + $0x200] sm:$0xff]  ;;  %v5095_v46 = vld [vmem:[#allocation10 + $0x210] sm:$0xff] }
 0x7df   :  { %4862 = vmatpush2.msra.mxu0 %v4593_v7  ;;  %4933 = vmatpush2.msra.mxu1 %v4595_v55  ;;  %v5086_v7 = vld [vmem:[#allocation10 + $0x1c8] sm:$0xff]  ;;  %v5088_v55 = vld [vmem:[#allocation10 + $0x1d8] sm:$0xff] }
 0x7e0   :  { %4863 = vmatprep.subr.mxu0 %v4586_v56  ;;  %4934 = vmatprep.subr.mxu1 %v4588_v59  ;;  %v5085_v56 = vld [vmem:[#allocation10 + $0x1c0] sm:$0xff]  ;;  %v5087_v59 = vld [vmem:[#allocation10 + $0x1d0] sm:$0xff] }
 0x7e1   :  { %4864 = vmatpush2.msra.mxu0 %v4585_v61  ;;  %4935 = vmatpush2.msra.mxu1 %v4587_v57  ;;  %v5078_v61 = vld [vmem:[#allocation10 + $0x188] sm:$0xff]  ;;  %v5080_v57 = vld [vmem:[#allocation10 + $0x198] sm:$0xff] }
 0x7e2   :  { %4865 = vmatprep.subr.mxu0 %v4578_v29  ;;  %4936 = vmatprep.subr.mxu1 %v4580_v30  ;;  %v5077_v29 = vld [vmem:[#allocation10 + $0x180] sm:$0xff]  ;;  %v5079_v30 = vld [vmem:[#allocation10 + $0x190] sm:$0xff] }
 0x7e3   :  { %4866 = vmatpush2.msra.mxu0 %v4577_v58  ;;  %4937 = vmatpush2.msra.mxu1 %v4579_v19  ;;  %v5070_v58 = vld [vmem:[#allocation10 + $0x148] sm:$0xff]  ;;  %v5072_v19 = vld [vmem:[#allocation10 + $0x158] sm:$0xff] }
 0x7e4   :  { %4867 = vmatprep.subr.mxu0 %v4570_v39  ;;  %4938 = vmatprep.subr.mxu1 %v4572_v44  ;;  %v5069_v39 = vld [vmem:[#allocation10 + $0x140] sm:$0xff]  ;;  %v5071_v44 = vld [vmem:[#allocation10 + $0x150] sm:$0xff] }
 0x7e5   :  { %4868 = vmatpush2.msra.mxu0 %v4569_v41  ;;  %4939 = vmatpush2.msra.mxu1 %v4571_v8  ;;  %v5062_v41 = vld [vmem:[#allocation10 + $0x108] sm:$0xff]  ;;  %v5064_v8 = vld [vmem:[#allocation10 + $0x118] sm:$0xff] }
 0x7e6   :  { %4869 = vmatprep.subr.mxu0 %v4562_v63  ;;  %4940 = vmatprep.subr.mxu1 %v4564_v43  ;;  %v5061_v63 = vld [vmem:[#allocation10 + $0x100] sm:$0xff]  ;;  %v5063_v43 = vld [vmem:[#allocation10 + $0x110] sm:$0xff] }
 0x7e7   :  { %4870 = vmatpush2.msra.mxu0 %v4561_v5  ;;  %4941 = vmatpush2.msra.mxu1 %v4563_v27  ;;  %v5054_v5 = vld [vmem:[#allocation10 + $0xc8] sm:$0xff]  ;;  %v5056_v27 = vld [vmem:[#allocation10 + $0xd8] sm:$0xff] }
 0x7e8   :  { %4871 = vmatprep.subr.mxu0 %v4554_v32  ;;  %4942 = vmatprep.subr.mxu1 %v4556_v9  ;;  %v5053_v32 = vld [vmem:[#allocation10 + $0xc0] sm:$0xff]  ;;  %v5055_v9 = vld [vmem:[#allocation10 + $0xd0] sm:$0xff] }
 0x7e9   :  { %4872 = vmatpush2.msra.mxu0 %v4553_v23  ;;  %4943 = vmatpush2.msra.mxu1 %v4555_v24  ;;  %v5046_v23 = vld [vmem:[#allocation10 + $0x88] sm:$0xff]  ;;  %v5048_v24 = vld [vmem:[#allocation10 + $0x98] sm:$0xff] }
 0x7ea   :  { %4873 = vmatprep.subr.mxu0 %v4546_v12  ;;  %4944 = vmatprep.subr.mxu1 %v4548_v15  ;;  %v5045_v12 = vld [vmem:[#allocation10 + $0x80] sm:$0xff]  ;;  %v5047_v15 = vld [vmem:[#allocation10 + $0x90] sm:$0xff] }
 0x7eb   :  { %4874 = vmatpush2.msra.mxu0 %v4545_v16  ;;  %4945 = vmatpush2.msra.mxu1 %v4547_v6  ;;  %v5038_v16 = vld [vmem:[#allocation10 + $0x48] sm:$0xff]  ;;  %v5040_v6 = vld [vmem:[#allocation10 + $0x58] sm:$0xff] }
 0x7ec   :  { %4876 = vmatmul.mubr.f32.vlgmr.msra.gmra.mxu0 %v6725_v22  ;;  %4947 = vmatmul.mubr.f32.vlgmr.msra.gmra.mxu1 %v6725_v22  ;;  %v5126_v22 = vld [vmem:[#allocation10 + $0x308] sm:$0xff] }
 0x7ed   :  { %5285 = vmatprep.subr.mxu0 %v5150_v3  ;;  %5356 = vmatprep.subr.mxu1 %v5152_v51  ;;  %v5037_v3 = vld [vmem:[#allocation10 + $0x40] sm:$0xff]  ;;  %v5039_v51 = vld [vmem:[#allocation10 + $0x50] sm:$0xff] }
 0x7ee   :  { %5286 = vmatpush1.msra.mxu0 %v5149_v0  ;;  %5357 = vmatpush1.msra.mxu1 %v5151_v53  ;;  %v5030_v0 = vld [vmem:[#allocation10 + $0x8] sm:$0xff]  ;;  %v5032_v53 = vld [vmem:[#allocation10 + $0x18] sm:$0xff] }
 0x7ef   :  { %5287 = vmatprep.subr.mxu0 %v5142_v40  ;;  %5358 = vmatprep.subr.mxu1 %v5144_v50  ;;  %v5029_v40 = vld [vmem:[#allocation10] sm:$0xff]  ;;  %v5031_v50 = vld [vmem:[#allocation10 + $0x10] sm:$0xff] }
 0x7f0   :  { %5288 = vmatpush1.msra.mxu0 %v5141_v36  ;;  %5359 = vmatpush1.msra.mxu1 %v5143_v20  ;;  %v5278_v36 = vld [vmem:[#allocation10 + $0x7c8] sm:$0xff]  ;;  %v5280_v20 = vld [vmem:[#allocation10 + $0x7d8] sm:$0xff] }
 0x7f1   :  { %5289 = vmatprep.subr.mxu0 %v5134_v48  ;;  %5360 = vmatprep.subr.mxu1 %v5136_v4  ;;  %v5277_v48 = vld [vmem:[#allocation10 + $0x7c0] sm:$0xff]  ;;  %v5279_v4 = vld [vmem:[#allocation10 + $0x7d0] sm:$0xff] }
 0x7f2   :  { %5290 = vmatpush1.msra.mxu0 %v5133_v21  ;;  %5361 = vmatpush1.msra.mxu1 %v5135_v25  ;;  %v5270_v21 = vld [vmem:[#allocation10 + $0x788] sm:$0xff]  ;;  %v5272_v25 = vld [vmem:[#allocation10 + $0x798] sm:$0xff] }
 0x7f3   :  { %5291 = vmatprep.subr.mxu0 %v5126_v22  ;;  %5362 = vmatprep.subr.mxu1 %v5128_v17  ;;  %v5269_v22 = vld [vmem:[#allocation10 + $0x780] sm:$0xff]  ;;  %v5271_v17 = vld [vmem:[#allocation10 + $0x790] sm:$0xff] }
 0x7f4   :  { %5292 = vmatpush1.msra.mxu0 %v5125_v18  ;;  %5363 = vmatpush1.msra.mxu1 %v5127_v10  ;;  %v5262_v18 = vld [vmem:[#allocation10 + $0x748] sm:$0xff]  ;;  %v5264_v10 = vld [vmem:[#allocation10 + $0x758] sm:$0xff] }
 0x7f5   :  { %5293 = vmatprep.subr.mxu0 %v5118_v54  ;;  %5364 = vmatprep.subr.mxu1 %v5120_v26  ;;  %v5261_v54 = vld [vmem:[#allocation10 + $0x740] sm:$0xff]  ;;  %v5263_v26 = vld [vmem:[#allocation10 + $0x750] sm:$0xff] }
 0x7f6   :  { %5294 = vmatpush1.msra.mxu0 %v5117_v11  ;;  %5365 = vmatpush1.msra.mxu1 %v5119_v13  ;;  %v5254_v11 = vld [vmem:[#allocation10 + $0x708] sm:$0xff]  ;;  %v5256_v13 = vld [vmem:[#allocation10 + $0x718] sm:$0xff] }
 0x7f7   :  { %5295 = vmatprep.subr.mxu0 %v5110_v35  ;;  %5366 = vmatprep.subr.mxu1 %v5112_v60  ;;  %v5253_v35 = vld [vmem:[#allocation10 + $0x700] sm:$0xff]  ;;  %v5255_v60 = vld [vmem:[#allocation10 + $0x710] sm:$0xff] }
 0x7f8   :  { %5296 = vmatpush1.msra.mxu0 %v5109_v42  ;;  %5367 = vmatpush1.msra.mxu1 %v5111_v14  ;;  %v5246_v42 = vld [vmem:[#allocation10 + $0x6c8] sm:$0xff]  ;;  %v5248_v14 = vld [vmem:[#allocation10 + $0x6d8] sm:$0xff] }
 0x7f9   :  { %5297 = vmatprep.subr.mxu0 %v5102_v52  ;;  %5368 = vmatprep.subr.mxu1 %v5104_v37  ;;  %v5245_v52 = vld [vmem:[#allocation10 + $0x6c0] sm:$0xff]  ;;  %v5247_v37 = vld [vmem:[#allocation10 + $0x6d0] sm:$0xff] }
 0x7fa   :  { %5298 = vmatpush1.msra.mxu0 %v5101_v47  ;;  %5369 = vmatpush1.msra.mxu1 %v5103_v28  ;;  %v5238_v47 = vld [vmem:[#allocation10 + $0x688] sm:$0xff]  ;;  %v5240_v28 = vld [vmem:[#allocation10 + $0x698] sm:$0xff] }
 0x7fb   :  { %5299 = vmatprep.subr.mxu0 %v5094_v31  ;;  %5370 = vmatprep.subr.mxu1 %v5096_v33  ;;  %v5237_v31 = vld [vmem:[#allocation10 + $0x680] sm:$0xff]  ;;  %v5239_v33 = vld [vmem:[#allocation10 + $0x690] sm:$0xff] }
 0x7fc   :  { %5300 = vmatpush1.msra.mxu0 %v5093_v45  ;;  %5371 = vmatpush1.msra.mxu1 %v5095_v46  ;;  %v5230_v45 = vld [vmem:[#allocation10 + $0x648] sm:$0xff]  ;;  %v5232_v46 = vld [vmem:[#allocation10 + $0x658] sm:$0xff] }
 0x7fd   :  { %5301 = vmatprep.subr.mxu0 %v5086_v7  ;;  %5372 = vmatprep.subr.mxu1 %v5088_v55  ;;  %v5229_v7 = vld [vmem:[#allocation10 + $0x640] sm:$0xff]  ;;  %v5231_v55 = vld [vmem:[#allocation10 + $0x650] sm:$0xff] }
 0x7fe   :  { %5302 = vmatpush1.msra.mxu0 %v5085_v56  ;;  %5373 = vmatpush1.msra.mxu1 %v5087_v59  ;;  %v5222_v56 = vld [vmem:[#allocation10 + $0x608] sm:$0xff]  ;;  %v5224_v59 = vld [vmem:[#allocation10 + $0x618] sm:$0xff] }
 0x7ff   :  { %5303 = vmatprep.subr.mxu0 %v5078_v61  ;;  %5374 = vmatprep.subr.mxu1 %v5080_v57  ;;  %v5221_v61 = vld [vmem:[#allocation10 + $0x600] sm:$0xff]  ;;  %v5223_v57 = vld [vmem:[#allocation10 + $0x610] sm:$0xff] }
 0x800   :  { %5304 = vmatpush1.msra.mxu0 %v5077_v29  ;;  %5375 = vmatpush1.msra.mxu1 %v5079_v30  ;;  %v5214_v29 = vld [vmem:[#allocation10 + $0x5c8] sm:$0xff]  ;;  %v5216_v30 = vld [vmem:[#allocation10 + $0x5d8] sm:$0xff] }
 0x801   :  { %5305 = vmatprep.subr.mxu0 %v5070_v58  ;;  %5376 = vmatprep.subr.mxu1 %v5072_v19  ;;  %v5213_v58 = vld [vmem:[#allocation10 + $0x5c0] sm:$0xff]  ;;  %v5215_v19 = vld [vmem:[#allocation10 + $0x5d0] sm:$0xff] }
 0x802   :  { %5306 = vmatpush1.msra.mxu0 %v5069_v39  ;;  %5377 = vmatpush1.msra.mxu1 %v5071_v44  ;;  %v5206_v39 = vld [vmem:[#allocation10 + $0x588] sm:$0xff]  ;;  %v5208_v44 = vld [vmem:[#allocation10 + $0x598] sm:$0xff] }
 0x803   :  { %5307 = vmatprep.subr.mxu0 %v5062_v41  ;;  %5378 = vmatprep.subr.mxu1 %v5064_v8  ;;  %v5205_v41 = vld [vmem:[#allocation10 + $0x580] sm:$0xff]  ;;  %v5207_v8 = vld [vmem:[#allocation10 + $0x590] sm:$0xff] }
 0x804   :  { %5308 = vmatpush1.msra.mxu0 %v5061_v63  ;;  %5379 = vmatpush1.msra.mxu1 %v5063_v43  ;;  %v5198_v63 = vld [vmem:[#allocation10 + $0x548] sm:$0xff]  ;;  %v5200_v43 = vld [vmem:[#allocation10 + $0x558] sm:$0xff] }
 0x805   :  { %5309 = vmatprep.subr.mxu0 %v5054_v5  ;;  %5380 = vmatprep.subr.mxu1 %v5056_v27  ;;  %v5197_v5 = vld [vmem:[#allocation10 + $0x540] sm:$0xff]  ;;  %v5199_v27 = vld [vmem:[#allocation10 + $0x550] sm:$0xff] }
 0x806   :  { %5310 = vmatpush1.msra.mxu0 %v5053_v32  ;;  %5381 = vmatpush1.msra.mxu1 %v5055_v9  ;;  %v5190_v32 = vld [vmem:[#allocation10 + $0x508] sm:$0xff]  ;;  %v5192_v9 = vld [vmem:[#allocation10 + $0x518] sm:$0xff] }
 0x807   :  { %5311 = vmatprep.subr.mxu0 %v5046_v23  ;;  %5382 = vmatprep.subr.mxu1 %v5048_v24  ;;  %v5189_v23 = vld [vmem:[#allocation10 + $0x500] sm:$0xff]  ;;  %v5191_v24 = vld [vmem:[#allocation10 + $0x510] sm:$0xff] }
 0x808   :  { %5312 = vmatpush1.msra.mxu0 %v5045_v12  ;;  %5383 = vmatpush1.msra.mxu1 %v5047_v15  ;;  %v5182_v12 = vld [vmem:[#allocation10 + $0x4c8] sm:$0xff]  ;;  %v5184_v15 = vld [vmem:[#allocation10 + $0x4d8] sm:$0xff] }
 0x809   :  { %5313 = vmatprep.subr.mxu0 %v5038_v16  ;;  %5384 = vmatprep.subr.mxu1 %v5040_v6  ;;  %v5181_v16 = vld [vmem:[#allocation10 + $0x4c0] sm:$0xff]  ;;  %v5183_v6 = vld [vmem:[#allocation10 + $0x4d0] sm:$0xff] }
 0x80a   :  { %5314 = vmatpush1.msra.mxu0 %v5037_v3  ;;  %5385 = vmatpush1.msra.mxu1 %v5039_v51  ;;  %v5174_v3 = vld [vmem:[#allocation10 + $0x488] sm:$0xff]  ;;  %v5176_v51 = vld [vmem:[#allocation10 + $0x498] sm:$0xff] }
 0x80b   :  { %5315 = vmatprep.subr.mxu0 %v5030_v0  ;;  %5386 = vmatprep.subr.mxu1 %v5032_v53  ;;  %v5173_v0 = vld [vmem:[#allocation10 + $0x480] sm:$0xff]  ;;  %v5175_v53 = vld [vmem:[#allocation10 + $0x490] sm:$0xff] }
 0x80c   :  { %5316 = vmatpush1.msra.mxu0 %v5029_v40  ;;  %5387 = vmatpush1.msra.mxu1 %v5031_v50  ;;  %v5166_v40 = vld [vmem:[#allocation10 + $0x448] sm:$0xff]  ;;  %v5168_v50 = vld [vmem:[#allocation10 + $0x458] sm:$0xff] }
 0x80d   :  { %5317 = vmatprep.subr.mxu0 %v5278_v36  ;;  %5388 = vmatprep.subr.mxu1 %v5280_v20  ;;  %v5165_v36 = vld [vmem:[#allocation10 + $0x440] sm:$0xff]  ;;  %v5167_v20 = vld [vmem:[#allocation10 + $0x450] sm:$0xff] }
 0x80e   :  { %5318 = vmatpush2.msra.mxu0 %v5277_v48  ;;  %5389 = vmatpush2.msra.mxu1 %v5279_v4  ;;  %v5158_v48 = vld [vmem:[#allocation10 + $0x408] sm:$0xff]  ;;  %v5160_v4 = vld [vmem:[#allocation10 + $0x418] sm:$0xff] }
 0x80f   :  { %5319 = vmatprep.subr.mxu0 %v5270_v21  ;;  %5390 = vmatprep.subr.mxu1 %v5272_v25  ;;  %v5157_v21 = vld [vmem:[#allocation10 + $0x400] sm:$0xff]  ;;  %v5159_v25 = vld [vmem:[#allocation10 + $0x410] sm:$0xff] }
 0x810   :  { %5320 = vmatpush2.msra.mxu0 %v5269_v22  ;;  %5391 = vmatpush2.msra.mxu1 %v5271_v17  ;;  %v5154_v22 = vld [vmem:[#allocation10 + $0x3e8] sm:$0xff]  ;;  %v5156_v17 = vld [vmem:[#allocation10 + $0x3f8] sm:$0xff] }
 0x811   :  { %5321 = vmatprep.subr.mxu0 %v5262_v18  ;;  %5392 = vmatprep.subr.mxu1 %v5264_v10 }
 0x812   :  { %5322 = vmatpush2.msra.mxu0 %v5261_v54  ;;  %5393 = vmatpush2.msra.mxu1 %v5263_v26  ;;  %v6815_v26 = vld [vmem:[#allocation23_spill] sm:$0xff] }
 0x813   :  { %5323 = vmatprep.subr.mxu0 %v5254_v11  ;;  %5394 = vmatprep.subr.mxu1 %v5256_v13  ;;  %v6816_v13 = vld [vmem:[#allocation24_spill] sm:$0xff] }
 0x814   :  { %5324 = vmatpush2.msra.mxu0 %v5253_v35  ;;  %5395 = vmatpush2.msra.mxu1 %v5255_v60 }
 0x815   :  { %5325 = vmatprep.subr.mxu0 %v5246_v42  ;;  %5396 = vmatprep.subr.mxu1 %v5248_v14  ;;  %v6817_v42 = vld [vmem:[#allocation25_spill] sm:$0xff] }
 0x816   :  { %5326 = vmatpush2.msra.mxu0 %v5245_v52  ;;  %5397 = vmatpush2.msra.mxu1 %v5247_v37  ;;  %v6818_v37 = vld [vmem:[#allocation26_spill] sm:$0xff] }
 0x817   :  { %5327 = vmatprep.subr.mxu0 %v5238_v47  ;;  %5398 = vmatprep.subr.mxu1 %v5240_v28 }
 0x818   :  { %5328 = vmatpush2.msra.mxu0 %v5237_v31  ;;  %5399 = vmatpush2.msra.mxu1 %v5239_v33 }
 0x819   :  { %5329 = vmatprep.subr.mxu0 %v5230_v45  ;;  %5400 = vmatprep.subr.mxu1 %v5232_v46 }
 0x81a   :  { %5330 = vmatpush2.msra.mxu0 %v5229_v7  ;;  %5401 = vmatpush2.msra.mxu1 %v5231_v55 }
 0x81b   :  { %5331 = vmatprep.subr.mxu0 %v5222_v56  ;;  %5402 = vmatprep.subr.mxu1 %v5224_v59 }
 0x81c   :  { %5332 = vmatpush2.msra.mxu0 %v5221_v61  ;;  %5403 = vmatpush2.msra.mxu1 %v5223_v57  ;;  %v6819_v57 = vld [vmem:[#allocation35_spill] sm:$0xff] }
 0x81d   :  { %5333 = vmatprep.subr.mxu0 %v5214_v29  ;;  %5404 = vmatprep.subr.mxu1 %v5216_v30  ;;  %v519_v29 = vadd.f32 %v6819_v57, %v6565_v1  ;;  %v6820_v30 = vld [vmem:[#allocation36_spill] sm:$0xff] }
 0x81e   :  { %5334 = vmatpush2.msra.mxu0 %v5213_v58  ;;  %5405 = vmatpush2.msra.mxu1 %v5215_v19  ;;  %v632_v58 = vadd.f32 %v6820_v30, %v6568_v2  ;;  %v6821_v19 = vld [vmem:[#allocation37_spill] sm:$0xff]  ;;  %v5116_v57 = vld [vmem:[#allocation10 + $0x2b8] sm:$0xff]  ;;  %v5115_v30 = vld [vmem:[#allocation10 + $0x2b0] sm:$0xff] }
 0x81f   :  { %5335 = vmatprep.subr.mxu0 %v5206_v39  ;;  %5406 = vmatprep.subr.mxu1 %v5208_v44  ;;  %v521_v39 = vadd.f32 %v6821_v19, %v6571_v49  ;;  %v5108_v19 = vld [vmem:[#allocation10 + $0x278] sm:$0xff] }
 0x820   :  { %5336 = vmatpush2.msra.mxu0 %v5205_v41  ;;  %5407 = vmatpush2.msra.mxu1 %v5207_v8 }
 0x821   :  { %5337 = vmatprep.subr.mxu0 %v5198_v63  ;;  %5408 = vmatprep.subr.mxu1 %v5200_v43  ;;  %v6822_v63 = vld [vmem:[#allocation38_spill] sm:$0xff] }
 0x822   :  { %5338 = vmatpush2.msra.mxu0 %v5197_v5  ;;  %5409 = vmatpush2.msra.mxu1 %v5199_v27  ;;  %v634_v43 = vadd.f32 %v6822_v63, %v6574_v34  ;;  %v5097_v63 = vld [vmem:[#allocation10 + $0x220] sm:$0xff] }
 0x823   :  { %5339 = vmatprep.subr.mxu0 %v5190_v32  ;;  %5410 = vmatprep.subr.mxu1 %v5192_v9 }
 0x824   :  { %5340 = vmatpush2.msra.mxu0 %v5189_v23  ;;  %5411 = vmatpush2.msra.mxu1 %v5191_v24 }
 0x825   :  { %5341 = vmatprep.subr.mxu0 %v5182_v12  ;;  %5412 = vmatprep.subr.mxu1 %v5184_v15 }
 0x826   :  { %5342 = vmatpush2.msra.mxu0 %v5181_v16  ;;  %5413 = vmatpush2.msra.mxu1 %v5183_v6 }
 0x827   :  { %5343 = vmatprep.subr.mxu0 %v5174_v3  ;;  %5414 = vmatprep.subr.mxu1 %v5176_v51 }
 0x828   :  { %5344 = vmatpush2.msra.mxu0 %v5173_v0  ;;  %5415 = vmatpush2.msra.mxu1 %v5175_v53 }
 0x829   :  { %5345 = vmatprep.subr.mxu0 %v5166_v40  ;;  %5416 = vmatprep.subr.mxu1 %v5168_v50 }
 0x82a   :  { %5346 = vmatpush2.msra.mxu0 %v5165_v36  ;;  %5417 = vmatpush2.msra.mxu1 %v5167_v20 }
 0x82b   :  { %5347 = vmatprep.subr.mxu0 %v5158_v48  ;;  %5418 = vmatprep.subr.mxu1 %v5160_v4 }
 0x82c   :  { %5348 = vmatpush2.msra.mxu0 %v5157_v21  ;;  %5419 = vmatpush2.msra.mxu1 %v5159_v25 }
 0x82d   :  { %5427 = vmatprep.subr.mxu0 %v5154_v22  ;;  %5498 = vmatprep.subr.mxu1 %v5156_v17 }
 0x86b   :  { %v4735_v18 = vpop.f32.mrf.mxu0  ;;  %v4806_v10 = vpop.f32.mrf.mxu1 }
 0x86c   :  { %v4953_v11 = vadd.f32 %v4735_v18, %v6815_v26  ;;  %v4955_v35 = vadd.f32 %v4806_v10, %v6816_v13  ;;  %v5155_v13 = vld [vmem:[#allocation10 + $0x3f0] sm:$0xff] }
 0x86d   :  { %v4737_v54 = vpop.f32.mrf.mxu0  ;;  %v4808_v60 = vpop.f32.mrf.mxu1 }
 0x86e   :  { %v4954_v14 = vadd.f32 %v4737_v54, %v6817_v42  ;;  %v5757_v52 = vmul.f32 -1.442695, %v4953_v11  ;;  %v4956_v47 = vadd.f32 %v4808_v60, %v6818_v37  ;;  %v5759_v28 = vmul.f32 -1.442695, %v4955_v35  ;;  %v5146_v35 = vld [vmem:[#allocation10 + $0x3a8] sm:$0xff]  ;;  %v5148_v60 = vld [vmem:[#allocation10 + $0x3b8] sm:$0xff] }
 0x86f   :  { %v5145_v42 = vld [vmem:[#allocation10 + $0x3a0] sm:$0xff]  ;;  %v5140_v37 = vld [vmem:[#allocation10 + $0x378] sm:$0xff] }
 0x870   :  { %v5758_v31 = vmul.f32 -1.442695, %v4954_v14  ;;  %5975 = vpow2.f32 %v5757_v52  ;;  %v5760_v33 = vmul.f32 -1.442695, %v4956_v47  ;;  %v5147_v14 = vld [vmem:[#allocation10 + $0x3b0] sm:$0xff]  ;;  %v5138_v52 = vld [vmem:[#allocation10 + $0x368] sm:$0xff] }
 0x871   :  { %5977 = vpow2.f32 %v5759_v28  ;;  %v5137_v47 = vld [vmem:[#allocation10 + $0x360] sm:$0xff]  ;;  %v5139_v28 = vld [vmem:[#allocation10 + $0x370] sm:$0xff] }
 0x872   :  { %5979 = vpow2.f32 %v5758_v31  ;;  %v5130_v31 = vld [vmem:[#allocation10 + $0x328] sm:$0xff] }
 0x873   :  { %5981 = vpow2.f32 %v5760_v33  ;;  %v5132_v33 = vld [vmem:[#allocation10 + $0x338] sm:$0xff] }
 0x87d   :  { %v5976_v45 = vpop.eup %5975 }
 0x87e   :  { %v5978_v46 = vpop.eup %5977  ;;  %v4967_v55 = vadd.f32 1.0, %v5976_v45  ;;  %v5129_v45 = vld [vmem:[#allocation10 + $0x320] sm:$0xff] }
 0x87f   :  { %v5980_v7 = vpop.eup %5979  ;;  %v4979_v59 = vadd.f32 1.0, %v5978_v46  ;;  %v5131_v46 = vld [vmem:[#allocation10 + $0x330] sm:$0xff] }
 0x880   :  { %v5982_v56 = vpop.eup %5981  ;;  %v4968_v61 = vadd.f32 1.0, %v5980_v7  ;;  %5983 = vrcp.f32 %v4967_v55  ;;  %v5122_v7 = vld [vmem:[#allocation10 + $0x2e8] sm:$0xff]  ;;  %v5124_v55 = vld [vmem:[#allocation10 + $0x2f8] sm:$0xff] }
 0x881   :  { %v4980_v44 = vadd.f32 1.0, %v5982_v56  ;;  %5985 = vrcp.f32 %v4979_v59  ;;  %v5121_v56 = vld [vmem:[#allocation10 + $0x2e0] sm:$0xff]  ;;  %v5123_v59 = vld [vmem:[#allocation10 + $0x2f0] sm:$0xff] }
 0x882   :  { %5987 = vrcp.f32 %v4968_v61  ;;  %v5114_v61 = vld [vmem:[#allocation10 + $0x2a8] sm:$0xff] }
 0x88d   :  { %v5984_v16 = vpop.eup %5983 }
 0x88e   :  { %v5986_v6 = vpop.eup %5985 }
 0x88f   :  { %v5988_v3 = vpop.eup %5987  ;;  %v4999_v53 = vmul.f32 %v5986_v6, %v6718_v62  ;;  %v5076_v6 = vld [vmem:[#allocation10 + $0x178] sm:$0xff] }
 0x8ac   :  { %v4877_v41 = vpop.f32.mrf.mxu0  ;;  %v4948_v8 = vpop.f32.mrf.mxu1 }
 0x8ad   :  { %v4957_v5 = vadd.f32 %v4877_v41, %v519_v29  ;;  %v4959_v27 = vadd.f32 %v4948_v8, %v632_v58  ;;  %v5113_v29 = vld [vmem:[#allocation10 + $0x2a0] sm:$0xff]  ;;  %v5106_v58 = vld [vmem:[#allocation10 + $0x268] sm:$0xff]  ;;  %v5100_v8 = vld [vmem:[#allocation10 + $0x238] sm:$0xff] }
 0x8ae   :  { %v4879_v32 = vpop.f32.mrf.mxu0  ;;  %v4950_v9 = vpop.f32.mrf.mxu1  ;;  %v5098_v41 = vld [vmem:[#allocation10 + $0x228] sm:$0xff] }
 0x8af   :  { %5989 = vtanh.f32 %v4957_v5  ;;  %v5761_v23 = vmul.f32 -1.442695, %v4959_v27  ;;  %v4958_v24 = vadd.f32 %v4879_v32, %v521_v39  ;;  %v4960_v12 = vadd.f32 %v4950_v9, %v634_v43  ;;  %v5105_v39 = vld [vmem:[#allocation10 + $0x260] sm:$0xff]  ;;  %v5099_v43 = vld [vmem:[#allocation10 + $0x230] sm:$0xff]  ;;  %v5090_v5 = vld [vmem:[#allocation10 + $0x1e8] sm:$0xff] }
 0x8b0   :  { %5991 = vrcp.f32 %v4980_v44  ;;  %v5107_v44 = vld [vmem:[#allocation10 + $0x270] sm:$0xff]  ;;  %v5092_v27 = vld [vmem:[#allocation10 + $0x1f8] sm:$0xff]  ;;  %v5089_v32 = vld [vmem:[#allocation10 + $0x1e0] sm:$0xff] }
 0x8b1   :  { %5993 = vpow2.f32 %v5761_v23  ;;  %v5762_v15 = vmul.f32 -1.442695, %v4960_v12  ;;  %v5091_v9 = vld [vmem:[#allocation10 + $0x1f0] sm:$0xff]  ;;  %v5082_v23 = vld [vmem:[#allocation10 + $0x1a8] sm:$0xff]  ;;  %v5081_v12 = vld [vmem:[#allocation10 + $0x1a0] sm:$0xff] }
 0x8b2   :  { %5995 = vtanh.f32 %v4958_v24  ;;  %v5084_v24 = vld [vmem:[#allocation10 + $0x1b8] sm:$0xff] }
 0x8b3   :  { %5997 = vpow2.f32 %v5762_v15  ;;  %v5083_v15 = vld [vmem:[#allocation10 + $0x1b0] sm:$0xff] }
 0x8bc   :  { %v5990_v51 = vpop.eup %5989 }
 0x8bd   :  { %v5992_v0 = vpop.eup %5991  ;;  %v5001_v40 = vmul.f32 %v5990_v51, %v5984_v16  ;;  %v5074_v16 = vld [vmem:[#allocation10 + $0x168] sm:$0xff]  ;;  %v5075_v51 = vld [vmem:[#allocation10 + $0x170] sm:$0xff] }
 0x8be   :  { %v5994_v50 = vpop.eup %5993  ;;  %v5000_v21 = vmul.f32 %v5992_v0, %v6722_v38  ;;  %v5153_v38 = vld [vmem:[#allocation10 + $0x3e0] sm:$0xff]  ;;  %v5066_v0 = vld [vmem:[#allocation10 + $0x128] sm:$0xff] }
 0x8bf   :  { %v5996_v36 = vpop.eup %5995  ;;  %v6745_v20 = vadd.f32 %v5001_v40, %v4999_v53  ;;  %v4993_v48 = vadd.f32 1.0, %v5994_v50  ;;  %v5068_v53 = vld [vmem:[#allocation10 + $0x138] sm:$0xff]  ;;  %v5065_v40 = vld [vmem:[#allocation10 + $0x120] sm:$0xff]  ;;  %v5067_v50 = vld [vmem:[#allocation10 + $0x130] sm:$0xff] }
 0x8c0   :  { %v5998_v4 = vpop.eup %5997  ;;  %v5002_v25 = vmul.f32 %v5996_v36, %v5988_v3  ;;  %v5073_v3 = vld [vmem:[#allocation10 + $0x160] sm:$0xff]  ;;  %v5058_v36 = vld [vmem:[#allocation10 + $0xe8] sm:$0xff] }
 0x8c1   :  { %5999 = vtanh.f32 %v6745_v20  ;;  %v4994_v22 = vadd.f32 1.0, %v5998_v4  ;;  %v5057_v4 = vld [vmem:[#allocation10 + $0xe0] sm:$0xff] }
 0x8c2   :  { %6001 = vrcp.f32 %v4993_v48  ;;  %v6749_v17 = vadd.f32 %v5002_v25, %v5000_v21  ;;  %v5060_v48 = vld [vmem:[#allocation10 + $0xf8] sm:$0xff]  ;;  %v5059_v21 = vld [vmem:[#allocation10 + $0xf0] sm:$0xff]  ;;  %v5050_v25 = vld [vmem:[#allocation10 + $0xa8] sm:$0xff] }
 0x8c3   :  { %6003 = vrcp.f32 %v4994_v22  ;;  %v5052_v22 = vld [vmem:[#allocation10 + $0xb8] sm:$0xff] }
 0x8c4   :  { %6005 = vtanh.f32 %v6749_v17 }
 0x8ce   :  { %v6000_v62 = vpop.eup %5999 }
 0x8cf   :  { %v6002_v18 = vpop.eup %6001 }
 0x8d0   :  { %v6004_v10 = vpop.eup %6003  ;;  %v6752_v54 = vmul.f32 %v6002_v18, %v6000_v62  ;;  %v5049_v62 = vld [vmem:[#allocation10 + $0xa0] sm:$0xff]  ;;  %v5051_v18 = vld [vmem:[#allocation10 + $0xb0] sm:$0xff] }
 0x8d1   :  { %v6006_v26 = vpop.eup %6005 }
 0x8d2   :  { %v5008_v11 = vmul.f32 %v6006_v26, %v6004_v10  ;;  %5014 = vst [vmem:[#allocation13 + $0x60] sm:$0xff] %v6752_v54  ;;  %v5042_v10 = vld [vmem:[#allocation10 + $0x68] sm:$0xff]  ;;  %v5044_v26 = vld [vmem:[#allocation10 + $0x78] sm:$0xff] }
 0x8d4   :  { %5015 = vst [vmem:[#allocation13 + $0x68] sm:$0xff] %v5008_v11  ;;  %5349 = vmatprep.mubr.f32.mxu0 %v5008_v11  ;;  %5420 = vmatprep.mubr.f32.mxu1 %v5008_v11 }
 0x8d5   :  { %5350 = vmatmul.mubr.f32.vlgmr.msra.gmra.mxu0 %v6752_v54  ;;  %5421 = vmatmul.mubr.f32.vlgmr.msra.gmra.mxu1 %v6752_v54 }
 0x8d6   :  { %5428 = vmatpush1.msra.mxu0 %v5153_v38  ;;  %5499 = vmatpush1.msra.mxu1 %v5155_v13  ;;  %v5043_v38 = vld [vmem:[#allocation10 + $0x70] sm:$0xff]  ;;  %v5034_v13 = vld [vmem:[#allocation10 + $0x28] sm:$0xff] }
 0x8d7   :  { %5429 = vmatprep.subr.mxu0 %v5146_v35  ;;  %5491 = vmatprep.mubr.f32.mxu0 %v5008_v11  ;;  %v5036_v35 = vld [vmem:[#allocation10 + $0x38] sm:$0xff] }
 0x8d8   :  { %5500 = vmatprep.subr.mxu1 %v5148_v60  ;;  %5562 = vmatprep.mubr.f32.mxu1 %v5008_v11  ;;  %v5041_v11 = vld [vmem:[#allocation10 + $0x60] sm:$0xff] }
 0x8d9   :  { %5430 = vmatpush1.msra.mxu0 %v5145_v42  ;;  %5501 = vmatpush1.msra.mxu1 %v5147_v14  ;;  %v5033_v60 = vld [vmem:[#allocation10 + $0x20] sm:$0xff]  ;;  %v5035_v42 = vld [vmem:[#allocation10 + $0x30] sm:$0xff]  ;;  %v5282_v14 = vld [vmem:[#allocation10 + $0x7e8] sm:$0xff] }
 0x8da   :  { %5431 = vmatprep.subr.mxu0 %v5138_v52  ;;  %5502 = vmatprep.subr.mxu1 %v5140_v37  ;;  %v5284_v52 = vld [vmem:[#allocation10 + $0x7f8] sm:$0xff]  ;;  %v5281_v37 = vld [vmem:[#allocation10 + $0x7e0] sm:$0xff] }
 0x8db   :  { %5432 = vmatpush1.msra.mxu0 %v5137_v47  ;;  %5503 = vmatpush1.msra.mxu1 %v5139_v28  ;;  %v5283_v47 = vld [vmem:[#allocation10 + $0x7f0] sm:$0xff]  ;;  %v5274_v28 = vld [vmem:[#allocation10 + $0x7a8] sm:$0xff] }
 0x8dc   :  { %5433 = vmatprep.subr.mxu0 %v5130_v31  ;;  %5504 = vmatprep.subr.mxu1 %v5132_v33  ;;  %v5276_v31 = vld [vmem:[#allocation10 + $0x7b8] sm:$0xff]  ;;  %v5273_v33 = vld [vmem:[#allocation10 + $0x7a0] sm:$0xff] }
 0x8dd   :  { %5434 = vmatpush1.msra.mxu0 %v5129_v45  ;;  %5505 = vmatpush1.msra.mxu1 %v5131_v46  ;;  %v5275_v45 = vld [vmem:[#allocation10 + $0x7b0] sm:$0xff]  ;;  %v5266_v46 = vld [vmem:[#allocation10 + $0x768] sm:$0xff] }
 0x8de   :  { %5435 = vmatprep.subr.mxu0 %v5122_v7  ;;  %5506 = vmatprep.subr.mxu1 %v5124_v55  ;;  %v5268_v7 = vld [vmem:[#allocation10 + $0x778] sm:$0xff]  ;;  %v5265_v55 = vld [vmem:[#allocation10 + $0x760] sm:$0xff] }
 0x8df   :  { %5436 = vmatpush1.msra.mxu0 %v5121_v56  ;;  %5507 = vmatpush1.msra.mxu1 %v5123_v59  ;;  %v5267_v56 = vld [vmem:[#allocation10 + $0x770] sm:$0xff]  ;;  %v5258_v59 = vld [vmem:[#allocation10 + $0x728] sm:$0xff] }
 0x8e0   :  { %5437 = vmatprep.subr.mxu0 %v5114_v61  ;;  %5508 = vmatprep.subr.mxu1 %v5116_v57  ;;  %v5260_v61 = vld [vmem:[#allocation10 + $0x738] sm:$0xff]  ;;  %v5257_v57 = vld [vmem:[#allocation10 + $0x720] sm:$0xff] }
 0x8e1   :  { %5438 = vmatpush1.msra.mxu0 %v5113_v29  ;;  %5509 = vmatpush1.msra.mxu1 %v5115_v30  ;;  %v5259_v29 = vld [vmem:[#allocation10 + $0x730] sm:$0xff]  ;;  %v5250_v30 = vld [vmem:[#allocation10 + $0x6e8] sm:$0xff] }
 0x8e2   :  { %5439 = vmatprep.subr.mxu0 %v5106_v58  ;;  %5510 = vmatprep.subr.mxu1 %v5108_v19  ;;  %v5252_v58 = vld [vmem:[#allocation10 + $0x6f8] sm:$0xff]  ;;  %v5249_v19 = vld [vmem:[#allocation10 + $0x6e0] sm:$0xff] }
 0x8e3   :  { %5440 = vmatpush1.msra.mxu0 %v5105_v39  ;;  %5511 = vmatpush1.msra.mxu1 %v5107_v44  ;;  %v5251_v39 = vld [vmem:[#allocation10 + $0x6f0] sm:$0xff]  ;;  %v5242_v44 = vld [vmem:[#allocation10 + $0x6a8] sm:$0xff] }
 0x8e4   :  { %5441 = vmatprep.subr.mxu0 %v5098_v41  ;;  %5512 = vmatprep.subr.mxu1 %v5100_v8  ;;  %v5244_v41 = vld [vmem:[#allocation10 + $0x6b8] sm:$0xff]  ;;  %v5241_v8 = vld [vmem:[#allocation10 + $0x6a0] sm:$0xff] }
 0x8e5   :  { %5442 = vmatpush1.msra.mxu0 %v5097_v63  ;;  %5513 = vmatpush1.msra.mxu1 %v5099_v43  ;;  %v5243_v63 = vld [vmem:[#allocation10 + $0x6b0] sm:$0xff]  ;;  %v5234_v43 = vld [vmem:[#allocation10 + $0x668] sm:$0xff] }
 0x8e6   :  { %5443 = vmatprep.subr.mxu0 %v5090_v5  ;;  %5514 = vmatprep.subr.mxu1 %v5092_v27  ;;  %v5236_v5 = vld [vmem:[#allocation10 + $0x678] sm:$0xff]  ;;  %v5233_v27 = vld [vmem:[#allocation10 + $0x660] sm:$0xff] }
 0x8e7   :  { %5444 = vmatpush1.msra.mxu0 %v5089_v32  ;;  %5515 = vmatpush1.msra.mxu1 %v5091_v9  ;;  %v5235_v32 = vld [vmem:[#allocation10 + $0x670] sm:$0xff]  ;;  %v5226_v9 = vld [vmem:[#allocation10 + $0x628] sm:$0xff] }
 0x8e8   :  { %5445 = vmatprep.subr.mxu0 %v5082_v23  ;;  %5516 = vmatprep.subr.mxu1 %v5084_v24  ;;  %v5228_v23 = vld [vmem:[#allocation10 + $0x638] sm:$0xff]  ;;  %v5225_v24 = vld [vmem:[#allocation10 + $0x620] sm:$0xff] }
 0x8e9   :  { %5446 = vmatpush1.msra.mxu0 %v5081_v12  ;;  %5517 = vmatpush1.msra.mxu1 %v5083_v15  ;;  %v5227_v12 = vld [vmem:[#allocation10 + $0x630] sm:$0xff]  ;;  %v5218_v15 = vld [vmem:[#allocation10 + $0x5e8] sm:$0xff] }
 0x8ea   :  { %5447 = vmatprep.subr.mxu0 %v5074_v16  ;;  %5518 = vmatprep.subr.mxu1 %v5076_v6  ;;  %v5220_v16 = vld [vmem:[#allocation10 + $0x5f8] sm:$0xff]  ;;  %v5217_v6 = vld [vmem:[#allocation10 + $0x5e0] sm:$0xff] }
 0x8eb   :  { %5448 = vmatpush1.msra.mxu0 %v5073_v3  ;;  %5519 = vmatpush1.msra.mxu1 %v5075_v51  ;;  %v5219_v3 = vld [vmem:[#allocation10 + $0x5f0] sm:$0xff]  ;;  %v5210_v51 = vld [vmem:[#allocation10 + $0x5a8] sm:$0xff] }
 0x8ec   :  { %5449 = vmatprep.subr.mxu0 %v5066_v0  ;;  %5520 = vmatprep.subr.mxu1 %v5068_v53  ;;  %v5212_v0 = vld [vmem:[#allocation10 + $0x5b8] sm:$0xff]  ;;  %v5209_v53 = vld [vmem:[#allocation10 + $0x5a0] sm:$0xff] }
 0x8ed   :  { %5450 = vmatpush1.msra.mxu0 %v5065_v40  ;;  %5521 = vmatpush1.msra.mxu1 %v5067_v50  ;;  %v5211_v40 = vld [vmem:[#allocation10 + $0x5b0] sm:$0xff]  ;;  %v5202_v50 = vld [vmem:[#allocation10 + $0x568] sm:$0xff] }
 0x8ee   :  { %5451 = vmatprep.subr.mxu0 %v5058_v36  ;;  %5522 = vmatprep.subr.mxu1 %v5060_v48  ;;  %v5204_v36 = vld [vmem:[#allocation10 + $0x578] sm:$0xff]  ;;  %v5201_v48 = vld [vmem:[#allocation10 + $0x560] sm:$0xff] }
 0x8ef   :  { %5452 = vmatpush1.msra.mxu0 %v5057_v4  ;;  %5523 = vmatpush1.msra.mxu1 %v5059_v21  ;;  %v5203_v4 = vld [vmem:[#allocation10 + $0x570] sm:$0xff]  ;;  %v5194_v21 = vld [vmem:[#allocation10 + $0x528] sm:$0xff] }
 0x8f0   :  { %5453 = vmatprep.subr.mxu0 %v5050_v25  ;;  %5524 = vmatprep.subr.mxu1 %v5052_v22  ;;  %v5196_v25 = vld [vmem:[#allocation10 + $0x538] sm:$0xff]  ;;  %v5193_v22 = vld [vmem:[#allocation10 + $0x520] sm:$0xff] }
 0x8f1   :  { %5454 = vmatpush1.msra.mxu0 %v5049_v62  ;;  %5525 = vmatpush1.msra.mxu1 %v5051_v18  ;;  %v5195_v62 = vld [vmem:[#allocation10 + $0x530] sm:$0xff]  ;;  %v5186_v18 = vld [vmem:[#allocation10 + $0x4e8] sm:$0xff] }
 0x8f2   :  { %5455 = vmatprep.subr.mxu0 %v5042_v10  ;;  %5526 = vmatprep.subr.mxu1 %v5044_v26  ;;  %v5188_v10 = vld [vmem:[#allocation10 + $0x4f8] sm:$0xff]  ;;  %v5185_v26 = vld [vmem:[#allocation10 + $0x4e0] sm:$0xff] }
 0x8f3   :  { %5456 = vmatpush1.msra.mxu0 %v5041_v11  ;;  %5527 = vmatpush1.msra.mxu1 %v5043_v38  ;;  %v5187_v11 = vld [vmem:[#allocation10 + $0x4f0] sm:$0xff]  ;;  %v5178_v38 = vld [vmem:[#allocation10 + $0x4a8] sm:$0xff] }
 0x8f4   :  { %5457 = vmatprep.subr.mxu0 %v5034_v13  ;;  %5528 = vmatprep.subr.mxu1 %v5036_v35  ;;  %v5180_v13 = vld [vmem:[#allocation10 + $0x4b8] sm:$0xff]  ;;  %v5177_v35 = vld [vmem:[#allocation10 + $0x4a0] sm:$0xff] }
 0x8f5   :  { %5458 = vmatpush1.msra.mxu0 %v5033_v60  ;;  %5529 = vmatpush1.msra.mxu1 %v5035_v42  ;;  %v5179_v60 = vld [vmem:[#allocation10 + $0x4b0] sm:$0xff]  ;;  %v5170_v42 = vld [vmem:[#allocation10 + $0x468] sm:$0xff] }
 0x8f6   :  { %5459 = vmatprep.subr.mxu0 %v5282_v14  ;;  %5530 = vmatprep.subr.mxu1 %v5284_v52  ;;  %v5172_v14 = vld [vmem:[#allocation10 + $0x478] sm:$0xff]  ;;  %v5169_v52 = vld [vmem:[#allocation10 + $0x460] sm:$0xff] }
 0x8f7   :  { %5460 = vmatpush2.msra.mxu0 %v5281_v37  ;;  %5531 = vmatpush2.msra.mxu1 %v5283_v47  ;;  %v5171_v37 = vld [vmem:[#allocation10 + $0x470] sm:$0xff]  ;;  %v5162_v47 = vld [vmem:[#allocation10 + $0x428] sm:$0xff] }
 0x8f8   :  { %5461 = vmatprep.subr.mxu0 %v5274_v28  ;;  %5532 = vmatprep.subr.mxu1 %v5276_v31  ;;  %v5164_v28 = vld [vmem:[#allocation10 + $0x438] sm:$0xff]  ;;  %v5161_v31 = vld [vmem:[#allocation10 + $0x420] sm:$0xff] }
 0x8f9   :  { %5462 = vmatpush2.msra.mxu0 %v5273_v33  ;;  %5533 = vmatpush2.msra.mxu1 %v5275_v45  ;;  %v5163_v33 = vld [vmem:[#allocation10 + $0x430] sm:$0xff] }
 0x8fa   :  { %5463 = vmatprep.subr.mxu0 %v5266_v46  ;;  %5534 = vmatprep.subr.mxu1 %v5268_v7 }
 0x8fb   :  { %5464 = vmatpush2.msra.mxu0 %v5265_v55  ;;  %5535 = vmatpush2.msra.mxu1 %v5267_v56  ;;  %v6823_v55 = vld [vmem:[#allocation27_spill] sm:$0xff] }
 0x8fc   :  { %5465 = vmatprep.subr.mxu0 %v5258_v59  ;;  %5536 = vmatprep.subr.mxu1 %v5260_v61  ;;  %v6824_v59 = vld [vmem:[#allocation28_spill] sm:$0xff] }
 0x8fd   :  { %5466 = vmatpush2.msra.mxu0 %v5257_v57  ;;  %5537 = vmatpush2.msra.mxu1 %v5259_v29  ;;  %v6825_v29 = vld [vmem:[#allocation29_spill] sm:$0xff] }
 0x8fe   :  { %5467 = vmatprep.subr.mxu0 %v5250_v30  ;;  %5538 = vmatprep.subr.mxu1 %v5252_v58 }
 0x8ff   :  { %5468 = vmatpush2.msra.mxu0 %v5249_v19  ;;  %5539 = vmatpush2.msra.mxu1 %v5251_v39  ;;  %v6826_v19 = vld [vmem:[#allocation30_spill] sm:$0xff] }
 0x900   :  { %5469 = vmatprep.subr.mxu0 %v5242_v44  ;;  %5540 = vmatprep.subr.mxu1 %v5244_v41 }
 0x901   :  { %5470 = vmatpush2.msra.mxu0 %v5241_v8  ;;  %5541 = vmatpush2.msra.mxu1 %v5243_v63 }
 0x902   :  { %5471 = vmatprep.subr.mxu0 %v5234_v43  ;;  %5542 = vmatprep.subr.mxu1 %v5236_v5 }
 0x903   :  { %5472 = vmatpush2.msra.mxu0 %v5233_v27  ;;  %5543 = vmatpush2.msra.mxu1 %v5235_v32 }
 0x904   :  { %5473 = vmatprep.subr.mxu0 %v5226_v9  ;;  %5544 = vmatprep.subr.mxu1 %v5228_v23  ;;  %v6827_v23 = vld [vmem:[#allocation39_spill] sm:$0xff] }
 0x905   :  { %5474 = vmatpush2.msra.mxu0 %v5225_v24  ;;  %5545 = vmatpush2.msra.mxu1 %v5227_v12  ;;  %v525_v24 = vadd.f32 %v6827_v23, %v6565_v1  ;;  %v6828_v12 = vld [vmem:[#allocation40_spill] sm:$0xff] }
 0x906   :  { %5475 = vmatprep.subr.mxu0 %v5218_v15  ;;  %5546 = vmatprep.subr.mxu1 %v5220_v16  ;;  %v638_v15 = vadd.f32 %v6828_v12, %v6568_v2  ;;  %v6829_v16 = vld [vmem:[#allocation41_spill] sm:$0xff] }
 0x907   :  { %5476 = vmatpush2.msra.mxu0 %v5217_v6  ;;  %5547 = vmatpush2.msra.mxu1 %v5219_v3  ;;  %v527_v6 = vadd.f32 %v6829_v16, %v6571_v49 }
 0x908   :  { %5477 = vmatprep.subr.mxu0 %v5210_v51  ;;  %5548 = vmatprep.subr.mxu1 %v5212_v0 }
 0x909   :  { %5478 = vmatpush2.msra.mxu0 %v5209_v53  ;;  %5549 = vmatpush2.msra.mxu1 %v5211_v40  ;;  %v6830_v53 = vld [vmem:[#allocation42_spill] sm:$0xff] }
 0x90a   :  { %5479 = vmatprep.subr.mxu0 %v5202_v50  ;;  %5550 = vmatprep.subr.mxu1 %v5204_v36  ;;  %v640_v40 = vadd.f32 %v6830_v53, %v6574_v34 }
 0x90b   :  { %5480 = vmatpush2.msra.mxu0 %v5201_v48  ;;  %5551 = vmatpush2.msra.mxu1 %v5203_v4 }
 0x90c   :  { %5481 = vmatprep.subr.mxu0 %v5194_v21  ;;  %5552 = vmatprep.subr.mxu1 %v5196_v25 }
 0x90d   :  { %5482 = vmatpush2.msra.mxu0 %v5193_v22  ;;  %5553 = vmatpush2.msra.mxu1 %v5195_v62 }
 0x90e   :  { %5483 = vmatprep.subr.mxu0 %v5186_v18  ;;  %5554 = vmatprep.subr.mxu1 %v5188_v10 }
 0x90f   :  { %5484 = vmatpush2.msra.mxu0 %v5185_v26  ;;  %5555 = vmatpush2.msra.mxu1 %v5187_v11 }
 0x910   :  { %5485 = vmatprep.subr.mxu0 %v5178_v38  ;;  %5556 = vmatprep.subr.mxu1 %v5180_v13 }
 0x911   :  { %5486 = vmatpush2.msra.mxu0 %v5177_v35  ;;  %5557 = vmatpush2.msra.mxu1 %v5179_v60 }
 0x912   :  { %5487 = vmatprep.subr.mxu0 %v5170_v42  ;;  %5558 = vmatprep.subr.mxu1 %v5172_v14 }
 0x913   :  { %5488 = vmatpush2.msra.mxu0 %v5169_v52  ;;  %5559 = vmatpush2.msra.mxu1 %v5171_v37 }
 0x914   :  { %5489 = vmatprep.subr.mxu0 %v5162_v47  ;;  %5560 = vmatprep.subr.mxu1 %v5164_v28 }
 0x915   :  { %5490 = vmatpush2.msra.mxu0 %v5161_v31  ;;  %5561 = vmatpush2.msra.mxu1 %v5163_v33 }
 0x916   :  { %5492 = vmatmul.mubr.f32.vlgmr.msra.gmra.mxu0 %v6752_v54  ;;  %5563 = vmatmul.mubr.f32.vlgmr.msra.gmra.mxu1 %v6752_v54 }
 0x995   :  { %v5351_v45 = vpop.f32.mrf.mxu0  ;;  %v5422_v46 = vpop.f32.mrf.mxu1 }
 0x996   :  { %v5569_v56 = vadd.f32 %v5351_v45, %v6823_v55  ;;  %v5571_v61 = vadd.f32 %v5422_v46, %v6824_v59 }
 0x997   :  { %v5353_v7 = vpop.f32.mrf.mxu0  ;;  %v5424_v57 = vpop.f32.mrf.mxu1 }
 0x998   :  { %v5570_v30 = vadd.f32 %v5353_v7, %v6825_v29  ;;  %v5763_v58 = vmul.f32 -1.442695, %v5569_v56  ;;  %v5572_v39 = vadd.f32 %v5424_v57, %v6826_v19  ;;  %v5765_v44 = vmul.f32 -1.442695, %v5571_v61 }
 0x99a   :  { %v5764_v41 = vmul.f32 -1.442695, %v5570_v30  ;;  %6007 = vpow2.f32 %v5763_v58  ;;  %v5766_v8 = vmul.f32 -1.442695, %v5572_v39 }
 0x99b   :  { %6009 = vpow2.f32 %v5765_v44 }
 0x99c   :  { %6011 = vpow2.f32 %v5764_v41 }
 0x99d   :  { %6013 = vpow2.f32 %v5766_v8 }
 0x9a7   :  { %v6008_v54 = vpop.eup %6007 }
 0x9a8   :  { %v6010_v63 = vpop.eup %6009  ;;  %v5583_v5 = vadd.f32 1.0, %v6008_v54 }
 0x9a9   :  { %v6012_v43 = vpop.eup %6011  ;;  %v5595_v32 = vadd.f32 1.0, %v6010_v63 }
 0x9aa   :  { %v6014_v27 = vpop.eup %6013  ;;  %v5584_v9 = vadd.f32 1.0, %v6012_v43  ;;  %6015 = vrcp.f32 %v5583_v5 }
 0x9ab   :  { %v5596_v3 = vadd.f32 1.0, %v6014_v27  ;;  %6017 = vrcp.f32 %v5595_v32 }
 0x9ac   :  { %6019 = vrcp.f32 %v5584_v9 }
 0x9b7   :  { %v6016_v25 = vpop.eup %6015 }
 0x9b8   :  { %v6018_v22 = vpop.eup %6017 }
 0x9b9   :  { %v6020_v62 = vpop.eup %6019  ;;  %v5615_v10 = vmul.f32 %v6018_v22, %v6745_v20 }
 0x9d6   :  { %v5493_v51 = vpop.f32.mrf.mxu0  ;;  %v5564_v0 = vpop.f32.mrf.mxu1 }
 0x9d7   :  { %v5573_v50 = vadd.f32 %v5493_v51, %v525_v24  ;;  %v5575_v36 = vadd.f32 %v5564_v0, %v638_v15 }
 0x9d8   :  { %v5495_v48 = vpop.f32.mrf.mxu0  ;;  %v5566_v4 = vpop.f32.mrf.mxu1 }
 0x9d9   :  { %6021 = vtanh.f32 %v5573_v50  ;;  %v5767_v1 = vmul.f32 -1.442695, %v5575_v36  ;;  %v5574_v21 = vadd.f32 %v5495_v48, %v527_v6  ;;  %v5576_v2 = vadd.f32 %v5566_v4, %v640_v40 }
 0x9da   :  { %6023 = vrcp.f32 %v5596_v3 }
 0x9db   :  { %6025 = vpow2.f32 %v5767_v1  ;;  %v5768_v49 = vmul.f32 -1.442695, %v5576_v2 }
 0x9dc   :  { %6027 = vtanh.f32 %v5574_v21 }
 0x9dd   :  { %6029 = vpow2.f32 %v5768_v49 }
 0x9e6   :  { %v6022_v18 = vpop.eup %6021 }
 0x9e7   :  { %v6024_v34 = vpop.eup %6023  ;;  %v5617_v26 = vmul.f32 %v6022_v18, %v6016_v25 }
 0x9e8   :  { %v6026_v11 = vpop.eup %6025  ;;  %v5616_v42 = vmul.f32 %v6024_v34, %v6749_v17 }
 0x9e9   :  { %v6028_v38 = vpop.eup %6027  ;;  %v5619_v13 = vadd.f32 %v5617_v26, %v5615_v10  ;;  %v5609_v35 = vadd.f32 1.0, %v6026_v11 }
 0x9ea   :  { %v6030_v60 = vpop.eup %6029  ;;  %v5618_v14 = vmul.f32 %v6028_v38, %v6020_v62 }
 0x9eb   :  { %6031 = vtanh.f32 %v5619_v13  ;;  %5641 = vst [vmem:[#allocation16] sm:$0xff] %v5619_v13  ;;  %v5610_v52 = vadd.f32 1.0, %v6030_v60 }
 0x9ec   :  { %6033 = vrcp.f32 %v5609_v35  ;;  %v5620_v37 = vadd.f32 %v5618_v14, %v5616_v42 }
 0x9ed   :  { %6035 = vrcp.f32 %v5610_v52 }
 0x9ee   :  { %6037 = vtanh.f32 %v5620_v37  ;;  %5642 = vst [vmem:[#allocation16 + $0x8] sm:$0xff] %v5620_v37 }
 0x9f8   :  { %v6032_v47 = vpop.eup %6031 }
 0x9f9   :  { %v6034_v28 = vpop.eup %6033 }
 0x9fa   :  { %v6036_v20 = vpop.eup %6035  ;;  %v5623_v31 = vmul.f32 %v6034_v28, %v6032_v47 }
 0x9fb   :  { %v6038_v33 = vpop.eup %6037 }
 0x9fc   :  { %v5624_v17 = vmul.f32 %v6038_v33, %v6036_v20  ;;  %5630 = vst [vmem:[#allocation13 + $0x70] sm:$0xff] %v5623_v31  ;;  %5637 = vst [vmem:[#allocation14] sm:$0xff] %v5623_v31 }
 0x9fe   :  { %5631 = vst [vmem:[#allocation13 + $0x78] sm:$0xff] %v5624_v17  ;;  %5638 = vst [vmem:[#allocation14 + $0x8] sm:$0xff] %v5624_v17 }
 0x9ff   :  { %6130 = shalt.err (!%p6127_p10)
}
 0xa00   :  { %5664 = dma.vmem_to_hbm [thread:$0]  %s5662_s3, 256, %s6787_s5, [#allocation15]  }
 0xa01   :  { %s6139_s26 = scalar_lea.vmem %s5649_s20, 2048  ;;  %p6144_p12 = scmp.lt.s32.totalorder %s5649_s20, %s5649_s20 }
 0xa02   :  { %p6140_p11 = scmp.ne.s32.totalorder %s5649_s20, %s6139_s26  ;;  %p6145_p13 = scmp.lt.s32.totalorder %s6139_s26, %s6139_s26 }
 0xa04   :  { %p6146_p0 = por %p6145_p13, %p6144_p12 }
 0xa06   :  { %p6147_p1 = pnand %p6146_p0, %p6140_p11 }
 0xa08   :  { %6150 = shalt.err (!%p6147_p1)
}
 0xa09   :  { %s6201_s27 = smov 256   ;;  %s6202_s28 = smov 16  }
 0xa0a   :  { %5654 = dma.vmem_to_hbm [thread:$0]  %s5649_s20, 2048, %s6786_s4, [#allocation7], %s6201_s27, %s6201_s27, %s6202_s28  }
 0xa0b   :  { %s6159_s7 = scalar_lea.vmem %s5672_s22, 256  ;;  %p6164_p3 = scmp.lt.s32.totalorder %s5672_s22, %s5672_s22 }
 0xa0c   :  { %p6160_p2 = scmp.ne.s32.totalorder %s5672_s22, %s6159_s7  ;;  %p6165_p4 = scmp.lt.s32.totalorder %s6159_s7, %s6159_s7 }
 0xa0e   :  { %p6166_p5 = por %p6165_p4, %p6164_p3 }
 0xa10   :  { %p6167_p6 = pnand %p6166_p5, %p6160_p2 }
 0xa12   :  { %6170 = shalt.err (!%p6167_p6)
}
 0xa13   :  { %5674 = dma.vmem_to_hbm [thread:$0]  %s5672_s22, 256, %s6788_s6, [#allocation15]  }
 0xa14   :  { %6185 = dma.done.wait [#allocation7], 2048  }
 0xa15   :  { %6186 = vsyncadd [#allocation7], 4294965248 }
 0xa16   :  { %6187 = dma.done.wait [#allocation15], 512  }
 0xa17   :  { %6188 = vsyncadd [#allocation15], 4294966784 }
 0xa18   :  { %5684 = vsyncpa [#allocation6], 1 }
 0xa19   :  { %5685 = vsyncpa [#allocation9], 1 }
 0xa1a   :  { %5686 = vsyncpa [#allocation12], 1 }
 0xa1b   :  { %5687 = vsyncpa [#allocation7], 1 }
 0xa1c   :  { %5688 = vsyncpa [#allocation15], 1 }

</bundles_post_ra>
